<compile_context>
chip_gen: v7x
topology: tpu7x:2x2x1
jax: 0.10.0
libtpu: 0.0.40
codegen_flags: <defaults>
</compile_context>

<pallas_src>
import functools

import jax
import jax.numpy as jnp
from jax import lax
from jax.experimental import pallas as pl
from jax.experimental.pallas import tpu as pltpu

GN_EPS = 1e-5


def _resblock_kernel(x_ref, e_ref,
                     gn1_w_ref, gn1_b_ref, c1_w_ref, c1_b_ref,
                     ew1_ref, eb1_ref, ew2_ref, eb2_ref,
                     gn2_w_ref, gn2_b_ref, c2_w_ref, c2_b_ref,
                     skip_w_ref, skip_b_ref, gmat_in_ref, gmat_out_ref,
                     o_ref,
                     pad1_ref, pad2_ref,
                     *, H, W, c_in, c_out, base):
    HW = H * W
    x = x_ref[0]                                          # (HW, c_in)

    # ---- hoisted horizontal border masks (emitted once, reused by both convs)
    col = lax.broadcasted_iota(jnp.int32, (HW, 1), 0) % W
    m_l = (col >= 1).astype(jnp.float32)                  # valid for tap ox == -1
    m_r = (col <= W - 2).astype(jnp.float32)              # valid for tap ox == +1
    masks = {}
    for c in {c_in, c_out}:
        masks[c] = (jnp.broadcast_to(m_l, (HW, c)),
                    jnp.broadcast_to(m_r, (HW, c)))

    def silu(v):
        return v * jax.nn.sigmoid(v)

    def group_norm(h, gmat, w, b):
        # Two-pass: per-group mean, then variance of the centered values.
        # (avoids E[x^2] - mean^2 catastrophic cancellation)
        s = jnp.sum(h, axis=0, keepdims=True)             # (1, C)
        mean = jnp.dot(s, gmat, preferred_element_type=jnp.float32)
        c = h - mean
        ss = jnp.sum(c * c, axis=0, keepdims=True)        # (1, C)
        var = jnp.dot(ss, gmat, preferred_element_type=jnp.float32)
        return c * lax.rsqrt(var + GN_EPS) * w + b

    def conv3x3(h, pad_ref, w_ref, bias):
        C = h.shape[1]
        m_left, m_right = masks[C]
        # Zero only the halo rows (both slices start at multiples of 8 rows);
        # the body [base, base+HW) is fully overwritten just below.
        pad_ref[0:base, :] = jnp.zeros((base, C), jnp.float32)
        pad_ref[base + HW:base + HW + base, :] = jnp.zeros((base, C), jnp.float32)
        pad_ref[base:base + HW, :] = h                    # sublane-aligned store
        # im2col: 9 shifted / border-masked windows concatenated along channels,
        # then a single (HW, 9C) x (9C, c_out) MXU matmul.
        cols = []
        for k in range(9):
            oy, ox = k // 3 - 1, k % 3 - 1
            sh = oy * W + ox
            win = pad_ref[base + sh:base + sh + HW, :]    # (HW, C) sublane shift
            if ox == -1:
                win = win * m_left
            elif ox == 1:
                win = win * m_right
            cols.append(win)
        patches = jnp.concatenate(cols, axis=1)           # (HW, 9*C)
        return jnp.dot(patches, w_ref[...],
                       preferred_element_type=jnp.float32) + bias

    # --- convblock_1: GroupNorm -> SiLU -> Conv3x3 -------------------------
    h = silu(group_norm(x, gmat_in_ref[...], gn1_w_ref[...], gn1_b_ref[...]))
    h = conv3x3(h, pad1_ref, c1_w_ref, c1_b_ref[...])

    # --- embedding projection: Linear -> SiLU -> Linear, broadcast over HW -
    e = e_ref[0]                                          # (1, EDIM)
    t = silu(jnp.dot(e, ew1_ref[...], preferred_element_type=jnp.float32)
             + eb1_ref[...])
    emb = (jnp.dot(t, ew2_ref[...], preferred_element_type=jnp.float32)
           + eb2_ref[...])
    h = h + emb                                           # (HW, c_out) + (1, c_out)

    # --- rescale: Identity (up=False, down=False) --------------------------
    # TODO(synk): up/down rescale modes (bilinear upsample / stride-2 conv) not implemented.

    # --- convblock_2: GroupNorm -> SiLU -> Conv3x3 -------------------------
    g = silu(group_norm(h, gmat_out_ref[...], gn2_w_ref[...], gn2_b_ref[...]))
    g = conv3x3(g, pad2_ref, c2_w_ref, c2_b_ref[...])

    # --- skip connection: 1x1 conv on x ------------------------------------
    skip = (jnp.dot(x, skip_w_ref[...], preferred_element_type=jnp.float32)
            + skip_b_ref[...])
    o_ref[0] = g + skip


def up_down_block(x_nchw, e, params):
    B, c_in, H, W = x_nchw.shape
    c_out = params["conv1_w"].shape[-1]
    HW = H * W
    EDIM = params["emb_w1"].shape[0]

    base = ((W + 1 + 7) // 8) * 8          # sublane-aligned halo, >= W + 1
    pad_rows = base + HW + base

    x_flat = jnp.transpose(x_nchw, (0, 2, 3, 1)).reshape(B, HW, c_in)
    e3 = e.reshape(B, 1, EDIM)

    def full(shape):
        zeros = (0,) * len(shape)
        return pl.BlockSpec(shape, lambda b: zeros)

    kernel = functools.partial(_resblock_kernel, H=H, W=W,
                               c_in=c_in, c_out=c_out, base=base)

    grid_spec = pltpu.PrefetchScalarGridSpec(
        num_scalar_prefetch=0,
        grid=(B,),
        in_specs=[
            pl.BlockSpec((1, HW, c_in), lambda b: (b, 0, 0)),
            pl.BlockSpec((1, 1, EDIM), lambda b: (b, 0, 0)),
            full(params["gn1_w"].shape), full(params["gn1_b"].shape),
            full(params["conv1_w"].shape), full(params["conv1_b"].shape),
            full(params["emb_w1"].shape), full(params["emb_b1"].shape),
            full(params["emb_w2"].shape), full(params["emb_b2"].shape),
            full(params["gn2_w"].shape), full(params["gn2_b"].shape),
            full(params["conv2_w"].shape), full(params["conv2_b"].shape),
            full(params["skip_w"].shape), full(params["skip_b"].shape),
            full(params["gmat_in"].shape), full(params["gmat_out"].shape),
        ],
        out_specs=pl.BlockSpec((1, HW, c_out), lambda b: (b, 0, 0)),
        scratch_shapes=[
            pltpu.VMEM((pad_rows, c_in), jnp.float32),
            pltpu.VMEM((pad_rows, c_out), jnp.float32),
        ],
    )

    out_flat = pl.pallas_call(
        kernel,
        out_shape=jax.ShapeDtypeStruct((B, HW, c_out), jnp.float32),
        grid_spec=grid_spec,
        compiler_params=pltpu.CompilerParams(
            # batch axis: each step writes its own output block and fully
            # re-initializes the scratch halos it reads -> safe to shard
            # across v7x's two TensorCores.
            dimension_semantics=("parallel",)),
    )(x_flat, e3,
      params["gn1_w"], params["gn1_b"], params["conv1_w"], params["conv1_b"],
      params["emb_w1"], params["emb_b1"], params["emb_w2"], params["emb_b2"],
      params["gn2_w"], params["gn2_b"], params["conv2_w"], params["conv2_b"],
      params["skip_w"], params["skip_b"],
      params["gmat_in"], params["gmat_out"])

    return jnp.transpose(out_flat.reshape(B, H, W, c_out), (0, 3, 1, 2))


# -------------------------- pure-JAX reference ------------------------------
def reference(x_nchw, e, params):
    x = jnp.transpose(x_nchw, (0, 2, 3, 1))

    def gn(h, w, b, groups):
        B, H, W, C = h.shape
        gs = C // groups
        hg = h.reshape(B, H, W, groups, gs)
        m = hg.mean(axis=(1, 2, 4), keepdims=True)
        v = jnp.mean((hg - m) ** 2, axis=(1, 2, 4), keepdims=True)
        hn = ((hg - m) * lax.rsqrt(v + GN_EPS)).reshape(B, H, W, C)
        return hn * w.reshape(1, 1, 1, C) + b.reshape(1, 1, 1, C)

    def conv3(h, w_hwio, b):
        y = lax.conv_general_dilated(h, w_hwio, (1, 1), "SAME",
                                     dimension_numbers=("NHWC", "HWIO", "NHWC"))
        return y + b.reshape(1, 1, 1, -1)

    silu = jax.nn.silu
    h = conv3(silu(gn(x, params["gn1_w"][0], params["gn1_b"][0], 8)),
              params["conv1_w_hwio"], params["conv1_b"][0])
    emb = (silu(e @ params["emb_w1"] + params["emb_b1"])
           @ params["emb_w2"] + params["emb_b2"])          # (B, c_out)
    h = h + emb[:, None, None, :]
    g = conv3(silu(gn(h, params["gn2_w"][0], params["gn2_b"][0], 8)),
              params["conv2_w_hwio"], params["conv2_b"][0])
    skip = (jnp.einsum("bhwc,co->bhwo", x, params["skip_w"])
            + params["skip_b"].reshape(1, 1, 1, -1))
    return jnp.transpose(g + skip, (0, 3, 1, 2))


def group_mat(C, groups, hw):
    gs = C // groups
    gid = jnp.arange(C) // gs
    return (gid[:, None] == gid[None, :]).astype(jnp.float32) / float(hw * gs)


if __name__ == "__main__":
    key = jax.random.PRNGKey(0)
    ks = jax.random.split(key, 16)

    B, c_in, c_out, H, W = 2, 8, 16, 16, 16
    EDIM, EHID = 16 * 8, 16          # embedding in_channels = 16*8 (per module)
    HW = H * W

    x = jax.random.normal(ks[0], (B, c_in, H, W), jnp.float32)
    e = jax.random.normal(ks[1], (B, EDIM), jnp.float32)

    def nrm(k, shape, scale):
        return scale * jax.random.normal(k, shape, jnp.float32)

    conv1_hwio = nrm(ks[2], (3, 3, c_in, c_out), 1.0 / (3.0 * c_in ** 0.5))
    conv2_hwio = nrm(ks[3], (3, 3, c_out, c_out), 1.0 / (3.0 * c_out ** 0.5))

    params = dict(
        gn1_w=1.0 + nrm(ks[4], (1, c_in), 0.1),
        gn1_b=nrm(ks[5], (1, c_in), 0.1),
        conv1_w=conv1_hwio.reshape(9 * c_in, c_out),      # im2col weight layout
        conv1_w_hwio=conv1_hwio,
        conv1_b=nrm(ks[6], (1, c_out), 0.1),
        emb_w1=nrm(ks[7], (EDIM, EHID), 1.0 / (EDIM ** 0.5)),
        emb_b1=nrm(ks[8], (1, EHID), 0.1),
        emb_w2=nrm(ks[9], (EHID, c_out), 1.0 / (EHID ** 0.5)),
        emb_b2=nrm(ks[10], (1, c_out), 0.1),
        gn2_w=1.0 + nrm(ks[11], (1, c_out), 0.1),
        gn2_b=nrm(ks[12], (1, c_out), 0.1),
        conv2_w=conv2_hwio.reshape(9 * c_out, c_out),     # im2col weight layout
        conv2_w_hwio=conv2_hwio,
        conv2_b=nrm(ks[13], (1, c_out), 0.1),
        skip_w=nrm(ks[14], (c_in, c_out), 1.0 / (c_in ** 0.5)),
        skip_b=nrm(ks[15], (1, c_out), 0.1),
        gmat_in=group_mat(c_in, 8, HW),
        gmat_out=group_mat(c_out, 8, HW),
    )

    out = up_down_block(x, e, params)
    out = jax.block_until_ready(out)

    ref = reference(x, e, params)
    err = float(jnp.max(jnp.abs(out - ref)))
    assert out.shape == (B, c_out, H, W), out.shape
    assert err < 1e-3, f"max abs err {err}"
    print("KERNEL_OK")
</pallas_src>

<mosaic_0001>
module attributes {stable_mosaic.version = 11 : i64} {
  func.func @_resblock_kernel(%arg0: i32, %arg1: memref<1x256x8xf32, #tpu.memory_space<vmem>>, %arg2: memref<1x1x128xf32, #tpu.memory_space<vmem>>, %arg3: memref<1x8xf32, #tpu.memory_space<vmem>>, %arg4: memref<1x8xf32, #tpu.memory_space<vmem>>, %arg5: memref<72x16xf32, #tpu.memory_space<vmem>>, %arg6: memref<1x16xf32, #tpu.memory_space<vmem>>, %arg7: memref<128x16xf32, #tpu.memory_space<vmem>>, %arg8: memref<1x16xf32, #tpu.memory_space<vmem>>, %arg9: memref<16x16xf32, #tpu.memory_space<vmem>>, %arg10: memref<1x16xf32, #tpu.memory_space<vmem>>, %arg11: memref<1x16xf32, #tpu.memory_space<vmem>>, %arg12: memref<1x16xf32, #tpu.memory_space<vmem>>, %arg13: memref<144x16xf32, #tpu.memory_space<vmem>>, %arg14: memref<1x16xf32, #tpu.memory_space<vmem>>, %arg15: memref<8x16xf32, #tpu.memory_space<vmem>>, %arg16: memref<1x16xf32, #tpu.memory_space<vmem>>, %arg17: memref<8x8xf32, #tpu.memory_space<vmem>>, %arg18: memref<16x16xf32, #tpu.memory_space<vmem>>, %arg19: memref<1x256x16xf32, #tpu.memory_space<vmem>>, %arg20: memref<304x8xf32, #tpu.memory_space<vmem>>, %arg21: memref<304x16xf32, #tpu.memory_space<vmem>>) attributes {dimension_semantics = [#tpu.dimension_semantics<parallel>], iteration_bounds = array<i64: 2>, scalar_prefetch = 0 : i64, scratch_operands = 2 : i64, tpu.core_type = #tpu.core_type<tc>, window_params = [{transform_indices = @transform_0, window_bounds = array<i64: 1, 256, 8>}, {transform_indices = @transform_1, window_bounds = array<i64: 1, 1, 128>}, {pipeline_mode = #tpu.pipeline_mode<synchronous>, transform_indices = @transform_2, window_bounds = array<i64: 1, 8>}, {pipeline_mode = #tpu.pipeline_mode<synchronous>, transform_indices = @transform_3, window_bounds = array<i64: 1, 8>}, {pipeline_mode = #tpu.pipeline_mode<synchronous>, transform_indices = @transform_4, window_bounds = array<i64: 72, 16>}, {pipeline_mode = #tpu.pipeline_mode<synchronous>, transform_indices = @transform_5, window_bounds = array<i64: 1, 16>}, {pipeline_mode = #tpu.pipeline_mode<synchronous>, transform_indices = @transform_6, window_bounds = array<i64: 128, 16>}, {pipeline_mode = #tpu.pipeline_mode<synchronous>, transform_indices = @transform_7, window_bounds = array<i64: 1, 16>}, {pipeline_mode = #tpu.pipeline_mode<synchronous>, transform_indices = @transform_8, window_bounds = array<i64: 16, 16>}, {pipeline_mode = #tpu.pipeline_mode<synchronous>, transform_indices = @transform_9, window_bounds = array<i64: 1, 16>}, {pipeline_mode = #tpu.pipeline_mode<synchronous>, transform_indices = @transform_10, window_bounds = array<i64: 1, 16>}, {pipeline_mode = #tpu.pipeline_mode<synchronous>, transform_indices = @transform_11, window_bounds = array<i64: 1, 16>}, {pipeline_mode = #tpu.pipeline_mode<synchronous>, transform_indices = @transform_12, window_bounds = array<i64: 144, 16>}, {pipeline_mode = #tpu.pipeline_mode<synchronous>, transform_indices = @transform_13, window_bounds = array<i64: 1, 16>}, {pipeline_mode = #tpu.pipeline_mode<synchronous>, transform_indices = @transform_14, window_bounds = array<i64: 8, 16>}, {pipeline_mode = #tpu.pipeline_mode<synchronous>, transform_indices = @transform_15, window_bounds = array<i64: 1, 16>}, {pipeline_mode = #tpu.pipeline_mode<synchronous>, transform_indices = @transform_16, window_bounds = array<i64: 8, 8>}, {pipeline_mode = #tpu.pipeline_mode<synchronous>, transform_indices = @transform_17, window_bounds = array<i64: 16, 16>}, {transform_indices = @transform_18, window_bounds = array<i64: 1, 256, 16>}]} {
    %c0 = arith.constant 0 : index
    %c0_0 = arith.constant 0 : index
    %c0_1 = arith.constant 0 : index
    %0 = vector.load %arg1[%c0, %c0_0, %c0_1] : memref<1x256x8xf32, #tpu.memory_space<vmem>>, vector<1x256x8xf32>
    %1 = vector.shape_cast %0 : vector<1x256x8xf32> to vector<256x8xf32>
    %2 = tpu.iota {dimensions = array<i32: 0>} : vector<256x1xi32>
    %c16_i32 = arith.constant 16 : i32
    %c0_i32 = arith.constant 0 : i32
    %3 = arith.cmpi eq, %c16_i32, %c0_i32 : i32
    %c1_i32 = arith.constant 1 : i32
    %4 = arith.select %3, %c1_i32, %c16_i32 : i32
    %5 = vector.broadcast %4 : i32 to vector<256x1xi32>
    %6 = arith.remsi %2, %5 : vector<256x1xi32>
    %c0_i32_2 = arith.constant 0 : i32
    %7 = vector.broadcast %c0_i32_2 : i32 to vector<256x1xi32>
    %8 = arith.cmpi ne, %6, %7 : vector<256x1xi32>
    %c0_i32_3 = arith.constant 0 : i32
    %9 = vector.broadcast %c0_i32_3 : i32 to vector<256x1xi32>
    %10 = arith.cmpi slt, %6, %9 : vector<256x1xi32>
    %c0_i32_4 = arith.constant 0 : i32
    %11 = arith.cmpi slt, %4, %c0_i32_4 : i32
    %12 = vector.broadcast %11 : i1 to vector<256x1xi1>
    %13 = vector.broadcast %12 : vector<256x1xi1> to vector<256x1xi1>
    %14 = arith.xori %10, %13 : vector<256x1xi1>
    %15 = arith.andi %14, %8 : vector<256x1xi1>
    %16 = vector.broadcast %4 : i32 to vector<256x1xi32>
    %17 = arith.addi %6, %16 : vector<256x1xi32>
    %18 = arith.select %15, %17, %6 : vector<256x1xi1>, vector<256x1xi32>
    %c1_i32_5 = arith.constant 1 : i32
    %19 = vector.broadcast %c1_i32_5 : i32 to vector<256x1xi32>
    %20 = arith.cmpi sge, %18, %19 : vector<256x1xi32>
    %21 = arith.extui %20 : vector<256x1xi1> to vector<256x1xi32>
    %22 = arith.sitofp %21 : vector<256x1xi32> to vector<256x1xf32>
    %c14_i32 = arith.constant 14 : i32
    %23 = vector.broadcast %c14_i32 : i32 to vector<256x1xi32>
    %24 = arith.cmpi sle, %18, %23 : vector<256x1xi32>
    %25 = arith.extui %24 : vector<256x1xi1> to vector<256x1xi32>
    %26 = arith.sitofp %25 : vector<256x1xi32> to vector<256x1xf32>
    %27 = vector.shape_cast %22 : vector<256x1xf32> to vector<256x1xf32>
    %28 = vector.broadcast %27 : vector<256x1xf32> to vector<256x8xf32>
    %29 = vector.shape_cast %26 : vector<256x1xf32> to vector<256x1xf32>
    %30 = vector.broadcast %29 : vector<256x1xf32> to vector<256x8xf32>
    %31 = vector.shape_cast %22 : vector<256x1xf32> to vector<256x1xf32>
    %32 = vector.broadcast %31 : vector<256x1xf32> to vector<256x16xf32>
    %33 = vector.shape_cast %26 : vector<256x1xf32> to vector<256x1xf32>
    %34 = vector.broadcast %33 : vector<256x1xf32> to vector<256x16xf32>
    %c0_6 = arith.constant 0 : index
    %c0_7 = arith.constant 0 : index
    %35 = vector.load %arg17[%c0_6, %c0_7] : memref<8x8xf32, #tpu.memory_space<vmem>>, vector<8x8xf32>
    %c0_8 = arith.constant 0 : index
    %c0_9 = arith.constant 0 : index
    %36 = vector.load %arg3[%c0_8, %c0_9] : memref<1x8xf32, #tpu.memory_space<vmem>>, vector<1x8xf32>
    %c0_10 = arith.constant 0 : index
    %c0_11 = arith.constant 0 : index
    %37 = vector.load %arg4[%c0_10, %c0_11] : memref<1x8xf32, #tpu.memory_space<vmem>>, vector<1x8xf32>
    %cst = arith.constant dense<0.000000e+00> : vector<8xf32>
    %38 = vector.multi_reduction <add>, %1, %cst [0] : vector<256x8xf32> to vector<8xf32>
    %39 = vector.shape_cast %38 : vector<8xf32> to vector<1x8xf32>
    %cst_12 = arith.constant dense<0.000000e+00> : vector<1x8xf32>
    %40 = tpu.matmul %39, %35, %cst_12 {dimension_numbers = #tpu.dot_dimension_numbers<[1], [0], [0], [1], [0, 0, 1, 1], [], []>} : vector<1x8xf32>, vector<8x8xf32>, vector<1x8xf32> -> vector<1x8xf32>
    %41 = vector.broadcast %40 : vector<1x8xf32> to vector<256x8xf32>
    %42 = arith.subf %1, %41 : vector<256x8xf32>
    %43 = arith.mulf %42, %42 : vector<256x8xf32>
    %cst_13 = arith.constant dense<0.000000e+00> : vector<8xf32>
    %44 = vector.multi_reduction <add>, %43, %cst_13 [0] : vector<256x8xf32> to vector<8xf32>
    %45 = vector.shape_cast %44 : vector<8xf32> to vector<1x8xf32>
    %cst_14 = arith.constant dense<0.000000e+00> : vector<1x8xf32>
    %46 = tpu.matmul %45, %35, %cst_14 {dimension_numbers = #tpu.dot_dimension_numbers<[1], [0], [0], [1], [0, 0, 1, 1], [], []>} : vector<1x8xf32>, vector<8x8xf32>, vector<1x8xf32> -> vector<1x8xf32>
    %cst_15 = arith.constant 9.99999974E-6 : f32
    %47 = vector.broadcast %cst_15 : f32 to vector<1x8xf32>
    %48 = arith.addf %46, %47 : vector<1x8xf32>
    %49 = math.rsqrt %48 : vector<1x8xf32>
    %50 = vector.broadcast %49 : vector<1x8xf32> to vector<256x8xf32>
    %51 = arith.mulf %42, %50 : vector<256x8xf32>
    %52 = vector.broadcast %36 : vector<1x8xf32> to vector<256x8xf32>
    %53 = arith.mulf %51, %52 : vector<256x8xf32>
    %54 = vector.broadcast %37 : vector<1x8xf32> to vector<256x8xf32>
    %55 = arith.addf %53, %54 : vector<256x8xf32>
    %56 = arith.negf %55 : vector<256x8xf32>
    %57 = math.exp %56 : vector<256x8xf32>
    %cst_16 = arith.constant 1.000000e+00 : f32
    %58 = vector.broadcast %cst_16 : f32 to vector<256x8xf32>
    %59 = arith.addf %58, %57 : vector<256x8xf32>
    %60 = arith.divf %58, %59 : vector<256x8xf32>
    %61 = arith.mulf %55, %60 : vector<256x8xf32>
    %c0_17 = arith.constant 0 : index
    %c0_18 = arith.constant 0 : index
    %62 = vector.load %arg6[%c0_17, %c0_18] : memref<1x16xf32, #tpu.memory_space<vmem>>, vector<1x16xf32>
    %cst_19 = arith.constant 0.000000e+00 : f32
    %63 = vector.broadcast %cst_19 : f32 to vector<24x8xf32>
    %c0_20 = arith.constant 0 : index
    %c0_21 = arith.constant 0 : index
    %64 = vector.load %arg20[%c0_20, %c0_21] : memref<304x8xf32, #tpu.memory_space<vmem>>, vector<24x8xf32>
    tpu.vector_store %arg20[%c0_20, %c0_21], %63 {strides = array<i32>} : memref<304x8xf32, #tpu.memory_space<vmem>>, vector<24x8xf32>,
    %cst_22 = arith.constant 0.000000e+00 : f32
    %65 = vector.broadcast %cst_22 : f32 to vector<24x8xf32>
    %c280 = arith.constant 280 : index
    %c0_23 = arith.constant 0 : index
    %66 = vector.load %arg20[%c280, %c0_23] : memref<304x8xf32, #tpu.memory_space<vmem>>, vector<24x8xf32>
    tpu.vector_store %arg20[%c280, %c0_23], %65 {strides = array<i32>} : memref<304x8xf32, #tpu.memory_space<vmem>>, vector<24x8xf32>,
    %c24 = arith.constant 24 : index
    %c0_24 = arith.constant 0 : index
    %67 = vector.load %arg20[%c24, %c0_24] : memref<304x8xf32, #tpu.memory_space<vmem>>, vector<256x8xf32>
    tpu.vector_store %arg20[%c24, %c0_24], %61 {strides = array<i32>} : memref<304x8xf32, #tpu.memory_space<vmem>>, vector<256x8xf32>,
    %c7 = arith.constant 7 : index
    %c0_25 = arith.constant 0 : index
    %68 = vector.load %arg20[%c7, %c0_25] : memref<304x8xf32, #tpu.memory_space<vmem>>, vector<256x8xf32>
    %69 = arith.mulf %68, %28 : vector<256x8xf32>
    %c8 = arith.constant 8 : index
    %c0_26 = arith.constant 0 : index
    %70 = vector.load %arg20[%c8, %c0_26] : memref<304x8xf32, #tpu.memory_space<vmem>>, vector<256x8xf32>
    %c9 = arith.constant 9 : index
    %c0_27 = arith.constant 0 : index
    %71 = vector.load %arg20[%c9, %c0_27] : memref<304x8xf32, #tpu.memory_space<vmem>>, vector<256x8xf32>
    %72 = arith.mulf %71, %30 : vector<256x8xf32>
    %c23 = arith.constant 23 : index
    %c0_28 = arith.constant 0 : index
    %73 = vector.load %arg20[%c23, %c0_28] : memref<304x8xf32, #tpu.memory_space<vmem>>, vector<256x8xf32>
    %74 = arith.mulf %73, %28 : vector<256x8xf32>
    %c24_29 = arith.constant 24 : index
    %c0_30 = arith.constant 0 : index
    %75 = vector.load %arg20[%c24_29, %c0_30] : memref<304x8xf32, #tpu.memory_space<vmem>>, vector<256x8xf32>
    %c25 = arith.constant 25 : index
    %c0_31 = arith.constant 0 : index
    %76 = vector.load %arg20[%c25, %c0_31] : memref<304x8xf32, #tpu.memory_space<vmem>>, vector<256x8xf32>
    %77 = arith.mulf %76, %30 : vector<256x8xf32>
    %c39 = arith.constant 39 : index
    %c0_32 = arith.constant 0 : index
    %78 = vector.load %arg20[%c39, %c0_32] : memref<304x8xf32, #tpu.memory_space<vmem>>, vector<256x8xf32>
    %79 = arith.mulf %78, %28 : vector<256x8xf32>
    %c40 = arith.constant 40 : index
    %c0_33 = arith.constant 0 : index
    %80 = vector.load %arg20[%c40, %c0_33] : memref<304x8xf32, #tpu.memory_space<vmem>>, vector<256x8xf32>
    %c41 = arith.constant 41 : index
    %c0_34 = arith.constant 0 : index
    %81 = vector.load %arg20[%c41, %c0_34] : memref<304x8xf32, #tpu.memory_space<vmem>>, vector<256x8xf32>
    %82 = arith.mulf %81, %30 : vector<256x8xf32>
    %83 = tpu.concatenate %69, %70, %72, %74, %75, %77, %79, %80, %82 in 1 : vector<256x8xf32>, vector<256x8xf32>, vector<256x8xf32>, vector<256x8xf32>, vector<256x8xf32>, vector<256x8xf32>, vector<256x8xf32>, vector<256x8xf32>, vector<256x8xf32> -> vector<256x72xf32>
    %c0_35 = arith.constant 0 : index
    %c0_36 = arith.constant 0 : index
    %84 = vector.load %arg5[%c0_35, %c0_36] : memref<72x16xf32, #tpu.memory_space<vmem>>, vector<72x16xf32>
    %cst_37 = arith.constant dense<0.000000e+00> : vector<256x16xf32>
    %85 = tpu.matmul %83, %84, %cst_37 {dimension_numbers = #tpu.dot_dimension_numbers<[1], [0], [0], [1], [0, 0, 1, 1], [], []>} : vector<256x72xf32>, vector<72x16xf32>, vector<256x16xf32> -> vector<256x16xf32>
    %86 = vector.broadcast %62 : vector<1x16xf32> to vector<256x16xf32>
    %87 = arith.addf %85, %86 : vector<256x16xf32>
    %c0_38 = arith.constant 0 : index
    %c0_39 = arith.constant 0 : index
    %c0_40 = arith.constant 0 : index
    %88 = vector.load %arg2[%c0_38, %c0_39, %c0_40] : memref<1x1x128xf32, #tpu.memory_space<vmem>>, vector<1x1x128xf32>
    %89 = vector.shape_cast %88 : vector<1x1x128xf32> to vector<1x128xf32>
    %c0_41 = arith.constant 0 : index
    %c0_42 = arith.constant 0 : index
    %90 = vector.load %arg7[%c0_41, %c0_42] : memref<128x16xf32, #tpu.memory_space<vmem>>, vector<128x16xf32>
    %cst_43 = arith.constant dense<0.000000e+00> : vector<1x16xf32>
    %91 = tpu.matmul %89, %90, %cst_43 {dimension_numbers = #tpu.dot_dimension_numbers<[1], [0], [0], [1], [0, 0, 1, 1], [], []>} : vector<1x128xf32>, vector<128x16xf32>, vector<1x16xf32> -> vector<1x16xf32>
    %c0_44 = arith.constant 0 : index
    %c0_45 = arith.constant 0 : index
    %92 = vector.load %arg8[%c0_44, %c0_45] : memref<1x16xf32, #tpu.memory_space<vmem>>, vector<1x16xf32>
    %93 = arith.addf %91, %92 : vector<1x16xf32>
    %94 = arith.negf %93 : vector<1x16xf32>
    %95 = math.exp %94 : vector<1x16xf32>
    %cst_46 = arith.constant 1.000000e+00 : f32
    %96 = vector.broadcast %cst_46 : f32 to vector<1x16xf32>
    %97 = arith.addf %96, %95 : vector<1x16xf32>
    %98 = arith.divf %96, %97 : vector<1x16xf32>
    %99 = arith.mulf %93, %98 : vector<1x16xf32>
    %c0_47 = arith.constant 0 : index
    %c0_48 = arith.constant 0 : index
    %100 = vector.load %arg9[%c0_47, %c0_48] : memref<16x16xf32, #tpu.memory_space<vmem>>, vector<16x16xf32>
    %cst_49 = arith.constant dense<0.000000e+00> : vector<1x16xf32>
    %101 = tpu.matmul %99, %100, %cst_49 {dimension_numbers = #tpu.dot_dimension_numbers<[1], [0], [0], [1], [0, 0, 1, 1], [], []>} : vector<1x16xf32>, vector<16x16xf32>, vector<1x16xf32> -> vector<1x16xf32>
    %c0_50 = arith.constant 0 : index
    %c0_51 = arith.constant 0 : index
    %102 = vector.load %arg10[%c0_50, %c0_51] : memref<1x16xf32, #tpu.memory_space<vmem>>, vector<1x16xf32>
    %103 = arith.addf %101, %102 : vector<1x16xf32>
    %104 = vector.broadcast %103 : vector<1x16xf32> to vector<256x16xf32>
    %105 = arith.addf %87, %104 : vector<256x16xf32>
    %c0_52 = arith.constant 0 : index
    %c0_53 = arith.constant 0 : index
    %106 = vector.load %arg18[%c0_52, %c0_53] : memref<16x16xf32, #tpu.memory_space<vmem>>, vector<16x16xf32>
    %c0_54 = arith.constant 0 : index
    %c0_55 = arith.constant 0 : index
    %107 = vector.load %arg11[%c0_54, %c0_55] : memref<1x16xf32, #tpu.memory_space<vmem>>, vector<1x16xf32>
    %c0_56 = arith.constant 0 : index
    %c0_57 = arith.constant 0 : index
    %108 = vector.load %arg12[%c0_56, %c0_57] : memref<1x16xf32, #tpu.memory_space<vmem>>, vector<1x16xf32>
    %cst_58 = arith.constant dense<0.000000e+00> : vector<16xf32>
    %109 = vector.multi_reduction <add>, %105, %cst_58 [0] : vector<256x16xf32> to vector<16xf32>
    %110 = vector.shape_cast %109 : vector<16xf32> to vector<1x16xf32>
    %cst_59 = arith.constant dense<0.000000e+00> : vector<1x16xf32>
    %111 = tpu.matmul %110, %106, %cst_59 {dimension_numbers = #tpu.dot_dimension_numbers<[1], [0], [0], [1], [0, 0, 1, 1], [], []>} : vector<1x16xf32>, vector<16x16xf32>, vector<1x16xf32> -> vector<1x16xf32>
    %112 = vector.broadcast %111 : vector<1x16xf32> to vector<256x16xf32>
    %113 = arith.subf %105, %112 : vector<256x16xf32>
    %114 = arith.mulf %113, %113 : vector<256x16xf32>
    %cst_60 = arith.constant dense<0.000000e+00> : vector<16xf32>
    %115 = vector.multi_reduction <add>, %114, %cst_60 [0] : vector<256x16xf32> to vector<16xf32>
    %116 = vector.shape_cast %115 : vector<16xf32> to vector<1x16xf32>
    %cst_61 = arith.constant dense<0.000000e+00> : vector<1x16xf32>
    %117 = tpu.matmul %116, %106, %cst_61 {dimension_numbers = #tpu.dot_dimension_numbers<[1], [0], [0], [1], [0, 0, 1, 1], [], []>} : vector<1x16xf32>, vector<16x16xf32>, vector<1x16xf32> -> vector<1x16xf32>
    %cst_62 = arith.constant 9.99999974E-6 : f32
    %118 = vector.broadcast %cst_62 : f32 to vector<1x16xf32>
    %119 = arith.addf %117, %118 : vector<1x16xf32>
    %120 = math.rsqrt %119 : vector<1x16xf32>
    %121 = vector.broadcast %120 : vector<1x16xf32> to vector<256x16xf32>
    %122 = arith.mulf %113, %121 : vector<256x16xf32>
    %123 = vector.broadcast %107 : vector<1x16xf32> to vector<256x16xf32>
    %124 = arith.mulf %122, %123 : vector<256x16xf32>
    %125 = vector.broadcast %108 : vector<1x16xf32> to vector<256x16xf32>
    %126 = arith.addf %124, %125 : vector<256x16xf32>
    %127 = arith.negf %126 : vector<256x16xf32>
    %128 = math.exp %127 : vector<256x16xf32>
    %cst_63 = arith.constant 1.000000e+00 : f32
    %129 = vector.broadcast %cst_63 : f32 to vector<256x16xf32>
    %130 = arith.addf %129, %128 : vector<256x16xf32>
    %131 = arith.divf %129, %130 : vector<256x16xf32>
    %132 = arith.mulf %126, %131 : vector<256x16xf32>
    %c0_64 = arith.constant 0 : index
    %c0_65 = arith.constant 0 : index
    %133 = vector.load %arg14[%c0_64, %c0_65] : memref<1x16xf32, #tpu.memory_space<vmem>>, vector<1x16xf32>
    %cst_66 = arith.constant 0.000000e+00 : f32
    %134 = vector.broadcast %cst_66 : f32 to vector<24x16xf32>
    %c0_67 = arith.constant 0 : index
    %c0_68 = arith.constant 0 : index
    %135 = vector.load %arg21[%c0_67, %c0_68] : memref<304x16xf32, #tpu.memory_space<vmem>>, vector<24x16xf32>
    tpu.vector_store %arg21[%c0_67, %c0_68], %134 {strides = array<i32>} : memref<304x16xf32, #tpu.memory_space<vmem>>, vector<24x16xf32>,
    %cst_69 = arith.constant 0.000000e+00 : f32
    %136 = vector.broadcast %cst_69 : f32 to vector<24x16xf32>
    %c280_70 = arith.constant 280 : index
    %c0_71 = arith.constant 0 : index
    %137 = vector.load %arg21[%c280_70, %c0_71] : memref<304x16xf32, #tpu.memory_space<vmem>>, vector<24x16xf32>
    tpu.vector_store %arg21[%c280_70, %c0_71], %136 {strides = array<i32>} : memref<304x16xf32, #tpu.memory_space<vmem>>, vector<24x16xf32>,
    %c24_72 = arith.constant 24 : index
    %c0_73 = arith.constant 0 : index
    %138 = vector.load %arg21[%c24_72, %c0_73] : memref<304x16xf32, #tpu.memory_space<vmem>>, vector<256x16xf32>
    tpu.vector_store %arg21[%c24_72, %c0_73], %132 {strides = array<i32>} : memref<304x16xf32, #tpu.memory_space<vmem>>, vector<256x16xf32>,
    %c7_74 = arith.constant 7 : index
    %c0_75 = arith.constant 0 : index
    %139 = vector.load %arg21[%c7_74, %c0_75] : memref<304x16xf32, #tpu.memory_space<vmem>>, vector<256x16xf32>
    %140 = arith.mulf %139, %32 : vector<256x16xf32>
    %c8_76 = arith.constant 8 : index
    %c0_77 = arith.constant 0 : index
    %141 = vector.load %arg21[%c8_76, %c0_77] : memref<304x16xf32, #tpu.memory_space<vmem>>, vector<256x16xf32>
    %c9_78 = arith.constant 9 : index
    %c0_79 = arith.constant 0 : index
    %142 = vector.load %arg21[%c9_78, %c0_79] : memref<304x16xf32, #tpu.memory_space<vmem>>, vector<256x16xf32>
    %143 = arith.mulf %142, %34 : vector<256x16xf32>
    %c23_80 = arith.constant 23 : index
    %c0_81 = arith.constant 0 : index
    %144 = vector.load %arg21[%c23_80, %c0_81] : memref<304x16xf32, #tpu.memory_space<vmem>>, vector<256x16xf32>
    %145 = arith.mulf %144, %32 : vector<256x16xf32>
    %c24_82 = arith.constant 24 : index
    %c0_83 = arith.constant 0 : index
    %146 = vector.load %arg21[%c24_82, %c0_83] : memref<304x16xf32, #tpu.memory_space<vmem>>, vector<256x16xf32>
    %c25_84 = arith.constant 25 : index
    %c0_85 = arith.constant 0 : index
    %147 = vector.load %arg21[%c25_84, %c0_85] : memref<304x16xf32, #tpu.memory_space<vmem>>, vector<256x16xf32>
    %148 = arith.mulf %147, %34 : vector<256x16xf32>
    %c39_86 = arith.constant 39 : index
    %c0_87 = arith.constant 0 : index
    %149 = vector.load %arg21[%c39_86, %c0_87] : memref<304x16xf32, #tpu.memory_space<vmem>>, vector<256x16xf32>
    %150 = arith.mulf %149, %32 : vector<256x16xf32>
    %c40_88 = arith.constant 40 : index
    %c0_89 = arith.constant 0 : index
    %151 = vector.load %arg21[%c40_88, %c0_89] : memref<304x16xf32, #tpu.memory_space<vmem>>, vector<256x16xf32>
    %c41_90 = arith.constant 41 : index
    %c0_91 = arith.constant 0 : index
    %152 = vector.load %arg21[%c41_90, %c0_91] : memref<304x16xf32, #tpu.memory_space<vmem>>, vector<256x16xf32>
    %153 = arith.mulf %152, %34 : vector<256x16xf32>
    %154 = tpu.concatenate %140, %141, %143, %145, %146, %148, %150, %151, %153 in 1 : vector<256x16xf32>, vector<256x16xf32>, vector<256x16xf32>, vector<256x16xf32>, vector<256x16xf32>, vector<256x16xf32>, vector<256x16xf32>, vector<256x16xf32>, vector<256x16xf32> -> vector<256x144xf32>
    %c0_92 = arith.constant 0 : index
    %c0_93 = arith.constant 0 : index
    %155 = vector.load %arg13[%c0_92, %c0_93] : memref<144x16xf32, #tpu.memory_space<vmem>>, vector<144x16xf32>
    %cst_94 = arith.constant dense<0.000000e+00> : vector<256x16xf32>
    %156 = tpu.matmul %154, %155, %cst_94 {dimension_numbers = #tpu.dot_dimension_numbers<[1], [0], [0], [1], [0, 0, 1, 1], [], []>} : vector<256x144xf32>, vector<144x16xf32>, vector<256x16xf32> -> vector<256x16xf32>
    %157 = vector.broadcast %133 : vector<1x16xf32> to vector<256x16xf32>
    %158 = arith.addf %156, %157 : vector<256x16xf32>
    %c0_95 = arith.constant 0 : index
    %c0_96 = arith.constant 0 : index
    %159 = vector.load %arg15[%c0_95, %c0_96] : memref<8x16xf32, #tpu.memory_space<vmem>>, vector<8x16xf32>
    %cst_97 = arith.constant dense<0.000000e+00> : vector<256x16xf32>
    %160 = tpu.matmul %1, %159, %cst_97 {dimension_numbers = #tpu.dot_dimension_numbers<[1], [0], [0], [1], [0, 0, 1, 1], [], []>} : vector<256x8xf32>, vector<8x16xf32>, vector<256x16xf32> -> vector<256x16xf32>
    %c0_98 = arith.constant 0 : index
    %c0_99 = arith.constant 0 : index
    %161 = vector.load %arg16[%c0_98, %c0_99] : memref<1x16xf32, #tpu.memory_space<vmem>>, vector<1x16xf32>
    %162 = vector.broadcast %161 : vector<1x16xf32> to vector<256x16xf32>
    %163 = arith.addf %160, %162 : vector<256x16xf32>
    %164 = arith.addf %158, %163 : vector<256x16xf32>
    %c0_100 = arith.constant 0 : index
    %c0_101 = arith.constant 0 : index
    %c0_102 = arith.constant 0 : index
    %165 = vector.load %arg19[%c0_100, %c0_101, %c0_102] : memref<1x256x16xf32, #tpu.memory_space<vmem>>, vector<1x256x16xf32>
    %166 = vector.shape_cast %165 : vector<1x256x16xf32> to vector<256x16xf32>
    %167 = vector.shape_cast %164 : vector<256x16xf32> to vector<1x256x16xf32>
    tpu.vector_store %arg19[%c0_100, %c0_101, %c0_102], %167 {strides = array<i32>} : memref<1x256x16xf32, #tpu.memory_space<vmem>>, vector<1x256x16xf32>,
    return
  }
  func.func @transform_0(%arg0: i32) -> (i32, i32, i32) {
    %c0_i32 = arith.constant 0 : i32
    %c0_i32_0 = arith.constant 0 : i32
    %c0_i32_1 = arith.constant 0 : i32
    return %arg0, %c0_i32, %c0_i32_0 : i32, i32, i32
  }
  func.func @transform_1(%arg0: i32) -> (i32, i32, i32) {
    %c0_i32 = arith.constant 0 : i32
    %c0_i32_0 = arith.constant 0 : i32
    %c0_i32_1 = arith.constant 0 : i32
    return %arg0, %c0_i32, %c0_i32_0 : i32, i32, i32
  }
  func.func @transform_2(%arg0: i32) -> (i32, i32) {
    %c0_i32 = arith.constant 0 : i32
    %c0_i32_0 = arith.constant 0 : i32
    %c0_i32_1 = arith.constant 0 : i32
    return %c0_i32, %c0_i32_0 : i32, i32
  }
  func.func @transform_3(%arg0: i32) -> (i32, i32) {
    %c0_i32 = arith.constant 0 : i32
    %c0_i32_0 = arith.constant 0 : i32
    %c0_i32_1 = arith.constant 0 : i32
    return %c0_i32, %c0_i32_0 : i32, i32
  }
  func.func @transform_4(%arg0: i32) -> (i32, i32) {
    %c0_i32 = arith.constant 0 : i32
    %c0_i32_0 = arith.constant 0 : i32
    %c0_i32_1 = arith.constant 0 : i32
    return %c0_i32, %c0_i32_0 : i32, i32
  }
  func.func @transform_5(%arg0: i32) -> (i32, i32) {
    %c0_i32 = arith.constant 0 : i32
    %c0_i32_0 = arith.constant 0 : i32
    %c0_i32_1 = arith.constant 0 : i32
    return %c0_i32, %c0_i32_0 : i32, i32
  }
  func.func @transform_6(%arg0: i32) -> (i32, i32) {
    %c0_i32 = arith.constant 0 : i32
    %c0_i32_0 = arith.constant 0 : i32
    %c0_i32_1 = arith.constant 0 : i32
    return %c0_i32, %c0_i32_0 : i32, i32
  }
  func.func @transform_7(%arg0: i32) -> (i32, i32) {
    %c0_i32 = arith.constant 0 : i32
    %c0_i32_0 = arith.constant 0 : i32
    %c0_i32_1 = arith.constant 0 : i32
    return %c0_i32, %c0_i32_0 : i32, i32
  }
  func.func @transform_8(%arg0: i32) -> (i32, i32) {
    %c0_i32 = arith.constant 0 : i32
    %c0_i32_0 = arith.constant 0 : i32
    %c0_i32_1 = arith.constant 0 : i32
    return %c0_i32, %c0_i32_0 : i32, i32
  }
  func.func @transform_9(%arg0: i32) -> (i32, i32) {
    %c0_i32 = arith.constant 0 : i32
    %c0_i32_0 = arith.constant 0 : i32
    %c0_i32_1 = arith.constant 0 : i32
    return %c0_i32, %c0_i32_0 : i32, i32
  }
  func.func @transform_10(%arg0: i32) -> (i32, i32) {
    %c0_i32 = arith.constant 0 : i32
    %c0_i32_0 = arith.constant 0 : i32
    %c0_i32_1 = arith.constant 0 : i32
    return %c0_i32, %c0_i32_0 : i32, i32
  }
  func.func @transform_11(%arg0: i32) -> (i32, i32) {
    %c0_i32 = arith.constant 0 : i32
    %c0_i32_0 = arith.constant 0 : i32
    %c0_i32_1 = arith.constant 0 : i32
    return %c0_i32, %c0_i32_0 : i32, i32
  }
  func.func @transform_12(%arg0: i32) -> (i32, i32) {
    %c0_i32 = arith.constant 0 : i32
    %c0_i32_0 = arith.constant 0 : i32
    %c0_i32_1 = arith.constant 0 : i32
    return %c0_i32, %c0_i32_0 : i32, i32
  }
  func.func @transform_13(%arg0: i32) -> (i32, i32) {
    %c0_i32 = arith.constant 0 : i32
    %c0_i32_0 = arith.constant 0 : i32
    %c0_i32_1 = arith.constant 0 : i32
    return %c0_i32, %c0_i32_0 : i32, i32
  }
  func.func @transform_14(%arg0: i32) -> (i32, i32) {
    %c0_i32 = arith.constant 0 : i32
    %c0_i32_0 = arith.constant 0 : i32
    %c0_i32_1 = arith.constant 0 : i32
    return %c0_i32, %c0_i32_0 : i32, i32
  }
  func.func @transform_15(%arg0: i32) -> (i32, i32) {
    %c0_i32 = arith.constant 0 : i32
    %c0_i32_0 = arith.constant 0 : i32
    %c0_i32_1 = arith.constant 0 : i32
    return %c0_i32, %c0_i32_0 : i32, i32
  }
  func.func @transform_16(%arg0: i32) -> (i32, i32) {
    %c0_i32 = arith.constant 0 : i32
    %c0_i32_0 = arith.constant 0 : i32
    %c0_i32_1 = arith.constant 0 : i32
    return %c0_i32, %c0_i32_0 : i32, i32
  }
  func.func @transform_17(%arg0: i32) -> (i32, i32) {
    %c0_i32 = arith.constant 0 : i32
    %c0_i32_0 = arith.constant 0 : i32
    %c0_i32_1 = arith.constant 0 : i32
    return %c0_i32, %c0_i32_0 : i32, i32
  }
  func.func @transform_18(%arg0: i32) -> (i32, i32, i32) {
    %c0_i32 = arith.constant 0 : i32
    %c0_i32_0 = arith.constant 0 : i32
    %c0_i32_1 = arith.constant 0 : i32
    return %arg0, %c0_i32, %c0_i32_0 : i32, i32, i32
  }
}

</mosaic_0001>

<bundles_post_ra>
// kernel: tpu_custom_call.1
= control target key start
LH: loop header
LB: loop body
LE: loop exit
PB: predicated region body
PF: predicated region fallthrough
CT: control target
= control target key end

     0   :  { %s8527_s27 = smov 0   ;;  %s12864_s0 = inlined_call_operand.vmem [shape: f32[2,256,8], index: 0, kind: input, shape index: {}]   ;;  %s12865_s1 = inlined_call_operand.vmem [shape: f32[2,1,128], index: 1, kind: input, shape index: {}]   ;;  %s12866_s2 = inlined_call_operand.vmem [shape: f32[1,8], index: 2, kind: input, shape index: {}]   ;;  %s12867_s3 = inlined_call_operand.vmem [shape: f32[1,8], index: 3, kind: input, shape index: {}]   ;;  %s12868_s4 = inlined_call_operand.vmem [shape: f32[72,16], index: 4, kind: input, shape index: {}]   ;;  %s12869_s5 = inlined_call_operand.vmem [shape: f32[1,16], index: 5, kind: input, shape index: {}]   ;;  %s12870_s6 = inlined_call_operand.vmem [shape: f32[128,16], index: 6, kind: input, shape index: {}]   ;;  %s12871_s7 = inlined_call_operand.vmem [shape: f32[1,16], index: 7, kind: input, shape index: {}]   ;;  %s12872_s8 = inlined_call_operand.vmem [shape: f32[16,16], index: 8, kind: input, shape index: {}]   ;;  %s12873_s9 = inlined_call_operand.vmem [shape: f32[1,16], index: 9, kind: input, shape index: {}]   ;;  %s12874_s10 = inlined_call_operand.vmem [shape: f32[1,16], index: 10, kind: input, shape index: {}]   ;;  %s12875_s11 = inlined_call_operand.vmem [shape: f32[1,16], index: 11, kind: input, shape index: {}]   ;;  %s12876_s12 = inlined_call_operand.vmem [shape: f32[144,16], index: 12, kind: input, shape index: {}]   ;;  %s12877_s13 = inlined_call_operand.vmem [shape: f32[1,16], index: 13, kind: input, shape index: {}]   ;;  %s12878_s14 = inlined_call_operand.vmem [shape: f32[8,16], index: 14, kind: input, shape index: {}]   ;;  %s12879_s15 = inlined_call_operand.vmem [shape: f32[1,16], index: 15, kind: input, shape index: {}]   ;;  %s12880_s16 = inlined_call_operand.vmem [shape: f32[8,8], index: 16, kind: input, shape index: {}]   ;;  %s12881_s17 = inlined_call_operand.vmem [shape: f32[16,16], index: 17, kind: input, shape index: {}]   ;;  %s12882_s18 = inlined_call_operand.vmem [shape: f32[2,256,16], index: 18, kind: output, shape index: {}]  }
   0x1   :  { %13035 = sst [smem:[#allocation195_spill]] %s12864_s0 }
   0x2   :  { %13036 = sst [smem:[#allocation196_spill]] %s12865_s1 }
   0x3   :  { %13037 = sst [smem:[#allocation197_spill]] %s12866_s2 }
   0x4 LB: > { %s6931_s28 = sadd.s32 4294967295, %s8416_s27   ;;  %p6935_p0 = scmp.ge.s32.totalorder %s8416_s27, 1  ;;  %s8416_s27 = sphi %s8527_s27, %s28_s27  }
   0x5   : > { %p520_p1 = scmp.lt.s32.totalorder %s8416_s27, 3 }
   0x7   : > { %p521_p2 = pnand %p6935_p0, %p520_p1 }
   0x9   : > { %524 = sbr.rel (%p521_p2) target bundleno = 2979 (0xba3), region = 92 }
  0x10   : > { %v1231_v0 = vld [vmem:[%s12880_s16] sm:$0xff]  ;;  %p577_p3 = scmp.lt.s32.totalorder %s6931_s28, 1  ;;  %vm1234_vm0 = vcmask 64512   ;;  %v12883_v1 = vmov 0.0   ;;  %vm8419_vm1 = vmmov 0   ;;  %s13038_s20 = sld [smem:[#allocation195_spill]] }
  0x11   : > { %7253 = vmatprep.subr.mxu0 %v12883_v1  ;;  %7255 = vmatprep.mubr.msk.f32.mxu0 %vm8419_vm1, %v12883_v1  ;;  %1925 = vst.msk [vmem:[#allocation2] sm:$0xff] %vm1234_vm0, %v12883_v1  ;;  %1926 = vst.msk [vmem:[#allocation2 + $0x8] sm:$0xff] %vm1234_vm0, %v12883_v1  ;;  %s8420_s22 = smov 16   ;;  %s8421_s2 = smov 8   ;;  %vm3259_vm2 = vcmask 130048  }
  0x12   : > { %1927 = vst.msk [vmem:[#allocation2 + $0x10] sm:$0xff] %vm1234_vm0, %v12883_v1  ;;  %1928 = vst.msk [vmem:[#allocation2 + $0x118] sm:$0xff] %vm1234_vm0, %v12883_v1  ;;  %7254 = vmatpush3.msra.mxu0 %v1231_v0  ;;  %s13565_s28 = smov (!%p577_p3, %s6931_s28), 1  ;;  %7258 = vmatprep.subr.mxu1 %v12883_v1  ;;  %s8422_s23 = smov 48  }
  0x13   : > { %1929 = vst.msk [vmem:[#allocation2 + $0x120] sm:$0xff] %vm1234_vm0, %v12883_v1  ;;  %1930 = vst.msk [vmem:[#allocation2 + $0x128] sm:$0xff] %vm1234_vm0, %v12883_v1  ;;  %7259 = vmatpush3.msra.mxu1 %v1231_v0  ;;  %7260 = vmatprep.mubr.msk.f32.mxu1 %vm8419_vm1, %v12883_v1  ;;  %s12887_s0 = sshll.u32 %s13565_s28, 8  ;;  %s8423_s24 = smov 56  }
  0x14   : > { %s13040_s29 = sld [smem:[#allocation197_spill]]  ;;  %4728 = vst.msk [vmem:[#allocation3] sm:$0xff] %vm3259_vm2, %v12883_v1  ;;  %4729 = vst.msk [vmem:[#allocation3 + $0x8] sm:$0xff] %vm3259_vm2, %v12883_v1  ;;  %s12964_s1 = smov 32  }
  0x15   : > { %4730 = vst.msk [vmem:[#allocation3 + $0x10] sm:$0xff] %vm3259_vm2, %v12883_v1  ;;  %4731 = vst.msk [vmem:[#allocation3 + $0x118] sm:$0xff] %vm3259_vm2, %v12883_v1  ;;  %s8426_s25 = smov 40   ;;  %s8427_s26 = smov 64  }
  0x16   : > { %s8564_s21 = scalar_lea.vmem %s13038_s20, %s12887_s0  ;;  %4732 = vst.msk [vmem:[#allocation3 + $0x120] sm:$0xff] %vm3259_vm2, %v12883_v1  ;;  %4733 = vst.msk [vmem:[#allocation3 + $0x128] sm:$0xff] %vm3259_vm2, %v12883_v1  ;;  %s8425_s20 = smov 24  }
  0x17   : > { %v8567_v2 = vld [vmem:[%s8564_s21] sm:$0xff]  ;;  %v8570_v3 = vld [vmem:[%s8564_s21 + $0x8] sm:$0xff]  ;;  %v8573_v4 = vld [vmem:[%s8564_s21 + $0x10] sm:$0xff]  ;;  %s8431_s19 = smov 96  }
  0x18   : > { %v8576_v5 = vld [vmem:[%s8564_s21 + $0x18] sm:$0xff]  ;;  %v1235_v6 = vsel %vm1234_vm0, %v8567_v2, 0.0  ;;  %v1236_v7 = vsel %vm1234_vm0, %v8570_v3, 0.0  ;;  %v1238_v8 = vsel %vm1234_vm0, %v8573_v4, 0.0  ;;  %v8585_v9 = vld [vmem:[%s8564_s21 + $0x20] sm:$0xff]  ;;  %v8590_v12 = vld [vmem:[%s8564_s21 + $0x28] sm:$0xff] }
  0x19   : > { %v1237_v10 = vadd.f32 %v1236_v7, %v1235_v6  ;;  %v1240_v11 = vsel %vm1234_vm0, %v8576_v5, 0.0  ;;  %v1242_v14 = vsel %vm1234_vm0, %v8585_v9, 0.0  ;;  %v8595_v15 = vld [vmem:[%s8564_s21 + $0x30] sm:$0xff]  ;;  %v1244_v17 = vsel %vm1234_vm0, %v8590_v12, 0.0  ;;  %v8600_v18 = vld [vmem:[%s8564_s21 + $0x38] sm:$0xff]  ;;  %v8605_v21 = vld [vmem:[%s8564_s21 + $0x40] sm:$0xff] }
  0x1a   : > { %v1246_v20 = vsel %vm1234_vm0, %v8595_v15, 0.0  ;;  %v1248_v23 = vsel %vm1234_vm0, %v8600_v18, 0.0  ;;  %v8610_v24 = vld [vmem:[%s8564_s21 + $0x48] sm:$0xff]  ;;  %v1250_v26 = vsel %vm1234_vm0, %v8605_v21, 0.0  ;;  %v8615_v27 = vld [vmem:[%s8564_s21 + $0x50] sm:$0xff]  ;;  %v8620_v30 = vld [vmem:[%s8564_s21 + $0x58] sm:$0xff] }
  0x1b   : > { %v1239_v13 = vadd.f32 %v1238_v8, %v1237_v10  ;;  %v1252_v29 = vsel %vm1234_vm0, %v8610_v24, 0.0  ;;  %v1254_v32 = vsel %vm1234_vm0, %v8615_v27, 0.0  ;;  %v8625_v33 = vld [vmem:[%s8564_s21 + $0x60] sm:$0xff]  ;;  %v1256_v35 = vsel %vm1234_vm0, %v8620_v30, 0.0  ;;  %v8630_v36 = vld [vmem:[%s8564_s21 + $0x68] sm:$0xff]  ;;  %v8635_v39 = vld [vmem:[%s8564_s21 + $0x70] sm:$0xff] }
  0x1c   : > { %v1258_v38 = vsel %vm1234_vm0, %v8625_v33, 0.0  ;;  %v1260_v41 = vsel %vm1234_vm0, %v8630_v36, 0.0  ;;  %v8640_v42 = vld [vmem:[%s8564_s21 + $0x78] sm:$0xff]  ;;  %v1262_v44 = vsel %vm1234_vm0, %v8635_v39, 0.0  ;;  %v8645_v45 = vld [vmem:[%s8564_s21 + $0x80] sm:$0xff]  ;;  %v8650_v48 = vld [vmem:[%s8564_s21 + $0x88] sm:$0xff] }
  0x1d   : > { %v1241_v16 = vadd.f32 %v1240_v11, %v1239_v13  ;;  %v1264_v47 = vsel %vm1234_vm0, %v8640_v42, 0.0  ;;  %v1266_v50 = vsel %vm1234_vm0, %v8645_v45, 0.0  ;;  %v8655_v51 = vld [vmem:[%s8564_s21 + $0x90] sm:$0xff]  ;;  %v1268_v53 = vsel %vm1234_vm0, %v8650_v48, 0.0  ;;  %v8660_v54 = vld [vmem:[%s8564_s21 + $0x98] sm:$0xff]  ;;  %v8665_v57 = vld [vmem:[%s8564_s21 + $0xa0] sm:$0xff] }
  0x1e   : > { %v1270_v56 = vsel %vm1234_vm0, %v8655_v51, 0.0  ;;  %v1272_v59 = vsel %vm1234_vm0, %v8660_v54, 0.0  ;;  %v8670_v60 = vld [vmem:[%s8564_s21 + $0xa8] sm:$0xff]  ;;  %v1274_v62 = vsel %vm1234_vm0, %v8665_v57, 0.0  ;;  %v8675_v63 = vld [vmem:[%s8564_s21 + $0xb0] sm:$0xff]  ;;  %v8680_v7 = vld [vmem:[%s8564_s21 + $0xb8] sm:$0xff] }
  0x1f   : > { %v1243_v19 = vadd.f32 %v1242_v14, %v1241_v16  ;;  %v1276_v6 = vsel %vm1234_vm0, %v8670_v60, 0.0  ;;  %v1278_v10 = vsel %vm1234_vm0, %v8675_v63, 0.0  ;;  %v8685_v11 = vld [vmem:[%s8564_s21 + $0xc0] sm:$0xff]  ;;  %v1280_v14 = vsel %vm1234_vm0, %v8680_v7, 0.0  ;;  %v8690_v16 = vld [vmem:[%s8564_s21 + $0xc8] sm:$0xff] }
  0x21   : > { %v1245_v22 = vadd.f32 %v1244_v17, %v1243_v19  ;;  %v1282_v19 = vsel %vm1234_vm0, %v8685_v11, 0.0 }
  0x23   : > { %v1247_v25 = vadd.f32 %v1246_v20, %v1245_v22  ;;  %v8695_v20 = vld [vmem:[%s8564_s21 + $0xd0] sm:$0xff] }
  0x25   : > { %v1249_v28 = vadd.f32 %v1248_v23, %v1247_v25  ;;  %v1284_v23 = vsel %vm1234_vm0, %v8690_v16, 0.0  ;;  %v8700_v25 = vld [vmem:[%s8564_s21 + $0xd8] sm:$0xff] }
  0x27   : > { %v1251_v31 = vadd.f32 %v1250_v26, %v1249_v28  ;;  %v1286_v28 = vsel %vm1234_vm0, %v8695_v20, 0.0 }
  0x29   : > { %v1253_v34 = vadd.f32 %v1252_v29, %v1251_v31  ;;  %v8705_v29 = vld [vmem:[%s8564_s21 + $0xe0] sm:$0xff] }
  0x2b   : > { %v1255_v37 = vadd.f32 %v1254_v32, %v1253_v34  ;;  %v1288_v32 = vsel %vm1234_vm0, %v8700_v25, 0.0  ;;  %v8710_v34 = vld [vmem:[%s8564_s21 + $0xe8] sm:$0xff] }
  0x2d   : > { %v1257_v40 = vadd.f32 %v1256_v35, %v1255_v37  ;;  %v1290_v37 = vsel %vm1234_vm0, %v8705_v29, 0.0 }
  0x2f   : > { %v1259_v43 = vadd.f32 %v1258_v38, %v1257_v40  ;;  %v8715_v38 = vld [vmem:[%s8564_s21 + $0xf0] sm:$0xff] }
  0x31   : > { %v1261_v46 = vadd.f32 %v1260_v41, %v1259_v43  ;;  %v1292_v41 = vsel %vm1234_vm0, %v8710_v34, 0.0  ;;  %v8720_v43 = vld [vmem:[%s8564_s21 + $0xf8] sm:$0xff] }
  0x33   : > { %v1263_v49 = vadd.f32 %v1262_v44, %v1261_v46  ;;  %v1294_v46 = vsel %vm1234_vm0, %v8715_v38, 0.0 }
  0x35   : > { %v1265_v52 = vadd.f32 %v1264_v47, %v1263_v49  ;;  %v1296_v49 = vsel %vm1234_vm0, %v8720_v43, 0.0 }
  0x37   : > { %v1267_v55 = vadd.f32 %v1266_v50, %v1265_v52 }
  0x39   : > { %v1269_v58 = vadd.f32 %v1268_v53, %v1267_v55 }
  0x3b   : > { %v1271_v61 = vadd.f32 %v1270_v56, %v1269_v58 }
  0x3d   : > { %v1273_v0 = vadd.f32 %v1272_v59, %v1271_v61 }
  0x3f   : > { %v1275_v8 = vadd.f32 %v1274_v62, %v1273_v0  ;;  %v622_v62 = vlaneseq }
  0x41   : > { %v1277_v13 = vadd.f32 %v1276_v6, %v1275_v8  ;;  %v8727_v0 = vshrl.u32 %v622_v62, 7 }
  0x43   : > { %v1279_v17 = vadd.f32 %v1278_v10, %v1277_v13  ;;  %v8730_v10 = vsub.s32 0, %v8727_v0 }
  0x45   : > { %v1281_v22 = vadd.f32 %v1280_v14, %v1279_v17  ;;  %13039 = vst [vmem:[#allocation4_spill] sm:$0xff] %v8730_v10 }
  0x47   : > { %v1283_v26 = vadd.f32 %v1282_v19, %v1281_v22 }
  0x49   : > { %v1285_v31 = vadd.f32 %v1284_v23, %v1283_v26 }
  0x4b   : > { %v1287_v35 = vadd.f32 %v1286_v28, %v1285_v31 }
  0x4d   : > { %v1289_v40 = vadd.f32 %v1288_v32, %v1287_v35 }
  0x4f   : > { %v1291_v44 = vadd.f32 %v1290_v37, %v1289_v40 }
  0x51   : > { %v1293_v47 = vadd.f32 %v1292_v41, %v1291_v44 }
  0x53   : > { %v1295_v50 = vadd.f32 %v1294_v46, %v1293_v47 }
  0x55   : > { %v1297_v52 = vadd.f32 %v1296_v49, %v1295_v50 }
  0x57   : > { %v1298_v53 = vrot.slane %v1297_v52, 4 }
  0x59   : > { %v1299_v55 = vadd.f32 %v1298_v53, %v1297_v52 }
  0x5b   : > { %v1300_v56 = vrot.slane %v1299_v55, 2 }
  0x5d   : > { %v1301_v58 = vadd.f32 %v1300_v56, %v1299_v55 }
  0x5f   : > { %v1302_v59 = vrot.slane %v1301_v58, 1 }
  0x61   : > { %v1303_v61 = vadd.f32 %v1302_v59, %v1301_v58 }
  0x63   : > { %7256 = vmatmul.mubr.msk.f32.vlgmr.msra.gmra.mrb[0].mxu0 %vm1234_vm0, %v1303_v61 }
 0x136   : > { %v1373_v6 = vpop.f32.mrb[0].mxu0 }
 0x137   : > { %v7257_v8 = vpop.f32.mrb[1].mxu0  ;;  %v8733_v13 = vrot.slane %v1373_v6, %v8730_v10 }
 0x139   : > { %v8737_v14 = vsub.f32 %v8567_v2, %v8733_v13  ;;  %v8741_v17 = vsub.f32 %v8570_v3, %v8733_v13  ;;  %v8745_v19 = vsub.f32 %v8573_v4, %v8733_v13  ;;  %v8749_v22 = vsub.f32 %v8576_v5, %v8733_v13 }
 0x13a   : > { %v8757_v2 = vsub.f32 %v8585_v9, %v8733_v13  ;;  %v8763_v4 = vsub.f32 %v8590_v12, %v8733_v13  ;;  %v8771_v35 = vsub.f32 %v8595_v15, %v8733_v13  ;;  %v8778_v12 = vsub.f32 %v8600_v18, %v8733_v13 }
 0x13b   : > { %v1413_v23 = vmul.f32 %v8737_v14, %v8737_v14  ;;  %v1414_v26 = vmul.f32 %v8741_v17, %v8741_v17  ;;  %v1415_v3 = vmul.f32 %v8745_v19, %v8745_v19  ;;  %v1416_v5 = vmul.f32 %v8749_v22, %v8749_v22 }
 0x13c   : > { %v1417_v9 = vmul.f32 %v8757_v2, %v8757_v2  ;;  %v1418_v41 = vmul.f32 %v8763_v4, %v8763_v4  ;;  %v8785_v15 = vsub.f32 %v8605_v21, %v8733_v13  ;;  %v1419_v47 = vmul.f32 %v8771_v35, %v8771_v35 }
 0x13d   : > { %v1445_v28 = vsel %vm1234_vm0, %v1413_v23, 0.0  ;;  %v1446_v31 = vsel %vm1234_vm0, %v1414_v26, 0.0  ;;  %v1448_v37 = vsel %vm1234_vm0, %v1415_v3, 0.0  ;;  %v1450_v44 = vsel %vm1234_vm0, %v1416_v5, 0.0 }
 0x13e   : > { %v1447_v32 = vadd.f32 %v1446_v31, %v1445_v28  ;;  %v1452_v49 = vsel %vm1234_vm0, %v1417_v9, 0.0  ;;  %v8792_v18 = vsub.f32 %v8610_v24, %v8733_v13  ;;  %v1420_v52 = vmul.f32 %v8778_v12, %v8778_v12 }
 0x13f   : > { %v1454_v53 = vsel %vm1234_vm0, %v1418_v41, 0.0  ;;  %v8799_v21 = vsub.f32 %v8615_v27, %v8733_v13  ;;  %v1421_v56 = vmul.f32 %v8785_v15, %v8785_v15  ;;  %v1456_v58 = vsel %vm1234_vm0, %v1419_v47, 0.0 }
 0x140   : > { %v1449_v40 = vadd.f32 %v1448_v37, %v1447_v32  ;;  %v8806_v24 = vsub.f32 %v8620_v30, %v8733_v13  ;;  %v1422_v61 = vmul.f32 %v8792_v18, %v8792_v18  ;;  %v1458_v62 = vsel %vm1234_vm0, %v1420_v52, 0.0 }
 0x141   : > { %v8813_v27 = vsub.f32 %v8625_v33, %v8733_v13  ;;  %v1423_v8 = vmul.f32 %v8799_v21, %v8799_v21  ;;  %v1460_v23 = vsel %vm1234_vm0, %v1421_v56, 0.0  ;;  %v8820_v30 = vsub.f32 %v8630_v36, %v8733_v13 }
 0x142   : > { %v1451_v46 = vadd.f32 %v1450_v44, %v1449_v40  ;;  %v1424_v3 = vmul.f32 %v8806_v24, %v8806_v24  ;;  %v1462_v5 = vsel %vm1234_vm0, %v1422_v61, 0.0  ;;  %v8827_v33 = vsub.f32 %v8635_v39, %v8733_v13 }
 0x143   : > { %v1425_v31 = vmul.f32 %v8813_v27, %v8813_v27  ;;  %v1464_v32 = vsel %vm1234_vm0, %v1423_v8, 0.0  ;;  %v8834_v36 = vsub.f32 %v8640_v42, %v8733_v13  ;;  %v1426_v37 = vmul.f32 %v8820_v30, %v8820_v30 }
 0x144   : > { %v1453_v50 = vadd.f32 %v1452_v49, %v1451_v46  ;;  %v1466_v40 = vsel %vm1234_vm0, %v1424_v3, 0.0  ;;  %v8841_v39 = vsub.f32 %v8645_v45, %v8733_v13  ;;  %v1427_v44 = vmul.f32 %v8827_v33, %v8827_v33 }
 0x145   : > { %v1468_v46 = vsel %vm1234_vm0, %v1425_v31, 0.0  ;;  %v8848_v42 = vsub.f32 %v8650_v48, %v8733_v13  ;;  %v1428_v49 = vmul.f32 %v8834_v36, %v8834_v36  ;;  %v8855_v45 = vsub.f32 %v8655_v51, %v8733_v13 }
 0x146   : > { %v1455_v55 = vadd.f32 %v1454_v53, %v1453_v50  ;;  %v1470_v50 = vsel %vm1234_vm0, %v1426_v37, 0.0  ;;  %v1429_v53 = vmul.f32 %v8841_v39, %v8841_v39  ;;  %v8862_v48 = vsub.f32 %v8660_v54, %v8733_v13 }
 0x147   : > { %v8869_v51 = vsub.f32 %v8665_v57, %v8733_v13  ;;  %v8876_v54 = vsub.f32 %v8670_v60, %v8733_v13  ;;  %v8883_v57 = vsub.f32 %v8675_v63, %v8733_v13  ;;  %v8890_v60 = vsub.f32 %v8680_v7, %v8733_v13 }
 0x148   : > { %v1457_v59 = vadd.f32 %v1456_v58, %v1455_v55  ;;  %v1472_v55 = vsel %vm1234_vm0, %v1427_v44, 0.0  ;;  %v1430_v58 = vmul.f32 %v8848_v42, %v8848_v42  ;;  %v8897_v63 = vsub.f32 %v8685_v11, %v8733_v13 }
 0x149   : > { %v8904_v7 = vsub.f32 %v8690_v16, %v8733_v13  ;;  %v8911_v11 = vsub.f32 %v8695_v20, %v8733_v13  ;;  %v8918_v16 = vsub.f32 %v8700_v25, %v8733_v13  ;;  %v1409_v20 = vsub.f32 %v8705_v29, %v8733_v13 }
 0x14a   : > { %v1459_v6 = vadd.f32 %v1458_v62, %v1457_v59  ;;  %v1474_v59 = vsel %vm1234_vm0, %v1428_v49, 0.0  ;;  %v1431_v62 = vmul.f32 %v8855_v45, %v8855_v45 }
 0x14b   : > { %v1440_v25 = vmul.f32 %v8918_v16, %v8918_v16 }
 0x14c   : > { %v1461_v26 = vadd.f32 %v1460_v23, %v1459_v6  ;;  %v1476_v6 = vsel %vm1234_vm0, %v1429_v53, 0.0  ;;  %v1432_v23 = vmul.f32 %v8862_v48, %v8862_v48 }
 0x14e   : > { %v1463_v28 = vadd.f32 %v1462_v5, %v1461_v26  ;;  %v1478_v26 = vsel %vm1234_vm0, %v1430_v58, 0.0  ;;  %v1433_v5 = vmul.f32 %v8869_v51, %v8869_v51 }
 0x150   : > { %v1465_v9 = vadd.f32 %v1464_v32, %v1463_v28  ;;  %v1480_v28 = vsel %vm1234_vm0, %v1431_v62, 0.0  ;;  %v1434_v32 = vmul.f32 %v8876_v54, %v8876_v54 }
 0x152   : > { %v1467_v41 = vadd.f32 %v1466_v40, %v1465_v9  ;;  %v1482_v9 = vsel %vm1234_vm0, %v1432_v23, 0.0  ;;  %v1435_v40 = vmul.f32 %v8883_v57, %v8883_v57 }
 0x154   : > { %v1469_v47 = vadd.f32 %v1468_v46, %v1467_v41  ;;  %v1484_v41 = vsel %vm1234_vm0, %v1433_v5, 0.0  ;;  %v1436_v46 = vmul.f32 %v8890_v60, %v8890_v60 }
 0x156   : > { %v1471_v52 = vadd.f32 %v1470_v50, %v1469_v47  ;;  %v1486_v47 = vsel %vm1234_vm0, %v1434_v32, 0.0  ;;  %v1437_v50 = vmul.f32 %v8897_v63, %v8897_v63  ;;  %v1498_v32 = vsel %vm1234_vm0, %v1440_v25, 0.0  ;;  %v2228_v25 = vld [vmem:[#allocation2 + $0x120] sm:$0xff] }
 0x158   : > { %v1473_v56 = vadd.f32 %v1472_v55, %v1471_v52  ;;  %v1488_v52 = vsel %vm1234_vm0, %v1435_v40, 0.0  ;;  %v1438_v55 = vmul.f32 %v8904_v7, %v8904_v7 }
 0x15a   : > { %v1475_v61 = vadd.f32 %v1474_v59, %v1473_v56  ;;  %v1490_v56 = vsel %vm1234_vm0, %v1436_v46, 0.0  ;;  %v1439_v59 = vmul.f32 %v8911_v11, %v8911_v11 }
 0x15c   : > { %v1477_v8 = vadd.f32 %v1476_v6, %v1475_v61  ;;  %v1492_v61 = vsel %vm1234_vm0, %v1437_v50, 0.0  ;;  %v1410_v6 = vsub.f32 %v8710_v34, %v8733_v13  ;;  %v1496_v29 = vsel %vm1234_vm0, %v1439_v59, 0.0  ;;  %v2027_v59 = vld [vmem:[#allocation2 + $0x8] sm:$0xff] }
 0x15d   : > { %2295 = vrot.lane.b32.xlu0 %v2027_v59, %s8421_s2 }
 0x15e   : > { %v1479_v3 = vadd.f32 %v1478_v26, %v1477_v8  ;;  %v1494_v8 = vsel %vm1234_vm0, %v1438_v55, 0.0  ;;  %v1411_v26 = vsub.f32 %v8715_v38, %v8733_v13 }
 0x160   : > { %v1481_v31 = vadd.f32 %v1480_v28, %v1479_v3  ;;  %v1441_v3 = vmul.f32 %v1409_v20, %v1409_v20  ;;  %v1412_v28 = vsub.f32 %v8720_v43, %v8733_v13 }
 0x162   : > { %v1483_v37 = vadd.f32 %v1482_v9, %v1481_v31  ;;  %v1442_v31 = vmul.f32 %v1410_v6, %v1410_v6  ;;  %v1443_v9 = vmul.f32 %v1411_v26, %v1411_v26 }
 0x164   : > { %v1485_v44 = vadd.f32 %v1484_v41, %v1483_v37  ;;  %v1500_v37 = vsel %vm1234_vm0, %v1441_v3, 0.0  ;;  %v1444_v41 = vmul.f32 %v1412_v28, %v1412_v28  ;;  %v1504_v38 = vsel %vm1234_vm0, %v1443_v9, 0.0 }
 0x166   : > { %v1487_v49 = vadd.f32 %v1486_v47, %v1485_v44  ;;  %v1502_v44 = vsel %vm1234_vm0, %v1442_v31, 0.0 }
 0x168   : > { %v1489_v53 = vadd.f32 %v1488_v52, %v1487_v49  ;;  %v1506_v49 = vsel %vm1234_vm0, %v1444_v41, 0.0  ;;  %v8969_v41 = vld [vmem:[%s12867_s3] ss:$0 sm:$0xff] }
 0x16a   : > { %v1491_v58 = vadd.f32 %v1490_v56, %v1489_v53 }
 0x16c   : > { %v1493_v62 = vadd.f32 %v1492_v61, %v1491_v58  ;;  %v2059_v58 = vld [vmem:[#allocation2 + $0x9] sm:$0xff]  ;;  %v2194_v61 = vld [vmem:[#allocation2 + $0x11f] sm:$0xff] }
 0x16d   : > { %2423 = vrot.lane.b32.xlu1 %v2059_v58, %s8420_s22 }
 0x16e   : > { %v1495_v23 = vadd.f32 %v1494_v8, %v1493_v62  ;;  %v2028_v62 = vld [vmem:[#allocation2 + $0x10] sm:$0xff]  ;;  %v2227_v8 = vld [vmem:[#allocation2 + $0x118] sm:$0xff] }
 0x16f   : > { %2297 = vrot.lane.b32.xlu0 %v2028_v62, %s8421_s2 }
 0x170   : > { %v1497_v5 = vadd.f32 %v1496_v29, %v1495_v23 }
 0x171   : > { %2967 = vrot.lane.b32.xlu1 %v2194_v61, %s8422_s23 }
 0x172   : > { %v1499_v34 = vadd.f32 %v1498_v32, %v1497_v5  ;;  %v8956_v32 = vld [vmem:[%s13040_s29] ss:$0 sm:$0xff] }
 0x173   : > { %3063 = vrot.lane.b32.xlu0 %v2227_v8, %s8423_s24 }
 0x174   : > { %v1501_v40 = vadd.f32 %v1500_v37, %v1499_v34 }
 0x175   : > { %3065 = vrot.lane.b32.xlu1 %v2228_v25, %s8423_s24 }
 0x176   : > { %v1503_v46 = vadd.f32 %v1502_v44, %v1501_v40 }
 0x178   : > { %v1505_v47 = vadd.f32 %v1504_v38, %v1503_v46 }
 0x17a   : > { %v1507_v50 = vadd.f32 %v1506_v49, %v1505_v47 }
 0x17c   : > { %v1508_v52 = vrot.slane %v1507_v50, 4 }
 0x17e   : > { %v1509_v43 = vadd.f32 %v1508_v52, %v1507_v50 }
 0x180   : > { %v1510_v13 = vrot.slane %v1509_v43, 2 }
 0x182   : > { %v1511_v53 = vadd.f32 %v1510_v13, %v1509_v43 }
 0x184   : > { %v1512_v55 = vrot.slane %v1511_v53, 1 }
 0x186   : > { %v1513_v56 = vadd.f32 %v1512_v55, %v1511_v53 }
 0x188   : > { %7261 = vmatmul.mubr.msk.f32.vlgmr.msra.gmra.mrb[0].mxu1 %vm1234_vm0, %v1513_v56 }
 0x25b   : > { %v1583_v23 = vpop.f32.mrb[0].mxu1 }
 0x25c   : > { %v1584_v3 = vadd.f32 1e-05, %v1583_v23  ;;  %v7262_v29 = vpop.f32.mrb[1].mxu1 }
 0x25e   : > { %8078 = vrsqrt.f32 %v1584_v3 }
 0x268   : > { %v8079_v5 = vpop.eup %8078 }
 0x269   : > { %v8951_v31 = vrot.slane %v8079_v5, %v8730_v10 }
 0x26b   : > { %v1616_v34 = vmul.f32 %v8951_v31, %v8897_v63  ;;  %v1617_v9 = vmul.f32 %v8951_v31, %v8904_v7  ;;  %v1618_v37 = vmul.f32 %v8951_v31, %v8911_v11  ;;  %v1619_v40 = vmul.f32 %v8951_v31, %v8918_v16 }
 0x26c   : > { %v1620_v44 = vmul.f32 %v8951_v31, %v1409_v20  ;;  %v1621_v46 = vmul.f32 %v8951_v31, %v1410_v6  ;;  %v1622_v63 = vmul.f32 %v8951_v31, %v1411_v26  ;;  %v1623_v38 = vmul.f32 %v8951_v31, %v1412_v28 }
 0x26d   : > { %v1654_v7 = vmul.f32 %v8956_v32, %v1616_v34  ;;  %v1655_v11 = vmul.f32 %v8956_v32, %v1617_v9  ;;  %v1656_v47 = vmul.f32 %v8956_v32, %v1618_v37  ;;  %v1657_v16 = vmul.f32 %v8956_v32, %v1619_v40 }
 0x26e   : > { %v1658_v49 = vmul.f32 %v8956_v32, %v1620_v44  ;;  %v1659_v50 = vmul.f32 %v8956_v32, %v1621_v46  ;;  %v1660_v20 = vmul.f32 %v8956_v32, %v1622_v63  ;;  %v1661_v6 = vmul.f32 %v8956_v32, %v1623_v38 }
 0x26f   : > { %v8984_v26 = vadd.f32 %v8969_v41, %v1654_v7  ;;  %v8987_v28 = vadd.f32 %v8969_v41, %v1655_v11  ;;  %v8990_v52 = vadd.f32 %v8969_v41, %v1656_v47  ;;  %v8993_v43 = vadd.f32 %v8969_v41, %v1657_v16 }
 0x270   : > { %v8996_v13 = vadd.f32 %v8969_v41, %v1658_v49  ;;  %v8999_v53 = vadd.f32 %v8969_v41, %v1659_v50  ;;  %v9002_v55 = vadd.f32 %v8969_v41, %v1660_v20  ;;  %v9005_v56 = vadd.f32 %v8969_v41, %v1661_v6 }
 0x271   : > { %v7000_v58 = vmul.f32 -1.442695, %v8984_v26  ;;  %v7001_v59 = vmul.f32 -1.442695, %v8987_v28  ;;  %v7002_v61 = vmul.f32 -1.442695, %v8990_v52  ;;  %v1592_v8 = vmul.f32 %v8951_v31, %v8737_v14 }
 0x272   : > { %v7003_v62 = vmul.f32 -1.442695, %v8993_v43  ;;  %v7004_v25 = vmul.f32 -1.442695, %v8996_v13  ;;  %v7005_v23 = vmul.f32 -1.442695, %v8999_v53  ;;  %v1593_v34 = vmul.f32 %v8951_v31, %v8741_v17 }
 0x273   : > { %v7006_v3 = vmul.f32 -1.442695, %v9002_v55  ;;  %v7007_v29 = vmul.f32 -1.442695, %v9005_v56  ;;  %8080 = vpow2.f32 %v7000_v58  ;;  %v1630_v5 = vmul.f32 %v8956_v32, %v1592_v8 }
 0x274   : > { %8082 = vpow2.f32 %v7001_v59  ;;  %v1594_v9 = vmul.f32 %v8951_v31, %v8745_v19  ;;  %v1595_v14 = vmul.f32 %v8951_v31, %v8749_v22  ;;  %v1596_v37 = vmul.f32 %v8951_v31, %v8757_v2 }
 0x275   : > { %8084 = vpow2.f32 %v7002_v61  ;;  %v1597_v40 = vmul.f32 %v8951_v31, %v8763_v4  ;;  %v9029_v44 = vadd.f32 %v8969_v41, %v1630_v5  ;;  %v1631_v46 = vmul.f32 %v8956_v32, %v1593_v34 }
 0x276   : > { %8086 = vpow2.f32 %v7003_v62  ;;  %v1632_v17 = vmul.f32 %v8956_v32, %v1594_v9  ;;  %v1633_v19 = vmul.f32 %v8956_v32, %v1595_v14  ;;  %v1634_v63 = vmul.f32 %v8956_v32, %v1596_v37 }
 0x277   : > { %8088 = vpow2.f32 %v7004_v25  ;;  %v6976_v22 = vmul.f32 -1.442695, %v9029_v44  ;;  %v9037_v2 = vadd.f32 %v8969_v41, %v1631_v46  ;;  %v1635_v7 = vmul.f32 %v8956_v32, %v1597_v40 }
 0x278   : > { %8090 = vpow2.f32 %v7005_v23  ;;  %v9040_v4 = vadd.f32 %v8969_v41, %v1632_v17  ;;  %v9043_v38 = vadd.f32 %v8969_v41, %v1633_v19  ;;  %v9047_v11 = vadd.f32 %v8969_v41, %v1634_v63 }
 0x279   : > { %8092 = vpow2.f32 %v7006_v3  ;;  %v6977_v47 = vmul.f32 -1.442695, %v9037_v2  ;;  %v1598_v49 = vmul.f32 %v8951_v31, %v8771_v35  ;;  %v1599_v58 = vmul.f32 %v8951_v31, %v8778_v12 }
 0x27a   : > { %8094 = vpow2.f32 %v7007_v29  ;;  %v6978_v16 = vmul.f32 -1.442695, %v9040_v4  ;;  %v6979_v50 = vmul.f32 -1.442695, %v9043_v38  ;;  %v6980_v20 = vmul.f32 -1.442695, %v9047_v11 }
 0x27b   : > { %8096 = vpow2.f32 %v6976_v22  ;;  %v1636_v6 = vmul.f32 %v8956_v32, %v1598_v49  ;;  %v1600_v59 = vmul.f32 %v8951_v31, %v8785_v15  ;;  %v1601_v62 = vmul.f32 %v8951_v31, %v8792_v18 }
 0x27c   : > { %8098 = vpow2.f32 %v6977_v47  ;;  %v9063_v8 = vadd.f32 %v8969_v41, %v1635_v7  ;;  %v1637_v23 = vmul.f32 %v8956_v32, %v1599_v58  ;;  %v1602_v15 = vmul.f32 %v8951_v31, %v8799_v21 }
 0x27d   : > { %v8081_v61 = vpop.eup %8080  ;;  %8100 = vpow2.f32 %v6978_v16  ;;  %v1638_v12 = vmul.f32 %v8956_v32, %v1600_v59  ;;  %v9070_v18 = vadd.f32 %v8969_v41, %v1636_v6  ;;  %v1639_v9 = vmul.f32 %v8956_v32, %v1601_v62 }
 0x27e   : > { %v8083_v35 = vpop.eup %8082  ;;  %v1820_v25 = vadd.f32 1.0, %v8081_v61  ;;  %8102 = vpow2.f32 %v6979_v50  ;;  %v1603_v40 = vmul.f32 %v8951_v31, %v8806_v24  ;;  %v9076_v19 = vadd.f32 %v8969_v41, %v1637_v23 }
 0x27f   : > { %v8085_v3 = vpop.eup %8084  ;;  %v1821_v29 = vadd.f32 1.0, %v8083_v35  ;;  %8104 = vpow2.f32 %v6980_v20  ;;  %v9079_v21 = vadd.f32 %v8969_v41, %v1638_v12  ;;  %v6981_v7 = vmul.f32 -1.442695, %v9063_v8 }
 0x280   : > { %v8087_v5 = vpop.eup %8086  ;;  %v1822_v34 = vadd.f32 1.0, %v8085_v3  ;;  %8106 = vrcp.f32 %v1820_v25  ;;  %v1640_v47 = vmul.f32 %v8956_v32, %v1602_v15  ;;  %v6982_v24 = vmul.f32 -1.442695, %v9070_v18 }
 0x281   : > { %v8089_v14 = vpop.eup %8088  ;;  %v1823_v37 = vadd.f32 1.0, %v8087_v5  ;;  %8108 = vrcp.f32 %v1821_v29  ;;  %v9085_v50 = vadd.f32 %v8969_v41, %v1639_v9  ;;  %v1641_v58 = vmul.f32 %v8956_v32, %v1603_v40 }
 0x282   : > { %v8091_v46 = vpop.eup %8090  ;;  %v1824_v17 = vadd.f32 1.0, %v8089_v14  ;;  %8110 = vrcp.f32 %v1822_v34  ;;  %v1604_v59 = vmul.f32 %v8951_v31, %v8813_v27  ;;  %v6983_v35 = vmul.f32 -1.442695, %v9076_v19 }
 0x283   : > { %v8093_v63 = vpop.eup %8092  ;;  %v1825_v22 = vadd.f32 1.0, %v8091_v46  ;;  %8112 = vrcp.f32 %v1823_v37  ;;  %v6984_v25 = vmul.f32 -1.442695, %v9079_v21  ;;  %v9093_v29 = vadd.f32 %v8969_v41, %v1640_v47 }
 0x284   : > { %v8095_v16 = vpop.eup %8094  ;;  %v1826_v49 = vadd.f32 1.0, %v8093_v63  ;;  %8114 = vrcp.f32 %v1824_v17  ;;  %v9096_v12 = vadd.f32 %v8969_v41, %v1641_v58  ;;  %v1642_v27 = vmul.f32 %v8956_v32, %v1604_v59 }
 0x285   : > { %v8097_v20 = vpop.eup %8096  ;;  %v1827_v6 = vadd.f32 1.0, %v8095_v16  ;;  %8116 = vrcp.f32 %v1825_v22  ;;  %v1605_v34 = vmul.f32 %v8951_v31, %v8820_v30  ;;  %v6985_v37 = vmul.f32 -1.442695, %v9085_v50 }
 0x286   : > { %v8099_v61 = vpop.eup %8098  ;;  %8118 = vrcp.f32 %v1826_v49  ;;  %v1796_v62 = vadd.f32 1.0, %v8097_v20  ;;  %v1606_v40 = vmul.f32 %v8951_v31, %v8827_v33  ;;  %v9107_v63 = vadd.f32 %v8969_v41, %v1642_v27 }
 0x287   : > { %v8101_v23 = vpop.eup %8100  ;;  %8120 = vrcp.f32 %v1827_v6  ;;  %v1797_v3 = vadd.f32 1.0, %v8099_v61  ;;  %v1643_v22 = vmul.f32 %v8956_v32, %v1605_v34  ;;  %v1607_v16 = vmul.f32 %v8951_v31, %v8834_v36 }
 0x288   : > { %v8103_v15 = vpop.eup %8102  ;;  %8122 = vrcp.f32 %v1796_v62  ;;  %v1798_v5 = vadd.f32 1.0, %v8101_v23  ;;  %v1644_v30 = vmul.f32 %v8956_v32, %v1606_v40  ;;  %v1608_v33 = vmul.f32 %v8951_v31, %v8841_v39 }
 0x289   : > { %v8105_v9 = vpop.eup %8104  ;;  %8124 = vrcp.f32 %v1797_v3  ;;  %v1799_v14 = vadd.f32 1.0, %v8103_v15  ;;  %v6986_v20 = vmul.f32 -1.442695, %v9093_v29  ;;  %v6987_v6 = vmul.f32 -1.442695, %v9096_v12 }
 0x28a   : > { %v9104_v46 = vpop.eup %8106  ;;  %8126 = vrcp.f32 %v1798_v5  ;;  %v1800_v17 = vadd.f32 1.0, %v8105_v9  ;;  %v1609_v58 = vmul.f32 %v8951_v31, %v8848_v42  ;;  %v9123_v62 = vadd.f32 %v8969_v41, %v1643_v22 }
 0x28b   : > { %v9110_v47 = vpop.eup %8108  ;;  %8128 = vrcp.f32 %v1799_v14  ;;  %v1645_v36 = vmul.f32 %v8956_v32, %v1607_v16  ;;  %v1646_v3 = vmul.f32 %v8956_v32, %v1608_v33 }
 0x28c   : > { %v8111_v49 = vpop.eup %8110  ;;  %8130 = vpow2.f32 %v6981_v7  ;;  %v9128_v7 = vadd.f32 %v8969_v41, %v1644_v30  ;;  %v1647_v34 = vmul.f32 %v8956_v32, %v1609_v58 }
 0x28d   : > { %v8113_v59 = vpop.eup %8112  ;;  %v1918_v61 = vmul.f32 %v8111_v49, %v8990_v52  ;;  %8132 = vrcp.f32 %v1800_v17  ;;  %v6988_v52 = vmul.f32 -1.442695, %v9107_v63  ;;  %v9135_v5 = vadd.f32 %v8969_v41, %v1645_v36 }
 0x28e   : > { %v8115_v23 = vpop.eup %8114  ;;  %v1919_v39 = vmul.f32 %v8113_v59, %v8993_v43  ;;  %8134 = vpow2.f32 %v6982_v24  ;;  %v9140_v24 = vadd.f32 %v8969_v41, %v1646_v3  ;;  %v1612_v36 = vmul.f32 %v8951_v31, %v8869_v51 }
 0x28f   : > { %v8117_v15 = vpop.eup %8116  ;;  %v1920_v42 = vmul.f32 %v8115_v23, %v8996_v13  ;;  %1957 = vst.msk [vmem:[#allocation2 + $0xe8] sm:$0xff] %vm1234_vm0, %v1918_v61  ;;  %8136 = vpow2.f32 %v6983_v35  ;;  %v6989_v35 = vmul.f32 -1.442695, %v9123_v62  ;;  %v1614_v3 = vmul.f32 %v8951_v31, %v8883_v57 }
 0x290   : > { %v8119_v27 = vpop.eup %8118  ;;  %v1921_v43 = vmul.f32 %v8117_v15, %v8999_v53  ;;  %1958 = vst.msk [vmem:[#allocation2 + $0xf0] sm:$0xff] %vm1234_vm0, %v1919_v39  ;;  %8138 = vpow2.f32 %v6984_v25  ;;  %v6990_v53 = vmul.f32 -1.442695, %v9128_v7  ;;  %v9150_v25 = vadd.f32 %v8969_v41, %v1647_v34 }
 0x291   : > { %v8121_v13 = vpop.eup %8120  ;;  %v1922_v9 = vmul.f32 %v8119_v27, %v9002_v55  ;;  %1959 = vst.msk [vmem:[#allocation2 + $0xf8] sm:$0xff] %vm1234_vm0, %v1920_v42  ;;  %8140 = vpow2.f32 %v6985_v37  ;;  %v6991_v55 = vmul.f32 -1.442695, %v9135_v5  ;;  %v6992_v30 = vmul.f32 -1.442695, %v9140_v24 }
 0x292   : > { %v8123_v14 = vpop.eup %8122  ;;  %v1923_v40 = vmul.f32 %v8121_v13, %v9005_v56  ;;  %1960 = vst.msk [vmem:[#allocation2 + $0x100] sm:$0xff] %vm1234_vm0, %v1921_v43  ;;  %8142 = vpow2.f32 %v6986_v20  ;;  %v6993_v20 = vmul.f32 -1.442695, %v9150_v25  ;;  %v1615_v42 = vmul.f32 %v8951_v31, %v8890_v60 }
 0x293   : > { %v8125_v17 = vpop.eup %8124  ;;  %v1892_v22 = vmul.f32 %v8123_v14, %v9029_v44  ;;  %1961 = vst.msk [vmem:[#allocation2 + $0x108] sm:$0xff] %vm1234_vm0, %v1922_v9  ;;  %8144 = vpow2.f32 %v6987_v6  ;;  %v1916_v60 = vmul.f32 %v9104_v46, %v8984_v26  ;;  %v1650_v13 = vmul.f32 %v8956_v32, %v1612_v36 }
 0x294   : > { %v8127_v37 = vpop.eup %8126  ;;  %1962 = vst.msk [vmem:[#allocation2 + $0x110] sm:$0xff] %vm1234_vm0, %v1923_v40  ;;  %v1893_v56 = vmul.f32 %v8125_v17, %v9037_v2  ;;  %8146 = vpow2.f32 %v6988_v52  ;;  %v1610_v2 = vmul.f32 %v8951_v31, %v8855_v45  ;;  %v1613_v45 = vmul.f32 %v8951_v31, %v8876_v54 }
 0x295   : > { %v8129_v16 = vpop.eup %8128  ;;  %1931 = vst.msk [vmem:[#allocation2 + $0x18] sm:$0xff] %vm1234_vm0, %v1892_v22  ;;  %v1894_v33 = vmul.f32 %v8127_v37, %v9040_v4  ;;  %8148 = vpow2.f32 %v6989_v35  ;;  %v1917_v9 = vmul.f32 %v9110_v47, %v8987_v28  ;;  %1955 = vst.msk [vmem:[#allocation2 + $0xd8] sm:$0xff] %vm1234_vm0, %v1916_v60  ;;  %v1653_v47 = vmul.f32 %v8956_v32, %v1615_v42 }
 0x296   : > { %v8131_v44 = vpop.eup %8130  ;;  %1932 = vst.msk [vmem:[#allocation2 + $0x20] sm:$0xff] %vm1234_vm0, %v1893_v56  ;;  %v1895_v49 = vmul.f32 %v8129_v16, %v9043_v38  ;;  %8150 = vpow2.f32 %v6990_v53  ;;  %v1611_v38 = vmul.f32 %v8951_v31, %v8862_v48  ;;  %v1648_v15 = vmul.f32 %v8956_v32, %v1610_v2 }
 0x297   : > { %v8133_v6 = vpop.eup %8132  ;;  %1933 = vst.msk [vmem:[#allocation2 + $0x28] sm:$0xff] %vm1234_vm0, %v1894_v33  ;;  %v1801_v58 = vadd.f32 1.0, %v8131_v44  ;;  %8152 = vpow2.f32 %v6991_v55  ;;  %v1651_v46 = vmul.f32 %v8956_v32, %v1613_v45  ;;  %v1652_v53 = vmul.f32 %v8956_v32, %v1614_v3  ;;  %1956 = vst.msk [vmem:[#allocation2 + $0xe0] sm:$0xff] %vm1234_vm0, %v1917_v9 }
 0x298   : > { %v8135_v59 = vpop.eup %8134  ;;  %1934 = vst.msk [vmem:[#allocation2 + $0x30] sm:$0xff] %vm1234_vm0, %v1895_v49  ;;  %v1896_v4 = vmul.f32 %v8133_v6, %v9047_v11  ;;  %8154 = vpow2.f32 %v6992_v30  ;;  %v1649_v57 = vmul.f32 %v8956_v32, %v1611_v38  ;;  %v9201_v26 = vadd.f32 %v8969_v41, %v1648_v15 }
 0x299   : > { %v8137_v61 = vpop.eup %8136  ;;  %8156 = vrcp.f32 %v1801_v58  ;;  %v1802_v23 = vadd.f32 1.0, %v8135_v59  ;;  %v9213_v16 = vadd.f32 %v8969_v41, %v1650_v13  ;;  %v9218_v49 = vadd.f32 %v8969_v41, %v1651_v46 }
 0x29a   : > { %v8139_v39 = vpop.eup %8138  ;;  %1935 = vst.msk [vmem:[#allocation2 + $0x38] sm:$0xff] %vm1234_vm0, %v1896_v4  ;;  %v1803_v11 = vadd.f32 1.0, %v8137_v61  ;;  %8158 = vpow2.f32 %v6993_v20  ;;  %v9209_v37 = vadd.f32 %v8969_v41, %v1649_v57  ;;  %v6994_v32 = vmul.f32 -1.442695, %v9201_v26 }
 0x29b   : > { %v8141_v48 = vpop.eup %8140  ;;  %8160 = vrcp.f32 %v1802_v23  ;;  %v1804_v51 = vadd.f32 1.0, %v8139_v39  ;;  %v9221_v6 = vadd.f32 %v8969_v41, %v1652_v53  ;;  %v9226_v38 = vadd.f32 %v8969_v41, %v1653_v47 }
 0x29c   : > { %v8143_v54 = vpop.eup %8142  ;;  %v2029_v52 = vld [vmem:[#allocation2 + $0x18] sm:$0xff]  ;;  %8162 = vrcp.f32 %v1803_v11  ;;  %v1805_v27 = vadd.f32 1.0, %v8141_v48  ;;  %v6995_v4 = vmul.f32 -1.442695, %v9209_v37  ;;  %v6996_v23 = vmul.f32 -1.442695, %v9213_v16 }
 0x29d   : > { %v8145_v31 = vpop.eup %8144  ;;  %2649 = vrot.lane.b32.xlu0 %v2029_v52, %s12964_s1  ;;  %v1966_v43 = vld [vmem:[#allocation2 + $0x1f] sm:$0xff]  ;;  %8164 = vrcp.f32 %v1804_v51  ;;  %v1806_v34 = vadd.f32 1.0, %v8143_v54  ;;  %v6997_v41 = vmul.f32 -1.442695, %v9218_v49  ;;  %v6998_v15 = vmul.f32 -1.442695, %v9221_v6 }
 0x29e   : > { %v8147_v35 = vpop.eup %8146  ;;  %2553 = vrot.lane.b32.xlu1 %v1966_v43, %s8425_s20  ;;  %8166 = vrcp.f32 %v1805_v27  ;;  %v1807_v14 = vadd.f32 1.0, %v8145_v31  ;;  %v2030_v22 = vld [vmem:[#allocation2 + $0x20] sm:$0xff]  ;;  %v6999_v54 = vmul.f32 -1.442695, %v9226_v38  ;;  %v2031_v43 = vld [vmem:[#allocation2 + $0x28] sm:$0xff] }
 0x29f   : > { %v8149_v40 = vpop.eup %8148  ;;  %8168 = vrcp.f32 %v1806_v34  ;;  %v1808_v17 = vadd.f32 1.0, %v8147_v35  ;;  %v2061_v36 = vld [vmem:[#allocation2 + $0x19] sm:$0xff]  ;;  %v1968_v42 = vld [vmem:[#allocation2 + $0x2f] sm:$0xff] }
 0x2a0   : > { %v8151_v28 = vpop.eup %8150  ;;  %8170 = vrcp.f32 %v1807_v14  ;;  %v1809_v55 = vadd.f32 1.0, %v8149_v40  ;;  %v2032_v35 = vld [vmem:[#allocation2 + $0x30] sm:$0xff] }
 0x2a1   : > { %v8153_v56 = vpop.eup %8152  ;;  %2651 = vrot.lane.b32.xlu0 %v2030_v22, %s12964_s1  ;;  %8172 = vrcp.f32 %v1808_v17  ;;  %v1810_v30 = vadd.f32 1.0, %v8151_v28  ;;  %v2063_v47 = vld [vmem:[#allocation2 + $0x29] sm:$0xff] }
 0x2a2   : > { %v8155_v33 = vpop.eup %8154  ;;  %2299 = vrot.lane.b32.xlu1 %v2029_v52, %s8421_s2  ;;  %8174 = vrcp.f32 %v1809_v55  ;;  %v1811_v44 = vadd.f32 1.0, %v8153_v56 }
 0x2a3   : > { %v8157_v20 = vpop.eup %8156  ;;  %8176 = vrcp.f32 %v1810_v30  ;;  %v1812_v2 = vadd.f32 1.0, %v8155_v33 }
 0x2a4   : > { %v8159_v58 = vpop.eup %8158  ;;  %v1897_v59 = vmul.f32 %v8157_v20, %v9063_v8  ;;  %8178 = vrcp.f32 %v1811_v44 }
 0x2a5   : > { %v8161_v61 = vpop.eup %8160  ;;  %2301 = vrot.lane.b32.xlu0 %v2030_v22, %s8421_s2  ;;  %8180 = vrcp.f32 %v1812_v2  ;;  %v1813_v45 = vadd.f32 1.0, %v8159_v58 }
 0x2a6   : > { %v8163_v39 = vpop.eup %8162  ;;  %2777 = vrot.lane.b32.xlu1 %v2061_v36, %s8426_s25  ;;  %1936 = vst.msk [vmem:[#allocation2 + $0x40] sm:$0xff] %vm1234_vm0, %v1897_v59  ;;  %v1898_v8 = vmul.f32 %v8161_v61, %v9070_v18  ;;  %8182 = vpow2.f32 %v6994_v32  ;;  %v2033_v59 = vld [vmem:[#allocation2 + $0x38] sm:$0xff] }
 0x2a7   : > { %v8165_v3 = vpop.eup %8164  ;;  %v1899_v11 = vmul.f32 %v8163_v39, %v9076_v19  ;;  %8184 = vrcp.f32 %v1813_v45 }
 0x2a8   : > { %v8167_v48 = vpop.eup %8166  ;;  %1937 = vst.msk [vmem:[#allocation2 + $0x48] sm:$0xff] %vm1234_vm0, %v1898_v8  ;;  %v1900_v51 = vmul.f32 %v8165_v3, %v9079_v21  ;;  %8186 = vpow2.f32 %v6995_v4 }
 0x2a9   : > { %v8169_v52 = vpop.eup %8168  ;;  %2907 = vrot.lane.b32.xlu0 %v1968_v42, %s8422_s23  ;;  %1938 = vst.msk [vmem:[#allocation2 + $0x50] sm:$0xff] %vm1234_vm0, %v1899_v11  ;;  %v1901_v18 = vmul.f32 %v8167_v48, %v9085_v50  ;;  %8188 = vpow2.f32 %v6996_v23  ;;  %v9314_v48 = vpop.permute.xlu0 %2295 }
 0x2aa   : > { %v8171_v19 = vpop.eup %8170  ;;  %2427 = vrot.lane.b32.xlu1 %v2061_v36, %s8420_s22  ;;  %1939 = vst.msk [vmem:[#allocation2 + $0x58] sm:$0xff] %vm1234_vm0, %v1900_v51  ;;  %v1902_v27 = vmul.f32 %v8169_v52, %v9093_v29  ;;  %8190 = vpow2.f32 %v6997_v41 }
 0x2ab   : > { %v8173_v21 = vpop.eup %8172  ;;  %1940 = vst.msk [vmem:[#allocation2 + $0x60] sm:$0xff] %vm1234_vm0, %v1901_v18  ;;  %v1903_v57 = vmul.f32 %v8171_v19, %v9096_v12  ;;  %8192 = vpow2.f32 %v6998_v15 }
 0x2ac   : > { %v8175_v60 = vpop.eup %8174  ;;  %1941 = vst.msk [vmem:[#allocation2 + $0x68] sm:$0xff] %vm1234_vm0, %v1902_v27  ;;  %v1904_v50 = vmul.f32 %v8173_v21, %v9107_v63  ;;  %8194 = vpow2.f32 %v6999_v54 }
 0x2ad   : > { %v8177_v31 = vpop.eup %8176  ;;  %2557 = vrot.lane.b32.xlu0 %v1968_v42, %s8425_s20  ;;  %1942 = vst.msk [vmem:[#allocation2 + $0x70] sm:$0xff] %vm1234_vm0, %v1903_v57  ;;  %v1905_v29 = vmul.f32 %v8175_v60, %v9123_v62  ;;  %v1970_v20 = vld [vmem:[#allocation2 + $0x3f] sm:$0xff]  ;;  %v9317_v42 = vpop.permute.xlu1 %2423 }
 0x2ae   : > { %v8179_v34 = vpop.eup %8178  ;;  %3003 = vrot.lane.b32.xlu1 %v2031_v43, %s8423_s24  ;;  %1943 = vst.msk [vmem:[#allocation2 + $0x78] sm:$0xff] %vm1234_vm0, %v1904_v50  ;;  %v1906_v12 = vmul.f32 %v8177_v31, %v9128_v7  ;;  %v9321_v51 = vpop.permute.xlu0 %2297 }
 0x2af   : > { %v8181_v13 = vpop.eup %8180  ;;  %1944 = vst.msk [vmem:[#allocation2 + $0x80] sm:$0xff] %vm1234_vm0, %v1905_v29  ;;  %v1907_v63 = vmul.f32 %v8179_v34, %v9135_v5 }
 0x2b0   : > { %v8183_v9 = vpop.eup %8182  ;;  %1945 = vst.msk [vmem:[#allocation2 + $0x88] sm:$0xff] %vm1234_vm0, %v1906_v12  ;;  %v1908_v14 = vmul.f32 %v8181_v13, %v9140_v24  ;;  %v2067_v23 = vld [vmem:[#allocation2 + $0x49] sm:$0xff] }
 0x2b1   : > { %v8185_v46 = vpop.eup %8184  ;;  %3005 = vrot.lane.b32.xlu0 %v2032_v35, %s8423_s24  ;;  %1946 = vst.msk [vmem:[#allocation2 + $0x90] sm:$0xff] %vm1234_vm0, %v1907_v63  ;;  %v1814_v62 = vadd.f32 1.0, %v8183_v9  ;;  %v2036_v39 = vld [vmem:[#allocation2 + $0x50] sm:$0xff]  ;;  %v2037_v8 = vld [vmem:[#allocation2 + $0x58] sm:$0xff]  ;;  %v9323_v54 = vpop.permute.xlu1 %2967 }
 0x2b2   : > { %v8187_v40 = vpop.eup %8186  ;;  %2653 = vrot.lane.b32.xlu1 %v2031_v43, %s12964_s1  ;;  %1947 = vst.msk [vmem:[#allocation2 + $0x98] sm:$0xff] %vm1234_vm0, %v1908_v14  ;;  %v1909_v7 = vmul.f32 %v8185_v46, %v9150_v25  ;;  %v1974_v41 = vld [vmem:[#allocation2 + $0x5f] sm:$0xff]  ;;  %13041 = vst [vmem:[#allocation5_spill] sm:$0xff] %v9323_v54  ;;  %v9328_v27 = vpop.permute.xlu0 %3063 }
 0x2b3   : > { %v8189_v5 = vpop.eup %8188  ;;  %8196 = vrcp.f32 %v1814_v62  ;;  %v1815_v53 = vadd.f32 1.0, %v8187_v40  ;;  %v2069_v3 = vld [vmem:[#allocation2 + $0x59] sm:$0xff]  ;;  %v2039_v15 = vld [vmem:[#allocation2 + $0x68] sm:$0xff]  ;;  %13042 = vst [vmem:[#allocation6_spill] sm:$0xff] %v9328_v27 }
 0x2b4   : > { %v8191_v17 = vpop.eup %8190  ;;  %1948 = vst.msk [vmem:[#allocation2 + $0xa0] sm:$0xff] %vm1234_vm0, %v1909_v7  ;;  %v1816_v24 = vadd.f32 1.0, %v8189_v5  ;;  %v2038_v11 = vld [vmem:[#allocation2 + $0x60] sm:$0xff]  ;;  %v2071_v52 = vld [vmem:[#allocation2 + $0x69] sm:$0xff] }
 0x2b5   : > { %v8193_v28 = vpop.eup %8192  ;;  %2303 = vrot.lane.b32.xlu0 %v2031_v43, %s8421_s2  ;;  %8198 = vrcp.f32 %v1815_v53  ;;  %v1817_v22 = vadd.f32 1.0, %v8191_v17  ;;  %v1976_v18 = vld [vmem:[#allocation2 + $0x6f] sm:$0xff]  ;;  %v9331_v21 = vpop.permute.xlu1 %3065  ;;  %v2041_v50 = vld [vmem:[#allocation2 + $0x78] sm:$0xff] }
 0x2b6   : > { %v8195_v55 = vpop.eup %8194  ;;  %3131 = vrot.lane.b32.xlu1 %v2063_v47, %s8427_s26  ;;  %8200 = vrcp.f32 %v1816_v24  ;;  %v1818_v56 = vadd.f32 1.0, %v8193_v28  ;;  %v2040_v19 = vld [vmem:[#allocation2 + $0x70] sm:$0xff]  ;;  %13043 = vst [vmem:[#allocation7_spill] sm:$0xff] %v9331_v21  ;;  %v2073_v12 = vld [vmem:[#allocation2 + $0x79] sm:$0xff] }
 0x2b7   : > { %8202 = vrcp.f32 %v1817_v22  ;;  %v1819_v25 = vadd.f32 1.0, %v8195_v55  ;;  %v2042_v9 = vld [vmem:[#allocation2 + $0x80] sm:$0xff]  ;;  %v2043_v7 = vld [vmem:[#allocation2 + $0x88] sm:$0xff] }
 0x2b8   : > { %8204 = vrcp.f32 %v1818_v56  ;;  %v1978_v46 = vld [vmem:[#allocation2 + $0x7f] sm:$0xff]  ;;  %v2075_v28 = vld [vmem:[#allocation2 + $0x89] sm:$0xff] }
 0x2b9   : > { %2781 = vrot.lane.b32.xlu0 %v2063_v47, %s8426_s25  ;;  %8206 = vrcp.f32 %v1819_v25  ;;  %v2044_v55 = vld [vmem:[#allocation2 + $0x90] sm:$0xff] }
 0x2ba   : > { %2655 = vrot.lane.b32.xlu1 %v2032_v35, %s12964_s1 }
 0x2bd   : > { %v8197_v30 = vpop.eup %8196  ;;  %2305 = vrot.lane.b32.xlu0 %v2032_v35, %s8421_s2 }
 0x2be   : > { %2431 = vrot.lane.b32.xlu1 %v2063_v47, %s8420_s22  ;;  %v1910_v33 = vmul.f32 %v8197_v30, %v9201_v26 }
 0x2bf   : > { %v8199_v44 = vpop.eup %8198 }
 0x2c0   : > { %v8201_v32 = vpop.eup %8200  ;;  %1949 = vst.msk [vmem:[#allocation2 + $0xa8] sm:$0xff] %vm1234_vm0, %v1910_v33  ;;  %v1911_v2 = vmul.f32 %v8199_v44, %v9209_v37  ;;  %v1980_v44 = vld [vmem:[#allocation2 + $0x8f] sm:$0xff] }
 0x2c1   : > { %v8203_v58 = vpop.eup %8202  ;;  %2911 = vrot.lane.b32.xlu0 %v1970_v20, %s8422_s23  ;;  %v1912_v4 = vmul.f32 %v8201_v32, %v9213_v16  ;;  %v2034_v16 = vld [vmem:[#allocation2 + $0x40] sm:$0xff]  ;;  %v2045_v32 = vld [vmem:[#allocation2 + $0x98] sm:$0xff] }
 0x2c2   : > { %v8205_v61 = vpop.eup %8204  ;;  %3007 = vrot.lane.b32.xlu1 %v2033_v59, %s8423_s24  ;;  %1950 = vst.msk [vmem:[#allocation2 + $0xb0] sm:$0xff] %vm1234_vm0, %v1911_v2  ;;  %v1913_v26 = vmul.f32 %v8203_v58, %v9218_v49  ;;  %v2065_v49 = vld [vmem:[#allocation2 + $0x39] sm:$0xff] }
 0x2c3   : > { %v8207_v36 = vpop.eup %8206  ;;  %1951 = vst.msk [vmem:[#allocation2 + $0xb8] sm:$0xff] %vm1234_vm0, %v1912_v4  ;;  %v1914_v45 = vmul.f32 %v8205_v61, %v9221_v6  ;;  %v2035_v6 = vld [vmem:[#allocation2 + $0x48] sm:$0xff]  ;;  %v2077_v4 = vld [vmem:[#allocation2 + $0x99] sm:$0xff] }
 0x2c4   : > { %1952 = vst.msk [vmem:[#allocation2 + $0xc0] sm:$0xff] %vm1234_vm0, %v1913_v26  ;;  %v1915_v37 = vmul.f32 %v8207_v36, %v9226_v38  ;;  %v1972_v38 = vld [vmem:[#allocation2 + $0x4f] sm:$0xff]  ;;  %v2046_v36 = vld [vmem:[#allocation2 + $0xa0] sm:$0xff] }
 0x2c5   : > { %2561 = vrot.lane.b32.xlu0 %v1970_v20, %s8425_s20  ;;  %1953 = vst.msk [vmem:[#allocation2 + $0xc8] sm:$0xff] %vm1234_vm0, %v1914_v45 }
 0x2c6   : > { %2657 = vrot.lane.b32.xlu1 %v2033_v59, %s12964_s1  ;;  %1954 = vst.msk [vmem:[#allocation2 + $0xd0] sm:$0xff] %vm1234_vm0, %v1915_v37 }
 0x2c9   : > { %3009 = vrot.lane.b32.xlu0 %v2034_v16, %s8423_s24 }
 0x2ca   : > { %3135 = vrot.lane.b32.xlu1 %v2065_v49, %s8427_s26 }
 0x2cb   : > { %v2050_v1 = vld [vmem:[#allocation2 + $0xc0] sm:$0xff] }
 0x2cc   : > { %v2051_v54 = vld [vmem:[#allocation2 + $0xc8] sm:$0xff] }
 0x2cd   : > { %2307 = vrot.lane.b32.xlu0 %v2033_v59, %s8421_s2 }
 0x2ce   : > { %2659 = vrot.lane.b32.xlu1 %v2034_v16, %s12964_s1 }
 0x2d1   : > { %2785 = vrot.lane.b32.xlu0 %v2065_v49, %s8426_s25 }
 0x2d2   : > { %2435 = vrot.lane.b32.xlu1 %v2065_v49, %s8420_s22 }
 0x2d5   : > { %2309 = vrot.lane.b32.xlu0 %v2034_v16, %s8421_s2 }
 0x2d6   : > { %3011 = vrot.lane.b32.xlu1 %v2035_v6, %s8423_s24 }
 0x2d9   : > { %2915 = vrot.lane.b32.xlu0 %v1972_v38, %s8422_s23 }
 0x2da   : > { %2661 = vrot.lane.b32.xlu1 %v2035_v6, %s12964_s1 }
 0x2dd   : > { %2565 = vrot.lane.b32.xlu0 %v1972_v38, %s8425_s20 }
 0x2de   : > { %3139 = vrot.lane.b32.xlu1 %v2067_v23, %s8427_s26 }
 0x2e1   : > { %3013 = vrot.lane.b32.xlu0 %v2036_v39, %s8423_s24 }
 0x2e2   : > { %2663 = vrot.lane.b32.xlu1 %v2036_v39, %s12964_s1 }
 0x2e5   : > { %2311 = vrot.lane.b32.xlu0 %v2035_v6, %s8421_s2  ;;  %v2047_v6 = vld [vmem:[#allocation2 + $0xa8] sm:$0xff] }
 0x2e6   : > { %2439 = vrot.lane.b32.xlu1 %v2067_v23, %s8420_s22 }
 0x2e9   : > { %2789 = vrot.lane.b32.xlu0 %v2067_v23, %s8426_s25 }
 0x2ea   : > { %3015 = vrot.lane.b32.xlu1 %v2037_v8, %s8423_s24 }
 0x2ed   : > { %2313 = vrot.lane.b32.xlu0 %v2036_v39, %s8421_s2  ;;  %v1982_v39 = vld [vmem:[#allocation2 + $0x9f] sm:$0xff] }
 0x2ee   : > { %2665 = vrot.lane.b32.xlu1 %v2037_v8, %s12964_s1 }
 0x2f1   : > { %2919 = vrot.lane.b32.xlu0 %v1974_v41, %s8422_s23 }
 0x2f2   : > { %3143 = vrot.lane.b32.xlu1 %v2069_v3, %s8427_s26 }
 0x2f5   : > { %2569 = vrot.lane.b32.xlu0 %v1974_v41, %s8425_s20 }
 0x2f6   : > { %2667 = vrot.lane.b32.xlu1 %v2038_v11, %s12964_s1 }
 0x2f9   : > { %3017 = vrot.lane.b32.xlu0 %v2038_v11, %s8423_s24 }
 0x2fa   : > { %2443 = vrot.lane.b32.xlu1 %v2069_v3, %s8420_s22 }
 0x2fd   : > { %2315 = vrot.lane.b32.xlu0 %v2037_v8, %s8421_s2 }
 0x2fe   : > { %3019 = vrot.lane.b32.xlu1 %v2039_v15, %s8423_s24 }
 0x301   : > { %2793 = vrot.lane.b32.xlu0 %v2069_v3, %s8426_s25  ;;  %v2079_v3 = vld [vmem:[#allocation2 + $0xa9] sm:$0xff] }
 0x302   : > { %2669 = vrot.lane.b32.xlu1 %v2039_v15, %s12964_s1 }
 0x305   : > { %2317 = vrot.lane.b32.xlu0 %v2038_v11, %s8421_s2 }
 0x306   : > { %3147 = vrot.lane.b32.xlu1 %v2071_v52, %s8427_s26 }
 0x309   : > { %2923 = vrot.lane.b32.xlu0 %v1976_v18, %s8422_s23 }
 0x30a   : > { %2671 = vrot.lane.b32.xlu1 %v2040_v19, %s12964_s1 }
 0x30d   : > { %2573 = vrot.lane.b32.xlu0 %v1976_v18, %s8425_s20 }
 0x30e   : > { %2447 = vrot.lane.b32.xlu1 %v2071_v52, %s8420_s22 }
 0x30f   : > { %v9335_v57 = vpop.permute.xlu0 %2649 }
 0x310   : > { %v9337_v60 = vpop.permute.xlu1 %2553 }
 0x311   : > { %3021 = vrot.lane.b32.xlu0 %v2040_v19, %s8423_s24 }
 0x312   : > { %3023 = vrot.lane.b32.xlu1 %v2041_v50, %s8423_s24 }
 0x313   : > { %v9341_v31 = vpop.permute.xlu0 %2651 }
 0x314   : > { %v9343_v43 = vpop.permute.xlu1 %2299 }
 0x315   : > { %2319 = vrot.lane.b32.xlu0 %v2039_v15, %s8421_s2 }
 0x316   : > { %2673 = vrot.lane.b32.xlu1 %v2041_v50, %s12964_s1 }
 0x317   : > { %v9347_v29 = vpop.permute.xlu0 %2301 }
 0x318   : > { %v9349_v34 = vpop.permute.xlu1 %2777 }
 0x319   : > { %2797 = vrot.lane.b32.xlu0 %v2071_v52, %s8426_s25  ;;  %v2048_v52 = vld [vmem:[#allocation2 + $0xb0] sm:$0xff] }
 0x31a   : > { %3151 = vrot.lane.b32.xlu1 %v2073_v12, %s8427_s26 }
 0x31b   : > { %v9353_v13 = vpop.permute.xlu0 %2907 }
 0x31c   : > { %v9355_v63 = vpop.permute.xlu1 %2427 }
 0x31d   : > { %2321 = vrot.lane.b32.xlu0 %v2040_v19, %s8421_s2 }
 0x31e   : > { %2675 = vrot.lane.b32.xlu1 %v2042_v9, %s12964_s1 }
 0x31f   : > { %v9359_v35 = vpop.permute.xlu0 %2557 }
 0x320   : > { %v9361_v14 = vpop.permute.xlu1 %3003 }
 0x321   : > { %2927 = vrot.lane.b32.xlu0 %v1978_v46, %s8422_s23 }
 0x322   : > { %2451 = vrot.lane.b32.xlu1 %v2073_v12, %s8420_s22 }
 0x323   : > { %v9365_v62 = vpop.permute.xlu0 %3005 }
 0x324   : > { %v9367_v40 = vpop.permute.xlu1 %2653 }
 0x325   : > { %2577 = vrot.lane.b32.xlu0 %v1978_v46, %s8425_s20 }
 0x326   : > { %3027 = vrot.lane.b32.xlu1 %v2043_v7, %s8423_s24 }
 0x327   : > { %v9371_v5 = vpop.permute.xlu0 %2303 }
 0x328   : > { %v9373_v53 = vpop.permute.xlu1 %3131 }
 0x329   : > { %3025 = vrot.lane.b32.xlu0 %v2042_v9, %s8423_s24 }
 0x32a   : > { %2677 = vrot.lane.b32.xlu1 %v2043_v7, %s12964_s1 }
 0x32b   : > { %v9377_v17 = vpop.permute.xlu0 %2781 }
 0x32c   : > { %v9379_v24 = vpop.permute.xlu1 %2655 }
 0x32d   : > { %2323 = vrot.lane.b32.xlu0 %v2041_v50, %s8421_s2 }
 0x32e   : > { %3155 = vrot.lane.b32.xlu1 %v2075_v28, %s8427_s26 }
 0x32f   : > { %v9383_v47 = vpop.permute.xlu0 %2305 }
 0x330   : > { %13044 = vst [vmem:[#allocation8_spill] sm:$0xff] %v9383_v47  ;;  %v9385_v22 = vpop.permute.xlu1 %2431 }
 0x331   : > { %2801 = vrot.lane.b32.xlu0 %v2073_v12, %s8426_s25 }
 0x332   : > { %2679 = vrot.lane.b32.xlu1 %v2044_v55, %s12964_s1 }
 0x333   : > { %v9389_v56 = vpop.permute.xlu0 %2911 }
 0x334   : > { %13045 = vst [vmem:[#allocation9_spill] sm:$0xff] %v9389_v56  ;;  %v9391_v25 = vpop.permute.xlu1 %3007  ;;  %v1963_v56 = vld [vmem:[#allocation2 + $0x7] sm:$0xff] }
 0x335   : > { %2325 = vrot.lane.b32.xlu0 %v2042_v9, %s8421_s2  ;;  %v2049_v9 = vld [vmem:[#allocation2 + $0xb8] sm:$0xff] }
 0x336   : > { %2455 = vrot.lane.b32.xlu1 %v2075_v28, %s8420_s22 }
 0x337   : > { %v9395_v30 = vpop.permute.xlu0 %2561 }
 0x338   : > { %13046 = vst [vmem:[#allocation10_spill] sm:$0xff] %v9395_v30  ;;  %v9397_v33 = vpop.permute.xlu1 %2657 }
 0x339   : > { %2931 = vrot.lane.b32.xlu0 %v1980_v44, %s8422_s23 }
 0x33a   : > { %3031 = vrot.lane.b32.xlu1 %v2045_v32, %s8423_s24 }
 0x33b   : > { %v9401_v20 = vpop.permute.xlu0 %3009 }
 0x33c   : > { %13047 = vst [vmem:[#allocation11_spill] sm:$0xff] %v9401_v20  ;;  %v9403_v2 = vpop.permute.xlu1 %3135 }
 0x33d   : > { %2581 = vrot.lane.b32.xlu0 %v1980_v44, %s8425_s20  ;;  %v1984_v44 = vld [vmem:[#allocation2 + $0xaf] sm:$0xff] }
 0x33e   : > { %2681 = vrot.lane.b32.xlu1 %v2045_v32, %s12964_s1 }
 0x33f   : > { %v9407_v58 = vpop.permute.xlu0 %2307 }
 0x340   : > { %v9409_v59 = vpop.permute.xlu1 %2659 }
 0x341   : > { %13048 = vst [vmem:[#allocation12_spill] sm:$0xff] %v9409_v59  ;;  %3029 = vrot.lane.b32.xlu0 %v2044_v55, %s8423_s24 }
 0x342   : > { %3159 = vrot.lane.b32.xlu1 %v2077_v4, %s8427_s26 }
 0x343   : > { %v9413_v61 = vpop.permute.xlu0 %2785 }
 0x344   : > { %v9415_v26 = vpop.permute.xlu1 %2435 }
 0x345   : > { %2327 = vrot.lane.b32.xlu0 %v2043_v7, %s8421_s2 }
 0x346   : > { %2683 = vrot.lane.b32.xlu1 %v2046_v36, %s12964_s1 }
 0x347   : > { %v9419_v45 = vpop.permute.xlu0 %2309 }
 0x348   : > { %13049 = vst [vmem:[#allocation13_spill] sm:$0xff] %v9419_v45  ;;  %v9421_v37 = vpop.permute.xlu1 %3011 }
 0x349   : > { %13050 = vst [vmem:[#allocation14_spill] sm:$0xff] %v9421_v37  ;;  %2805 = vrot.lane.b32.xlu0 %v2075_v28, %s8426_s25  ;;  %v653_v37 = vadd.s32 240, %v8727_v0 }
 0x34a   : > { %2459 = vrot.lane.b32.xlu1 %v2077_v4, %s8420_s22 }
 0x34b   : > { %v9425_v16 = vpop.permute.xlu0 %2915 }
 0x34c   : > { %13051 = vst [vmem:[#allocation15_spill] sm:$0xff] %v9425_v16  ;;  %v9427_v49 = vpop.permute.xlu1 %2661  ;;  %v2124_v16 = vld [vmem:[#allocation2 + $0x10f] sm:$0xff] }
 0x34d   : > { %13052 = vst [vmem:[#allocation16_spill] sm:$0xff] %v9427_v49  ;;  %2329 = vrot.lane.b32.xlu0 %v2044_v55, %s8421_s2  ;;  %v654_v49 = vadd.s32 248, %v8727_v0 }
 0x34e   : > { %3035 = vrot.lane.b32.xlu1 %v2047_v6, %s8423_s24 }
 0x34f   : > { %v9431_v38 = vpop.permute.xlu0 %2565 }
 0x350   : > { %13053 = vst [vmem:[#allocation17_spill] sm:$0xff] %v9431_v38  ;;  %v9433_v23 = vpop.permute.xlu1 %3139 }
 0x351   : > { %13054 = vst [vmem:[#allocation18_spill] sm:$0xff] %v9433_v23  ;;  %2935 = vrot.lane.b32.xlu0 %v1982_v39, %s8422_s23 }
 0x352   : > { %2685 = vrot.lane.b32.xlu1 %v2047_v6, %s12964_s1 }
 0x353   : > { %v9437_v8 = vpop.permute.xlu0 %3013 }
 0x354   : > { %13055 = vst [vmem:[#allocation19_spill] sm:$0xff] %v9437_v8  ;;  %v9439_v41 = vpop.permute.xlu1 %2663  ;;  %v631_v8 = vadd.s32 64, %v8727_v0 }
 0x355   : > { %13056 = vst [vmem:[#allocation20_spill] sm:$0xff] %v9439_v41  ;;  %2585 = vrot.lane.b32.xlu0 %v1982_v39, %s8425_s20  ;;  %v659_v41 = vand.u32 15, %v8727_v0 }
 0x356   : > { %3163 = vrot.lane.b32.xlu1 %v2079_v3, %s8427_s26 }
 0x357   : > { %v9443_v11 = vpop.permute.xlu0 %2311  ;;  %vm1039_vm4 = vcmp.ge.s32.totalorder %v659_v41, 1 }
 0x358   : > { %13057 = vst [vmem:[#allocation21_spill] sm:$0xff] %v9443_v11  ;;  %v9445_v15 = vpop.permute.xlu1 %2439  ;;  %v10209_v11 = vld [vmem:[#allocation2 + $0xf7] sm:$0xff] }
 0x359   : > { %13058 = vst [vmem:[#allocation22_spill] sm:$0xff] %v9445_v15  ;;  %3033 = vrot.lane.b32.xlu0 %v2046_v36, %s8423_s24  ;;  %v2062_v15 = vld [vmem:[#allocation2 + $0x21] sm:$0xff] }
 0x35a   : > { %2687 = vrot.lane.b32.xlu1 %v2048_v52, %s12964_s1 }
 0x35b   : > { %v9449_v18 = vpop.permute.xlu0 %2789 }
 0x35c   : > { %13059 = vst [vmem:[#allocation23_spill] sm:$0xff] %v9449_v18  ;;  %v9451_v19 = vpop.permute.xlu1 %3015 }
 0x35d   : > { %13060 = vst [vmem:[#allocation24_spill] sm:$0xff] %v9451_v19  ;;  %2331 = vrot.lane.b32.xlu0 %v2045_v32, %s8421_s2  ;;  %v2081_v32 = vld [vmem:[#allocation2 + $0xb9] sm:$0xff] }
 0x35e   : > { %2463 = vrot.lane.b32.xlu1 %v2079_v3, %s8420_s22 }
 0x35f   : > { %v9455_v50 = vpop.permute.xlu0 %2313 }
 0x360   : > { %13061 = vst [vmem:[#allocation25_spill] sm:$0xff] %v9455_v50  ;;  %v9457_v12 = vpop.permute.xlu1 %2665 }
 0x361   : > { %13062 = vst [vmem:[#allocation26_spill] sm:$0xff] %v9457_v12  ;;  %2809 = vrot.lane.b32.xlu0 %v2077_v4, %s8426_s25 }
 0x362   : > { %3039 = vrot.lane.b32.xlu1 %v2049_v9, %s8423_s24 }
 0x363   : > { %v9461_v46 = vpop.permute.xlu0 %2919 }
 0x364   : > { %13063 = vst [vmem:[#allocation27_spill] sm:$0xff] %v9461_v46  ;;  %v9463_v7 = vpop.permute.xlu1 %3143 }
 0x365   : > { %13064 = vst [vmem:[#allocation28_spill] sm:$0xff] %v9463_v7  ;;  %2333 = vrot.lane.b32.xlu0 %v2046_v36, %s8421_s2  ;;  %v629_v7 = vadd.s32 48, %v8727_v0 }
 0x366   : > { %2689 = vrot.lane.b32.xlu1 %v2049_v9, %s12964_s1 }
 0x367   : > { %v9467_v28 = vpop.permute.xlu0 %2569 }
 0x368   : > { %13065 = vst [vmem:[#allocation29_spill] sm:$0xff] %v9467_v28  ;;  %v9469_v55 = vpop.permute.xlu1 %2667 }
 0x369   : > { %13066 = vst [vmem:[#allocation30_spill] sm:$0xff] %v9469_v55  ;;  %2939 = vrot.lane.b32.xlu0 %v1984_v44, %s8422_s23 }
 0x36a   : > { %3167 = vrot.lane.b32.xlu1 %v2081_v32, %s8427_s26 }
 0x36b   : > { %v9473_v4 = vpop.permute.xlu0 %3017 }
 0x36c   : > { %13067 = vst [vmem:[#allocation31_spill] sm:$0xff] %v9473_v4  ;;  %v9475_v39 = vpop.permute.xlu1 %2443  ;;  %v2083_v4 = vld [vmem:[#allocation2 + $0xc9] sm:$0xff] }
 0x36d   : > { %13068 = vst [vmem:[#allocation32_spill] sm:$0xff] %v9475_v39  ;;  %2589 = vrot.lane.b32.xlu0 %v1984_v44, %s8425_s20  ;;  %v625_v39 = vadd.s32 16, %v8727_v0 }
 0x36e   : > { %2691 = vrot.lane.b32.xlu1 %v2050_v1, %s12964_s1 }
 0x36f   : > { %v9479_v36 = vpop.permute.xlu0 %2315 }
 0x370   : > { %13069 = vst [vmem:[#allocation33_spill] sm:$0xff] %v9479_v36  ;;  %v9481_v10 = vpop.permute.xlu1 %3019  ;;  %v9739_v36 = vld [vmem:[#allocation2 + $0x47] sm:$0xff] }
 0x371   : > { %13070 = vst [vmem:[#allocation34_spill] sm:$0xff] %v9481_v10  ;;  %3037 = vrot.lane.b32.xlu0 %v2048_v52, %s8423_s24 }
 0x372   : > { %2467 = vrot.lane.b32.xlu1 %v2081_v32, %s8420_s22 }
 0x373   : > { %v9485_v27 = vpop.permute.xlu0 %2793 }
 0x374   : > { %13071 = vst [vmem:[#allocation35_spill] sm:$0xff] %v9485_v27  ;;  %v9487_v21 = vpop.permute.xlu1 %2669  ;;  %v9702_v27 = vld [vmem:[#allocation2 + $0x37] sm:$0xff] }
 0x375   : > { %13072 = vst [vmem:[#allocation36_spill] sm:$0xff] %v9487_v21  ;;  %2335 = vrot.lane.b32.xlu0 %v2047_v6, %s8421_s2 }
 0x376   : > { %3043 = vrot.lane.b32.xlu1 %v2051_v54, %s8423_s24 }
 0x377   : > { %v9491_v44 = vpop.permute.xlu0 %2317 }
 0x378   : > { %13073 = vst [vmem:[#allocation37_spill] sm:$0xff] %v9491_v44  ;;  %v9493_v55 = vpop.permute.xlu1 %3147  ;;  %v1986_v44 = vld [vmem:[#allocation2 + $0xbf] sm:$0xff] }
 0x379   : > { %13074 = vst [vmem:[#allocation38_spill] sm:$0xff] %v9493_v55  ;;  %2813 = vrot.lane.b32.xlu0 %v2079_v3, %s8426_s25  ;;  %v2052_v55 = vld [vmem:[#allocation2 + $0xd0] sm:$0xff] }
 0x37a   : > { %2693 = vrot.lane.b32.xlu1 %v2051_v54, %s12964_s1 }
 0x37b   : > { %v9497_v28 = vpop.permute.xlu0 %2923 }
 0x37c   : > { %13075 = vst [vmem:[#allocation39_spill] sm:$0xff] %v9497_v28  ;;  %v9499_v50 = vpop.permute.xlu1 %2671 }
 0x37d   : > { %13076 = vst [vmem:[#allocation40_spill] sm:$0xff] %v9499_v50  ;;  %2337 = vrot.lane.b32.xlu0 %v2048_v52, %s8421_s2 }
 0x37e   : > { %3171 = vrot.lane.b32.xlu1 %v2083_v4, %s8427_s26 }
 0x37f   : > { %v9503_v6 = vpop.permute.xlu0 %2573 }
 0x380   : > { %13077 = vst [vmem:[#allocation41_spill] sm:$0xff] %v9503_v6  ;;  %v9505_v21 = vpop.permute.xlu1 %2447  ;;  %v2053_v6 = vld [vmem:[#allocation2 + $0xd8] sm:$0xff] }
 0x381   : > { %13078 = vst [vmem:[#allocation42_spill] sm:$0xff] %v9505_v21  ;;  %2943 = vrot.lane.b32.xlu0 %v1986_v44, %s8422_s23 }
 0x382   : > { %2695 = vrot.lane.b32.xlu1 %v2052_v55, %s12964_s1 }
 0x383   : > { %v9509_v3 = vpop.permute.xlu0 %3021 }
 0x384   : > { %13079 = vst [vmem:[#allocation43_spill] sm:$0xff] %v9509_v3  ;;  %v9511_v28 = vpop.permute.xlu1 %3023 }
 0x385   : > { %13080 = vst [vmem:[#allocation44_spill] sm:$0xff] %v9511_v28  ;;  %2593 = vrot.lane.b32.xlu0 %v1986_v44, %s8425_s20 }
 0x386   : > { %2471 = vrot.lane.b32.xlu1 %v2083_v4, %s8420_s22 }
 0x387   : > { %v9515_v52 = vpop.permute.xlu0 %2319 }
 0x388   : > { %13081 = vst [vmem:[#allocation45_spill] sm:$0xff] %v9515_v52  ;;  %v9517_v50 = vpop.permute.xlu1 %2673 }
 0x389   : > { %13082 = vst [vmem:[#allocation46_spill] sm:$0xff] %v9517_v50  ;;  %3041 = vrot.lane.b32.xlu0 %v2050_v1, %s8423_s24  ;;  %v2085_v50 = vld [vmem:[#allocation2 + $0xd9] sm:$0xff] }
 0x38a   : > { %3047 = vrot.lane.b32.xlu1 %v2053_v6, %s8423_s24 }
 0x38b   : > { %v9521_v21 = vpop.permute.xlu0 %2797 }
 0x38c   : > { %13083 = vst [vmem:[#allocation47_spill] sm:$0xff] %v9521_v21  ;;  %v9523_v46 = vpop.permute.xlu1 %3151 }
 0x38d   : > { %13084 = vst [vmem:[#allocation48_spill] sm:$0xff] %v9523_v46  ;;  %2339 = vrot.lane.b32.xlu0 %v2049_v9, %s8421_s2  ;;  %v2054_v46 = vld [vmem:[#allocation2 + $0xe0] sm:$0xff] }
 0x38e   : > { %2697 = vrot.lane.b32.xlu1 %v2053_v6, %s12964_s1 }
 0x38f   : > { %v9527_v44 = vpop.permute.xlu0 %2321 }
 0x390   : > { %13085 = vst [vmem:[#allocation49_spill] sm:$0xff] %v9527_v44  ;;  %v9529_v3 = vpop.permute.xlu1 %2675  ;;  %v1988_v44 = vld [vmem:[#allocation2 + $0xcf] sm:$0xff] }
 0x391   : > { %13086 = vst [vmem:[#allocation50_spill] sm:$0xff] %v9529_v3  ;;  %2817 = vrot.lane.b32.xlu0 %v2081_v32, %s8426_s25 }
 0x392   : > { %3175 = vrot.lane.b32.xlu1 %v2085_v50, %s8427_s26 }
 0x393   : > { %v9533_v28 = vpop.permute.xlu0 %2927 }
 0x394   : > { %13087 = vst [vmem:[#allocation51_spill] sm:$0xff] %v9533_v28  ;;  %v9535_v52 = vpop.permute.xlu1 %2451  ;;  %v9550_v28 = vld [vmem:[#allocation2 + $0xe8] sm:$0xff] }
 0x395   : > { %13088 = vst [vmem:[#allocation52_spill] sm:$0xff] %v9535_v52  ;;  %2341 = vrot.lane.b32.xlu0 %v2050_v1, %s8421_s2 }
 0x396   : > { %2699 = vrot.lane.b32.xlu1 %v2054_v46, %s12964_s1 }
 0x397   : > { %v9539_v9 = vpop.permute.xlu0 %2577 }
 0x398   : > { %13089 = vst [vmem:[#allocation53_spill] sm:$0xff] %v9539_v9  ;;  %v9541_v21 = vpop.permute.xlu1 %3027 }
 0x399   : > { %13090 = vst [vmem:[#allocation54_spill] sm:$0xff] %v9541_v21  ;;  %2947 = vrot.lane.b32.xlu0 %v1988_v44, %s8422_s23 }
 0x39a   : > { %2475 = vrot.lane.b32.xlu1 %v2085_v50, %s8420_s22 }
 0x39b   : > { %v9545_v32 = vpop.permute.xlu0 %3025 }
 0x39c   : > { %13091 = vst [vmem:[#allocation55_spill] sm:$0xff] %v9545_v32  ;;  %v9547_v3 = vpop.permute.xlu1 %2677 }
 0x39d   : > { %13092 = vst [vmem:[#allocation56_spill] sm:$0xff] %v9547_v3  ;;  %2597 = vrot.lane.b32.xlu0 %v1988_v44, %s8425_s20  ;;  %v9566_v44 = vld [vmem:[#allocation2 + $0xe9] sm:$0xff] }
 0x39e   : > { %3051 = vrot.lane.b32.xlu1 %v9550_v28, %s8423_s24 }
 0x39f   : > { %v9554_v1 = vpop.permute.xlu0 %2323 }
 0x3a0   : > { %13093 = vst [vmem:[#allocation57_spill] sm:$0xff] %v9554_v1  ;;  %v9556_v9 = vpop.permute.xlu1 %3155 }
 0x3a1   : > { %13094 = vst [vmem:[#allocation58_spill] sm:$0xff] %v9556_v9  ;;  %3045 = vrot.lane.b32.xlu0 %v2052_v55, %s8423_s24  ;;  %v9575_v9 = vld [vmem:[#allocation2 + $0xf0] sm:$0xff] }
 0x3a2   : > { %2701 = vrot.lane.b32.xlu1 %v9550_v28, %s12964_s1 }
 0x3a3   : > { %v9561_v21 = vpop.permute.xlu0 %2801 }
 0x3a4   : > { %13095 = vst [vmem:[#allocation59_spill] sm:$0xff] %v9561_v21  ;;  %v9563_v32 = vpop.permute.xlu1 %2679 }
 0x3a5   : > { %13096 = vst [vmem:[#allocation60_spill] sm:$0xff] %v9563_v32  ;;  %2343 = vrot.lane.b32.xlu0 %v2051_v54, %s8421_s2 }
 0x3a6   : > { %3179 = vrot.lane.b32.xlu1 %v9566_v44, %s8427_s26 }
 0x3a7   : > { %v9570_v3 = vpop.permute.xlu0 %2325 }
 0x3a8   : > { %13097 = vst [vmem:[#allocation61_spill] sm:$0xff] %v9570_v3  ;;  %v9572_v52 = vpop.permute.xlu1 %2455 }
 0x3a9   : > { %13098 = vst [vmem:[#allocation62_spill] sm:$0xff] %v9572_v52  ;;  %2821 = vrot.lane.b32.xlu0 %v2083_v4, %s8426_s25  ;;  %v1990_v52 = vld [vmem:[#allocation2 + $0xdf] sm:$0xff] }
 0x3aa   : > { %2703 = vrot.lane.b32.xlu1 %v9575_v9, %s12964_s1  ;;  %v9591_v4 = vld [vmem:[#allocation2 + $0xf8] sm:$0xff] }
 0x3ab   : > { %v9579_v21 = vpop.permute.xlu0 %2931 }
 0x3ac   : > { %13099 = vst [vmem:[#allocation63_spill] sm:$0xff] %v9579_v21  ;;  %v9581_v32 = vpop.permute.xlu1 %3031 }
 0x3ad   : > { %13100 = vst [vmem:[#allocation64_spill] sm:$0xff] %v9581_v32  ;;  %2345 = vrot.lane.b32.xlu0 %v2052_v55, %s8421_s2 }
 0x3ae   : > { %2479 = vrot.lane.b32.xlu1 %v9566_v44, %s8420_s22 }
 0x3af   : > { %v9586_v54 = vpop.permute.xlu0 %2581 }
 0x3b0   : > { %13101 = vst [vmem:[#allocation65_spill] sm:$0xff] %v9586_v54  ;;  %v9588_v3 = vpop.permute.xlu1 %2681 }
 0x3b1   : > { %13102 = vst [vmem:[#allocation66_spill] sm:$0xff] %v9588_v3  ;;  %2951 = vrot.lane.b32.xlu0 %v1990_v52, %s8422_s23  ;;  %v9607_v3 = vld [vmem:[#allocation2 + $0xf9] sm:$0xff] }
 0x3b2   : > { %3055 = vrot.lane.b32.xlu1 %v9591_v4, %s8423_s24 }
 0x3b3   : > { %v9595_v21 = vpop.permute.xlu0 %3029 }
 0x3b4   : > { %13103 = vst [vmem:[#allocation67_spill] sm:$0xff] %v9595_v21  ;;  %v9597_v32 = vpop.permute.xlu1 %3159 }
 0x3b5   : > { %13104 = vst [vmem:[#allocation68_spill] sm:$0xff] %v9597_v32  ;;  %2601 = vrot.lane.b32.xlu0 %v1990_v52, %s8425_s20  ;;  %v9616_v52 = vld [vmem:[#allocation2 + $0x100] sm:$0xff] }
 0x3b6   : > { %2705 = vrot.lane.b32.xlu1 %v9591_v4, %s12964_s1 }
 0x3b7   : > { %v9602_v55 = vpop.permute.xlu0 %2327 }
 0x3b8   : > { %13105 = vst [vmem:[#allocation69_spill] sm:$0xff] %v9602_v55  ;;  %v9604_v54 = vpop.permute.xlu1 %2683 }
 0x3b9   : > { %13106 = vst [vmem:[#allocation70_spill] sm:$0xff] %v9604_v54  ;;  %3049 = vrot.lane.b32.xlu0 %v2054_v46, %s8423_s24 }
 0x3ba   : > { %3183 = vrot.lane.b32.xlu1 %v9607_v3, %s8427_s26 }
 0x3bb   : > { %v9611_v1 = vpop.permute.xlu0 %2805 }
 0x3bc   : > { %13107 = vst [vmem:[#allocation71_spill] sm:$0xff] %v9611_v1  ;;  %v9613_v21 = vpop.permute.xlu1 %2459 }
 0x3bd   : > { %13108 = vst [vmem:[#allocation72_spill] sm:$0xff] %v9613_v21  ;;  %2347 = vrot.lane.b32.xlu0 %v2053_v6, %s8421_s2  ;;  %v2157_v6 = vld [vmem:[#allocation2 + $0x108] sm:$0xff]  ;;  %v624_v21 = vadd.s32 8, %v8727_v0 }
 0x3be   : > { %2707 = vrot.lane.b32.xlu1 %v9616_v52, %s12964_s1 }
 0x3bf   : > { %v9620_v32 = vpop.permute.xlu0 %2329 }
 0x3c0   : > { %13109 = vst [vmem:[#allocation73_spill] sm:$0xff] %v9620_v32  ;;  %v9622_v54 = vpop.permute.xlu1 %3035 }
 0x3c1   : > { %13110 = vst [vmem:[#allocation74_spill] sm:$0xff] %v9622_v54  ;;  %2825 = vrot.lane.b32.xlu0 %v2085_v50, %s8426_s25  ;;  %v1992_v54 = vld [vmem:[#allocation2 + $0xef] sm:$0xff]  ;;  %v666_v50 = vand.u32 15, %v624_v21  ;;  %v13119_v21 = vmov 0.0  }
 0x3c2   : > { %2483 = vrot.lane.b32.xlu1 %v9607_v3, %s8420_s22 }
 0x3c3   : > { %v9627_v55 = vpop.permute.xlu0 %2935  ;;  %vm1136_vm3 = vcmp.le.s32.totalorder %v666_v50, 14 }
 0x3c4   : > { %13111 = vst [vmem:[#allocation75_spill] sm:$0xff] %v9627_v55  ;;  %v9629_v1 = vpop.permute.xlu1 %2685 }
 0x3c5   : > { %13112 = vst [vmem:[#allocation76_spill] sm:$0xff] %v9629_v1  ;;  %2349 = vrot.lane.b32.xlu0 %v2054_v46, %s8421_s2  ;;  %v2159_v46 = vld [vmem:[#allocation2 + $0x109] sm:$0xff] }
 0x3c6   : > { %3059 = vrot.lane.b32.xlu1 %v2157_v6, %s8423_s24 }
 0x3c7   : > { %v9634_v10 = vpop.permute.xlu0 %2585 }
 0x3c8   : > { %13113 = vst [vmem:[#allocation77_spill] sm:$0xff] %v9634_v10  ;;  %v9636_v32 = vpop.permute.xlu1 %3163 }
 0x3c9   : > { %13114 = vst [vmem:[#allocation78_spill] sm:$0xff] %v9636_v32  ;;  %2955 = vrot.lane.b32.xlu0 %v1992_v54, %s8422_s23 }
 0x3ca   : > { %2709 = vrot.lane.b32.xlu1 %v2157_v6, %s12964_s1  ;;  %v9655_v6 = vsel %vm1136_vm3, 1.0, %v13119_v21 }
 0x3cb   : > { %v9640_v55 = vpop.permute.xlu0 %3033  ;;  %13120 = vst [vmem:[#allocation83_spill] sm:$0xff] %v9655_v6 }
 0x3cc   : > { %13115 = vst [vmem:[#allocation79_spill] sm:$0xff] %v9640_v55  ;;  %v9642_v1 = vpop.permute.xlu1 %2687 }
 0x3cd   : > { %13116 = vst [vmem:[#allocation80_spill] sm:$0xff] %v9642_v1  ;;  %2605 = vrot.lane.b32.xlu0 %v1992_v54, %s8425_s20  ;;  %v2060_v1 = vld [vmem:[#allocation2 + $0x11] sm:$0xff]  ;;  %v673_v54 = vand.u32 15, %v625_v39 }
 0x3ce   : > { %3187 = vrot.lane.b32.xlu1 %v2159_v46, %s8427_s26  ;;  %v2092_v50 = vmul.f32 %v9655_v6, %v2060_v1 }
 0x3cf   : > { %v9648_v10 = vpop.permute.xlu0 %2331  ;;  %vm1041_vm5 = vcmp.ge.s32.totalorder %v673_v54, 1 }
 0x3d0   : > { %13117 = vst [vmem:[#allocation81_spill] sm:$0xff] %v9648_v10  ;;  %v9650_v32 = vpop.permute.xlu1 %2463  ;;  %v9664_v10 = vsel %vm1039_vm4, 1.0, %v13119_v21  ;;  %v9678_v1 = vsel %vm1041_vm5, 1.0, %v13119_v21 }
 0x3d1   : > { %13118 = vst [vmem:[#allocation82_spill] sm:$0xff] %v9650_v32  ;;  %3053 = vrot.lane.b32.xlu0 %v9575_v9, %s8423_s24  ;;  %13123 = vst [vmem:[#allocation86_spill] sm:$0xff] %v9664_v10  ;;  %v9666_v32 = vld [vmem:[#allocation2 + $0x27] sm:$0xff] }
 0x3d2   : > { %2837 = vrot.lane.b32.xlu1 %v2159_v46, %s8426_s25  ;;  %v2195_v46 = vmul.f32 %v9664_v10, %v9666_v32  ;;  %13126 = vst [vmem:[#allocation89_spill] sm:$0xff] %v9678_v1 }
 0x3d3   : > { %v9658_v55 = vpop.permute.xlu0 %2809 }
 0x3d4   : > { %13121 = vst [vmem:[#allocation84_spill] sm:$0xff] %v9658_v55  ;;  %v9660_v38 = vpop.permute.xlu1 %3039 }
 0x3d5   : > { %13122 = vst [vmem:[#allocation85_spill] sm:$0xff] %v9660_v38  ;;  %2351 = vrot.lane.b32.xlu0 %v9550_v28, %s8421_s2  ;;  %v627_v38 = vadd.s32 32, %v8727_v0 }
 0x3d6   : > { %2425 = vrot.lane.b32.xlu1 %v2092_v50, %s8420_s22  ;;  %v2127_v50 = vmul.f32 %v9678_v1, %v9666_v32 }
 0x3d7   : > { %v9671_v41 = vpop.permute.xlu0 %2333 }
 0x3d8   : > { %13124 = vst [vmem:[#allocation87_spill] sm:$0xff] %v9671_v41  ;;  %v9673_v39 = vpop.permute.xlu1 %2689  ;;  %v9692_v41 = vld [vmem:[#allocation2 + $0x31] sm:$0xff] }
 0x3d9   : > { %13125 = vst [vmem:[#allocation88_spill] sm:$0xff] %v9673_v39  ;;  %2829 = vrot.lane.b32.xlu0 %v9566_v44, %s8426_s25  ;;  %v687_v39 = vand.u32 15, %v627_v38  ;;  %v626_v44 = vadd.s32 24, %v8727_v0 }
 0x3da   : > { %2905 = vrot.lane.b32.xlu1 %v2195_v46, %s8422_s23 }
 0x3db   : > { %v9684_v28 = vpop.permute.xlu0 %2939  ;;  %vm1043_vm6 = vcmp.ge.s32.totalorder %v687_v39, 1  ;;  %v680_v38 = vand.u32 15, %v626_v44 }
 0x3dc   : > { %13127 = vst [vmem:[#allocation90_spill] sm:$0xff] %v9684_v28  ;;  %v9686_v54 = vpop.permute.xlu1 %3167  ;;  %v1994_v28 = vld [vmem:[#allocation2 + $0xff] sm:$0xff] }
 0x3dd   : > { %13128 = vst [vmem:[#allocation91_spill] sm:$0xff] %v9686_v54  ;;  %2353 = vrot.lane.b32.xlu0 %v9575_v9, %s8421_s2  ;;  %v2232_v54 = vmul.f32 %v9655_v6, %v9692_v41  ;;  %vm1138_vm7 = vcmp.le.s32.totalorder %v680_v38, 14 }
 0x3de   : > { %2555 = vrot.lane.b32.xlu1 %v2127_v50, %s8425_s20 }
 0x3df   : > { %v9696_v55 = vpop.permute.xlu0 %2589 }
 0x3e0   : > { %13129 = vst [vmem:[#allocation92_spill] sm:$0xff] %v9696_v55  ;;  %v9698_v46 = vpop.permute.xlu1 %2691  ;;  %v2197_v55 = vmul.f32 %v9678_v1, %v9702_v27 }
 0x3e1   : > { %13130 = vst [vmem:[#allocation93_spill] sm:$0xff] %v9698_v46  ;;  %2959 = vrot.lane.b32.xlu0 %v1994_v28, %s8422_s23  ;;  %v9713_v46 = vsel %vm1043_vm6, 1.0, %v13119_v21 }
 0x3e2   : > { %3133 = vrot.lane.b32.xlu1 %v2232_v54, %s8427_s26  ;;  %13133 = vst [vmem:[#allocation96_spill] sm:$0xff] %v9713_v46  ;;  %v2129_v44 = vmul.f32 %v9713_v46, %v9702_v27 }
 0x3e3   : > { %v9706_v9 = vpop.permute.xlu0 %3037 }
 0x3e4   : > { %13131 = vst [vmem:[#allocation94_spill] sm:$0xff] %v9706_v9  ;;  %v9708_v50 = vpop.permute.xlu1 %2467  ;;  %v9729_v9 = vld [vmem:[#allocation2 + $0x41] sm:$0xff] }
 0x3e5   : > { %13132 = vst [vmem:[#allocation95_spill] sm:$0xff] %v9708_v50  ;;  %2609 = vrot.lane.b32.xlu0 %v1994_v28, %s8425_s20  ;;  %v9727_v50 = vsel %vm1138_vm7, 1.0, %v13119_v21  ;;  %v701_v28 = vand.u32 15, %v629_v7 }
 0x3e6   : > { %2909 = vrot.lane.b32.xlu1 %v2197_v55, %s8422_s23  ;;  %13136 = vst [vmem:[#allocation99_spill] sm:$0xff] %v9727_v50  ;;  %v628_v55 = vadd.s32 40, %v8727_v0 }
 0x3e7   : > { %v9718_v39 = vpop.permute.xlu0 %2335  ;;  %vm1045_vm8 = vcmp.ge.s32.totalorder %v701_v28, 1 }
 0x3e8   : > { %13134 = vst [vmem:[#allocation97_spill] sm:$0xff] %v9718_v39  ;;  %v9720_v54 = vpop.permute.xlu1 %3043  ;;  %v694_v7 = vand.u32 15, %v628_v55 }
 0x3e9   : > { %13135 = vst [vmem:[#allocation98_spill] sm:$0xff] %v9720_v54  ;;  %3057 = vrot.lane.b32.xlu0 %v9616_v52, %s8423_s24  ;;  %v2234_v54 = vmul.f32 %v9727_v50, %v9729_v9 }
 0x3ea   : > { %2559 = vrot.lane.b32.xlu1 %v2129_v44, %s8425_s20  ;;  %vm1140_vm9 = vcmp.le.s32.totalorder %v694_v7, 14  ;;  %v9774_v7 = vld [vmem:[#allocation2 + $0x51] sm:$0xff] }
 0x3eb   : > { %v9733_v38 = vpop.permute.xlu0 %2813 }
 0x3ec   : > { %13137 = vst [vmem:[#allocation100_spill] sm:$0xff] %v9733_v38  ;;  %v9735_v39 = vpop.permute.xlu1 %2693  ;;  %v2199_v38 = vmul.f32 %v9713_v46, %v9739_v36 }
 0x3ed   : > { %13138 = vst [vmem:[#allocation101_spill] sm:$0xff] %v9735_v39  ;;  %2355 = vrot.lane.b32.xlu0 %v9591_v4, %s8421_s2  ;;  %v9751_v39 = vsel %vm1045_vm8, 1.0, %v13119_v21  ;;  %v3490_v4 = vld [vmem:[%s12868_s4] sm:$0xff] }
 0x3ee   : > { %3137 = vrot.lane.b32.xlu1 %v2234_v54, %s8427_s26  ;;  %13141 = vst [vmem:[#allocation104_spill] sm:$0xff] %v9751_v39  ;;  %v3491_v54 = vld [vmem:[%s12868_s4 + $0x8] sm:$0xff] }
 0x3ef   : > { %v9744_v45 = vpop.permute.xlu0 %2337  ;;  %v7435_v55 = vpack.c.bf16 %v3491_v54, %v3490_v4  ;;  %v3492_v4 = vld [vmem:[%s12868_s4 + $0x10] sm:$0xff] }
 0x3f0   : > { %13139 = vst [vmem:[#allocation102_spill] sm:$0xff] %v9744_v45  ;;  %v9746_v44 = vpop.permute.xlu1 %3171  ;;  %v715_v45 = vand.u32 15, %v631_v8 }
 0x3f1   : > { %13140 = vst [vmem:[#allocation103_spill] sm:$0xff] %v9746_v44  ;;  %2833 = vrot.lane.b32.xlu0 %v9607_v3, %s8426_s25  ;;  %v2131_v3 = vmul.f32 %v9751_v39, %v9739_v36  ;;  %7436 = vmatprep.subr.bf16.mxu0 %v7435_v55 }
 0x3f2   : > { %2913 = vrot.lane.b32.xlu1 %v2199_v38, %s8422_s23  ;;  %v9772_v38 = vsel %vm1140_vm9, 1.0, %v13119_v21  ;;  %7438 = vmatpush3.bf16.msra.mxu0 %v7435_v55  ;;  %vm1047_vm10 = vcmp.ge.s32.totalorder %v715_v45, 1 }
 0x3f3   : > { %v9763_v28 = vpop.permute.xlu0 %2943  ;;  %13144 = vst [vmem:[#allocation107_spill] sm:$0xff] %v9772_v38  ;;  %v2236_v8 = vmul.f32 %v9772_v38, %v9774_v7 }
 0x3f4   : > { %13142 = vst [vmem:[#allocation105_spill] sm:$0xff] %v9763_v28  ;;  %v9765_v44 = vpop.permute.xlu1 %2695  ;;  %v630_v28 = vadd.s32 56, %v8727_v0 }
 0x3f5   : > { %13143 = vst [vmem:[#allocation106_spill] sm:$0xff] %v9765_v44  ;;  %2357 = vrot.lane.b32.xlu0 %v9616_v52, %s8421_s2  ;;  %v3493_v52 = vld [vmem:[%s12868_s4 + $0x18] sm:$0xff]  ;;  %s13563_s2 = sshll.u32 %s13565_s28, 8 }
 0x3f6   : > { %2563 = vrot.lane.b32.xlu1 %v2131_v3, %s8425_s20  ;;  %v7439_v44 = vpack.c.bf16 %v3493_v52, %v3492_v4  ;;  %v9790_v3 = vld [vmem:[#allocation2 + $0x57] sm:$0xff]  ;;  %v708_v55 = vand.u32 15, %v630_v28  ;;  %v3494_v4 = vld [vmem:[%s12868_s4 + $0x20] sm:$0xff]  ;;  %v3495_v52 = vld [vmem:[%s12868_s4 + $0x28] sm:$0xff] }
 0x3f7   : > { %v9784_v54 = vpop.permute.xlu0 %2593  ;;  %13147 = vst [vmem:[#allocation110_spill] sm:$0xff] %v9790_v3  ;;  %v2201_v45 = vmul.f32 %v9751_v39, %v9790_v3  ;;  %v3496_v28 = vld [vmem:[%s12868_s4 + $0x30] sm:$0xff] }
 0x3f8   : > { %13145 = vst [vmem:[#allocation108_spill] sm:$0xff] %v9784_v54  ;;  %v9786_v12 = vpop.permute.xlu1 %2471  ;;  %7440 = vmatprep.subr.bf16.mxu0 %v7439_v44  ;;  %v7443_v54 = vpack.c.bf16 %v3495_v52, %v3494_v4  ;;  %vm1142_vm11 = vcmp.le.s32.totalorder %v708_v55, 14  ;;  %v3497_v4 = vld [vmem:[%s12868_s4 + $0x38] sm:$0xff]  ;;  %v9828_v55 = vld [vmem:[#allocation2 + $0x61] sm:$0xff] }
 0x3f9   : > { %13146 = vst [vmem:[#allocation109_spill] sm:$0xff] %v9786_v12  ;;  %2963 = vrot.lane.b32.xlu0 %v2124_v16, %s8422_s23  ;;  %7442 = vmatpush3.bf16.msra.mxu0 %v7439_v44  ;;  %v633_v44 = vadd.s32 80, %v8727_v0 }
 0x3fa   : > { %3141 = vrot.lane.b32.xlu1 %v2236_v8, %s8427_s26  ;;  %v9807_v8 = vsel %vm1047_vm10, 1.0, %v13119_v21  ;;  %7444 = vmatprep.subr.bf16.mxu0 %v7443_v54 }
 0x3fb   : > { %v9800_v12 = vpop.permute.xlu0 %3041  ;;  %13150 = vst [vmem:[#allocation113_spill] sm:$0xff] %v9807_v8  ;;  %v2133_v59 = vmul.f32 %v9807_v8, %v9790_v3 }
 0x3fc   : > { %13148 = vst [vmem:[#allocation111_spill] sm:$0xff] %v9800_v12  ;;  %v9802_v19 = vpop.permute.xlu1 %3047 }
 0x3fd   : > { %13149 = vst [vmem:[#allocation112_spill] sm:$0xff] %v9802_v19  ;;  %2613 = vrot.lane.b32.xlu0 %v2124_v16, %s8425_s20  ;;  %7446 = vmatpush3.bf16.msra.mxu0 %v7443_v54  ;;  %v7447_v19 = vpack.c.bf16 %v3497_v4, %v3496_v28  ;;  %v2158_v16 = vld [vmem:[#allocation2 + $0x110] sm:$0xff]  ;;  %v9826_v54 = vsel %vm1142_vm11, 1.0, %v13119_v21  ;;  %v3498_v28 = vld [vmem:[%s12868_s4 + $0x40] sm:$0xff] }
 0x3fe   : > { %2917 = vrot.lane.b32.xlu1 %v2201_v45, %s8422_s23  ;;  %13153 = vst [vmem:[#allocation116_spill] sm:$0xff] %v9826_v54  ;;  %v729_v45 = vand.u32 15, %v633_v44  ;;  %v2238_v30 = vmul.f32 %v9826_v54, %v9828_v55  ;;  %v9843_v44 = vld [vmem:[#allocation2 + $0x67] sm:$0xff] }
 0x3ff   : > { %v9818_v52 = vpop.permute.xlu0 %2339  ;;  %7448 = vmatprep.subr.bf16.mxu0 %v7447_v19  ;;  %13156 = vst [vmem:[#allocation119_spill] sm:$0xff] %v9843_v44 }
 0x400   : > { %13151 = vst [vmem:[#allocation114_spill] sm:$0xff] %v9818_v52  ;;  %v9820_v12 = vpop.permute.xlu1 %2697  ;;  %v632_v52 = vadd.s32 72, %v8727_v0  ;;  %vm1049_vm12 = vcmp.ge.s32.totalorder %v729_v45, 1 }
 0x401   : > { %13152 = vst [vmem:[#allocation115_spill] sm:$0xff] %v9820_v12  ;;  %3061 = vrot.lane.b32.xlu0 %v2158_v16, %s8423_s24  ;;  %7450 = vmatpush3.bf16.msra.mxu0 %v7447_v19  ;;  %v9837_v12 = vld [vmem:[#allocation2 + $0x17] sm:$0xff]  ;;  %v9856_v23 = vsel %vm1049_vm12, 1.0, %v13119_v21 }
 0x402   : > { %2567 = vrot.lane.b32.xlu1 %v2133_v59, %s8425_s20  ;;  %7279 = vmatprep.subr.mxu0 %v3498_v28  ;;  %v722_v59 = vand.u32 15, %v632_v52  ;;  %13159 = vst [vmem:[#allocation122_spill] sm:$0xff] %v9856_v23 }
 0x403   : > { %v9835_v4 = vpop.permute.xlu0 %2817 }
 0x404   : > { %13154 = vst [vmem:[#allocation117_spill] sm:$0xff] %v9835_v4  ;;  %v9839_v3 = vpop.permute.xlu1 %3175  ;;  %v2125_v4 = vmul.f32 %v9664_v10, %v9837_v12  ;;  %vm1144_vm13 = vcmp.le.s32.totalorder %v722_v59, 14 }
 0x405   : > { %13155 = vst [vmem:[#allocation118_spill] sm:$0xff] %v9839_v3  ;;  %2711 = vrot.lane.b32.xlu0 %v2158_v16, %s12964_s1  ;;  %7280 = vmatpush3.msra.mxu0 %v3498_v28  ;;  %v2203_v3 = vmul.f32 %v9807_v8, %v9843_v44  ;;  %v2162_v16 = vmul.f32 %v9655_v6, %v2062_v15 }
 0x406   : > { %3145 = vrot.lane.b32.xlu1 %v2238_v30, %s8427_s26  ;;  %v635_v30 = vadd.s32 96, %v8727_v0  ;;  %v2135_v28 = vmul.f32 %v9856_v23, %v9843_v44  ;;  %v2094_v6 = vmul.f32 %v9727_v50, %v2062_v15 }
 0x407   : > { %v9847_v19 = vpop.permute.xlu0 %2341 }
 0x408   : > { %13157 = vst [vmem:[#allocation120_spill] sm:$0xff] %v9847_v19  ;;  %v9851_v18 = vpop.permute.xlu1 %2699  ;;  %v743_v19 = vand.u32 15, %v635_v30 }
 0x409   : > { %13158 = vst [vmem:[#allocation121_spill] sm:$0xff] %v9851_v18  ;;  %2551 = vrot.lane.b32.xlu0 %v2125_v4, %s8425_s20  ;;  %v9870_v18 = vsel %vm1144_vm13, 1.0, %v13119_v21  ;;  %v9872_v4 = vld [vmem:[#allocation2 + $0x71] sm:$0xff] }
 0x40a   : > { %2921 = vrot.lane.b32.xlu1 %v2203_v3, %s8422_s23  ;;  %13162 = vst [vmem:[#allocation125_spill] sm:$0xff] %v9870_v18  ;;  %v634_v3 = vadd.s32 88, %v8727_v0  ;;  %vm1051_vm14 = vcmp.ge.s32.totalorder %v743_v19, 1 }
 0x40b   : > { %v9861_v52 = vpop.permute.xlu0 %2947 }
 0x40c   : > { %13160 = vst [vmem:[#allocation123_spill] sm:$0xff] %v9861_v52  ;;  %v9864_v45 = vpop.permute.xlu1 %2475  ;;  %v2240_v52 = vmul.f32 %v9870_v18, %v9872_v4  ;;  %v736_v30 = vand.u32 15, %v634_v3 }
 0x40d   : > { %13161 = vst [vmem:[#allocation124_spill] sm:$0xff] %v9864_v45  ;;  %2779 = vrot.lane.b32.xlu0 %v2162_v16, %s8426_s25  ;;  %v9883_v16 = vld [vmem:[#allocation2 + $0x77] sm:$0xff] }
 0x40e   : > { %2571 = vrot.lane.b32.xlu1 %v2135_v28, %s8425_s20  ;;  %13165 = vst [vmem:[#allocation128_spill] sm:$0xff] %v9883_v16  ;;  %v2205_v15 = vmul.f32 %v9856_v23, %v9883_v16  ;;  %vm1146_vm15 = vcmp.le.s32.totalorder %v736_v30, 14  ;;  %v636_v30 = vadd.s32 104, %v8727_v0  ;;  %v2086_v23 = vld [vmem:[#allocation2 + $0xe1] sm:$0xff] }
 0x40f   : > { %v9876_v59 = vpop.permute.xlu0 %2597 }
 0x410   : > { %13163 = vst [vmem:[#allocation126_spill] sm:$0xff] %v9876_v59  ;;  %v9879_v45 = vpop.permute.xlu1 %3051  ;;  %v2164_v59 = vmul.f32 %v9727_v50, %v9692_v41 }
 0x411   : > { %13164 = vst [vmem:[#allocation127_spill] sm:$0xff] %v9879_v45  ;;  %2429 = vrot.lane.b32.xlu0 %v2094_v6, %s8420_s22  ;;  %v9896_v45 = vsel %vm1051_vm14, 1.0, %v13119_v21  ;;  %v637_v6 = vadd.s32 112, %v8727_v0 }
 0x412   : > { %3149 = vrot.lane.b32.xlu1 %v2240_v52, %s8427_s26  ;;  %13168 = vst [vmem:[#allocation131_spill] sm:$0xff] %v9896_v45  ;;  %v2096_v52 = vmul.f32 %v9772_v38, %v9692_v41  ;;  %v2137_v50 = vmul.f32 %v9896_v45, %v9883_v16  ;;  %v2166_v41 = vmul.f32 %v9772_v38, %v9729_v9 }
 0x413   : > { %v9887_v28 = vpop.permute.xlu0 %3045 }
 0x414   : > { %13166 = vst [vmem:[#allocation129_spill] sm:$0xff] %v9887_v28  ;;  %v9891_v44 = vpop.permute.xlu1 %2701  ;;  %v757_v28 = vand.u32 15, %v637_v6 }
 0x415   : > { %13167 = vst [vmem:[#allocation130_spill] sm:$0xff] %v9891_v44  ;;  %2783 = vrot.lane.b32.xlu0 %v2164_v59, %s8426_s25  ;;  %v9911_v44 = vsel %vm1146_vm15, 1.0, %v13119_v21  ;;  %v9913_v59 = vld [vmem:[#allocation2 + $0x81] sm:$0xff] }
 0x416   : > { %2925 = vrot.lane.b32.xlu1 %v2205_v15, %s8422_s23  ;;  %13171 = vst [vmem:[#allocation134_spill] sm:$0xff] %v9911_v44  ;;  %vm1053_vm3 = vcmp.ge.s32.totalorder %v757_v28, 1  ;;  %v639_v28 = vadd.s32 128, %v8727_v0 }
 0x417   : > { %v9901_v19 = vpop.permute.xlu0 %2343 }
 0x418   : > { %13169 = vst [vmem:[#allocation132_spill] sm:$0xff] %v9901_v19  ;;  %v9905_v3 = vpop.permute.xlu1 %3179  ;;  %v9925_v19 = vld [vmem:[#allocation2 + $0x87] sm:$0xff] }
 0x419   : > { %13170 = vst [vmem:[#allocation133_spill] sm:$0xff] %v9905_v3  ;;  %2433 = vrot.lane.b32.xlu0 %v2096_v52, %s8420_s22  ;;  %v2242_v52 = vmul.f32 %v9911_v44, %v9913_v59  ;;  %13174 = vst [vmem:[#allocation137_spill] sm:$0xff] %v9925_v19  ;;  %v2207_v38 = vmul.f32 %v9896_v45, %v9925_v19 }
 0x41a   : > { %2575 = vrot.lane.b32.xlu1 %v2137_v50, %s8425_s20  ;;  %v750_v50 = vand.u32 15, %v636_v30 }
 0x41b   : > { %v9917_v15 = vpop.permute.xlu0 %2821 }
 0x41c   : > { %13172 = vst [vmem:[#allocation135_spill] sm:$0xff] %v9917_v15  ;;  %v9921_v3 = vpop.permute.xlu1 %2703  ;;  %v2098_v15 = vmul.f32 %v9826_v54, %v9729_v9  ;;  %vm1148_vm4 = vcmp.le.s32.totalorder %v750_v50, 14  ;;  %v2168_v9 = vmul.f32 %v9826_v54, %v9774_v7  ;;  %v2100_v54 = vmul.f32 %v9870_v18, %v9774_v7 }
 0x41d   : > { %13173 = vst [vmem:[#allocation136_spill] sm:$0xff] %v9921_v3  ;;  %2787 = vrot.lane.b32.xlu0 %v2166_v41, %s8426_s25  ;;  %v9938_v3 = vsel %vm1053_vm3, 1.0, %v13119_v21 }
 0x41e   : > { %3153 = vrot.lane.b32.xlu1 %v2242_v52, %s8427_s26  ;;  %13177 = vst [vmem:[#allocation140_spill] sm:$0xff] %v9938_v3  ;;  %v2139_v52 = vmul.f32 %v9938_v3, %v9925_v19 }
 0x41f   : > { %v9929_v6 = vpop.permute.xlu0 %2345 }
 0x420   : > { %13175 = vst [vmem:[#allocation138_spill] sm:$0xff] %v9929_v6  ;;  %v9933_v16 = vpop.permute.xlu1 %2479  ;;  %v771_v6 = vand.u32 15, %v639_v28 }
 0x421   : > { %13176 = vst [vmem:[#allocation139_spill] sm:$0xff] %v9933_v16  ;;  %2437 = vrot.lane.b32.xlu0 %v2098_v15, %s8420_s22  ;;  %v9953_v16 = vsel %vm1148_vm4, 1.0, %v13119_v21  ;;  %v9955_v15 = vld [vmem:[#allocation2 + $0x91] sm:$0xff] }
 0x422   : > { %2929 = vrot.lane.b32.xlu1 %v2207_v38, %s8422_s23  ;;  %13180 = vst [vmem:[#allocation143_spill] sm:$0xff] %v9953_v16  ;;  %v638_v38 = vadd.s32 120, %v8727_v0  ;;  %vm1055_vm5 = vcmp.ge.s32.totalorder %v771_v6, 1 }
 0x423   : > { %v9943_v30 = vpop.permute.xlu0 %2951 }
 0x424   : > { %13178 = vst [vmem:[#allocation141_spill] sm:$0xff] %v9943_v30  ;;  %v9947_v41 = vpop.permute.xlu1 %3055  ;;  %v9967_v30 = vld [vmem:[#allocation2 + $0x97] sm:$0xff]  ;;  %v764_v28 = vand.u32 15, %v638_v38  ;;  %v2102_v38 = vmul.f32 %v9911_v44, %v9828_v55 }
 0x425   : > { %13179 = vst [vmem:[#allocation142_spill] sm:$0xff] %v9947_v41  ;;  %2791 = vrot.lane.b32.xlu0 %v2168_v9, %s8426_s25  ;;  %v2244_v9 = vmul.f32 %v9953_v16, %v9955_v15  ;;  %13183 = vst [vmem:[#allocation146_spill] sm:$0xff] %v9967_v30  ;;  %v2209_v7 = vmul.f32 %v9938_v3, %v9967_v30 }
 0x426   : > { %2579 = vrot.lane.b32.xlu1 %v2139_v52, %s8425_s20  ;;  %vm1150_vm6 = vcmp.le.s32.totalorder %v764_v28, 14  ;;  %v640_v28 = vadd.s32 136, %v8727_v0 }
 0x427   : > { %v9959_v50 = vpop.permute.xlu0 %2601 }
 0x428   : > { %13181 = vst [vmem:[#allocation144_spill] sm:$0xff] %v9959_v50  ;;  %v9963_v41 = vpop.permute.xlu1 %2705  ;;  %v2170_v50 = vmul.f32 %v9870_v18, %v9828_v55  ;;  %v2172_v55 = vmul.f32 %v9911_v44, %v9872_v4 }
 0x429   : > { %13182 = vst [vmem:[#allocation145_spill] sm:$0xff] %v9963_v41  ;;  %2441 = vrot.lane.b32.xlu0 %v2100_v54, %s8420_s22  ;;  %v9980_v41 = vsel %vm1055_vm5, 1.0, %v13119_v21  ;;  %v641_v54 = vadd.s32 144, %v8727_v0 }
 0x42a   : > { %3157 = vrot.lane.b32.xlu1 %v2244_v9, %s8427_s26  ;;  %13186 = vst [vmem:[#allocation149_spill] sm:$0xff] %v9980_v41  ;;  %v2141_v18 = vmul.f32 %v9980_v41, %v9967_v30 }
 0x42b   : > { %v9971_v52 = vpop.permute.xlu0 %3049 }
 0x42c   : > { %13184 = vst [vmem:[#allocation147_spill] sm:$0xff] %v9971_v52  ;;  %v9975_v19 = vpop.permute.xlu1 %3183  ;;  %v785_v52 = vand.u32 15, %v641_v54 }
 0x42d   : > { %13185 = vst [vmem:[#allocation148_spill] sm:$0xff] %v9975_v19  ;;  %2795 = vrot.lane.b32.xlu0 %v2170_v50, %s8426_s25  ;;  %v9995_v19 = vsel %vm1150_vm6, 1.0, %v13119_v21  ;;  %v9997_v50 = vld [vmem:[#allocation2 + $0xa1] sm:$0xff] }
 0x42e   : > { %2933 = vrot.lane.b32.xlu1 %v2209_v7, %s8422_s23  ;;  %13189 = vst [vmem:[#allocation152_spill] sm:$0xff] %v9995_v19  ;;  %vm1057_vm7 = vcmp.ge.s32.totalorder %v785_v52, 1  ;;  %v643_v52 = vadd.s32 160, %v8727_v0 }
 0x42f   : > { %v9985_v6 = vpop.permute.xlu0 %2347 }
 0x430   : > { %13187 = vst [vmem:[#allocation150_spill] sm:$0xff] %v9985_v6  ;;  %v9989_v9 = vpop.permute.xlu1 %2707  ;;  %v10009_v6 = vld [vmem:[#allocation2 + $0xa7] sm:$0xff] }
 0x431   : > { %13188 = vst [vmem:[#allocation151_spill] sm:$0xff] %v9989_v9  ;;  %2445 = vrot.lane.b32.xlu0 %v2102_v38, %s8420_s22  ;;  %v2246_v38 = vmul.f32 %v9995_v19, %v9997_v50  ;;  %13192 = vst [vmem:[#allocation155_spill] sm:$0xff] %v10009_v6  ;;  %v2211_v44 = vmul.f32 %v9980_v41, %v10009_v6 }
 0x432   : > { %2583 = vrot.lane.b32.xlu1 %v2141_v18, %s8425_s20  ;;  %v778_v18 = vand.u32 15, %v640_v28 }
 0x433   : > { %v10001_v7 = vpop.permute.xlu0 %2825 }
 0x434   : > { %13190 = vst [vmem:[#allocation153_spill] sm:$0xff] %v10001_v7  ;;  %v10005_v9 = vpop.permute.xlu1 %2483  ;;  %v2104_v7 = vmul.f32 %v9953_v16, %v9872_v4  ;;  %vm1152_vm8 = vcmp.le.s32.totalorder %v778_v18, 14  ;;  %v2174_v4 = vmul.f32 %v9953_v16, %v9913_v59  ;;  %v2106_v16 = vmul.f32 %v9995_v19, %v9913_v59 }
 0x435   : > { %13191 = vst [vmem:[#allocation154_spill] sm:$0xff] %v10005_v9  ;;  %2799 = vrot.lane.b32.xlu0 %v2172_v55, %s8426_s25  ;;  %v10022_v9 = vsel %vm1057_vm7, 1.0, %v13119_v21  ;;  %vm3292_vm7 = vcmask 195584  }
 0x436   : > { %3161 = vrot.lane.b32.xlu1 %v2246_v38, %s8427_s26  ;;  %13195 = vst [vmem:[#allocation158_spill] sm:$0xff] %v10022_v9  ;;  %v2143_v38 = vmul.f32 %v10022_v9, %v10009_v6 }
 0x437   : > { %v10013_v54 = vpop.permute.xlu0 %2349 }
 0x438   : > { %13193 = vst [vmem:[#allocation156_spill] sm:$0xff] %v10013_v54  ;;  %v10017_v30 = vpop.permute.xlu1 %3059  ;;  %v799_v54 = vand.u32 15, %v643_v52 }
 0x439   : > { %13194 = vst [vmem:[#allocation157_spill] sm:$0xff] %v10017_v30  ;;  %2449 = vrot.lane.b32.xlu0 %v2104_v7, %s8420_s22  ;;  %v10037_v30 = vsel %vm1152_vm8, 1.0, %v13119_v21  ;;  %v10039_v7 = vld [vmem:[#allocation2 + $0xb1] sm:$0xff] }
 0x43a   : > { %2937 = vrot.lane.b32.xlu1 %v2211_v44, %s8422_s23  ;;  %13198 = vst [vmem:[#allocation161_spill] sm:$0xff] %v10037_v30  ;;  %v642_v44 = vadd.s32 152, %v8727_v0  ;;  %vm1059_vm9 = vcmp.ge.s32.totalorder %v799_v54, 1 }
 0x43b   : > { %v10027_v28 = vpop.permute.xlu0 %2955 }
 0x43c   : > { %13196 = vst [vmem:[#allocation159_spill] sm:$0xff] %v10027_v28  ;;  %v10031_v55 = vpop.permute.xlu1 %2709  ;;  %v10051_v28 = vld [vmem:[#allocation2 + $0xb7] sm:$0xff]  ;;  %v792_v52 = vand.u32 15, %v642_v44  ;;  %v2108_v44 = vmul.f32 %v10037_v30, %v9955_v15 }
 0x43d   : > { %13197 = vst [vmem:[#allocation160_spill] sm:$0xff] %v10031_v55  ;;  %2803 = vrot.lane.b32.xlu0 %v2174_v4, %s8426_s25  ;;  %v2248_v4 = vmul.f32 %v10037_v30, %v10039_v7  ;;  %13201 = vst [vmem:[#allocation164_spill] sm:$0xff] %v10051_v28  ;;  %v2213_v59 = vmul.f32 %v10022_v9, %v10051_v28  ;;  %v10092_v9 = vld [vmem:[#allocation2 + $0xc7] sm:$0xff] }
 0x43e   : > { %2587 = vrot.lane.b32.xlu1 %v2143_v38, %s8425_s20  ;;  %vm1154_vm10 = vcmp.le.s32.totalorder %v792_v52, 14  ;;  %v2082_v52 = vld [vmem:[#allocation2 + $0xc1] sm:$0xff]  ;;  %13208 = vst [vmem:[#allocation171_spill] sm:$0xff] %v10092_v9 }
 0x43f   : > { %v10043_v18 = vpop.permute.xlu0 %2605 }
 0x440   : > { %13199 = vst [vmem:[#allocation162_spill] sm:$0xff] %v10043_v18  ;;  %v10047_v55 = vpop.permute.xlu1 %3187  ;;  %v2176_v18 = vmul.f32 %v9995_v19, %v9955_v15 }
 0x441   : > { %13200 = vst [vmem:[#allocation163_spill] sm:$0xff] %v10047_v55  ;;  %2453 = vrot.lane.b32.xlu0 %v2106_v16, %s8420_s22  ;;  %v10064_v55 = vsel %vm1059_vm9, 1.0, %v13119_v21  ;;  %v645_v16 = vadd.s32 176, %v8727_v0  ;;  %vm3325_vm9 = vcmask 261120  }
 0x442   : > { %3165 = vrot.lane.b32.xlu1 %v2248_v4, %s8427_s26  ;;  %13204 = vst [vmem:[#allocation167_spill] sm:$0xff] %v10064_v55  ;;  %v12910_v4 = vmov 0.0|0.0  }
 0x443   : > { %v10055_v38 = vpop.permute.xlu0 %3053  ;;  %7451 = vmatprep.subr.bf16.mxu0 %v12910_v4  ;;  %7484 = vmatprep.subr.bf16.mxu1 %v12910_v4  ;;  %v2178_v4 = vmul.f32 %v10037_v30, %v9997_v50  ;;  %v2215_v30 = vmul.f32 %v10064_v55, %v10092_v9 }
 0x444   : > { %13202 = vst [vmem:[#allocation165_spill] sm:$0xff] %v10055_v38  ;;  %v10059_v6 = vpop.permute.xlu1 %2837 }
 0x445   : > { %13203 = vst [vmem:[#allocation166_spill] sm:$0xff] %v10059_v6  ;;  %2807 = vrot.lane.b32.xlu0 %v2176_v18, %s8426_s25  ;;  %v2145_v18 = vmul.f32 %v10064_v55, %v10051_v28  ;;  %v644_v6 = vadd.s32 168, %v8727_v0 }
 0x446   : > { %2941 = vrot.lane.b32.xlu1 %v2213_v59, %s8422_s23  ;;  %v10081_v59 = vsel %vm1154_vm10, 1.0, %v13119_v21 }
 0x447   : > { %v10069_v54 = vpop.permute.xlu0 %2351  ;;  %13206 = vst [vmem:[#allocation169_spill] sm:$0xff] %v10081_v59  ;;  %v2250_v28 = vmul.f32 %v10081_v59, %v2082_v52 }
 0x448   : > { %13205 = vst [vmem:[#allocation168_spill] sm:$0xff] %v10069_v54  ;;  %v10075_v19 = vpop.permute.xlu1 %2425  ;;  %v813_v54 = vand.u32 15, %v645_v16 }
 0x449   : > { %2457 = vrot.lane.b32.xlu0 %v2108_v44, %s8420_s22  ;;  %v806_v44 = vand.u32 15, %v644_v6  ;;  %v646_v6 = vadd.s32 184, %v8727_v0 }
 0x44a   : > { %2591 = vrot.lane.b32.xlu1 %v2145_v18, %s8425_s20  ;;  %vm1061_vm11 = vcmp.ge.s32.totalorder %v813_v54, 1  ;;  %v2110_v18 = vmul.f32 %v10081_v59, %v9997_v50  ;;  %v2180_v50 = vmul.f32 %v10081_v59, %v10039_v7 }
 0x44b   : > { %v10085_v15 = vpop.permute.xlu0 %2829  ;;  %v10105_v41 = vsel %vm1061_vm11, 1.0, %v13119_v21  ;;  %vm1156_vm12 = vcmp.le.s32.totalorder %v806_v44, 14  ;;  %v2084_v44 = vld [vmem:[#allocation2 + $0xd1] sm:$0xff]  ;;  %vm3358_vm11 = vcmask 326656  }
 0x44c   : > { %13207 = vst [vmem:[#allocation170_spill] sm:$0xff] %v10085_v15  ;;  %v10089_v38 = vpop.permute.xlu1 %2905  ;;  %13210 = vst [vmem:[#allocation173_spill] sm:$0xff] %v10105_v41  ;;  %v10120_v55 = vsel %vm1156_vm12, 1.0, %v13119_v21  ;;  %vm3391_vm12 = vcmask 392192  }
 0x44d   : > { %2811 = vrot.lane.b32.xlu0 %v2178_v4, %s8426_s25  ;;  %13212 = vst [vmem:[#allocation175_spill] sm:$0xff] %v10120_v55  ;;  %v2112_v59 = vmul.f32 %v10120_v55, %v10039_v7  ;;  %v2252_v45 = vmul.f32 %v10120_v55, %v2084_v44 }
 0x44e   : > { %3169 = vrot.lane.b32.xlu1 %v2250_v28, %s8427_s26  ;;  %v647_v28 = vadd.s32 192, %v8727_v0 }
 0x44f   : > { %v10096_v16 = vpop.permute.xlu0 %2353 }
 0x450   : > { %13209 = vst [vmem:[#allocation172_spill] sm:$0xff] %v10096_v16  ;;  %v10100_v15 = vpop.permute.xlu1 %2555  ;;  %v2147_v16 = vmul.f32 %v10105_v41, %v10092_v9  ;;  %v827_v3 = vand.u32 15, %v647_v28  ;;  %v10131_v9 = vld [vmem:[#allocation2 + $0xd7] sm:$0xff] }
 0x451   : > { %2461 = vrot.lane.b32.xlu0 %v2110_v18, %s8420_s22  ;;  %v820_v18 = vand.u32 15, %v646_v6  ;;  %13214 = vst [vmem:[#allocation177_spill] sm:$0xff] %v10131_v9  ;;  %v2182_v6 = vmul.f32 %v10120_v55, %v2082_v52  ;;  %v2217_v7 = vmul.f32 %v10105_v41, %v10131_v9 }
 0x452   : > { %2945 = vrot.lane.b32.xlu1 %v2215_v30, %s8422_s23  ;;  %vm1063_vm14 = vcmp.ge.s32.totalorder %v827_v3, 1 }
 0x453   : > { %v10111_v54 = vpop.permute.xlu0 %2959  ;;  %vm1158_vm13 = vcmp.le.s32.totalorder %v820_v18, 14 }
 0x454   : > { %13211 = vst [vmem:[#allocation174_spill] sm:$0xff] %v10111_v54  ;;  %v10115_v4 = vpop.permute.xlu1 %3133 }
 0x455   : > { %2815 = vrot.lane.b32.xlu0 %v2180_v50, %s8426_s25  ;;  %v648_v50 = vadd.s32 200, %v8727_v0 }
 0x456   : > { %2595 = vrot.lane.b32.xlu1 %v2147_v16, %s8425_s20 }
 0x457   : > { %v10124_v30 = vpop.permute.xlu0 %2609  ;;  %v834_v3 = vand.u32 15, %v648_v50 }
 0x458   : > { %13213 = vst [vmem:[#allocation176_spill] sm:$0xff] %v10124_v30  ;;  %v10128_v54 = vpop.permute.xlu1 %2909  ;;  %v10144_v30 = vsel %vm1158_vm13, 1.0, %v13119_v21  ;;  %vm3424_vm13 = vcmask 457728  }
 0x459   : > { %2465 = vrot.lane.b32.xlu0 %v2112_v59, %s8420_s22  ;;  %13216 = vst [vmem:[#allocation179_spill] sm:$0xff] %v10144_v30  ;;  %v10147_v59 = vsel %vm1063_vm14, 1.0, %v13119_v21  ;;  %v2114_v55 = vmul.f32 %v10144_v30, %v2082_v52  ;;  %vm1160_vm15 = vcmp.le.s32.totalorder %v834_v3, 14  ;;  %v2254_v52 = vmul.f32 %v10144_v30, %v2086_v23 }
 0x45a   : > { %3173 = vrot.lane.b32.xlu1 %v2252_v45, %s8427_s26  ;;  %13217 = vst [vmem:[#allocation180_spill] sm:$0xff] %v10147_v59  ;;  %v649_v45 = vadd.s32 208, %v8727_v0  ;;  %v2149_v41 = vmul.f32 %v10147_v59, %v10131_v9  ;;  %v10171_v9 = vld [vmem:[#allocation2 + $0xe7] sm:$0xff]  ;;  %vm3505_vm14 = vcmask 588800  }
 0x45b   : > { %v10136_v16 = vpop.permute.xlu0 %3057  ;;  %13222 = vst [vmem:[#allocation185_spill] sm:$0xff] %v10171_v9 }
 0x45c   : > { %13215 = vst [vmem:[#allocation178_spill] sm:$0xff] %v10136_v16  ;;  %v10139_v28 = vpop.permute.xlu1 %2559  ;;  %v841_v50 = vand.u32 15, %v649_v45 }
 0x45d   : > { %2819 = vrot.lane.b32.xlu0 %v2182_v6, %s8426_s25  ;;  %v650_v6 = vadd.s32 216, %v8727_v0 }
 0x45e   : > { %2949 = vrot.lane.b32.xlu1 %v2217_v7, %s8422_s23  ;;  %v2184_v7 = vmul.f32 %v10144_v30, %v2084_v44  ;;  %vm1065_vm3 = vcmp.ge.s32.totalorder %v841_v50, 1  ;;  %v2219_v30 = vmul.f32 %v10147_v59, %v10171_v9  ;;  %v651_v50 = vadd.s32 224, %v8727_v0 }
 0x45f   : > { %v10152_v18 = vpop.permute.xlu0 %2355 }
 0x460   : > { %13218 = vst [vmem:[#allocation181_spill] sm:$0xff] %v10152_v18  ;;  %v10155_v16 = vpop.permute.xlu1 %3137  ;;  %v855_v20 = vand.u32 15, %v651_v50  ;;  %v876_v50 = vand.u32 15, %v654_v49 }
 0x461   : > { %13219 = vst [vmem:[#allocation182_spill] sm:$0xff] %v10155_v16  ;;  %2469 = vrot.lane.b32.xlu0 %v2114_v55, %s8420_s22  ;;  %v10169_v16 = vsel %vm1160_vm15, 1.0, %v13119_v21  ;;  %v848_v55 = vand.u32 15, %v650_v6  ;;  %v652_v6 = vadd.s32 232, %v8727_v0  ;;  %vm3457_vm15 = vcmask 523264  }
 0x462   : > { %2599 = vrot.lane.b32.xlu1 %v2149_v41, %s8425_s20  ;;  %13221 = vst [vmem:[#allocation184_spill] sm:$0xff] %v10169_v16  ;;  %v2116_v3 = vmul.f32 %v10169_v16, %v2084_v44  ;;  %v2186_v44 = vmul.f32 %v10169_v16, %v2086_v23  ;;  %vm1067_vm6 = vcmp.ge.s32.totalorder %v855_v20, 1  ;;  %v1964_v20 = vld [vmem:[#allocation2 + $0xf] sm:$0xff]  ;;  %vm1166_vm8 = vcmp.le.s32.totalorder %v876_v50, 14 }
 0x463   : > { %v10162_v47 = vpop.permute.xlu0 %2833  ;;  %vm1162_vm4 = vcmp.le.s32.totalorder %v848_v55, 14  ;;  %v2088_v55 = vld [vmem:[#allocation2 + $0xf1] sm:$0xff] }
 0x464   : > { %13220 = vst [vmem:[#allocation183_spill] sm:$0xff] %v10162_v47  ;;  %v10165_v18 = vpop.permute.xlu1 %2913  ;;  %v10183_v47 = vsel %vm1065_vm3, 1.0, %v13119_v21  ;;  %v10197_v59 = vsel %vm1162_vm4, 1.0, %v13119_v21  ;;  %vm6096_vm3 = vcmask 916480  }
 0x465   : > { %2823 = vrot.lane.b32.xlu0 %v2184_v7, %s8426_s25  ;;  %13224 = vst [vmem:[#allocation187_spill] sm:$0xff] %v10183_v47  ;;  %13227 = vst [vmem:[#allocation190_spill] sm:$0xff] %v10197_v59  ;;  %v2221_v0 = vmul.f32 %v10183_v47, %v10209_v11 }
 0x466   : > { %3177 = vrot.lane.b32.xlu1 %v2254_v52, %s8427_s26 }
 0x467   : > { %v10175_v41 = vpop.permute.xlu0 %2357 }
 0x468   : > { %13223 = vst [vmem:[#allocation186_spill] sm:$0xff] %v10175_v41  ;;  %v10178_v45 = vpop.permute.xlu1 %2563  ;;  %v2151_v41 = vmul.f32 %v10183_v47, %v10171_v9  ;;  %v2256_v9 = vmul.f32 %v10169_v16, %v2088_v55 }
 0x469   : > { %2473 = vrot.lane.b32.xlu0 %v2116_v3, %s8420_s22  ;;  %v862_v3 = vand.u32 15, %v652_v6  ;;  %v2188_v6 = vmul.f32 %v10197_v59, %v2088_v55 }
 0x46a   : > { %2953 = vrot.lane.b32.xlu1 %v2219_v30, %s8422_s23 }
 0x46b   : > { %v10189_v7 = vpop.permute.xlu0 %2963  ;;  %vm1164_vm5 = vcmp.le.s32.totalorder %v862_v3, 14  ;;  %v869_v3 = vand.u32 15, %v653_v37  ;;  %v3228_v37 = vsel %vm1234_vm0, %v1964_v20, %v9321_v51  ;;  %v1999_v51 = vmul.f32 %v9713_v46, %v9666_v32 }
 0x46c   : > { %13225 = vst [vmem:[#allocation188_spill] sm:$0xff] %v10189_v7  ;;  %v10192_v52 = vpop.permute.xlu1 %3141  ;;  %v2118_v7 = vmul.f32 %v10197_v59, %v2086_v23  ;;  %v1997_v23 = vmul.f32 %v9678_v1, %v9837_v12  ;;  %v10229_v12 = vsel %vm1067_vm6, 1.0, %v13119_v21 }
 0x46d   : > { %13226 = vst [vmem:[#allocation189_spill] sm:$0xff] %v10192_v52  ;;  %2827 = vrot.lane.b32.xlu0 %v2186_v44, %s8426_s25  ;;  %v1995_v44 = vmul.f32 %v9664_v10, %v1963_v56  ;;  %13229 = vst [vmem:[#allocation192_spill] sm:$0xff] %v10229_v12  ;;  %vm1069_vm10 = vcmp.ge.s32.totalorder %v869_v3, 1  ;;  %v3231_v32 = vsel %vm1234_vm0, %v1999_v51, %v9371_v5 }
 0x46e   : > { %2603 = vrot.lane.b32.xlu1 %v2151_v41, %s8425_s20 }
 0x46f   : > { %v10201_v30 = vpop.permute.xlu0 %2613 }
 0x470   : > { %v10205_v52 = vpop.permute.xlu1 %2917 }
 0x471   : > { %2477 = vrot.lane.b32.xlu0 %v2118_v7, %s8420_s22  ;;  %v10224_v7 = vsel %vm1164_vm5, 1.0, %v13119_v21 }
 0x472   : > { %3181 = vrot.lane.b32.xlu1 %v2256_v9, %s8427_s26  ;;  %13228 = vst [vmem:[#allocation191_spill] sm:$0xff] %v10224_v7  ;;  %v3229_v9 = vsel %vm1234_vm0, %v1997_v23, %v9343_v43  ;;  %v2120_v10 = vmul.f32 %v10224_v7, %v2088_v55  ;;  %v3227_v43 = vsel %vm1234_vm0, %v1995_v44, %v9314_v48  ;;  %v10255_v48 = vsel %vm1166_vm8, 1.0, %v13119_v21 }
 0x473   : > { %v10215_v41 = vpop.permute.xlu0 %3061  ;;  %v3262_v56 = vsel %vm3259_vm2, %v3229_v9, %v9355_v63  ;;  %v2153_v63 = vmul.f32 %v10229_v12, %v10209_v11  ;;  %13230 = vst [vmem:[#allocation193_spill] sm:$0xff] %v10255_v48 }
 0x474   : > { %v10219_v16 = vpop.permute.xlu1 %2567  ;;  %v3295_v49 = vsel %vm3292_vm7, %v3262_v56, %v10100_v15  ;;  %v3261_v15 = vsel %vm3259_vm2, %v3228_v37, %v10075_v19  ;;  %v3260_v19 = vsel %vm3259_vm2, %v3227_v43, %v9317_v42 }
 0x475   : > { %2831 = vrot.lane.b32.xlu0 %v2188_v6, %s8426_s25  ;;  %v2090_v6 = vld [vmem:[#allocation2 + $0x101] sm:$0xff]  ;;  %v3328_v55 = vsel %vm3325_vm9, %v3295_v49, %v9367_v40  ;;  %v10265_v40 = vsel %vm1069_vm10, 1.0, %v13119_v21  ;;  %v3264_v49 = vsel %vm3259_vm2, %v3231_v32, %v9385_v22 }
 0x476   : > { %2957 = vrot.lane.b32.xlu1 %v2221_v0, %s8422_s23  ;;  %v2190_v44 = vmul.f32 %v10224_v7, %v2090_v6  ;;  %13231 = vst [vmem:[#allocation194_spill] sm:$0xff] %v10265_v40  ;;  %v2258_v9 = vmul.f32 %v10197_v59, %v2090_v6  ;;  %v3361_v42 = vsel %vm3358_vm11, %v3328_v55, %v9377_v17  ;;  %v3828_v22 = vld [vmem:[%s12870_s6] sm:$0xff] }
 0x477   : > { %v10237_v1 = vpop.permute.xlu0 %2711  ;;  %v2122_v56 = vmul.f32 %v10255_v48, %v2090_v6  ;;  %v3394_v43 = vsel %vm3391_vm12, %v3361_v42, %v10128_v54  ;;  %v2193_v42 = vld [vmem:[#allocation2 + $0x117] sm:$0xff] }
 0x478   : > { %v10244_v23 = vpop.permute.xlu1 %3145  ;;  %v3427_v55 = vsel %vm3424_vm13, %v3394_v43, %v9391_v25  ;;  %v8342_v25 = vld [vmem:[#allocation2 + $0x1f] sm:$0xff] }
 0x479   : > { %2481 = vrot.lane.b32.xlu0 %v2120_v10, %s8420_s22  ;;  %v3294_v10 = vsel %vm3292_vm7, %v3261_v15, %v9337_v60  ;;  %v2123_v60 = vld [vmem:[#allocation2 + $0x107] sm:$0xff]  ;;  %v2001_v15 = vmul.f32 %v9751_v39, %v9702_v27  ;;  %v3460_v32 = vsel %vm3457_vm15, %v3427_v55, %v9403_v2 }
 0x47a   : > { %2607 = vrot.lane.b32.xlu1 %v2153_v63, %s8425_s20  ;;  %v3327_v17 = vsel %vm3325_vm9, %v3294_v10, %v9341_v31  ;;  %v2223_v6 = vmul.f32 %v10229_v12, %v2123_v60 }
 0x47b   : > { %v2552_v50 = vpop.permute.xlu0 %2551 }
 0x47c   : > { %v10267_v0 = vpop.permute.xlu1 %2921  ;;  %v3293_v20 = vsel %vm3292_vm7, %v3260_v19, %v2552_v50 }
 0x47d   : > { %v3326_v3 = vsel %vm3325_vm9, %v3293_v20, %v9335_v57  ;;  %2835 = vrot.lane.b32.xlu0 %v2190_v44, %s8426_s25  ;;  %v3297_v57 = vsel %vm3292_vm7, %v3264_v49, %v10139_v28  ;;  %v3233_v20 = vsel %vm1234_vm0, %v2001_v15, %v9407_v58  ;;  %v2230_v49 = vld [vmem:[#allocation2 + $0x121] sm:$0xff] }
 0x47e   : > { %v3359_v5 = vsel %vm3358_vm11, %v3326_v3, %v9349_v34  ;;  %3185 = vrot.lane.b32.xlu1 %v2258_v9, %s8427_s26  ;;  %v3829_v34 = vld [vmem:[%s12870_s6 + $0x8] sm:$0xff]  ;;  %v3330_v50 = vsel %vm3325_vm9, %v3297_v57, %v9397_v33  ;;  %v3830_v33 = vld [vmem:[%s12870_s6 + $0x10] sm:$0xff]  ;;  %v3266_v3 = vsel %vm3259_vm2, %v3233_v20, %v9415_v26  ;;  %v13232_v57 = vmov 0.0|0.0   ;;  %v13236_v15 = vld [vmem:[#allocation16_spill] sm:$0xff] }
 0x47f   : > { %v2780_v37 = vpop.permute.xlu0 %2779  ;;  %v3392_v63 = vsel %vm3391_vm12, %v3359_v5, %v10089_v38  ;;  %v2160_v38 = vld [vmem:[#allocation2 + $0x111] sm:$0xff]  ;;  %v7452_v27 = vpack.c.bf16 %v3829_v34, %v3828_v22  ;;  %v2225_v5 = vmul.f32 %v10265_v40, %v2193_v42 }
 0x480   : > { %v10298_v54 = vpop.permute.xlu1 %2571  ;;  %v3360_v28 = vsel %vm3358_vm11, %v3327_v17, %v2780_v37  ;;  %v3425_v31 = vsel %vm3424_vm13, %v3392_v63, %v9361_v14  ;;  %v2192_v37 = vmul.f32 %v10255_v48, %v2160_v38  ;;  %v13234_v22 = vld [vmem:[#allocation14_spill] sm:$0xff] }
 0x481   : > { %v3393_v51 = vsel %vm3391_vm12, %v3360_v28, %v9353_v13  ;;  %2485 = vrot.lane.b32.xlu0 %v2122_v56, %s8420_s22  ;;  %v3458_v19 = vsel %vm3457_vm15, %v3425_v31, %v9373_v53  ;;  %v3230_v13 = vsel %vm1234_vm0, %v8342_v25, %v9347_v29  ;;  %v2260_v53 = vmul.f32 %v10224_v7, %v2160_v38  ;;  %v13235_v28 = vld [vmem:[#allocation9_spill] sm:$0xff] }
 0x482   : > { %v3426_v14 = vsel %vm3424_vm13, %v3393_v51, %v9365_v62  ;;  %2961 = vrot.lane.b32.xlu1 %v2223_v6, %s8422_s23  ;;  %7281 = vmatprep.mubr.msk.f32.mxu0 %vm3505_vm14, %v3458_v19  ;;  %v3831_v62 = vld [vmem:[%s12870_s6 + $0x18] sm:$0xff]  ;;  %v3363_v56 = vsel %vm3358_vm11, %v3330_v50, %v9413_v61  ;;  %v2003_v61 = vmul.f32 %v9807_v8, %v9739_v36 }
 0x483   : > { %v2430_v44 = vpop.permute.xlu0 %2429  ;;  %v3459_v10 = vsel %vm3457_vm15, %v3426_v14, %v10115_v4  ;;  %v2155_v4 = vmul.f32 %v10265_v40, %v2123_v60  ;;  %v3396_v60 = vsel %vm3391_vm12, %v3363_v56, %v10165_v18  ;;  %v7455_v26 = vpack.c.bf16 %v3831_v62, %v3830_v33  ;;  %v3832_v18 = vld [vmem:[%s12870_s6 + $0x20] sm:$0xff]  ;;  %v13237_v51 = vld [vmem:[#allocation11_spill] sm:$0xff]  ;;  %v8343_v14 = vld [vmem:[#allocation2 + $0x2f] sm:$0xff] }
 0x484   : > { %v10332_v9 = vpop.permute.xlu1 %3149  ;;  %v3263_v29 = vsel %vm3259_vm2, %v3230_v13, %v2430_v44  ;;  %7282 = vmatmul.mubr.msk.f32.vlgmr.msra.gmra.mrb[2].mxu0 %vm3505_vm14, %v3459_v10  ;;  %v3429_v34 = vsel %vm3424_vm13, %v3396_v60, %v13234_v22  ;;  %v2262_v31 = vmul.f32 %v10255_v48, %v2230_v49  ;;  %v2229_v19 = vld [vmem:[#allocation2 + $0x119] sm:$0xff]  ;;  %v13239_v44 = vld [vmem:[#allocation182_spill] sm:$0xff] }
 0x485   : > { %v3296_v58 = vsel %vm3292_vm7, %v3263_v29, %v9359_v35  ;;  %3189 = vrot.lane.b32.xlu0 %v2260_v53, %s8427_s26  ;;  %7284 = vmatprep.mubr.msk.f32.mxu0 %vm3505_vm14, %v3460_v32  ;;  %v3299_v35 = vsel %vm3292_vm7, %v3266_v3, %v10178_v45  ;;  %v13233_v45 = vld [vmem:[#allocation21_spill] sm:$0xff]  ;;  %v3834_v53 = vld [vmem:[%s12870_s6 + $0x30] sm:$0xff]  ;;  %v3835_v33 = vld [vmem:[%s12870_s6 + $0x38] sm:$0xff] }
 0x486   : > { %2611 = vrot.lane.b32.xlu1 %v2155_v4, %s8425_s20  ;;  %v3329_v2 = vsel %vm3325_vm9, %v3296_v58, %v9379_v24  ;;  %7453 = vmatpush3.bf16.msra.mxu0 %v7452_v27  ;;  %v3833_v24 = vld [vmem:[%s12870_s6 + $0x28] sm:$0xff]  ;;  %v3235_v63 = vsel %vm1234_vm0, %v2003_v61, %v13233_v45  ;;  %v3332_v55 = vsel %vm3325_vm9, %v3299_v35, %v13236_v15  ;;  %v13238_v27 = vld [vmem:[#allocation8_spill] sm:$0xff]  ;;  %v13240_v29 = vld [vmem:[#allocation18_spill] sm:$0xff]  ;;  %s13399_s20 = sld [smem:[#allocation196_spill]] }
 0x487   : > { %v2784_v43 = vpop.permute.xlu0 %2783  ;;  %7454 = vmatprep.subr.bf16.mxu0 %v13232_v57  ;;  %v7458_v50 = vpack.c.bf16 %v3833_v24, %v3832_v18  ;;  %v3232_v25 = vsel %vm1234_vm0, %v8343_v14, %v13238_v27  ;;  %v3462_v4 = vsel %vm3457_vm15, %v3429_v34, %v13240_v29  ;;  %v13241_v32 = vld [vmem:[#allocation22_spill] sm:$0xff]  ;;  %v13242_v3 = vld [vmem:[#allocation23_spill] sm:$0xff]  ;;  %v13244_v49 = vld [vmem:[#allocation12_spill] sm:$0xff]  ;;  %v7461_v61 = vpack.c.bf16 %v3835_v33, %v3834_v53 }
 0x488   : > { %v10364_v17 = vpop.permute.xlu1 %2925  ;;  %v3362_v36 = vsel %vm3358_vm11, %v3329_v2, %v2784_v43  ;;  %v3268_v42 = vsel %vm3259_vm2, %v3235_v63, %v13241_v32  ;;  %v3365_v56 = vsel %vm3358_vm11, %v3332_v55, %v13242_v3  ;;  %v13243_v58 = vld [vmem:[#allocation10_spill] sm:$0xff]  ;;  %v13247_v63 = vld [vmem:[#allocation24_spill] sm:$0xff]  ;;  %v13248_v22 = vld [vmem:[#allocation15_spill] sm:$0xff] }
 0x489   : > { %v3395_v6 = vsel %vm3391_vm12, %v3362_v36, %v13235_v28  ;;  %2965 = vrot.lane.b32.xlu0 %v2225_v5, %s8422_s23  ;;  %v3398_v2 = vsel %vm3391_vm12, %v3365_v56, %v10205_v52  ;;  %v3301_v35 = vsel %vm3292_vm7, %v3268_v42, %v10219_v16  ;;  %v3836_v5 = vld [vmem:[%s12870_s6 + $0x40] sm:$0xff]  ;;  %v3837_v52 = vld [vmem:[%s12870_s6 + $0x48] sm:$0xff]  ;;  %v13245_v36 = vld [vmem:[#allocation110_spill] sm:$0xff] }
 0x48a   : > { %2839 = vrot.lane.b32.xlu1 %v2192_v37, %s8426_s25  ;;  %v3428_v38 = vsel %vm3424_vm13, %v3395_v6, %v13237_v51  ;;  %7456 = vmatpush3.bf16.msra.mxu0 %v7455_v26  ;;  %v13246_v37 = vld [vmem:[#allocation122_spill] sm:$0xff]  ;;  %v3431_v16 = vsel %vm3424_vm13, %v3398_v2, %v13247_v63  ;;  %v7464_v55 = vpack.c.bf16 %v3837_v52, %v3836_v5  ;;  %v8344_v51 = vld [vmem:[#allocation2 + $0x3f] sm:$0xff]  ;;  %v13256_v42 = vld [vmem:[#allocation17_spill] sm:$0xff]  ;;  %s8429_s25 = smov 112  }
 0x48b   : > { %v2434_v13 = vpop.permute.xlu0 %2433  ;;  %v3461_v10 = vsel %vm3457_vm15, %v3428_v38, %v13239_v44  ;;  %7457 = vmatprep.subr.bf16.mxu0 %v13232_v57  ;;  %v2005_v45 = vmul.f32 %v13246_v37, %v13245_v36  ;;  %v13249_v28 = vld [vmem:[#allocation26_spill] sm:$0xff]  ;;  %v13251_v38 = vld [vmem:[#allocation13_spill] sm:$0xff]  ;;  %v13258_v2 = vld [vmem:[#allocation20_spill] sm:$0xff] }
 0x48c   : > { %v10392_v62 = vpop.permute.xlu1 %2575  ;;  %v3265_v20 = vsel %vm3259_vm2, %v3232_v25, %v2434_v13  ;;  %7285 = vmatmul.mubr.msk.f32.gmra.mrb[4].mxu0 %vm3505_vm14, %v3461_v10  ;;  %v3334_v6 = vsel %vm3325_vm9, %v3301_v35, %v13249_v28  ;;  %v13253_v25 = vld [vmem:[#allocation189_spill] sm:$0xff]  ;;  %v3838_v44 = vld [vmem:[%s12870_s6 + $0x50] sm:$0xff]  ;;  %v3839_v10 = vld [vmem:[%s12870_s6 + $0x58] sm:$0xff]  ;;  %s584_s30 = scalar_lea.vmem %s13399_s20, %s13565_s28  ;;  %s12702_s20 = scalar_lea.vmem %s12882_s18, %s13563_s2 }
 0x48d   : > { %v3298_v60 = vsel %vm3292_vm7, %v3265_v20, %v13243_v58  ;;  %3191 = vrot.lane.b32.xlu0 %v2229_v19, %s8427_s26  ;;  %7287 = vmatprep.mubr.msk.f32.mxu0 %vm3505_vm14, %v3462_v4  ;;  %v3234_v19 = vsel %vm1234_vm0, %v8344_v51, %v13251_v38  ;;  %v13254_v20 = vld [vmem:[#allocation28_spill] sm:$0xff]  ;;  %v13255_v4 = vld [vmem:[#allocation35_spill] sm:$0xff]  ;;  %v13261_v63 = vld [vmem:[#allocation34_spill] sm:$0xff] }
 0x48e   : > { %3193 = vrot.lane.b32.xlu1 %v2262_v31, %s8427_s26  ;;  %v3331_v26 = vsel %vm3325_vm9, %v3298_v60, %v13244_v49  ;;  %7459 = vmatpush3.bf16.msra.mxu0 %v7458_v50  ;;  %v13250_v31 = vld [vmem:[#allocation19_spill] sm:$0xff]  ;;  %v13252_v50 = vld [vmem:[#allocation33_spill] sm:$0xff]  ;;  %v3464_v29 = vsel %vm3457_vm15, %v3431_v16, %v13254_v20  ;;  %v3367_v32 = vsel %vm3358_vm11, %v3334_v6, %v13255_v4  ;;  %v13257_v58 = vld [vmem:[#allocation32_spill] sm:$0xff] }
 0x48f   : > { %v2788_v43 = vpop.permute.xlu0 %2787  ;;  %7460 = vmatprep.subr.bf16.mxu0 %v13232_v57  ;;  %v3237_v14 = vsel %vm1234_vm0, %v2005_v45, %v13252_v50  ;;  %v3400_v56 = vsel %vm3391_vm12, %v3367_v32, %v10267_v0  ;;  %v3841_v0 = vld [vmem:[%s12870_s6 + $0x68] sm:$0xff]  ;;  %v13260_v36 = vld [vmem:[#allocation131_spill] sm:$0xff] }
 0x490   : > { %v10420_v18 = vpop.permute.xlu1 %3153  ;;  %v3364_v24 = vsel %vm3358_vm11, %v3331_v26, %v2788_v43  ;;  %v3270_v60 = vsel %vm3259_vm2, %v3237_v14, %v13257_v58  ;;  %v7467_v26 = vpack.c.bf16 %v3839_v10, %v3838_v44  ;;  %v3840_v43 = vld [vmem:[%s12870_s6 + $0x60] sm:$0xff]  ;;  %v13262_v16 = vld [vmem:[#allocation27_spill] sm:$0xff]  ;;  %v13265_v51 = vld [vmem:[#allocation25_spill] sm:$0xff] }
 0x491   : > { %v3397_v34 = vsel %vm3391_vm12, %v3364_v24, %v13248_v22  ;;  %v13259_v24 = vld [vmem:[#allocation119_spill] sm:$0xff]  ;;  %v13269_v4 = vld [vmem:[#allocation29_spill] sm:$0xff]  ;;  %v13271_v58 = vld [vmem:[#allocation30_spill] sm:$0xff] }
 0x492   : > { %v3430_v15 = vsel %vm3424_vm13, %v3397_v34, %v13250_v31  ;;  %7462 = vmatpush3.bf16.msra.mxu0 %v7461_v61  ;;  %v3303_v61 = vsel %vm3292_vm7, %v3270_v60, %v10298_v54  ;;  %v2007_v45 = vmul.f32 %v13260_v36, %v13259_v24  ;;  %v3433_v54 = vsel %vm3424_vm13, %v3400_v56, %v13261_v63  ;;  %v13263_v34 = vld [vmem:[#allocation36_spill] sm:$0xff]  ;;  %v13264_v6 = vld [vmem:[#allocation31_spill] sm:$0xff] }
 0x493   : > { %v2438_v27 = vpop.permute.xlu0 %2437  ;;  %v3463_v13 = vsel %vm3457_vm15, %v3430_v15, %v13253_v25  ;;  %7463 = vmatprep.subr.bf16.mxu0 %v13232_v57  ;;  %v3336_v28 = vsel %vm3325_vm9, %v3303_v61, %v13263_v34  ;;  %v7470_v15 = vpack.c.bf16 %v3841_v0, %v3840_v43  ;;  %v3842_v25 = vld [vmem:[%s12870_s6 + $0x70] sm:$0xff]  ;;  %v13272_v43 = vld [vmem:[#allocation128_spill] sm:$0xff] }
 0x494   : > { %v10446_v53 = vpop.permute.xlu1 %2929  ;;  %v3267_v33 = vsel %vm3259_vm2, %v3234_v19, %v2438_v27  ;;  %7288 = vmatmul.mubr.msk.f32.gmra.mrb[6].mxu0 %vm3505_vm14, %v3463_v13  ;;  %v13266_v19 = vld [vmem:[#allocation45_spill] sm:$0xff]  ;;  %v3843_v13 = vld [vmem:[%s12870_s6 + $0x78] sm:$0xff]  ;;  %v13273_v0 = vld [vmem:[#allocation140_spill] sm:$0xff] }
 0x495   : > { %v3300_v3 = vsel %vm3292_vm7, %v3267_v33, %v13256_v42  ;;  %7290 = vmatprep.mubr.msk.f32.mxu0 %vm3505_vm14, %v3464_v29  ;;  %v3239_v50 = vsel %vm1234_vm0, %v2007_v45, %v13266_v19  ;;  %v13267_v33 = vld [vmem:[#allocation38_spill] sm:$0xff]  ;;  %v13275_v45 = vld [vmem:[#allocation39_spill] sm:$0xff] }
 0x496   : > { %v3333_v49 = vsel %vm3325_vm9, %v3300_v3, %v13258_v2  ;;  %7465 = vmatpush3.bf16.msra.mxu0 %v7464_v55  ;;  %v8345_v55 = vld [vmem:[#allocation2 + $0x4f] sm:$0xff]  ;;  %v3466_v20 = vsel %vm3457_vm15, %v3433_v54, %v13267_v33  ;;  %v7473_v2 = vpack.c.bf16 %v3843_v13, %v3842_v25  ;;  %v8346_v34 = vld [vmem:[#allocation2 + $0x5f] sm:$0xff] }
 0x497   : > { %v2792_v35 = vpop.permute.xlu0 %2791  ;;  %7466 = vmatprep.subr.bf16.mxu0 %v13232_v57  ;;  %v3236_v38 = vsel %vm1234_vm0, %v8345_v55, %v13265_v51  ;;  %v13270_v3 = vld [vmem:[#allocation42_spill] sm:$0xff]  ;;  %v13282_v13 = vld [vmem:[#allocation41_spill] sm:$0xff]  ;;  %v13283_v33 = vld [vmem:[#allocation52_spill] sm:$0xff] }
 0x498   : > { %v2580_v5 = vpop.permute.xlu1 %2579  ;;  %v3366_v52 = vsel %vm3358_vm11, %v3333_v49, %v2792_v35  ;;  %v3272_v56 = vsel %vm3259_vm2, %v3239_v50, %v13270_v3  ;;  %v13276_v54 = vld [vmem:[#allocation46_spill] sm:$0xff]  ;;  %v13280_v50 = vld [vmem:[#allocation48_spill] sm:$0xff] }
 0x499   : > { %v3399_v22 = vsel %vm3391_vm12, %v3366_v52, %v13262_v16  ;;  %v3305_v49 = vsel %vm3292_vm7, %v3272_v56, %v10392_v62  ;;  %v13274_v52 = vld [vmem:[#allocation44_spill] sm:$0xff]  ;;  %v13285_v56 = vld [vmem:[#allocation137_spill] sm:$0xff] }
 0x49a   : > { %v3432_v31 = vsel %vm3424_vm13, %v3399_v22, %v13264_v6  ;;  %7468 = vmatpush3.bf16.msra.mxu0 %v7467_v26  ;;  %v3338_v16 = vsel %vm3325_vm9, %v3305_v49, %v13276_v54  ;;  %v13277_v22 = vld [vmem:[#allocation43_spill] sm:$0xff] }
 0x49b   : > { %v2442_v14 = vpop.permute.xlu0 %2441  ;;  %v3465_v27 = vsel %vm3457_vm15, %v3432_v31, %v10244_v23  ;;  %7469 = vmatprep.subr.bf16.mxu0 %v13232_v57  ;;  %v13268_v23 = vld [vmem:[#allocation47_spill] sm:$0xff]  ;;  %v13279_v31 = vld [vmem:[#allocation57_spill] sm:$0xff] }
 0x49c   : > { %v10496_v44 = vpop.permute.xlu1 %3157  ;;  %v3269_v10 = vsel %vm3259_vm2, %v3236_v38, %v2442_v14  ;;  %7291 = vmatmul.mubr.msk.f32.gmra.mrb[8].mxu0 %vm3505_vm14, %v3465_v27  ;;  %v3369_v29 = vsel %vm3358_vm11, %v3336_v28, %v13268_v23  ;;  %v13278_v28 = vld [vmem:[#allocation37_spill] sm:$0xff]  ;;  %v13281_v27 = vld [vmem:[#allocation59_spill] sm:$0xff]  ;;  %v13284_v23 = vld [vmem:[#allocation40_spill] sm:$0xff] }
 0x49d   : > { %v3302_v32 = vsel %vm3292_vm7, %v3269_v10, %v13269_v4  ;;  %7293 = vmatprep.mubr.msk.f32.mxu0 %vm3505_vm14, %v3466_v20  ;;  %v3402_v42 = vsel %vm3391_vm12, %v3369_v29, %v10364_v17  ;;  %v2009_v17 = vmul.f32 %v13273_v0, %v13272_v43  ;;  %v3238_v6 = vsel %vm1234_vm0, %v8346_v34, %v13278_v28  ;;  %v13293_v28 = vld [vmem:[#allocation58_spill] sm:$0xff] }
 0x49e   : > { %v3335_v60 = vsel %vm3325_vm9, %v3302_v32, %v13271_v58  ;;  %7471 = vmatpush3.bf16.msra.mxu0 %v7470_v15  ;;  %v3435_v24 = vsel %vm3424_vm13, %v3402_v42, %v13274_v52  ;;  %v3371_v25 = vsel %vm3358_vm11, %v3338_v16, %v13281_v27  ;;  %v13286_v58 = vld [vmem:[#allocation149_spill] sm:$0xff] }
 0x49f   : > { %v2796_v26 = vpop.permute.xlu0 %2795  ;;  %7472 = vmatprep.subr.bf16.mxu0 %v13232_v57  ;;  %v3241_v15 = vsel %vm1234_vm0, %v2009_v17, %v13279_v31  ;;  %v3468_v14 = vsel %vm3457_vm15, %v3435_v24, %v13280_v50  ;;  %v13290_v17 = vld [vmem:[#allocation55_spill] sm:$0xff]  ;;  %v13291_v24 = vld [vmem:[#allocation49_spill] sm:$0xff]  ;;  %v13296_v50 = vld [vmem:[#allocation62_spill] sm:$0xff] }
 0x4a0   : > { %v2934_v61 = vpop.permute.xlu1 %2933  ;;  %v3368_v35 = vsel %vm3358_vm11, %v3335_v60, %v2796_v26  ;;  %v3274_v20 = vsel %vm3259_vm2, %v3241_v15, %v13283_v33  ;;  %v2011_v60 = vmul.f32 %v13286_v58, %v13285_v56  ;;  %v13288_v26 = vld [vmem:[#allocation51_spill] sm:$0xff]  ;;  %v13298_v33 = vld [vmem:[#allocation146_spill] sm:$0xff] }
 0x4a1   : > { %v3401_v63 = vsel %vm3391_vm12, %v3368_v35, %v13275_v45  ;;  %v3307_v4 = vsel %vm3292_vm7, %v3274_v20, %v2580_v5  ;;  %v13289_v35 = vld [vmem:[#allocation56_spill] sm:$0xff]  ;;  %v8347_v5 = vld [vmem:[#allocation2 + $0x6f] sm:$0xff]  ;;  %v13294_v31 = vld [vmem:[#allocation71_spill] sm:$0xff] }
 0x4a2   : > { %v3434_v62 = vsel %vm3424_vm13, %v3401_v63, %v13277_v22  ;;  %7474 = vmatpush3.bf16.msra.mxu0 %v7473_v2  ;;  %v13287_v2 = vld [vmem:[#allocation54_spill] sm:$0xff]  ;;  %v3340_v43 = vsel %vm3325_vm9, %v3307_v4, %v13289_v35  ;;  %v3240_v45 = vsel %vm1234_vm0, %v8347_v5, %v13291_v24  ;;  %v13292_v63 = vld [vmem:[#allocation69_spill] sm:$0xff]  ;;  %v13306_v24 = vld [vmem:[#allocation68_spill] sm:$0xff] }
 0x4a3   : > { %v2446_v55 = vpop.permute.xlu0 %2445  ;;  %v3467_v51 = vsel %vm3457_vm15, %v3434_v62, %v10332_v9  ;;  %7475 = vmatprep.subr.bf16.mxu0 %v13232_v57  ;;  %v3404_v9 = vsel %vm3391_vm12, %v3371_v25, %v10446_v53  ;;  %v3243_v54 = vsel %vm1234_vm0, %v2011_v60, %v13292_v63  ;;  %v3373_v15 = vsel %vm3358_vm11, %v3340_v43, %v13294_v31  ;;  %v13299_v20 = vld [vmem:[#allocation158_spill] sm:$0xff]  ;;  %v13303_v60 = vld [vmem:[#allocation67_spill] sm:$0xff]  ;;  %v13307_v63 = vld [vmem:[#allocation84_spill] sm:$0xff] }
 0x4a4   : > { %v2584_v38 = vpop.permute.xlu1 %2583  ;;  %v3271_v19 = vsel %vm3259_vm2, %v3238_v6, %v2446_v55  ;;  %7294 = vmatmul.mubr.msk.f32.gmra.mrb[10].mxu0 %vm3505_vm14, %v3467_v51  ;;  %v3437_v49 = vsel %vm3424_vm13, %v3404_v9, %v13287_v2  ;;  %v13295_v55 = vld [vmem:[#allocation53_spill] sm:$0xff] }
 0x4a5   : > { %v3304_v10 = vsel %vm3292_vm7, %v3271_v19, %v13282_v13  ;;  %7296 = vmatprep.mubr.msk.f32.mxu0 %vm3505_vm14, %v3468_v14  ;;  %v3470_v6 = vsel %vm3457_vm15, %v3437_v49, %v13293_v28  ;;  %v3406_v19 = vsel %vm3391_vm12, %v3373_v15, %v2934_v61  ;;  %v13297_v14 = vld [vmem:[#allocation50_spill] sm:$0xff]  ;;  %v13304_v49 = vld [vmem:[#allocation61_spill] sm:$0xff]  ;;  %v13309_v28 = vld [vmem:[#allocation72_spill] sm:$0xff] }
 0x4a6   : > { %v3337_v29 = vsel %vm3325_vm9, %v3304_v10, %v13284_v23  ;;  %v2013_v23 = vmul.f32 %v13299_v20, %v13298_v33 }
 0x4a7   : > { %v2800_v32 = vpop.permute.xlu0 %2799 }
 0x4a8   : > { %v3162_v42 = vpop.permute.xlu1 %3161  ;;  %v3370_v3 = vsel %vm3358_vm11, %v3337_v29, %v2800_v32  ;;  %v13300_v29 = vld [vmem:[#allocation64_spill] sm:$0xff]  ;;  %v13301_v32 = vld [vmem:[#allocation63_spill] sm:$0xff] }
 0x4a9   : > { %v3403_v53 = vsel %vm3391_vm12, %v3370_v3, %v13288_v26  ;;  %v3439_v4 = vsel %vm3424_vm13, %v3406_v19, %v13300_v29  ;;  %v13302_v3 = vld [vmem:[#allocation66_spill] sm:$0xff] }
 0x4aa   : > { %v3436_v52 = vsel %vm3424_vm13, %v3403_v53, %v13290_v17  ;;  %v13305_v53 = vld [vmem:[#allocation81_spill] sm:$0xff] }
 0x4ab   : > { %v2450_v16 = vpop.permute.xlu0 %2449  ;;  %v3469_v22 = vsel %vm3457_vm15, %v3436_v52, %v10420_v18  ;;  %v3276_v18 = vsel %vm3259_vm2, %v3243_v54, %v13296_v50  ;;  %v3245_v35 = vsel %vm1234_vm0, %v2013_v23, %v13305_v53  ;;  %v13311_v50 = vld [vmem:[#allocation155_spill] sm:$0xff]  ;;  %v13320_v53 = vld [vmem:[#allocation100_spill] sm:$0xff] }
 0x4ac   : > { %v2938_v62 = vpop.permute.xlu1 %2937  ;;  %v3273_v34 = vsel %vm3259_vm2, %v3240_v45, %v2450_v16  ;;  %7297 = vmatmul.mubr.msk.f32.gmra.mrb[12].mxu0 %vm3505_vm14, %v3469_v22  ;;  %v3309_v25 = vsel %vm3292_vm7, %v3276_v18, %v2584_v38  ;;  %v8348_v38 = vld [vmem:[#allocation2 + $0x7f] sm:$0xff]  ;;  %v3472_v45 = vsel %vm3457_vm15, %v3439_v4, %v13306_v24  ;;  %v13308_v16 = vld [vmem:[#allocation65_spill] sm:$0xff]  ;;  %v13322_v24 = vld [vmem:[#allocation82_spill] sm:$0xff] }
 0x4ad   : > { %v3306_v51 = vsel %vm3292_vm7, %v3273_v34, %v13295_v55  ;;  %7299 = vmatprep.mubr.msk.f32.mxu0 %vm3505_vm14, %v3470_v6  ;;  %v3342_v56 = vsel %vm3325_vm9, %v3309_v25, %v13302_v3  ;;  %v3242_v26 = vsel %vm1234_vm0, %v8348_v38, %v13304_v49  ;;  %v13310_v6 = vld [vmem:[#allocation60_spill] sm:$0xff]  ;;  %v13312_v18 = vld [vmem:[#allocation167_spill] sm:$0xff]  ;;  %v13317_v4 = vld [vmem:[#allocation73_spill] sm:$0xff] }
 0x4ae   : > { %v3339_v27 = vsel %vm3325_vm9, %v3306_v51, %v13297_v14  ;;  %v3375_v54 = vsel %vm3358_vm11, %v3342_v56, %v13307_v63  ;;  %v2015_v14 = vmul.f32 %v13312_v18, %v13311_v50  ;;  %v13316_v23 = vld [vmem:[#allocation79_spill] sm:$0xff]  ;;  %v13319_v49 = vld [vmem:[#allocation78_spill] sm:$0xff] }
 0x4af   : > { %v2804_v13 = vpop.permute.xlu0 %2803  ;;  %v3408_v34 = vsel %vm3391_vm12, %v3375_v54, %v2938_v62  ;;  %v8350_v50 = vld [vmem:[#allocation2 + $0x9f] sm:$0xff] }
 0x4b0   : > { %v2588_v10 = vpop.permute.xlu1 %2587  ;;  %v3372_v9 = vsel %vm3358_vm11, %v3339_v27, %v2804_v13  ;;  %v13313_v27 = vld [vmem:[#allocation74_spill] sm:$0xff]  ;;  %v13314_v13 = vld [vmem:[#allocation75_spill] sm:$0xff] }
 0x4b1   : > { %v3405_v61 = vsel %vm3391_vm12, %v3372_v9, %v13301_v32  ;;  %v3441_v25 = vsel %vm3424_vm13, %v3408_v34, %v13313_v27  ;;  %v13315_v9 = vld [vmem:[#allocation76_spill] sm:$0xff] }
 0x4b2   : > { %v3438_v2 = vsel %vm3424_vm13, %v3405_v61, %v13303_v60  ;;  %v13318_v61 = vld [vmem:[#allocation97_spill] sm:$0xff] }
 0x4b3   : > { %v2454_v43 = vpop.permute.xlu0 %2453  ;;  %v3471_v17 = vsel %vm3457_vm15, %v3438_v2, %v10496_v44  ;;  %v3278_v44 = vsel %vm3259_vm2, %v3245_v35, %v13309_v28  ;;  %v3247_v3 = vsel %vm1234_vm0, %v2015_v14, %v13318_v61  ;;  %v13324_v28 = vld [vmem:[#allocation85_spill] sm:$0xff]  ;;  %v13328_v14 = vld [vmem:[#allocation87_spill] sm:$0xff] }
 0x4b4   : > { %v3166_v52 = vpop.permute.xlu1 %3165  ;;  %v3275_v5 = vsel %vm3259_vm2, %v3242_v26, %v2454_v43  ;;  %7300 = vmatmul.mubr.msk.f32.gmra.mrb[14].mxu0 %vm3505_vm14, %v3471_v17  ;;  %v3311_v15 = vsel %vm3292_vm7, %v3278_v44, %v2588_v10  ;;  %v8349_v10 = vld [vmem:[#allocation2 + $0x8f] sm:$0xff]  ;;  %v3474_v26 = vsel %vm3457_vm15, %v3441_v25, %v13319_v49  ;;  %v3246_v27 = vsel %vm1234_vm0, %v8350_v50, %v13328_v14 }
 0x4b5   : > { %v3308_v22 = vsel %vm3292_vm7, %v3275_v5, %v13308_v16  ;;  %7302 = vmatprep.mubr.msk.f32.mxu0 %vm3505_vm14, %v3472_v45  ;;  %v3344_v33 = vsel %vm3325_vm9, %v3311_v15, %v13315_v9  ;;  %v3244_v32 = vsel %vm1234_vm0, %v8349_v10, %v13317_v4  ;;  %v13321_v43 = vld [vmem:[#allocation77_spill] sm:$0xff]  ;;  %v13323_v45 = vld [vmem:[#allocation70_spill] sm:$0xff]  ;;  %v13326_v15 = vld [vmem:[#allocation88_spill] sm:$0xff] }
 0x4b6   : > { %v3341_v31 = vsel %vm3325_vm9, %v3308_v22, %v13310_v6  ;;  %v3377_v35 = vsel %vm3358_vm11, %v3344_v33, %v13320_v53  ;;  %v13325_v6 = vld [vmem:[#allocation90_spill] sm:$0xff]  ;;  %v13330_v9 = vld [vmem:[#allocation173_spill] sm:$0xff]  ;;  %v13331_v10 = vld [vmem:[#allocation91_spill] sm:$0xff] }
 0x4b7   : > { %v2808_v55 = vpop.permute.xlu0 %2807  ;;  %v13342_v50 = vld [vmem:[#allocation101_spill] sm:$0xff] }
 0x4b8   : > { %v2942_v51 = vpop.permute.xlu1 %2941  ;;  %v3374_v19 = vsel %vm3358_vm11, %v3341_v31, %v2808_v55 }
 0x4b9   : > { %v3407_v62 = vsel %vm3391_vm12, %v3374_v19, %v13314_v13  ;;  %v3410_v5 = vsel %vm3391_vm12, %v3377_v35, %v2942_v51  ;;  %v13327_v51 = vld [vmem:[#allocation94_spill] sm:$0xff] }
 0x4ba   : > { %v3440_v29 = vsel %vm3424_vm13, %v3407_v62, %v13316_v23  ;;  %v3443_v44 = vsel %vm3424_vm13, %v3410_v5, %v13324_v28  ;;  %v13329_v62 = vld [vmem:[#allocation164_spill] sm:$0xff]  ;;  %v13337_v5 = vld [vmem:[#allocation95_spill] sm:$0xff]  ;;  %v13340_v28 = vld [vmem:[#allocation102_spill] sm:$0xff] }
 0x4bb   : > { %v2458_v56 = vpop.permute.xlu0 %2457  ;;  %v3473_v60 = vsel %vm3457_vm15, %v3440_v29, %v3162_v42  ;;  %v3280_v42 = vsel %vm3259_vm2, %v3247_v3, %v13322_v24  ;;  %v2017_v33 = vmul.f32 %v13330_v9, %v13329_v62  ;;  %v3476_v4 = vsel %vm3457_vm15, %v3443_v44, %v13331_v10  ;;  %v13333_v3 = vld [vmem:[#allocation92_spill] sm:$0xff]  ;;  %v13347_v10 = vld [vmem:[#allocation135_spill] sm:$0xff] }
 0x4bc   : > { %v2592_v2 = vpop.permute.xlu1 %2591  ;;  %v3277_v38 = vsel %vm3259_vm2, %v3244_v32, %v2458_v56  ;;  %7303 = vmatmul.mubr.msk.f32.gmra.mrb[16].mxu0 %vm3505_vm14, %v3473_v60  ;;  %v13332_v32 = vld [vmem:[#allocation117_spill] sm:$0xff] }
 0x4bd   : > { %v3310_v17 = vsel %vm3292_vm7, %v3277_v38, %v13321_v43  ;;  %7305 = vmatprep.mubr.msk.f32.mxu0 %vm3505_vm14, %v3474_v26  ;;  %v3313_v54 = vsel %vm3292_vm7, %v3280_v42, %v2592_v2  ;;  %v13335_v38 = vld [vmem:[#allocation80_spill] sm:$0xff]  ;;  %v13336_v43 = vld [vmem:[#allocation98_spill] sm:$0xff]  ;;  %v13338_v42 = vld [vmem:[#allocation105_spill] sm:$0xff] }
 0x4be   : > { %v3343_v63 = vsel %vm3325_vm9, %v3310_v17, %v13323_v45  ;;  %v3346_v55 = vsel %vm3325_vm9, %v3313_v54, %v13326_v15  ;;  %v13339_v54 = vld [vmem:[#allocation111_spill] sm:$0xff] }
 0x4bf   : > { %v2812_v16 = vpop.permute.xlu0 %2811  ;;  %v3379_v61 = vsel %vm3358_vm11, %v3346_v55, %v13332_v32 }
 0x4c0   : > { %v3170_v22 = vpop.permute.xlu1 %3169  ;;  %v3376_v34 = vsel %vm3358_vm11, %v3343_v63, %v2812_v16 }
 0x4c1   : > { %v3409_v31 = vsel %vm3391_vm12, %v3376_v34, %v13325_v6  ;;  %v8351_v34 = vld [vmem:[#allocation2 + $0xaf] sm:$0xff] }
 0x4c2   : > { %v3442_v19 = vsel %vm3424_vm13, %v3409_v31, %v13327_v51  ;;  %v3248_v44 = vsel %vm1234_vm0, %v8351_v34, %v13340_v28  ;;  %v13341_v51 = vld [vmem:[#allocation103_spill] sm:$0xff]  ;;  %v13355_v28 = vld [vmem:[#allocation126_spill] sm:$0xff] }
 0x4c3   : > { %v2462_v25 = vpop.permute.xlu0 %2461  ;;  %v3475_v13 = vsel %vm3457_vm15, %v3442_v19, %v3166_v52  ;;  %v13334_v52 = vld [vmem:[#allocation114_spill] sm:$0xff] }
 0x4c4   : > { %v2946_v23 = vpop.permute.xlu1 %2945  ;;  %v3279_v29 = vsel %vm3259_vm2, %v3246_v27, %v2462_v25  ;;  %7306 = vmatmul.mubr.msk.f32.gmra.mrb[18].mxu0 %vm3505_vm14, %v3475_v13  ;;  %v3249_v60 = vsel %vm1234_vm0, %v2017_v33, %v13334_v52  ;;  %v13343_v27 = vld [vmem:[#allocation108_spill] sm:$0xff]  ;;  %v13344_v13 = vld [vmem:[#allocation93_spill] sm:$0xff]  ;;  %v13345_v33 = vld [vmem:[#allocation171_spill] sm:$0xff] }
 0x4c5   : > { %v3312_v56 = vsel %vm3292_vm7, %v3279_v29, %v13333_v3  ;;  %7308 = vmatprep.mubr.msk.f32.mxu0 %vm3505_vm14, %v3476_v4  ;;  %v3412_v2 = vsel %vm3391_vm12, %v3379_v61, %v2946_v23  ;;  %v3282_v24 = vsel %vm3259_vm2, %v3249_v60, %v13337_v5  ;;  %v13346_v23 = vld [vmem:[#allocation180_spill] sm:$0xff] }
 0x4c6   : > { %v3345_v49 = vsel %vm3325_vm9, %v3312_v56, %v13335_v38  ;;  %v3445_v17 = vsel %vm3424_vm13, %v3412_v2, %v13336_v43  ;;  %v2019_v29 = vmul.f32 %v13346_v23, %v13345_v33  ;;  %v13348_v56 = vld [vmem:[#allocation123_spill] sm:$0xff]  ;;  %v13349_v60 = vld [vmem:[#allocation132_spill] sm:$0xff]  ;;  %v13360_v33 = vld [vmem:[#allocation138_spill] sm:$0xff] }
 0x4c7   : > { %v2816_v26 = vpop.permute.xlu0 %2815  ;;  %v3478_v19 = vsel %vm3457_vm15, %v3445_v17, %v13341_v51  ;;  %v13350_v38 = vld [vmem:[#allocation112_spill] sm:$0xff] }
 0x4c8   : > { %v2596_v53 = vpop.permute.xlu1 %2595  ;;  %v3378_v35 = vsel %vm3358_vm11, %v3345_v49, %v2816_v26  ;;  %v3251_v2 = vsel %vm1234_vm0, %v2019_v29, %v13349_v60  ;;  %v13351_v26 = vld [vmem:[#allocation129_spill] sm:$0xff]  ;;  %v13352_v43 = vld [vmem:[#allocation120_spill] sm:$0xff] }
 0x4c9   : > { %v3411_v45 = vsel %vm3391_vm12, %v3378_v35, %v13338_v42  ;;  %v3315_v63 = vsel %vm3292_vm7, %v3282_v24, %v2596_v53  ;;  %v8352_v35 = vld [vmem:[#allocation2 + $0xbf] sm:$0xff] }
 0x4ca   : > { %v3444_v16 = vsel %vm3424_vm13, %v3411_v45, %v13339_v54  ;;  %v3348_v14 = vsel %vm3325_vm9, %v3315_v63, %v13342_v50  ;;  %v3250_v17 = vsel %vm1234_vm0, %v8352_v35, %v13352_v43  ;;  %v13353_v63 = vld [vmem:[#allocation118_spill] sm:$0xff]  ;;  %v13357_v50 = vld [vmem:[#allocation115_spill] sm:$0xff] }
 0x4cb   : > { %v2466_v6 = vpop.permute.xlu0 %2465  ;;  %v3477_v31 = vsel %vm3457_vm15, %v3444_v16, %v3170_v22  ;;  %v3381_v4 = vsel %vm3358_vm11, %v3348_v14, %v13347_v10  ;;  %v13354_v16 = vld [vmem:[#allocation109_spill] sm:$0xff]  ;;  %v13365_v35 = vld [vmem:[#allocation127_spill] sm:$0xff] }
 0x4cc   : > { %v3174_v15 = vpop.permute.xlu1 %3173  ;;  %v3281_v55 = vsel %vm3259_vm2, %v3248_v44, %v2466_v6  ;;  %7309 = vmatmul.mubr.msk.f32.gmra.mrb[20].mxu0 %vm3505_vm14, %v3477_v31  ;;  %v3284_v34 = vsel %vm3259_vm2, %v3251_v2, %v13354_v16  ;;  %v13356_v31 = vld [vmem:[#allocation106_spill] sm:$0xff]  ;;  %v13368_v16 = vld [vmem:[#allocation124_spill] sm:$0xff] }
 0x4cd   : > { %v3314_v25 = vsel %vm3292_vm7, %v3281_v55, %v13343_v27  ;;  %7311 = vmatprep.mubr.msk.f32.mxu0 %vm3505_vm14, %v3478_v19  ;;  %v13358_v27 = vld [vmem:[#allocation141_spill] sm:$0xff] }
 0x4ce   : > { %v3347_v62 = vsel %vm3325_vm9, %v3314_v25, %v13344_v13  ;;  %v13359_v13 = vld [vmem:[#allocation147_spill] sm:$0xff] }
 0x4cf   : > { %v2820_v22 = vpop.permute.xlu0 %2819 }
 0x4d0   : > { %v2950_v32 = vpop.permute.xlu1 %2949  ;;  %v3380_v61 = vsel %vm3358_vm11, %v3347_v62, %v2820_v22  ;;  %v8353_v22 = vld [vmem:[#allocation2 + $0xcf] sm:$0xff] }
 0x4d1   : > { %v3414_v3 = vsel %vm3391_vm12, %v3381_v4, %v2950_v32  ;;  %v3413_v52 = vsel %vm3391_vm12, %v3380_v61, %v13348_v56  ;;  %v3252_v29 = vsel %vm1234_vm0, %v8353_v22, %v13360_v33  ;;  %v13361_v32 = vld [vmem:[#allocation177_spill] sm:$0xff]  ;;  %v13373_v22 = vld [vmem:[#allocation162_spill] sm:$0xff] }
 0x4d2   : > { %v3447_v49 = vsel %vm3424_vm13, %v3414_v3, %v13350_v38  ;;  %v3446_v53 = vsel %vm3424_vm13, %v3413_v52, %v13351_v26  ;;  %v2021_v61 = vmul.f32 %v10183_v47, %v13361_v32  ;;  %v13362_v3 = vld [vmem:[#allocation153_spill] sm:$0xff]  ;;  %v13363_v38 = vld [vmem:[#allocation144_spill] sm:$0xff]  ;;  %v13364_v26 = vld [vmem:[#allocation150_spill] sm:$0xff] }
 0x4d3   : > { %v2470_v5 = vpop.permute.xlu0 %2469  ;;  %v3479_v24 = vsel %vm3457_vm15, %v3446_v53, %v3174_v15  ;;  %v3480_v54 = vsel %vm3457_vm15, %v3447_v49, %v13353_v63  ;;  %v13375_v32 = vld [vmem:[#allocation185_spill] sm:$0xff] }
 0x4d4   : > { %v2600_v42 = vpop.permute.xlu1 %2599  ;;  %v3283_v45 = vsel %vm3259_vm2, %v3250_v17, %v2470_v5  ;;  %7312 = vmatmul.mubr.msk.f32.gmra.mrb[22].mxu0 %vm3505_vm14, %v3479_v24  ;;  %v3253_v53 = vsel %vm1234_vm0, %v2021_v61, %v13364_v26  ;;  %v13366_v17 = vld [vmem:[#allocation121_spill] sm:$0xff]  ;;  %v2023_v61 = vmul.f32 %v10229_v12, %v13375_v32 }
 0x4d5   : > { %v3316_v44 = vsel %vm3292_vm7, %v3283_v45, %v13355_v28  ;;  %7314 = vmatprep.mubr.msk.f32.mxu0 %vm3505_vm14, %v3480_v54  ;;  %v3317_v6 = vsel %vm3292_vm7, %v3284_v34, %v2600_v42  ;;  %v13367_v42 = vld [vmem:[#allocation133_spill] sm:$0xff]  ;;  %v3286_v34 = vsel %vm3259_vm2, %v3253_v53, %v13368_v16  ;;  %v13369_v28 = vld [vmem:[#allocation159_spill] sm:$0xff] }
 0x4d6   : > { %v3349_v15 = vsel %vm3325_vm9, %v3316_v44, %v13356_v31  ;;  %v3350_v14 = vsel %vm3325_vm9, %v3317_v6, %v13357_v50  ;;  %v13370_v31 = vld [vmem:[#allocation165_spill] sm:$0xff] }
 0x4d7   : > { %v2824_v55 = vpop.permute.xlu0 %2823  ;;  %v3383_v56 = vsel %vm3358_vm11, %v3350_v14, %v13362_v3  ;;  %v13376_v3 = vld [vmem:[#allocation170_spill] sm:$0xff] }
 0x4d8   : > { %v3178_v51 = vpop.permute.xlu1 %3177  ;;  %v3382_v19 = vsel %vm3358_vm11, %v3349_v15, %v2824_v55  ;;  %v8354_v55 = vld [vmem:[#allocation2 + $0xdf] sm:$0xff] }
 0x4d9   : > { %v3415_v25 = vsel %vm3391_vm12, %v3382_v19, %v13358_v27 }
 0x4da   : > { %v3448_v62 = vsel %vm3424_vm13, %v3415_v25, %v13359_v13  ;;  %v13372_v25 = vld [vmem:[#allocation130_spill] sm:$0xff] }
 0x4db   : > { %v2474_v10 = vpop.permute.xlu0 %2473  ;;  %v3481_v4 = vsel %vm3457_vm15, %v3448_v62, %v3178_v51  ;;  %v13371_v51 = vld [vmem:[#allocation156_spill] sm:$0xff] }
 0x4dc   : > { %v2954_v52 = vpop.permute.xlu1 %2953  ;;  %v3285_v60 = vsel %vm3259_vm2, %v3252_v29, %v2474_v10  ;;  %7315 = vmatmul.mubr.msk.f32.gmra.mrb[24].mxu0 %vm3505_vm14, %v3481_v4  ;;  %v3254_v19 = vsel %vm1234_vm0, %v8354_v55, %v13371_v51  ;;  %v13374_v29 = vld [vmem:[#allocation136_spill] sm:$0xff] }
 0x4dd   : > { %v3416_v2 = vsel %vm3391_vm12, %v3383_v56, %v2954_v52  ;;  %v3318_v49 = vsel %vm3292_vm7, %v3285_v60, %v13363_v38 }
 0x4de   : > { %v3449_v43 = vsel %vm3424_vm13, %v3416_v2, %v13365_v35  ;;  %v3351_v5 = vsel %vm3325_vm9, %v3318_v49, %v13366_v17  ;;  %v13377_v2 = vld [vmem:[#allocation168_spill] sm:$0xff]  ;;  %v13378_v49 = vld [vmem:[#allocation142_spill] sm:$0xff] }
 0x4df   : > { %v2828_v24 = vpop.permute.xlu0 %2827  ;;  %v3482_v45 = vsel %vm3457_vm15, %v3449_v43, %v13367_v42  ;;  %v3255_v38 = vsel %vm1234_vm0, %v2023_v61, %v13377_v2  ;;  %v8355_v35 = vld [vmem:[#allocation2 + $0xef] sm:$0xff]  ;;  %v13379_v43 = vld [vmem:[#allocation172_spill] sm:$0xff] }
 0x4e0   : > { %v2604_v63 = vpop.permute.xlu1 %2603  ;;  %v3384_v54 = vsel %vm3358_vm11, %v3351_v5, %v2828_v24  ;;  %7317 = vmatprep.mubr.msk.f32.mxu0 %vm3505_vm14, %v3482_v45  ;;  %v3256_v17 = vsel %vm1234_vm0, %v8355_v35, %v13379_v43  ;;  %v13380_v24 = vld [vmem:[#allocation148_spill] sm:$0xff]  ;;  %v13392_v43 = vld [vmem:[#allocation163_spill] sm:$0xff] }
 0x4e1   : > { %v3417_v44 = vsel %vm3391_vm12, %v3384_v54, %v13369_v28  ;;  %v3319_v6 = vsel %vm3292_vm7, %v3286_v34, %v2604_v63  ;;  %v13381_v54 = vld [vmem:[#allocation174_spill] sm:$0xff]  ;;  %v13382_v34 = vld [vmem:[#allocation139_spill] sm:$0xff] }
 0x4e2   : > { %v3450_v15 = vsel %vm3424_vm13, %v3417_v44, %v13370_v31  ;;  %v3352_v13 = vsel %vm3325_vm9, %v3319_v6, %v13372_v25  ;;  %v3288_v28 = vsel %vm3259_vm2, %v3255_v38, %v13382_v34  ;;  %v13383_v44 = vld [vmem:[#allocation176_spill] sm:$0xff]  ;;  %v13395_v34 = vld [vmem:[#allocation166_spill] sm:$0xff] }
 0x4e3   : > { %v2478_v50 = vpop.permute.xlu0 %2477  ;;  %v3385_v56 = vsel %vm3358_vm11, %v3352_v13, %v13376_v3  ;;  %v13389_v3 = vld [vmem:[#allocation181_spill] sm:$0xff] }
 0x4e4   : > { %v3182_v14 = vpop.permute.xlu1 %3181  ;;  %v3287_v27 = vsel %vm3259_vm2, %v3254_v19, %v2478_v50  ;;  %v13385_v50 = vld [vmem:[#allocation178_spill] sm:$0xff] }
 0x4e5   : > { %v3483_v62 = vsel %vm3457_vm15, %v3450_v15, %v3182_v14  ;;  %v3320_v33 = vsel %vm3292_vm7, %v3287_v27, %v13373_v22  ;;  %v13384_v15 = vld [vmem:[#allocation151_spill] sm:$0xff]  ;;  %v13386_v27 = vld [vmem:[#allocation145_spill] sm:$0xff]  ;;  %v2025_v22 = vmul.f32 %v10265_v40, %v10209_v11 }
 0x4e6   : > { %7318 = vmatmul.mubr.msk.f32.gmra.mrb[26].mxu0 %vm3505_vm14, %v3483_v62  ;;  %v3353_v10 = vsel %vm3325_vm9, %v3320_v33, %v13374_v29  ;;  %v13387_v29 = vld [vmem:[#allocation188_spill] sm:$0xff] }
 0x4e7   : > { %v2832_v4 = vpop.permute.xlu0 %2831 }
 0x4e8   : > { %v2958_v52 = vpop.permute.xlu1 %2957  ;;  %v3386_v53 = vsel %vm3358_vm11, %v3353_v10, %v2832_v4  ;;  %v13388_v4 = vld [vmem:[#allocation183_spill] sm:$0xff] }
 0x4e9   : > { %v3418_v60 = vsel %vm3391_vm12, %v3385_v56, %v2958_v52  ;;  %v3419_v16 = vsel %vm3391_vm12, %v3386_v53, %v13381_v54  ;;  %v3257_v56 = vsel %vm1234_vm0, %v2025_v22, %v13389_v3  ;;  %v8356_v52 = vld [vmem:[#allocation2 + $0xff] sm:$0xff] }
 0x4ea   : > { %v3451_v26 = vsel %vm3424_vm13, %v3418_v60, %v13378_v49  ;;  %v3452_v14 = vsel %vm3424_vm13, %v3419_v16, %v13385_v50  ;;  %v13390_v60 = vld [vmem:[#allocation186_spill] sm:$0xff]  ;;  %v13391_v49 = vld [vmem:[#allocation157_spill] sm:$0xff]  ;;  %v3827_v22 = vld [vmem:[%s584_s30] sm:$0x1] }
 0x4eb   : > { %v2482_v5 = vpop.permute.xlu0 %2481  ;;  %v3484_v42 = vsel %vm3457_vm15, %v3451_v26, %v13380_v24  ;;  %v3258_v2 = vsel %vm1234_vm0, %v8356_v52, %v13390_v60  ;;  %v3922_v52 = vld [vmem:[%s12872_s8] sm:$0xff]  ;;  %v3923_v60 = vld [vmem:[%s12872_s8 + $0x8] sm:$0xff] }
 0x4ec   : > { %v2608_v45 = vpop.permute.xlu1 %2607  ;;  %v3289_v63 = vsel %vm3259_vm2, %v3256_v17, %v2482_v5  ;;  %7320 = vmatprep.mubr.msk.f32.mxu0 %vm3505_vm14, %v3484_v42  ;;  %v13393_v5 = vld [vmem:[#allocation154_spill] sm:$0xff] }
 0x4ed   : > { %v3322_v6 = vsel %vm3292_vm7, %v3289_v63, %v13383_v44  ;;  %v3321_v31 = vsel %vm3292_vm7, %v3288_v28, %v2608_v45  ;;  %v3290_v24 = vsel %vm3259_vm2, %v3257_v56, %v13393_v5 }
 0x4ee   : > { %v3355_v55 = vsel %vm3325_vm9, %v3322_v6, %v13384_v15  ;;  %v3354_v25 = vsel %vm3325_vm9, %v3321_v31, %v13386_v27 }
 0x4ef   : > { %v2836_v51 = vpop.permute.xlu0 %2835  ;;  %v3387_v32 = vsel %vm3358_vm11, %v3354_v25, %v13388_v4 }
 0x4f0   : > { %v3186_v19 = vpop.permute.xlu1 %3185  ;;  %v3388_v62 = vsel %vm3358_vm11, %v3355_v55, %v2836_v51  ;;  %v13396_v55 = vld [vmem:[#allocation5_spill] sm:$0xff] }
 0x4f1   : > { %v3485_v13 = vsel %vm3457_vm15, %v3452_v14, %v3186_v19  ;;  %v3421_v10 = vsel %vm3391_vm12, %v3388_v62, %v13387_v29  ;;  %v13397_v19 = vld [vmem:[#allocation7_spill] sm:$0xff]  ;;  %v13398_v14 = vld [vmem:[#allocation6_spill] sm:$0xff] }
 0x4f2   : > { %7321 = vmatmul.mubr.msk.f32.gmra.mrb[28].mxu0 %vm3505_vm14, %v3485_v13  ;;  %v3454_v53 = vsel %vm3424_vm13, %v3421_v10, %v10215_v41  ;;  %v13394_v41 = vld [vmem:[#allocation160_spill] sm:$0xff] }
 0x4f3   : > { %v2486_v33 = vpop.permute.xlu0 %2485 }
 0x4f4   : > { %v2962_v61 = vpop.permute.xlu1 %2961  ;;  %v3291_v26 = vsel %vm3259_vm2, %v3258_v2, %v2486_v33 }
 0x4f5   : > { %v3420_v38 = vsel %vm3391_vm12, %v3387_v32, %v2962_v61  ;;  %v3324_v63 = vsel %vm3292_vm7, %v3291_v26, %v10201_v30 }
 0x4f6   : > { %v3453_v11 = vsel %vm3424_vm13, %v3420_v38, %v13391_v49  ;;  %v3357_v31 = vsel %vm3325_vm9, %v3324_v63, %v10237_v1  ;;  %v7476_v38 = vpack.c.bf16 %v3923_v60, %v3922_v52  ;;  %v4035_v52 = vld [vmem:[%s12881_s17 + $0x8] sm:$0xff] }
 0x4f7   : > { %v3190_v35 = vpop.permute.xlu0 %3189  ;;  %v3486_v17 = vsel %vm3457_vm15, %v3453_v11, %v13392_v43 }
 0x4f8   : > { %v2612_v42 = vpop.permute.xlu1 %2611  ;;  %v3487_v45 = vsel %vm3457_vm15, %v3454_v53, %v3190_v35  ;;  %7323 = vmatprep.mubr.msk.f32.mxu0 %vm3505_vm14, %v3486_v17 }
 0x4f9   : > { %v3323_v54 = vsel %vm3292_vm7, %v3290_v24, %v2612_v42  ;;  %7324 = vmatmul.mubr.msk.f32.gmra.mrb[30].mxu0 %vm3505_vm14, %v3487_v45 }
 0x4fa   : > { %v3356_v16 = vsel %vm3325_vm9, %v3323_v54, %v13394_v41 }
 0x4fb   : > { %v3389_v28 = vsel %vm3358_vm11, %v3356_v16, %v13395_v34  ;;  %v2966_v44 = vpop.permute.xlu0 %2965 }
 0x4fc   : > { %v2840_v6 = vpop.permute.xlu1 %2839  ;;  %v3422_v15 = vsel %vm3391_vm12, %v3389_v28, %v2966_v44 }
 0x4fd   : > { %v3390_v30 = vsel %vm3358_vm11, %v3357_v31, %v2840_v6  ;;  %v3455_v27 = vsel %vm3424_vm13, %v3422_v15, %v13398_v14 }
 0x4fe   : > { %v3423_v51 = vsel %vm3391_vm12, %v3390_v30, %v13396_v55 }
 0x4ff   : > { %v3456_v50 = vsel %vm3424_vm13, %v3423_v51, %v13397_v19  ;;  %v3192_v25 = vpop.permute.xlu0 %3191  ;;  %v3844_v51 = vld [vmem:[%s12871_s7] sm:$0x1] }
 0x500   : > { %v3194_v13 = vpop.permute.xlu1 %3193  ;;  %v3488_v62 = vsel %vm3457_vm15, %v3455_v27, %v3192_v25 }
 0x501   : > { %v3489_v1 = vsel %vm3457_vm15, %v3456_v50, %v3194_v13  ;;  %7326 = vmatprep.mubr.msk.f32.mxu0 %vm3505_vm14, %v3488_v62 }
 0x502   : > { %7327 = vmatmul.mubr.msk.f32.gmra.mrb[32].mxu0 %vm3505_vm14, %v3489_v1 }
 0x503   : > { %7361 = vmatprep.mubr.msk.f32.mxu0 %vm8419_vm1, %v13119_v21 }
 0x506   : > { %7362 = vmatmul.mubr.f32.vlgmr.msra.gmra.mrb[34].mxu0 %v3827_v22  ;;  %v4034_v22 = vld [vmem:[%s12881_s17] sm:$0xff] }
 0x507   : > { %7368 = vmatprep.mubr.msk.f32.mxu0 %vm8419_vm1, %v13119_v21  ;;  %7477 = vmatpush3.bf16.msra.mxu0 %v7476_v38  ;;  %v10876_v60 = vpack.c.bf16 %v4035_v52, %v4034_v22  ;;  %v7008_v38 = vld [vmem:[%s12869_s5] ss:$0 sm:$0xff] }
 0x508   : > { %7478 = vmatprep.subr.bf16.mxu0 %v13232_v57  ;;  %v3924_v22 = vld [vmem:[%s12873_s9] sm:$0x1] }
 0x557   : > { %v7283_v33 = vpop.f32.mrb[2].mxu0 }
 0x558   : > { %v3668_v29 = vpop.f32.mrb[3].mxu0 }
 0x55f   : > { %v7286_v10 = vpop.f32.mrb[4].mxu0 }
 0x560   : > { %v3678_v4 = vpop.f32.mrb[5].mxu0 }
 0x567   : > { %v7289_v32 = vpop.f32.mrb[6].mxu0 }
 0x568   : > { %v3688_v61 = vpop.f32.mrb[7].mxu0 }
 0x56f   : > { %v7292_v3 = vpop.f32.mrb[8].mxu0 }
 0x570   : > { %v3698_v56 = vpop.f32.mrb[9].mxu0 }
 0x577   : > { %v7295_v2 = vpop.f32.mrb[10].mxu0 }
 0x578   : > { %v3708_v49 = vpop.f32.mrb[11].mxu0 }
 0x579   : > { %v3709_v48 = vadd.f32 %v7008_v38, %v3708_v49 }
 0x57f   : > { %v7298_v11 = vpop.f32.mrb[12].mxu0 }
 0x580   : > { %v3718_v26 = vpop.f32.mrb[13].mxu0  ;;  %v3724_v52 = vadd.f32 %v7298_v11, %v7008_v38 }
 0x581   : > { %v3719_v40 = vadd.f32 %v7008_v38, %v3718_v26  ;;  %v13400_v26 = vld [vmem:[#allocation4_spill] sm:$0xff] }
 0x587   : > { %v7301_v53 = vpop.f32.mrb[14].mxu0 }
 0x588   : > { %v3728_v35 = vpop.f32.mrb[15].mxu0  ;;  %v3734_v7 = vadd.f32 %v7301_v53, %v7008_v38 }
 0x589   : > { %v3729_v12 = vadd.f32 %v7008_v38, %v3728_v35 }
 0x58f   : > { %v7304_v43 = vpop.f32.mrb[16].mxu0 }
 0x590   : > { %v3738_v17 = vpop.f32.mrb[17].mxu0  ;;  %v3744_v47 = vadd.f32 %v7304_v43, %v7008_v38 }
 0x591   : > { %v3739_v59 = vadd.f32 %v7008_v38, %v3738_v17 }
 0x597   : > { %v7307_v5 = vpop.f32.mrb[18].mxu0 }
 0x598   : > { %v3748_v24 = vpop.f32.mrb[19].mxu0 }
 0x59f   : > { %v7310_v42 = vpop.f32.mrb[20].mxu0 }
 0x5a0   : > { %v3758_v45 = vpop.f32.mrb[21].mxu0 }
 0x5a7   : > { %v7313_v63 = vpop.f32.mrb[22].mxu0 }
 0x5a8   : > { %v3768_v54 = vpop.f32.mrb[23].mxu0 }
 0x5af   : > { %v7316_v41 = vpop.f32.mrb[24].mxu0 }
 0x5b0   : > { %v3778_v16 = vpop.f32.mrb[25].mxu0  ;;  %v3784_v49 = vadd.f32 %v7316_v41, %v7008_v38 }
 0x5b1   : > { %v3779_v23 = vadd.f32 %v7008_v38, %v3778_v16 }
 0x5b9   : > { %v7319_v34 = vpop.f32.mrb[26].mxu0 }
 0x5ba   : > { %v3788_v28 = vpop.f32.mrb[27].mxu0  ;;  %v3794_v9 = vadd.f32 %v7319_v34, %v7008_v38 }
 0x5bb   : > { %v3789_v18 = vadd.f32 %v7008_v38, %v3788_v28 }
 0x5c5   : > { %v7322_v44 = vpop.f32.mrb[28].mxu0 }
 0x5c6   : > { %v3798_v6 = vpop.f32.mrb[29].mxu0  ;;  %v3804_v20 = vadd.f32 %v7322_v44, %v7008_v38 }
 0x5c7   : > { %v3799_v11 = vadd.f32 %v7008_v38, %v3798_v6 }
 0x5cc   : > { %v7325_v31 = vpop.f32.mrb[30].mxu0 }
 0x5cd   : > { %v3808_v15 = vpop.f32.mrb[31].mxu0  ;;  %v3814_v35 = vadd.f32 %v7325_v31, %v7008_v38 }
 0x5ce   : > { %v3809_v43 = vadd.f32 %v7008_v38, %v3808_v15 }
 0x5d5   : > { %v7328_v30 = vpop.f32.mrb[32].mxu0 }
 0x5d6   : > { %v3818_v55 = vpop.f32.mrb[33].mxu0  ;;  %v3824_v17 = vadd.f32 %v7328_v30, %v7008_v38 }
 0x5d9   : > { %v3911_v19 = vpop.f32.mrb[34].mxu0 }
 0x5da   : > { %v3912_v50 = vadd.f32 %v3911_v19, %v3844_v51  ;;  %v7363_v14 = vpop.f32.mrb[35].mxu0  ;;  %v3674_v51 = vadd.f32 %v7283_v33, %v7008_v38  ;;  %v3669_v19 = vadd.f32 %v7008_v38, %v3668_v29  ;;  %v3754_v33 = vadd.f32 %v7307_v5, %v7008_v38 }
 0x5db   : > { %v3679_v14 = vadd.f32 %v7008_v38, %v3678_v4  ;;  %v3749_v29 = vadd.f32 %v7008_v38, %v3748_v24  ;;  %v3764_v4 = vadd.f32 %v7310_v42, %v7008_v38  ;;  %v3819_v5 = vadd.f32 %v7008_v38, %v3818_v55 }
 0x5dc   : > { %v7041_v27 = vmul.f32 -1.442695, %v3912_v50 }
 0x5de   : > { %8208 = vpow2.f32 %v7041_v27  ;;  %v3694_v27 = vadd.f32 %v7289_v32, %v7008_v38  ;;  %v3759_v32 = vadd.f32 %v7008_v38, %v3758_v45 }
 0x5e8   : > { %v8209_v25 = vpop.eup %8208 }
 0x5e9   : > { %v3918_v13 = vadd.f32 1.0, %v8209_v25  ;;  %v3689_v25 = vadd.f32 %v7008_v38, %v3688_v61  ;;  %v3774_v61 = vadd.f32 %v7313_v63, %v7008_v38 }
 0x5eb   : > { %8210 = vrcp.f32 %v3918_v13  ;;  %v3704_v13 = vadd.f32 %v7292_v3, %v7008_v38 }
 0x5f5   : > { %v8211_v62 = vpop.eup %8210 }
 0x5f6   : > { %v3921_v1 = vmul.f32 %v8211_v62, %v3912_v50  ;;  %v3684_v50 = vadd.f32 %v7286_v10, %v7008_v38  ;;  %v3699_v62 = vadd.f32 %v7008_v38, %v3698_v56 }
 0x5f8   : > { %7369 = vmatmul.mubr.msk.f32.vlgmr.msra.gmra.mrb[36].mxu0 %vm3259_vm2, %v3921_v1  ;;  %v3714_v1 = vadd.f32 %v7295_v2, %v7008_v38  ;;  %v3769_v2 = vadd.f32 %v7008_v38, %v3768_v54 }
 0x5f9   : > { %7375 = vmatprep.mubr.msk.f32.mxu0 %vm8419_vm1, %v13119_v21  ;;  %7480 = vmatpush3.bf16.msra.mxu0 %v10876_v60 }
 0x5fa   : > { %7481 = vmatprep.subr.bf16.mxu0 %v13232_v57 }
 0x6cb   : > { %v3994_v10 = vpop.f32.mrb[36].mxu0 }
 0x6cc   : > { %v3995_v3 = vadd.f32 %v3994_v10, %v3924_v22  ;;  %v7370_v56 = vpop.f32.mrb[37].mxu0 }
 0x6ce   : > { %v4001_v53 = vrot.slane %v3995_v3, %v13400_v26 }
 0x6d0   : > { %v10887_v24 = vadd.f32 %v4001_v53, %v3669_v19  ;;  %v10889_v42 = vadd.f32 %v4001_v53, %v3674_v51  ;;  %v10891_v45 = vadd.f32 %v4001_v53, %v3679_v14  ;;  %v10893_v63 = vadd.f32 %v4001_v53, %v3684_v50 }
 0x6d1   : > { %v10895_v54 = vadd.f32 %v4001_v53, %v3689_v25  ;;  %v10897_v41 = vadd.f32 %v4001_v53, %v3694_v27  ;;  %v10899_v16 = vadd.f32 %v4001_v53, %v3699_v62  ;;  %v10901_v34 = vadd.f32 %v4001_v53, %v3704_v13 }
 0x6d2   : > { %v10903_v28 = vadd.f32 %v4001_v53, %v3709_v48  ;;  %v10905_v44 = vadd.f32 %v4001_v53, %v3714_v1  ;;  %v10907_v6 = vadd.f32 %v4001_v53, %v3719_v40  ;;  %v10909_v31 = vadd.f32 %v4001_v53, %v3724_v52 }
 0x6d3   : > { %v10911_v15 = vadd.f32 %v4001_v53, %v3729_v12  ;;  %v10913_v30 = vadd.f32 %v4001_v53, %v3734_v7  ;;  %v10915_v55 = vadd.f32 %v4001_v53, %v3739_v59  ;;  %v10917_v38 = vadd.f32 %v4001_v53, %v3744_v47 }
 0x6d4   : > { %v10919_v51 = vadd.f32 %v4001_v53, %v3749_v29  ;;  %v10921_v19 = vadd.f32 %v4001_v53, %v3754_v33  ;;  %v10923_v48 = vadd.f32 %v4001_v53, %v3759_v32  ;;  %v10925_v50 = vadd.f32 %v4001_v53, %v3764_v4 }
 0x6d5   : > { %v10927_v40 = vadd.f32 %v4001_v53, %v3769_v2  ;;  %v10929_v14 = vadd.f32 %v4001_v53, %v3774_v61  ;;  %v10931_v12 = vadd.f32 %v4001_v53, %v3779_v23  ;;  %v10933_v7 = vadd.f32 %v4001_v53, %v3784_v49 }
 0x6d6   : > { %v10935_v59 = vadd.f32 %v4001_v53, %v3789_v18  ;;  %v10937_v47 = vadd.f32 %v4001_v53, %v3794_v9  ;;  %v10939_v27 = vadd.f32 %v4001_v53, %v3799_v11  ;;  %v10941_v25 = vadd.f32 %v4001_v53, %v3804_v20 }
 0x6d7   : > { %v10943_v13 = vadd.f32 %v4001_v53, %v3809_v43  ;;  %v10945_v62 = vadd.f32 %v4001_v53, %v3814_v35  ;;  %v10947_v1 = vadd.f32 %v4001_v53, %v3819_v5  ;;  %v10949_v22 = vadd.f32 %v4001_v53, %v3824_v17 }
 0x6d8   : > { %v4038_v23 = vsel %vm3259_vm2, %v10887_v24, 0.0  ;;  %v4039_v18 = vsel %vm3259_vm2, %v10889_v42, 0.0  ;;  %v4041_v52 = vsel %vm3259_vm2, %v10891_v45, 0.0  ;;  %v4043_v33 = vsel %vm3259_vm2, %v10893_v63, 0.0 }
 0x6d9   : > { %v4040_v9 = vadd.f32 %v4039_v18, %v4038_v23  ;;  %v4045_v10 = vsel %vm3259_vm2, %v10895_v54, 0.0  ;;  %v4047_v32 = vsel %vm3259_vm2, %v10897_v41, 0.0  ;;  %v4049_v3 = vsel %vm3259_vm2, %v10899_v16, 0.0 }
 0x6da   : > { %v4051_v2 = vsel %vm3259_vm2, %v10901_v34, 0.0  ;;  %v4053_v11 = vsel %vm3259_vm2, %v10903_v28, 0.0  ;;  %v4055_v35 = vsel %vm3259_vm2, %v10905_v44, 0.0  ;;  %v4057_v17 = vsel %vm3259_vm2, %v10907_v6, 0.0 }
 0x6db   : > { %v4042_v20 = vadd.f32 %v4041_v52, %v4040_v9  ;;  %v4059_v23 = vsel %vm3259_vm2, %v10909_v31, 0.0  ;;  %v4061_v9 = vsel %vm3259_vm2, %v10911_v15, 0.0 }
 0x6dd   : > { %v4044_v29 = vadd.f32 %v4043_v33, %v4042_v20  ;;  %v4063_v20 = vsel %vm3259_vm2, %v10913_v30, 0.0 }
 0x6df   : > { %v4046_v4 = vadd.f32 %v4045_v10, %v4044_v29  ;;  %v4065_v29 = vsel %vm3259_vm2, %v10915_v55, 0.0 }
 0x6e1   : > { %v4048_v61 = vadd.f32 %v4047_v32, %v4046_v4  ;;  %v4067_v4 = vsel %vm3259_vm2, %v10917_v38, 0.0 }
 0x6e3   : > { %v4050_v56 = vadd.f32 %v4049_v3, %v4048_v61  ;;  %v4069_v61 = vsel %vm3259_vm2, %v10919_v51, 0.0 }
 0x6e5   : > { %v4052_v49 = vadd.f32 %v4051_v2, %v4050_v56  ;;  %v4071_v56 = vsel %vm3259_vm2, %v10921_v19, 0.0 }
 0x6e7   : > { %v4054_v53 = vadd.f32 %v4053_v11, %v4052_v49  ;;  %v4073_v49 = vsel %vm3259_vm2, %v10923_v48, 0.0 }
 0x6e9   : > { %v4056_v43 = vadd.f32 %v4055_v35, %v4054_v53  ;;  %v4075_v53 = vsel %vm3259_vm2, %v10925_v50, 0.0 }
 0x6eb   : > { %v4058_v5 = vadd.f32 %v4057_v17, %v4056_v43  ;;  %v4077_v43 = vsel %vm3259_vm2, %v10927_v40, 0.0 }
 0x6ed   : > { %v4060_v18 = vadd.f32 %v4059_v23, %v4058_v5  ;;  %v4079_v5 = vsel %vm3259_vm2, %v10929_v14, 0.0 }
 0x6ef   : > { %v4062_v52 = vadd.f32 %v4061_v9, %v4060_v18  ;;  %v4081_v18 = vsel %vm3259_vm2, %v10931_v12, 0.0 }
 0x6f1   : > { %v4064_v33 = vadd.f32 %v4063_v20, %v4062_v52  ;;  %v4083_v52 = vsel %vm3259_vm2, %v10933_v7, 0.0 }
 0x6f3   : > { %v4066_v10 = vadd.f32 %v4065_v29, %v4064_v33  ;;  %v4085_v33 = vsel %vm3259_vm2, %v10935_v59, 0.0 }
 0x6f5   : > { %v4068_v32 = vadd.f32 %v4067_v4, %v4066_v10  ;;  %v4087_v10 = vsel %vm3259_vm2, %v10937_v47, 0.0 }
 0x6f7   : > { %v4070_v3 = vadd.f32 %v4069_v61, %v4068_v32  ;;  %v4089_v32 = vsel %vm3259_vm2, %v10939_v27, 0.0 }
 0x6f9   : > { %v4072_v2 = vadd.f32 %v4071_v56, %v4070_v3  ;;  %v4091_v3 = vsel %vm3259_vm2, %v10941_v25, 0.0 }
 0x6fb   : > { %v4074_v11 = vadd.f32 %v4073_v49, %v4072_v2  ;;  %v4093_v2 = vsel %vm3259_vm2, %v10943_v13, 0.0 }
 0x6fd   : > { %v4076_v35 = vadd.f32 %v4075_v53, %v4074_v11  ;;  %v4095_v11 = vsel %vm3259_vm2, %v10945_v62, 0.0 }
 0x6ff   : > { %v4078_v17 = vadd.f32 %v4077_v43, %v4076_v35  ;;  %v4097_v35 = vsel %vm3259_vm2, %v10947_v1, 0.0 }
 0x701   : > { %v4080_v23 = vadd.f32 %v4079_v5, %v4078_v17  ;;  %v4099_v17 = vsel %vm3259_vm2, %v10949_v22, 0.0 }
 0x703   : > { %v4082_v9 = vadd.f32 %v4081_v18, %v4080_v23 }
 0x705   : > { %v4084_v20 = vadd.f32 %v4083_v52, %v4082_v9 }
 0x707   : > { %v4086_v29 = vadd.f32 %v4085_v33, %v4084_v20 }
 0x709   : > { %v4088_v4 = vadd.f32 %v4087_v10, %v4086_v29 }
 0x70b   : > { %v4090_v61 = vadd.f32 %v4089_v32, %v4088_v4 }
 0x70d   : > { %v4092_v56 = vadd.f32 %v4091_v3, %v4090_v61 }
 0x70f   : > { %v4094_v49 = vadd.f32 %v4093_v2, %v4092_v56 }
 0x711   : > { %v4096_v53 = vadd.f32 %v4095_v11, %v4094_v49 }
 0x713   : > { %v4098_v43 = vadd.f32 %v4097_v35, %v4096_v53 }
 0x715   : > { %v4100_v5 = vadd.f32 %v4099_v17, %v4098_v43 }
 0x717   : > { %v4101_v23 = vrot.slane %v4100_v5, 4 }
 0x719   : > { %v4102_v18 = vadd.f32 %v4101_v23, %v4100_v5 }
 0x71b   : > { %v4103_v9 = vrot.slane %v4102_v18, 2 }
 0x71d   : > { %v4104_v52 = vadd.f32 %v4103_v9, %v4102_v18 }
 0x71f   : > { %v4105_v20 = vrot.slane %v4104_v52, 1 }
 0x721   : > { %v4106_v33 = vadd.f32 %v4105_v20, %v4104_v52 }
 0x723   : > { %7376 = vmatmul.mubr.msk.f32.vlgmr.msra.gmra.mrb[38].mxu0 %vm3259_vm2, %v4106_v33 }
 0x724   : > { %7483 = vmatpush3.bf16.msra.mxu0 %v10876_v60  ;;  %7382 = vmatprep.mubr.msk.f32.mxu0 %vm8419_vm1, %v13119_v21  ;;  %vm6063_vm1 = vcmask 785408  }
 0x7f6   : > { %v4176_v29 = vpop.f32.mrb[38].mxu0 }
 0x7f7   : > { %v7377_v10 = vpop.f32.mrb[39].mxu0  ;;  %v11020_v4 = vrot.slane %v4176_v29, %v13400_v26 }
 0x7f9   : > { %v11024_v32 = vsub.f32 %v10887_v24, %v11020_v4  ;;  %v11028_v61 = vsub.f32 %v10889_v42, %v11020_v4  ;;  %v11032_v3 = vsub.f32 %v10891_v45, %v11020_v4  ;;  %v11036_v21 = vsub.f32 %v10893_v63, %v11020_v4 }
 0x7fa   : > { %v11044_v24 = vsub.f32 %v10895_v54, %v11020_v4  ;;  %v11050_v45 = vsub.f32 %v10897_v41, %v11020_v4  ;;  %v11058_v53 = vsub.f32 %v10899_v16, %v11020_v4  ;;  %v11065_v41 = vsub.f32 %v10901_v34, %v11020_v4 }
 0x7fb   : > { %v4216_v60 = vmul.f32 %v11024_v32, %v11024_v32  ;;  %v4217_v56 = vmul.f32 %v11028_v61, %v11028_v61  ;;  %v4218_v42 = vmul.f32 %v11032_v3, %v11032_v3  ;;  %v4219_v63 = vmul.f32 %v11036_v21, %v11036_v21 }
 0x7fc   : > { %v4220_v54 = vmul.f32 %v11044_v24, %v11044_v24  ;;  %v4221_v17 = vmul.f32 %v11050_v45, %v11050_v45  ;;  %v11072_v16 = vsub.f32 %v10903_v28, %v11020_v4  ;;  %v4222_v18 = vmul.f32 %v11058_v53, %v11058_v53 }
 0x7fd   : > { %v4248_v2 = vsel %vm3259_vm2, %v4216_v60, 0.0  ;;  %v4249_v49 = vsel %vm3259_vm2, %v4217_v56, 0.0  ;;  %v4251_v35 = vsel %vm3259_vm2, %v4218_v42, 0.0  ;;  %v4253_v5 = vsel %vm3259_vm2, %v4219_v63, 0.0 }
 0x7fe   : > { %v4250_v11 = vadd.f32 %v4249_v49, %v4248_v2  ;;  %v4255_v9 = vsel %vm3259_vm2, %v4220_v54, 0.0  ;;  %v11079_v34 = vsub.f32 %v10905_v44, %v11020_v4  ;;  %v4223_v20 = vmul.f32 %v11065_v41, %v11065_v41 }
 0x7ff   : > { %v4257_v33 = vsel %vm3259_vm2, %v4221_v17, 0.0  ;;  %v11086_v28 = vsub.f32 %v10907_v6, %v11020_v4  ;;  %v4224_v10 = vmul.f32 %v11072_v16, %v11072_v16  ;;  %v4259_v60 = vsel %vm3259_vm2, %v4222_v18, 0.0 }
 0x800   : > { %v4252_v43 = vadd.f32 %v4251_v35, %v4250_v11  ;;  %v11093_v44 = vsub.f32 %v10909_v31, %v11020_v4  ;;  %v4225_v42 = vmul.f32 %v11079_v34, %v11079_v34  ;;  %v4261_v63 = vsel %vm3259_vm2, %v4223_v20, 0.0 }
 0x801   : > { %v11100_v6 = vsub.f32 %v10911_v15, %v11020_v4  ;;  %v4226_v49 = vmul.f32 %v11086_v28, %v11086_v28  ;;  %v4263_v11 = vsel %vm3259_vm2, %v4224_v10, 0.0  ;;  %v11107_v31 = vsub.f32 %v10913_v30, %v11020_v4 }
 0x802   : > { %v4254_v23 = vadd.f32 %v4253_v5, %v4252_v43  ;;  %v4227_v35 = vmul.f32 %v11093_v44, %v11093_v44  ;;  %v4265_v43 = vsel %vm3259_vm2, %v4225_v42, 0.0  ;;  %v11114_v15 = vsub.f32 %v10915_v55, %v11020_v4 }
 0x803   : > { %v4228_v5 = vmul.f32 %v11100_v6, %v11100_v6  ;;  %v11121_v30 = vsub.f32 %v10917_v38, %v11020_v4  ;;  %v11128_v55 = vsub.f32 %v10919_v51, %v11020_v4  ;;  %v11135_v38 = vsub.f32 %v10921_v19, %v11020_v4 }
 0x804   : > { %v4256_v52 = vadd.f32 %v4255_v9, %v4254_v23  ;;  %v4267_v23 = vsel %vm3259_vm2, %v4226_v49, 0.0  ;;  %v4229_v9 = vmul.f32 %v11107_v31, %v11107_v31  ;;  %v11142_v51 = vsub.f32 %v10923_v48, %v11020_v4 }
 0x805   : > { %v11149_v19 = vsub.f32 %v10925_v50, %v11020_v4  ;;  %v11156_v48 = vsub.f32 %v10927_v40, %v11020_v4  ;;  %v11163_v50 = vsub.f32 %v10929_v14, %v11020_v4  ;;  %v11170_v40 = vsub.f32 %v10931_v12, %v11020_v4 }
 0x806   : > { %v4258_v29 = vadd.f32 %v4257_v33, %v4256_v52  ;;  %v4269_v52 = vsel %vm3259_vm2, %v4227_v35, 0.0  ;;  %v4230_v33 = vmul.f32 %v11114_v15, %v11114_v15  ;;  %v11177_v14 = vsub.f32 %v10933_v7, %v11020_v4 }
 0x807   : > { %v11184_v12 = vsub.f32 %v10935_v59, %v11020_v4  ;;  %v11191_v7 = vsub.f32 %v10937_v47, %v11020_v4  ;;  %v11198_v59 = vsub.f32 %v10939_v27, %v11020_v4  ;;  %v11205_v47 = vsub.f32 %v10941_v25, %v11020_v4 }
 0x808   : > { %v4260_v56 = vadd.f32 %v4259_v60, %v4258_v29  ;;  %v4271_v29 = vsel %vm3259_vm2, %v4228_v5, 0.0  ;;  %v4231_v60 = vmul.f32 %v11121_v30, %v11121_v30  ;;  %v11212_v27 = vsub.f32 %v10943_v13, %v11020_v4 }
 0x809   : > { %v11219_v25 = vsub.f32 %v10945_v62, %v11020_v4  ;;  %v11226_v13 = vsub.f32 %v10947_v1, %v11020_v4  ;;  %v11233_v62 = vsub.f32 %v10949_v22, %v11020_v4 }
 0x80a   : > { %v4262_v2 = vadd.f32 %v4261_v63, %v4260_v56  ;;  %v4273_v56 = vsel %vm3259_vm2, %v4229_v9, 0.0  ;;  %v4232_v63 = vmul.f32 %v11128_v55, %v11128_v55 }
 0x80b   : > { %v4246_v1 = vmul.f32 %v11226_v13, %v11226_v13 }
 0x80c   : > { %v4264_v54 = vadd.f32 %v4263_v11, %v4262_v2  ;;  %v4275_v2 = vsel %vm3259_vm2, %v4230_v33, 0.0  ;;  %v4233_v11 = vmul.f32 %v11135_v38, %v11135_v38 }
 0x80d   : > { %v4307_v4 = vsel %vm3259_vm2, %v4246_v1, 0.0 }
 0x80e   : > { %v4266_v17 = vadd.f32 %v4265_v43, %v4264_v54  ;;  %v4277_v54 = vsel %vm3259_vm2, %v4231_v60, 0.0  ;;  %v4234_v43 = vmul.f32 %v11142_v51, %v11142_v51 }
 0x810   : > { %v4268_v18 = vadd.f32 %v4267_v23, %v4266_v17  ;;  %v4279_v17 = vsel %vm3259_vm2, %v4232_v63, 0.0  ;;  %v4235_v23 = vmul.f32 %v11149_v19, %v11149_v19 }
 0x812   : > { %v4270_v20 = vadd.f32 %v4269_v52, %v4268_v18  ;;  %v4281_v18 = vsel %vm3259_vm2, %v4233_v11, 0.0  ;;  %v4236_v52 = vmul.f32 %v11156_v48, %v11156_v48 }
 0x814   : > { %v4272_v10 = vadd.f32 %v4271_v29, %v4270_v20  ;;  %v4283_v20 = vsel %vm3259_vm2, %v4234_v43, 0.0  ;;  %v4237_v29 = vmul.f32 %v11163_v50, %v11163_v50 }
 0x816   : > { %v4274_v42 = vadd.f32 %v4273_v56, %v4272_v10  ;;  %v4285_v10 = vsel %vm3259_vm2, %v4235_v23, 0.0  ;;  %v4238_v56 = vmul.f32 %v11170_v40, %v11170_v40 }
 0x818   : > { %v4276_v49 = vadd.f32 %v4275_v2, %v4274_v42  ;;  %v4287_v42 = vsel %vm3259_vm2, %v4236_v52, 0.0  ;;  %v4239_v2 = vmul.f32 %v11177_v14, %v11177_v14 }
 0x81a   : > { %v4278_v35 = vadd.f32 %v4277_v54, %v4276_v49  ;;  %v4289_v49 = vsel %vm3259_vm2, %v4237_v29, 0.0  ;;  %v4240_v54 = vmul.f32 %v11184_v12, %v11184_v12 }
 0x81c   : > { %v4280_v5 = vadd.f32 %v4279_v17, %v4278_v35  ;;  %v4291_v35 = vsel %vm3259_vm2, %v4238_v56, 0.0  ;;  %v4241_v17 = vmul.f32 %v11191_v7, %v11191_v7 }
 0x81e   : > { %v4282_v9 = vadd.f32 %v4281_v18, %v4280_v5  ;;  %v4293_v5 = vsel %vm3259_vm2, %v4239_v2, 0.0  ;;  %v4242_v18 = vmul.f32 %v11198_v59, %v11198_v59 }
 0x820   : > { %v4284_v33 = vadd.f32 %v4283_v20, %v4282_v9  ;;  %v4295_v9 = vsel %vm3259_vm2, %v4240_v54, 0.0  ;;  %v4243_v20 = vmul.f32 %v11205_v47, %v11205_v47  ;;  %v4247_v54 = vmul.f32 %v11233_v62, %v11233_v62 }
 0x822   : > { %v4286_v60 = vadd.f32 %v4285_v10, %v4284_v33  ;;  %v4297_v33 = vsel %vm3259_vm2, %v4241_v17, 0.0  ;;  %v4244_v10 = vmul.f32 %v11212_v27, %v11212_v27  ;;  %v4309_v17 = vsel %vm3259_vm2, %v4247_v54, 0.0 }
 0x824   : > { %v4288_v63 = vadd.f32 %v4287_v42, %v4286_v60  ;;  %v4299_v60 = vsel %vm3259_vm2, %v4242_v18, 0.0  ;;  %v4245_v42 = vmul.f32 %v11219_v25, %v11219_v25 }
 0x826   : > { %v4290_v11 = vadd.f32 %v4289_v49, %v4288_v63  ;;  %v4301_v63 = vsel %vm3259_vm2, %v4243_v20, 0.0  ;;  %v4303_v49 = vsel %vm3259_vm2, %v4244_v10, 0.0  ;;  %v4830_v10 = vld [vmem:[#allocation3 + $0x8] sm:$0xff] }
 0x828   : > { %v4292_v43 = vadd.f32 %v4291_v35, %v4290_v11  ;;  %v4305_v35 = vsel %vm3259_vm2, %v4245_v42, 0.0 }
 0x82a   : > { %v4294_v23 = vadd.f32 %v4293_v5, %v4292_v43 }
 0x82c   : > { %v4296_v52 = vadd.f32 %v4295_v9, %v4294_v23 }
 0x82e   : > { %v4298_v29 = vadd.f32 %v4297_v33, %v4296_v52 }
 0x830   : > { %v4300_v56 = vadd.f32 %v4299_v60, %v4298_v29  ;;  %v8357_v29 = vld [vmem:[%s8564_s21] sm:$0xff] }
 0x831   : > { %v4831_v60 = vld [vmem:[#allocation3 + $0x10] sm:$0xff] }
 0x832   : > { %v4302_v2 = vadd.f32 %v4301_v63, %v4300_v56  ;;  %v7533_v56 = vpack.i.bf16 %v4831_v60, %v4830_v10 }
 0x834   : > { %v4304_v11 = vadd.f32 %v4303_v49, %v4302_v2  ;;  %7534 = vrot.lane.b32.xlu0 %v7533_v56, %s8420_s22 }
 0x836   : > { %v4306_v22 = vadd.f32 %v4305_v35, %v4304_v11 }
 0x838   : > { %v4308_v43 = vadd.f32 %v4307_v4, %v4306_v22  ;;  %v11262_v22 = vld [vmem:[%s12874_s10] ss:$0 sm:$0xff] }
 0x83a   : > { %v4310_v5 = vadd.f32 %v4309_v17, %v4308_v43 }
 0x83c   : > { %v4311_v23 = vrot.slane %v4310_v5, 4 }
 0x83e   : > { %v4312_v18 = vadd.f32 %v4311_v23, %v4310_v5 }
 0x840   : > { %v4313_v9 = vrot.slane %v4312_v18, 2 }
 0x842   : > { %v4314_v52 = vadd.f32 %v4313_v9, %v4312_v18 }
 0x844   : > { %v4315_v20 = vrot.slane %v4314_v52, 1 }
 0x846   : > { %v4316_v33 = vadd.f32 %v4315_v20, %v4314_v52 }
 0x848   : > { %7383 = vmatmul.mubr.msk.f32.vlgmr.msra.gmra.mrb[40].mxu0 %vm3259_vm2, %v4316_v33 }
 0x849   : > { %7387 = vmatprep.mubr.msk.f32.mxu0 %vm1234_vm0, %v8357_v29 }
 0x91b   : > { %v4386_v42 = vpop.f32.mrb[40].mxu0 }
 0x91c   : > { %v7384_v63 = vpop.f32.mrb[41].mxu0  ;;  %v4387_v2 = vadd.f32 1e-05, %v4386_v42 }
 0x91e   : > { %8212 = vrsqrt.f32 %v4387_v2 }
 0x928   : > { %v8213_v1 = vpop.eup %8212 }
 0x929   : > { %v11251_v49 = vrot.slane %v8213_v1, %v13400_v26 }
 0x92b   : > { %v4397_v11 = vmul.f32 %v11251_v49, %v11032_v3  ;;  %v4398_v54 = vmul.f32 %v11251_v49, %v11036_v21  ;;  %v4399_v35 = vmul.f32 %v11251_v49, %v11044_v24  ;;  %v4395_v4 = vmul.f32 %v11251_v49, %v11024_v32 }
 0x92c   : > { %v4396_v26 = vmul.f32 %v11251_v49, %v11028_v61  ;;  %v4400_v3 = vmul.f32 %v11251_v49, %v11050_v45  ;;  %v4401_v21 = vmul.f32 %v11251_v49, %v11058_v53  ;;  %v4402_v24 = vmul.f32 %v11251_v49, %v11065_v41  ;;  %v11286_v53 = vld [vmem:[%s12875_s11] ss:$0 sm:$0xff] }
 0x92d   : > { %v4403_v43 = vmul.f32 %v11251_v49, %v11072_v16  ;;  %v4404_v17 = vmul.f32 %v11251_v49, %v11079_v34  ;;  %v4405_v32 = vmul.f32 %v11251_v49, %v11086_v28  ;;  %v4435_v61 = vmul.f32 %v11262_v22, %v4397_v11 }
 0x92e   : > { %v4436_v5 = vmul.f32 %v11262_v22, %v4398_v54  ;;  %v4437_v45 = vmul.f32 %v11262_v22, %v4399_v35  ;;  %v4406_v41 = vmul.f32 %v11251_v49, %v11093_v44  ;;  %v4407_v16 = vmul.f32 %v11251_v49, %v11100_v6 }
 0x92f   : > { %v4408_v34 = vmul.f32 %v11251_v49, %v11107_v31  ;;  %v4433_v28 = vmul.f32 %v11262_v22, %v4395_v4  ;;  %v4409_v23 = vmul.f32 %v11251_v49, %v11114_v15  ;;  %v4410_v18 = vmul.f32 %v11251_v49, %v11121_v30 }
 0x930   : > { %v4411_v9 = vmul.f32 %v11251_v49, %v11128_v55  ;;  %v4434_v52 = vmul.f32 %v11262_v22, %v4396_v26  ;;  %v4412_v44 = vmul.f32 %v11251_v49, %v11135_v38  ;;  %v11306_v6 = vmul.f32 %v11251_v49, %v11142_v51 }
 0x931   : > { %v11310_v31 = vmul.f32 %v11251_v49, %v11149_v19  ;;  %v4438_v15 = vmul.f32 %v11262_v22, %v4400_v3  ;;  %v4439_v30 = vmul.f32 %v11262_v22, %v4401_v21  ;;  %v11315_v20 = vadd.f32 %v11286_v53, %v4435_v61 }
 0x932   : > { %v11318_v55 = vadd.f32 %v11286_v53, %v4436_v5  ;;  %v11321_v38 = vadd.f32 %v11286_v53, %v4437_v45  ;;  %v4415_v51 = vmul.f32 %v11251_v49, %v11156_v48  ;;  %v4416_v19 = vmul.f32 %v11251_v49, %v11163_v50 }
 0x933   : > { %v4440_v33 = vmul.f32 %v11262_v22, %v4402_v24  ;;  %v11329_v29 = vadd.f32 %v11286_v53, %v4433_v28  ;;  %v4417_v10 = vmul.f32 %v11251_v49, %v11170_v40  ;;  %v11335_v60 = vmul.f32 %v11251_v49, %v11177_v14 }
 0x934   : > { %v4441_v56 = vmul.f32 %v11262_v22, %v4403_v43  ;;  %v11339_v42 = vadd.f32 %v11286_v53, %v4434_v52  ;;  %v11343_v48 = vmul.f32 %v11251_v49, %v11184_v12  ;;  %v4442_v50 = vmul.f32 %v11262_v22, %v4404_v17 }
 0x935   : > { %v4443_v63 = vmul.f32 %v11262_v22, %v4405_v32  ;;  %v11348_v2 = vadd.f32 %v11286_v53, %v4438_v15  ;;  %v11351_v40 = vadd.f32 %v11286_v53, %v4439_v30  ;;  %v7049_v14 = vmul.f32 -1.442695, %v11315_v20 }
 0x936   : > { %v7050_v1 = vmul.f32 -1.442695, %v11318_v55  ;;  %v7051_v11 = vmul.f32 -1.442695, %v11321_v38  ;;  %v11358_v12 = vmul.f32 %v11251_v49, %v11191_v7  ;;  %v4444_v54 = vmul.f32 %v11262_v22, %v4406_v41 }
 0x937   : > { %v11362_v35 = vadd.f32 %v11286_v53, %v4440_v33  ;;  %v7047_v4 = vmul.f32 -1.442695, %v11329_v29  ;;  %v4445_v26 = vmul.f32 %v11262_v22, %v4407_v16  ;;  %v11367_v3 = vadd.f32 %v11286_v53, %v4441_v56 }
 0x938   : > { %8214 = vpow2.f32 %v7049_v14  ;;  %v7048_v21 = vmul.f32 -1.442695, %v11339_v42  ;;  %v11372_v24 = vmul.f32 %v11251_v49, %v11198_v59  ;;  %v11375_v7 = vadd.f32 %v11286_v53, %v4442_v50 }
 0x939   : > { %8216 = vpow2.f32 %v7050_v1  ;;  %v7052_v43 = vmul.f32 -1.442695, %v11348_v2  ;;  %v11380_v17 = vmul.f32 %v11251_v49, %v11205_v47  ;;  %v11383_v32 = vadd.f32 %v11286_v53, %v4443_v63 }
 0x93a   : > { %8218 = vpow2.f32 %v7051_v11  ;;  %v7053_v61 = vmul.f32 -1.442695, %v11351_v40  ;;  %v11388_v59 = vmul.f32 %v11251_v49, %v11212_v27  ;;  %v11391_v5 = vadd.f32 %v11286_v53, %v4444_v54 }
 0x93b   : > { %v7054_v45 = vmul.f32 -1.442695, %v11362_v35  ;;  %8220 = vpow2.f32 %v7047_v4  ;;  %v4446_v41 = vmul.f32 %v11262_v22, %v4408_v34  ;;  %v11396_v47 = vadd.f32 %v11286_v53, %v4445_v26 }
 0x93c   : > { %v7055_v16 = vmul.f32 -1.442695, %v11367_v3  ;;  %8222 = vpow2.f32 %v7048_v21  ;;  %v11401_v28 = vmul.f32 %v11251_v49, %v11219_v25  ;;  %v4447_v27 = vmul.f32 %v11262_v22, %v4409_v23 }
 0x93d   : > { %v7056_v52 = vmul.f32 -1.442695, %v11375_v7  ;;  %8224 = vpow2.f32 %v7052_v43  ;;  %v11407_v15 = vmul.f32 %v11251_v49, %v11226_v13  ;;  %v4448_v34 = vmul.f32 %v11262_v22, %v4410_v18 }
 0x93e   : > { %v7057_v30 = vmul.f32 -1.442695, %v11383_v32  ;;  %8226 = vpow2.f32 %v7053_v61  ;;  %v11413_v33 = vmul.f32 %v11251_v49, %v11233_v62  ;;  %v4449_v25 = vmul.f32 %v11262_v22, %v4411_v9 }
 0x93f   : > { %v7058_v23 = vmul.f32 -1.442695, %v11391_v5  ;;  %8228 = vpow2.f32 %v7054_v45  ;;  %v4450_v56 = vmul.f32 %v11262_v22, %v4412_v44  ;;  %v11419_v50 = vadd.f32 %v11286_v53, %v4446_v41 }
 0x940   : > { %v7059_v13 = vmul.f32 -1.442695, %v11396_v47  ;;  %8230 = vpow2.f32 %v7055_v16  ;;  %v4451_v18 = vmul.f32 %v11262_v22, %v11306_v6  ;;  %v4452_v62 = vmul.f32 %v11262_v22, %v11310_v31 }
 0x941   : > { %v11427_v49 = vadd.f32 %v11286_v53, %v4447_v27  ;;  %8232 = vpow2.f32 %v7056_v52  ;;  %v4453_v63 = vmul.f32 %v11262_v22, %v4415_v51  ;;  %v4454_v44 = vmul.f32 %v11262_v22, %v4416_v19 }
 0x942   : > { %v8215_v9 = vpop.eup %8214  ;;  %v11432_v14 = vadd.f32 %v11286_v53, %v4448_v34  ;;  %8234 = vpow2.f32 %v7057_v30  ;;  %v4455_v11 = vmul.f32 %v11262_v22, %v4417_v10  ;;  %v11436_v6 = vadd.f32 %v11286_v53, %v4449_v25 }
 0x943   : > { %v8217_v1 = vpop.eup %8216  ;;  %v4601_v31 = vadd.f32 1.0, %v8215_v9  ;;  %8236 = vpow2.f32 %v7058_v23  ;;  %v11439_v4 = vadd.f32 %v11286_v53, %v4450_v56  ;;  %v7060_v51 = vmul.f32 -1.442695, %v11419_v50 }
 0x944   : > { %v8219_v54 = vpop.eup %8218  ;;  %v4602_v26 = vadd.f32 1.0, %v8217_v1  ;;  %8238 = vpow2.f32 %v7059_v13  ;;  %v11445_v21 = vadd.f32 %v11286_v53, %v4451_v18  ;;  %v7061_v10 = vmul.f32 -1.442695, %v11427_v49 }
 0x945   : > { %v11442_v19 = vpop.eup %8220  ;;  %v4603_v43 = vadd.f32 1.0, %v8219_v54  ;;  %8240 = vrcp.f32 %v4601_v31  ;;  %v4456_v45 = vmul.f32 %v11262_v22, %v11335_v60  ;;  %v11453_v41 = vadd.f32 %v11286_v53, %v4452_v62 }
 0x946   : > { %v11448_v61 = vpop.eup %8222  ;;  %8242 = vrcp.f32 %v4602_v26  ;;  %v7062_v16 = vmul.f32 -1.442695, %v11432_v14  ;;  %v4457_v52 = vmul.f32 %v11262_v22, %v11343_v48  ;;  %v11461_v34 = vadd.f32 %v11286_v53, %v4453_v63 }
 0x947   : > { %v11456_v27 = vpop.eup %8224  ;;  %8244 = vrcp.f32 %v4603_v43  ;;  %v7063_v30 = vmul.f32 -1.442695, %v11436_v6  ;;  %v4458_v60 = vmul.f32 %v11262_v22, %v11358_v12  ;;  %v11469_v23 = vadd.f32 %v11286_v53, %v4454_v44 }
 0x948   : > { %v11464_v25 = vpop.eup %8226  ;;  %v7064_v56 = vmul.f32 -1.442695, %v11439_v4  ;;  %8246 = vpow2.f32 %v7060_v51  ;;  %v4459_v48 = vmul.f32 %v11262_v22, %v11372_v24  ;;  %v11477_v18 = vadd.f32 %v11286_v53, %v4455_v11 }
 0x949   : > { %v11472_v13 = vpop.eup %8228  ;;  %v7065_v62 = vmul.f32 -1.442695, %v11445_v21  ;;  %8248 = vpow2.f32 %v7061_v10  ;;  %v4460_v12 = vmul.f32 %v11262_v22, %v11380_v17  ;;  %v11485_v63 = vadd.f32 %v11286_v53, %v4456_v45 }
 0x94a   : > { %v11480_v9 = vpop.eup %8230  ;;  %v7066_v44 = vmul.f32 -1.442695, %v11453_v41  ;;  %8250 = vpow2.f32 %v7062_v16  ;;  %v4461_v24 = vmul.f32 %v11262_v22, %v11388_v59  ;;  %v11493_v11 = vadd.f32 %v11286_v53, %v4457_v52 }
 0x94b   : > { %v11488_v1 = vpop.eup %8232  ;;  %v7067_v31 = vmul.f32 -1.442695, %v11461_v34  ;;  %8252 = vpow2.f32 %v7063_v30  ;;  %v4462_v17 = vmul.f32 %v11262_v22, %v11401_v28  ;;  %v11501_v26 = vadd.f32 %v11286_v53, %v4458_v60 }
 0x94c   : > { %v11496_v54 = vpop.eup %8234  ;;  %v7068_v51 = vmul.f32 -1.442695, %v11469_v23  ;;  %8254 = vpow2.f32 %v7064_v56  ;;  %v4463_v59 = vmul.f32 %v11262_v22, %v11407_v15  ;;  %v11509_v10 = vadd.f32 %v11286_v53, %v4459_v48 }
 0x94d   : > { %v11504_v43 = vpop.eup %8236  ;;  %v7069_v45 = vmul.f32 -1.442695, %v11477_v18  ;;  %8256 = vpow2.f32 %v7065_v62  ;;  %v4464_v28 = vmul.f32 %v11262_v22, %v11413_v33  ;;  %v11517_v52 = vadd.f32 %v11286_v53, %v4460_v12 }
 0x94e   : > { %v11512_v16 = vpop.eup %8238  ;;  %v7070_v30 = vmul.f32 -1.442695, %v11485_v63  ;;  %8258 = vpow2.f32 %v7066_v44  ;;  %v11521_v15 = vadd.f32 %v11286_v53, %v4461_v24  ;;  %v7071_v56 = vmul.f32 -1.442695, %v11493_v11 }
 0x94f   : > { %v8241_v60 = vpop.eup %8240  ;;  %8260 = vpow2.f32 %v7067_v31  ;;  %v11525_v62 = vadd.f32 %v11286_v53, %v4462_v17  ;;  %v7072_v22 = vmul.f32 -1.442695, %v11501_v26  ;;  %v11530_v12 = vadd.f32 %v11286_v53, %v4463_v59 }
 0x950   : > { %v8243_v48 = vpop.eup %8242  ;;  %v4697_v58 = vmul.f32 %v8241_v60, %v11315_v20  ;;  %8262 = vpow2.f32 %v7068_v51  ;;  %v7073_v24 = vmul.f32 -1.442695, %v11509_v10  ;;  %v11535_v31 = vadd.f32 %v11286_v53, %v4464_v28 }
 0x951   : > { %v8245_v33 = vpop.eup %8244  ;;  %v4698_v44 = vmul.f32 %v8243_v48, %v11318_v55  ;;  %8264 = vpow2.f32 %v7069_v45  ;;  %v7074_v20 = vmul.f32 -1.442695, %v11517_v52  ;;  %v7075_v59 = vmul.f32 -1.442695, %v11521_v15 }
 0x952   : > { %v8247_v0 = vpop.eup %8246  ;;  %v4699_v17 = vmul.f32 %v8245_v33, %v11321_v38  ;;  %4736 = vst.msk [vmem:[#allocation3 + $0x28] sm:$0xff] %vm3259_vm2, %v4697_v58  ;;  %8266 = vpow2.f32 %v7070_v30  ;;  %v7076_v45 = vmul.f32 -1.442695, %v11525_v62  ;;  %v7077_v38 = vmul.f32 -1.442695, %v11530_v12 }
 0x953   : > { %v8249_v51 = vpop.eup %8248  ;;  %4737 = vst.msk [vmem:[#allocation3 + $0x30] sm:$0xff] %vm3259_vm2, %v4698_v44  ;;  %8268 = vpow2.f32 %v7071_v56  ;;  %v7078_v28 = vmul.f32 -1.442695, %v11535_v31  ;;  %v4599_v60 = vadd.f32 1.0, %v11442_v19  ;;  %v4600_v56 = vadd.f32 1.0, %v11448_v61 }
 0x954   : > { %v8251_v55 = vpop.eup %8250  ;;  %4738 = vst.msk [vmem:[#allocation3 + $0x38] sm:$0xff] %vm3259_vm2, %v4699_v17  ;;  %8270 = vpow2.f32 %v7072_v22  ;;  %v4605_v22 = vadd.f32 1.0, %v11464_v25  ;;  %v4604_v61 = vadd.f32 1.0, %v11456_v27  ;;  %v4607_v25 = vadd.f32 1.0, %v11480_v9 }
 0x955   : > { %v8253_v53 = vpop.eup %8252  ;;  %8272 = vpow2.f32 %v7073_v24 }
 0x956   : > { %v8255_v58 = vpop.eup %8254  ;;  %8274 = vpow2.f32 %v7074_v20  ;;  %v4606_v20 = vadd.f32 1.0, %v11472_v13 }
 0x957   : > { %v8257_v30 = vpop.eup %8256  ;;  %8276 = vpow2.f32 %v7075_v59  ;;  %v4616_v39 = vadd.f32 1.0, %v8255_v58 }
 0x958   : > { %v8259_v48 = vpop.eup %8258  ;;  %8278 = vpow2.f32 %v7076_v45 }
 0x959   : > { %v8261_v33 = vpop.eup %8260  ;;  %v4834_v44 = vld [vmem:[#allocation3 + $0x28] sm:$0xff]  ;;  %8280 = vpow2.f32 %v7077_v38  ;;  %v4608_v38 = vadd.f32 1.0, %v11488_v1  ;;  %v4613_v1 = vadd.f32 1.0, %v8249_v51 }
 0x95a   : > { %v8263_v17 = vpop.eup %8262  ;;  %v11549_v36 = vld [vmem:[#allocation3 + $0x29] sm:$0xff]  ;;  %8282 = vpow2.f32 %v7078_v28  ;;  %v4609_v28 = vadd.f32 1.0, %v11496_v54  ;;  %v4614_v54 = vadd.f32 1.0, %v8251_v55  ;;  %v4619_v55 = vadd.f32 1.0, %v8261_v33 }
 0x95b   : > { %v4835_v24 = vld [vmem:[#allocation3 + $0x30] sm:$0xff]  ;;  %v8265_v37 = vpop.eup %8264  ;;  %7080 = vmatprep.mubr.msk.f32.mxu1 %vm3259_vm2, %v11549_v36  ;;  %8284 = vrcp.f32 %v4599_v60  ;;  %v4610_v60 = vadd.f32 1.0, %v11504_v43  ;;  %v4615_v43 = vadd.f32 1.0, %v8253_v53  ;;  %v4620_v58 = vadd.f32 1.0, %v8263_v17 }
 0x95c   : > { %v11554_v19 = vpack.i.bf16 %v4835_v24, %v4834_v44  ;;  %v8267_v59 = vpop.eup %8266  ;;  %8286 = vrcp.f32 %v4600_v56  ;;  %v4611_v56 = vadd.f32 1.0, %v11512_v16  ;;  %v4612_v24 = vadd.f32 1.0, %v8247_v0 }
 0x95d   : > { %v8269_v45 = vpop.eup %8268  ;;  %8288 = vrcp.f32 %v4605_v22  ;;  %v4617_v0 = vadd.f32 1.0, %v8257_v30 }
 0x95e   : > { %7544 = vrot.lane.b32.xlu0 %v11554_v19, %s8420_s22  ;;  %v8271_v13 = vpop.eup %8270  ;;  %8290 = vrcp.f32 %v4606_v20 }
 0x95f   : > { %v8273_v44 = vpop.eup %8272  ;;  %8292 = vrcp.f32 %v4604_v61 }
 0x960   : > { %v8275_v27 = vpop.eup %8274  ;;  %8294 = vrcp.f32 %v4607_v25  ;;  %v4625_v17 = vadd.f32 1.0, %v8273_v44 }
 0x961   : > { %v11564_v9 = vpop.eup %8276  ;;  %8296 = vrcp.f32 %v4608_v38 }
 0x962   : > { %v11566_v8 = vpop.eup %8278  ;;  %8298 = vrcp.f32 %v4609_v28  ;;  %v4618_v28 = vadd.f32 1.0, %v8259_v48 }
 0x963   : > { %v11568_v22 = vpop.eup %8280  ;;  %8300 = vrcp.f32 %v4610_v60 }
 0x964   : > { %v11570_v20 = vpop.eup %8282  ;;  %8302 = vrcp.f32 %v4611_v56  ;;  %v4621_v56 = vadd.f32 1.0, %v8265_v37  ;;  %v4624_v37 = vadd.f32 1.0, %v8271_v13 }
 0x965   : > { %v8285_v61 = vpop.eup %8284  ;;  %8304 = vrcp.f32 %v4612_v24  ;;  %v4622_v24 = vadd.f32 1.0, %v8267_v59 }
 0x966   : > { %v8287_v16 = vpop.eup %8286  ;;  %v4695_v25 = vmul.f32 %v8285_v61, %v11329_v29  ;;  %8306 = vrcp.f32 %v4613_v1  ;;  %v4623_v1 = vadd.f32 1.0, %v8269_v45 }
 0x967   : > { %v8289_v38 = vpop.eup %8288  ;;  %v4696_v51 = vmul.f32 %v8287_v16, %v11339_v42  ;;  %8308 = vrcp.f32 %v4614_v54  ;;  %v4626_v54 = vadd.f32 1.0, %v8275_v27  ;;  %v4628_v16 = vadd.f32 1.0, %v11566_v8 }
 0x968   : > { %v8291_v46 = vpop.eup %8290  ;;  %4734 = vst.msk [vmem:[#allocation3 + $0x18] sm:$0xff] %vm3259_vm2, %v4695_v25  ;;  %v4701_v53 = vmul.f32 %v8289_v38, %v11351_v40  ;;  %8310 = vrcp.f32 %v4615_v43  ;;  %v4836_v38 = vld [vmem:[#allocation3 + $0x38] sm:$0xff]  ;;  %v4630_v8 = vadd.f32 1.0, %v11570_v20 }
 0x969   : > { %v8293_v60 = vpop.eup %8292  ;;  %4735 = vst.msk [vmem:[#allocation3 + $0x20] sm:$0xff] %vm3259_vm2, %v4696_v51  ;;  %v4702_v29 = vmul.f32 %v8291_v46, %v11362_v35  ;;  %8312 = vrcp.f32 %v4616_v39 }
 0x96a   : > { %v8295_v30 = vpop.eup %8294  ;;  %4740 = vst.msk [vmem:[#allocation3 + $0x48] sm:$0xff] %vm3259_vm2, %v4701_v53  ;;  %8314 = vrcp.f32 %v4617_v0  ;;  %v4700_v42 = vmul.f32 %v8293_v60, %v11348_v2  ;;  %v4629_v0 = vadd.f32 1.0, %v11568_v22 }
 0x96b   : > { %v8297_v48 = vpop.eup %8296  ;;  %4741 = vst.msk [vmem:[#allocation3 + $0x50] sm:$0xff] %vm3259_vm2, %v4702_v29  ;;  %8316 = vrcp.f32 %v4618_v28  ;;  %v4703_v40 = vmul.f32 %v8295_v30, %v11367_v3 }
 0x96c   : > { %v8299_v33 = vpop.eup %8298  ;;  %8318 = vrcp.f32 %v4619_v55  ;;  %4739 = vst.msk [vmem:[#allocation3 + $0x40] sm:$0xff] %vm3259_vm2, %v4700_v42  ;;  %v4704_v46 = vmul.f32 %v8297_v48, %v11375_v7 }
 0x96d   : > { %v8301_v39 = vpop.eup %8300  ;;  %8320 = vrcp.f32 %v4620_v58  ;;  %v4705_v35 = vmul.f32 %v8299_v33, %v11383_v32  ;;  %4742 = vst.msk [vmem:[#allocation3 + $0x58] sm:$0xff] %vm3259_vm2, %v4703_v40  ;;  %v4627_v32 = vadd.f32 1.0, %v11564_v9 }
 0x96e   : > { %v8303_v2 = vpop.eup %8302  ;;  %8322 = vrcp.f32 %v4621_v56  ;;  %v4706_v59 = vmul.f32 %v8301_v39, %v11391_v5  ;;  %4743 = vst.msk [vmem:[#allocation3 + $0x60] sm:$0xff] %vm3259_vm2, %v4704_v46 }
 0x96f   : > { %v8305_v3 = vpop.eup %8304  ;;  %v4832_v45 = vld [vmem:[#allocation3 + $0x18] sm:$0xff]  ;;  %8324 = vrcp.f32 %v4622_v24  ;;  %v4707_v7 = vmul.f32 %v8303_v2, %v11396_v47  ;;  %4744 = vst.msk [vmem:[#allocation3 + $0x68] sm:$0xff] %vm3259_vm2, %v4705_v35 }
 0x970   : > { %v8307_v13 = vpop.eup %8306  ;;  %v4833_v43 = vld [vmem:[#allocation3 + $0x20] sm:$0xff]  ;;  %8326 = vrcp.f32 %v4623_v1  ;;  %v4708_v44 = vmul.f32 %v8305_v3, %v11419_v50  ;;  %4745 = vst.msk [vmem:[#allocation3 + $0x70] sm:$0xff] %vm3259_vm2, %v4706_v59 }
 0x971   : > { %v8309_v5 = vpop.eup %8308  ;;  %v11593_v61 = vpack.i.bf16 %v4833_v43, %v4832_v45  ;;  %v4838_v27 = vld [vmem:[#allocation3 + $0x48] sm:$0xff]  ;;  %8328 = vrcp.f32 %v4624_v37  ;;  %v4709_v47 = vmul.f32 %v8307_v13, %v11427_v49  ;;  %4746 = vst.msk [vmem:[#allocation3 + $0x78] sm:$0xff] %vm3259_vm2, %v4707_v7 }
 0x972   : > { %v8311_v25 = vpop.eup %8310  ;;  %v4839_v9 = vld [vmem:[#allocation3 + $0x50] sm:$0xff]  ;;  %8330 = vrcp.f32 %v4625_v17  ;;  %v4710_v50 = vmul.f32 %v8309_v5, %v11432_v14  ;;  %4747 = vst.msk [vmem:[#allocation3 + $0x80] sm:$0xff] %vm3259_vm2, %v4708_v44 }
 0x973   : > { %v8313_v51 = vpop.eup %8312  ;;  %7539 = vrot.lane.b32.xlu1 %v11593_v61, %s8420_s22  ;;  %v11604_v28 = vpack.i.bf16 %v4839_v9, %v4838_v27  ;;  %8332 = vrcp.f32 %v4626_v54  ;;  %v4837_v49 = vld [vmem:[#allocation3 + $0x40] sm:$0xff]  ;;  %v4711_v55 = vmul.f32 %v8311_v25, %v11436_v6  ;;  %4748 = vst.msk [vmem:[#allocation3 + $0x88] sm:$0xff] %vm3259_vm2, %v4709_v47 }
 0x974   : > { %v8315_v22 = vpop.eup %8314  ;;  %8334 = vrcp.f32 %v4627_v32  ;;  %v4712_v14 = vmul.f32 %v8313_v51, %v11439_v4  ;;  %4749 = vst.msk [vmem:[#allocation3 + $0x90] sm:$0xff] %vm3259_vm2, %v4710_v50  ;;  %v11612_v20 = vpack.i.bf16 %v4837_v49, %v4836_v38  ;;  %v4840_v4 = vld [vmem:[#allocation3 + $0x58] sm:$0xff]  ;;  %v6131_v50 = vld [vmem:[%s12876_s12 + $0x10] sm:$0xff]  ;;  %v6132_v51 = vld [vmem:[%s12876_s12 + $0x18] sm:$0xff] }
 0x975   : > { %v8317_v53 = vpop.eup %8316  ;;  %7554 = vrot.lane.b32.xlu0 %v11604_v28, %s8420_s22  ;;  %8336 = vrcp.f32 %v4628_v16  ;;  %v4713_v60 = vmul.f32 %v8315_v22, %v11445_v21  ;;  %4750 = vst.msk [vmem:[#allocation3 + $0x98] sm:$0xff] %vm3259_vm2, %v4711_v55  ;;  %v4841_v30 = vld [vmem:[#allocation3 + $0x60] sm:$0xff]  ;;  %v6133_v49 = vld [vmem:[%s12876_s12 + $0x20] sm:$0xff]  ;;  %v6134_v55 = vld [vmem:[%s12876_s12 + $0x28] sm:$0xff] }
 0x976   : > { %v8319_v6 = vpop.eup %8318  ;;  %8338 = vrcp.f32 %v4629_v0  ;;  %v4714_v58 = vmul.f32 %v8317_v53, %v11453_v41  ;;  %v4842_v29 = vld [vmem:[#allocation3 + $0x68] sm:$0xff]  ;;  %4751 = vst.msk [vmem:[#allocation3 + $0xa0] sm:$0xff] %vm3259_vm2, %v4712_v14  ;;  %v7558_v1 = vpack.i.bf16 %v4841_v30, %v4840_v4  ;;  %v7491_v22 = vpack.c.bf16 %v6134_v55, %v6133_v49  ;;  %v6137_v30 = vld [vmem:[%s12876_s12 + $0x40] sm:$0xff]  ;;  %v8363_v49 = vld [vmem:[%s8564_s21 + $0x30] sm:$0xff] }
 0x977   : > { %v8321_v56 = vpop.eup %8320  ;;  %8340 = vrcp.f32 %v4630_v8  ;;  %7549 = vrot.lane.b32.xlu1 %v11612_v20, %s8420_s22  ;;  %v4715_v42 = vmul.f32 %v8319_v6, %v11461_v34  ;;  %v4843_v48 = vld [vmem:[#allocation3 + $0x70] sm:$0xff]  ;;  %4752 = vst.msk [vmem:[#allocation3 + $0xa8] sm:$0xff] %vm3259_vm2, %v4713_v60  ;;  %v6136_v60 = vld [vmem:[%s12876_s12 + $0x38] sm:$0xff] }
 0x978   : > { %v8323_v21 = vpop.eup %8322  ;;  %v4716_v24 = vmul.f32 %v8321_v56, %v11469_v23  ;;  %v11623_v40 = vpack.i.bf16 %v4843_v48, %v4842_v29  ;;  %4753 = vst.msk [vmem:[#allocation3 + $0xb0] sm:$0xff] %vm3259_vm2, %v4714_v58  ;;  %v4844_v23 = vld [vmem:[#allocation3 + $0x78] sm:$0xff] }
 0x979   : > { %v8325_v41 = vpop.eup %8324  ;;  %v4717_v33 = vmul.f32 %v8323_v21, %v11477_v18  ;;  %4754 = vst.msk [vmem:[#allocation3 + $0xb8] sm:$0xff] %vm3259_vm2, %v4715_v42  ;;  %v4845_v37 = vld [vmem:[#allocation3 + $0x80] sm:$0xff]  ;;  %v6138_v56 = vld [vmem:[%s12876_s12 + $0x48] sm:$0xff] }
 0x97a   : > { %v8327_v46 = vpop.eup %8326  ;;  %v4718_v39 = vmul.f32 %v8325_v41, %v11485_v63  ;;  %7564 = vrot.lane.b32.xlu0 %v11623_v40, %s8420_s22  ;;  %4755 = vst.msk [vmem:[#allocation3 + $0xc0] sm:$0xff] %vm3259_vm2, %v4716_v24  ;;  %v4846_v34 = vld [vmem:[#allocation3 + $0x88] sm:$0xff]  ;;  %v7568_v54 = vpack.i.bf16 %v4845_v37, %v4844_v23  ;;  %v7497_v48 = vpack.c.bf16 %v6138_v56, %v6137_v30  ;;  %v6139_v21 = vld [vmem:[%s12876_s12 + $0x50] sm:$0xff] }
 0x97b   : > { %v8329_v35 = vpop.eup %8328  ;;  %v4719_v2 = vmul.f32 %v8327_v46, %v11493_v11  ;;  %4756 = vst.msk [vmem:[#allocation3 + $0xc8] sm:$0xff] %vm3259_vm2, %v4717_v33  ;;  %7559 = vrot.lane.b32.xlu1 %v7558_v1, %s8420_s22  ;;  %v4847_v18 = vld [vmem:[#allocation3 + $0x90] sm:$0xff]  ;;  %v6140_v24 = vld [vmem:[%s12876_s12 + $0x58] sm:$0xff]  ;;  %v6142_v46 = vld [vmem:[%s12876_s12 + $0x68] sm:$0xff] }
 0x97c   : > { %v8331_v17 = vpop.eup %8330  ;;  %v4720_v59 = vmul.f32 %v8329_v35, %v11501_v26  ;;  %4757 = vst.msk [vmem:[#allocation3 + $0xd0] sm:$0xff] %vm3259_vm2, %v4718_v39  ;;  %v7573_v63 = vpack.i.bf16 %v4847_v18, %v4846_v34  ;;  %v4848_v43 = vld [vmem:[#allocation3 + $0x98] sm:$0xff]  ;;  %v6143_v18 = vld [vmem:[%s12876_s12 + $0x70] sm:$0xff]  ;;  %v13407_v30 = vld [vmem:[#allocation107_spill] sm:$0xff] }
 0x97d   : > { %v8333_v3 = vpop.eup %8332  ;;  %v4721_v45 = vmul.f32 %v8331_v17, %v11509_v10  ;;  %4758 = vst.msk [vmem:[#allocation3 + $0xd8] sm:$0xff] %vm3259_vm2, %v4719_v2  ;;  %v4849_v32 = vld [vmem:[#allocation3 + $0xa0] sm:$0xff]  ;;  %v11745_v2 = vld [vmem:[#allocation3 + $0x17] sm:$0xff]  ;;  %v6144_v17 = vld [vmem:[%s12876_s12 + $0x78] sm:$0xff] }
 0x97e   : > { %v8335_v7 = vpop.eup %8334  ;;  %v4722_v11 = vmul.f32 %v8333_v3, %v11517_v52  ;;  %4759 = vst.msk [vmem:[#allocation3 + $0xe0] sm:$0xff] %vm3259_vm2, %v4720_v59  ;;  %7574 = vrot.lane.b32.xlu0 %v7573_v63, %s8420_s22  ;;  %v4850_v13 = vld [vmem:[#allocation3 + $0xa8] sm:$0xff]  ;;  %v7578_v25 = vpack.i.bf16 %v4849_v32, %v4848_v43  ;;  %v4863_v59 = vld [vmem:[#allocation3 + $0x11] sm:$0xff] }
 0x97f   : > { %v8337_v26 = vpop.eup %8336  ;;  %v4723_v44 = vmul.f32 %v8335_v7, %v11521_v15  ;;  %4760 = vst.msk [vmem:[#allocation3 + $0xe8] sm:$0xff] %vm3259_vm2, %v4721_v45  ;;  %7569 = vrot.lane.b32.xlu1 %v7568_v54, %s8420_s22  ;;  %v4851_v10 = vld [vmem:[#allocation3 + $0xb0] sm:$0xff]  ;;  %v6146_v45 = vld [vmem:[%s12876_s12 + $0x88] sm:$0xff]  ;;  %v13401_v7 = vld [vmem:[#allocation86_spill] sm:$0xff] }
 0x980   : > { %v8339_v5 = vpop.eup %8338  ;;  %v4724_v16 = vmul.f32 %v8337_v26, %v11525_v62  ;;  %4761 = vst.msk [vmem:[#allocation3 + $0xf0] sm:$0xff] %vm3259_vm2, %v4722_v11  ;;  %v7583_v52 = vpack.i.bf16 %v4851_v10, %v4850_v13  ;;  %v4852_v15 = vld [vmem:[#allocation3 + $0xb8] sm:$0xff]  ;;  %v6145_v3 = vld [vmem:[%s12876_s12 + $0x80] sm:$0xff]  ;;  %v4928_v11 = vmul.f32 %v13401_v7, %v11745_v2  ;;  %v13402_v43 = vld [vmem:[#allocation83_spill] sm:$0xff] }
 0x981   : > { %v8341_v27 = vpop.eup %8340  ;;  %v4725_v47 = vmul.f32 %v8339_v5, %v11530_v12  ;;  %4762 = vst.msk [vmem:[#allocation3 + $0xf8] sm:$0xff] %vm3259_vm2, %v4723_v44  ;;  %v4853_v62 = vld [vmem:[#allocation3 + $0xc0] sm:$0xff]  ;;  %v7509_v13 = vpack.c.bf16 %v6146_v45, %v6145_v3  ;;  %v4895_v32 = vmul.f32 %v13402_v43, %v4863_v59  ;;  %v4862_v44 = vld [vmem:[#allocation3 + $0x9] sm:$0xff]  ;;  %v8358_v5 = vld [vmem:[%s8564_s21 + $0x8] sm:$0xff] }
 0x982   : > { %v4726_v0 = vmul.f32 %v8341_v27, %v11535_v31  ;;  %4763 = vst.msk [vmem:[#allocation3 + $0x100] sm:$0xff] %vm3259_vm2, %v4724_v16  ;;  %7584 = vrot.lane.b32.xlu0 %v7583_v52, %s8420_s22  ;;  %v7683_v12 = vpack.i.bf16 %v4853_v62, %v4852_v15  ;;  %v6129_v31 = vld [vmem:[%s12876_s12] sm:$0xff]  ;;  %v4865_v26 = vld [vmem:[#allocation3 + $0x21] sm:$0xff]  ;;  %v4864_v15 = vld [vmem:[#allocation3 + $0x19] sm:$0xff] }
 0x983   : > { %4764 = vst.msk [vmem:[#allocation3 + $0x108] sm:$0xff] %vm3259_vm2, %v4725_v47  ;;  %7579 = vrot.lane.b32.xlu1 %v7578_v25, %s8420_s22  ;;  %v4855_v9 = vld [vmem:[#allocation3 + $0xd0] sm:$0xff]  ;;  %v11769_v10 = vld [vmem:[#allocation3 + $0x27] sm:$0xff]  ;;  %v11774_v16 = vld [vmem:[#allocation3 + $0x1f] sm:$0xff]  ;;  %v4965_v27 = vmul.f32 %v13402_v43, %v4865_v26  ;;  %v7768_v47 = vpack.i.bf16 %v4895_v32, %v4862_v44 }
 0x984   : > { %4765 = vst.msk [vmem:[#allocation3 + $0x110] sm:$0xff] %vm3259_vm2, %v4726_v0  ;;  %v4856_v14 = vld [vmem:[#allocation3 + $0xd8] sm:$0xff]  ;;  %v8360_v0 = vld [vmem:[%s8564_s21 + $0x18] sm:$0xff]  ;;  %v8361_v62 = vld [vmem:[%s8564_s21 + $0x20] sm:$0xff] }
 0x985   : > { %v4857_v53 = vld [vmem:[#allocation3 + $0xe0] sm:$0xff]  ;;  %v13409_v3 = vld [vmem:[#allocation116_spill] sm:$0xff] }
 0x986   : > { %7594 = vrot.lane.b32.xlu0 %v11554_v19, %s8429_s25  ;;  %v7708_v6 = vpack.i.bf16 %v4857_v53, %v4856_v14  ;;  %v4858_v58 = vld [vmem:[#allocation3 + $0xe8] sm:$0xff]  ;;  %v8371_v32 = vld [vmem:[%s8564_s21 + $0x70] sm:$0xff] }
 0x987   : > { %7589 = vrot.lane.b32.xlu1 %v11593_v61, %s8427_s26  ;;  %v4854_v61 = vld [vmem:[#allocation3 + $0xc8] sm:$0xff]  ;;  %v4859_v29 = vld [vmem:[#allocation3 + $0xf0] sm:$0xff] }
 0x988   : > { %v7693_v8 = vpack.i.bf16 %v4855_v9, %v4854_v61  ;;  %v7723_v42 = vpack.i.bf16 %v4859_v29, %v4858_v58  ;;  %v4860_v41 = vld [vmem:[#allocation3 + $0xf8] sm:$0xff]  ;;  %v13406_v29 = vld [vmem:[#allocation96_spill] sm:$0xff] }
 0x989   : > { %v4861_v33 = vld [vmem:[#allocation3 + $0x100] sm:$0xff]  ;;  %v11792_v9 = vld [vmem:[#allocation3 + $0x31] sm:$0xff] }
 0x98a   : > { %7604 = vrot.lane.b32.xlu0 %v11612_v20, %s8429_s25  ;;  %v7738_v39 = vpack.i.bf16 %v4861_v33, %v4860_v41  ;;  %v4960_v34 = vld [vmem:[#allocation3 + $0x108] sm:$0xff]  ;;  %v11816_v58 = vld [vmem:[#allocation3 + $0x3f] sm:$0xff]  ;;  %v4899_v56 = vmul.f32 %v13407_v30, %v11792_v9 }
 0x98b   : > { %7599 = vrot.lane.b32.xlu1 %v11554_v19, %s8427_s26  ;;  %v6130_v19 = vld [vmem:[%s12876_s12 + $0x8] sm:$0xff]  ;;  %v4961_v23 = vld [vmem:[#allocation3 + $0x110] sm:$0xff]  ;;  %v8367_v41 = vld [vmem:[%s8564_s21 + $0x50] sm:$0xff] }
 0x98c   : > { %v7485_v38 = vpack.c.bf16 %v6130_v19, %v6129_v31  ;;  %v7753_v35 = vpack.i.bf16 %v4961_v23, %v4960_v34  ;;  %v7778_v31 = vpack.i.bf16 %v4965_v27, %v4864_v15  ;;  %v13404_v19 = vld [vmem:[#allocation89_spill] sm:$0xff]  ;;  %v8368_v34 = vld [vmem:[%s8564_s21 + $0x58] sm:$0xff] }
 0x98d   : > { %v4930_v61 = vmul.f32 %v13404_v19, %v11769_v10  ;;  %v11845_v23 = vld [vmem:[#allocation3 + $0x39] sm:$0xff]  ;;  %v8372_v27 = vld [vmem:[%s8564_s21 + $0x78] sm:$0xff] }
 0x98e   : > { %7614 = vrot.lane.b32.xlu0 %v11604_v28, %s8429_s25  ;;  %7486 = vmatpush1.bf16.msra.mxu1 %v7485_v38 }
 0x98f   : > { %7609 = vrot.lane.b32.xlu1 %v11612_v20, %s8427_s26  ;;  %7487 = vmatprep.subr.bf16.mxu1 %v13232_v57  ;;  %v6135_v20 = vld [vmem:[%s12876_s12 + $0x30] sm:$0xff] }
 0x990   : > { %v7494_v4 = vpack.c.bf16 %v6136_v60, %v6135_v20  ;;  %v8364_v20 = vld [vmem:[%s8564_s21 + $0x38] sm:$0xff]  ;;  %v8365_v60 = vld [vmem:[%s8564_s21 + $0x40] sm:$0xff] }
 0x992   : > { %7624 = vrot.lane.b32.xlu0 %v7558_v1, %s8429_s25 }
 0x993   : > { %7619 = vrot.lane.b32.xlu1 %v11604_v28, %s8427_s26  ;;  %v7488_v28 = vpack.c.bf16 %v6132_v51, %v6131_v50  ;;  %v13405_v50 = vld [vmem:[#allocation99_spill] sm:$0xff] }
 0x994   : > { %v4897_v51 = vmul.f32 %v13405_v50, %v4865_v26  ;;  %v4967_v55 = vmul.f32 %v13405_v50, %v11792_v9 }
 0x995   : > { %7489 = vmatpush1.bf16.msra.mxu1 %v7488_v28  ;;  %v8362_v28 = vld [vmem:[%s8564_s21 + $0x28] sm:$0xff] }
 0x996   : > { %7634 = vrot.lane.b32.xlu0 %v11623_v40, %s8429_s25  ;;  %7490 = vmatprep.subr.bf16.mxu1 %v13232_v57  ;;  %v7788_v14 = vpack.i.bf16 %v4897_v51, %v4864_v15  ;;  %v11887_v15 = vld [vmem:[#allocation3 + $0x5f] sm:$0xff] }
 0x997   : > { %7629 = vrot.lane.b32.xlu1 %v7558_v1, %s8427_s26  ;;  %v6141_v1 = vld [vmem:[%s12876_s12 + $0x60] sm:$0xff]  ;;  %13411 = vst [vmem:[#allocation14_spill] sm:$0xff] %v11887_v15 }
 0x998   : > { %v7503_v37 = vpack.c.bf16 %v6142_v46, %v6141_v1  ;;  %v7808_v46 = vpack.i.bf16 %v4899_v56, %v11549_v36 }
 0x999   : > { %7492 = vmatpush1.bf16.msra.mxu1 %v7491_v22 }
 0x99a   : > { %7644 = vrot.lane.b32.xlu0 %v7568_v54, %s8429_s25  ;;  %7493 = vmatprep.subr.bf16.mxu1 %v13232_v57 }
 0x99b   : > { %7639 = vrot.lane.b32.xlu1 %v11623_v40, %s8427_s26  ;;  %v7500_v40 = vpack.c.bf16 %v6140_v24, %v6139_v21  ;;  %v11826_v21 = vld [vmem:[#allocation3 + $0x47] sm:$0xff]  ;;  %v8366_v24 = vld [vmem:[%s8564_s21 + $0x48] sm:$0xff] }
 0x99d   : > { %7495 = vmatpush1.bf16.msra.mxu1 %v7494_v4 }
 0x99e   : > { %7654 = vrot.lane.b32.xlu0 %v7573_v63, %s8429_s25  ;;  %7496 = vmatprep.subr.bf16.mxu1 %v13232_v57 }
 0x99f   : > { %7649 = vrot.lane.b32.xlu1 %v7568_v54, %s8427_s26  ;;  %v6474_v54 = vld [vmem:[%s12878_s14] sm:$0xff] }
 0x9a0   : > { %7385 = vmatprep.subr.mxu0 %v6474_v54 }
 0x9a1   : > { %7498 = vmatpush1.bf16.msra.mxu1 %v7497_v48  ;;  %7386 = vmatpush3.msra.mxu0 %v6474_v54  ;;  %v11823_v48 = vld [vmem:[#allocation3 + $0x41] sm:$0xff]  ;;  %v11859_v54 = vld [vmem:[#allocation3 + $0x51] sm:$0xff] }
 0x9a2   : > { %7664 = vrot.lane.b32.xlu0 %v7578_v25, %s8429_s25  ;;  %7499 = vmatprep.subr.bf16.mxu1 %v13232_v57  ;;  %v4969_v1 = vmul.f32 %v13407_v30, %v11823_v48  ;;  %v4901_v45 = vmul.f32 %v13409_v3, %v11823_v48  ;;  %v4971_v44 = vmul.f32 %v13409_v3, %v11859_v54 }
 0x9a3   : > { %7659 = vrot.lane.b32.xlu1 %v7573_v63, %s8427_s26  ;;  %v7506_v63 = vpack.c.bf16 %v6144_v17, %v6143_v18  ;;  %7388 = vmatmul.mubr.msk.f32.vlgmr.msra.gmra.mrb[42].mxu0 %vm1234_vm0, %v8358_v5  ;;  %v13408_v18 = vld [vmem:[#allocation104_spill] sm:$0xff] }
 0x9a4   : > { %v4934_v17 = vmul.f32 %v13408_v18, %v11826_v21 }
 0x9a5   : > { %7501 = vmatpush1.bf16.msra.mxu1 %v7500_v40  ;;  %v11831_v40 = vpop.permute.xlu0 %7534 }
 0x9a6   : > { %7674 = vrot.lane.b32.xlu0 %v7583_v52, %s8429_s25  ;;  %7502 = vmatprep.subr.bf16.mxu1 %v13232_v57 }
 0x9a7   : > { %7669 = vrot.lane.b32.xlu1 %v7578_v25, %s8427_s26  ;;  %v4998_v25 = vmul.f32 %v13401_v7, %v11769_v10 }
 0x9a9   : > { %7504 = vmatpush1.bf16.msra.mxu1 %v7503_v37  ;;  %v8369_v37 = vld [vmem:[%s8564_s21 + $0x60] sm:$0xff] }
 0x9aa   : > { %7684 = vrot.lane.b32.xlu0 %v7683_v12, %s8429_s25  ;;  %7505 = vmatprep.subr.bf16.mxu1 %v13232_v57 }
 0x9ab   : > { %7679 = vrot.lane.b32.xlu1 %v7583_v52, %s8427_s26  ;;  %v8359_v52 = vld [vmem:[%s8564_s21 + $0x10] sm:$0xff] }
 0x9ac   : > { %7390 = vmatprep.mubr.msk.f32.mxu0 %vm1234_vm0, %v8359_v52  ;;  %v7828_v52 = vpack.i.bf16 %v4901_v45, %v11845_v23 }
 0x9ad   : > { %7507 = vmatpush1.bf16.msra.mxu1 %v7506_v63  ;;  %7391 = vmatmul.mubr.msk.f32.gmra.mrb[44].mxu0 %vm1234_vm0, %v8360_v0  ;;  %v8373_v0 = vld [vmem:[%s8564_s21 + $0x80] sm:$0xff] }
 0x9ae   : > { %7694 = vrot.lane.b32.xlu0 %v7693_v8, %s8429_s25  ;;  %7508 = vmatprep.subr.bf16.mxu1 %v13232_v57  ;;  %v7773_v57 = vpack.i.bf16 %v11774_v16, %v4928_v11  ;;  %v11862_v11 = vld [vmem:[#allocation3 + $0x57] sm:$0xff] }
 0x9af   : > { %7689 = vrot.lane.b32.xlu1 %v7683_v12, %s8427_s26  ;;  %7393 = vmatprep.mubr.msk.f32.mxu0 %vm1234_vm0, %v8361_v62  ;;  %13410 = vst [vmem:[#allocation21_spill] sm:$0xff] %v11862_v11 }
 0x9b1   : > { %7510 = vmatpush1.bf16.msra.mxu1 %v7509_v13  ;;  %7394 = vmatmul.mubr.msk.f32.gmra.mrb[46].mxu0 %vm1234_vm0, %v8362_v28  ;;  %v8370_v13 = vld [vmem:[%s8564_s21 + $0x68] sm:$0xff] }
 0x9b2   : > { %7704 = vrot.lane.b32.xlu0 %v7693_v8, %s8427_s26  ;;  %7396 = vmatprep.mubr.msk.f32.mxu0 %vm1234_vm0, %v8363_v49  ;;  %v13413_v28 = vld [vmem:[#allocation125_spill] sm:$0xff] }
 0x9b3   : > { %7699 = vrot.lane.b32.xlu1 %v7683_v12, %s8420_s22  ;;  %v11788_v12 = vld [vmem:[#allocation3 + $0x2f] sm:$0xff]  ;;  %v4903_v49 = vmul.f32 %v13413_v28, %v11859_v54 }
 0x9b4   : > { %v7783_v38 = vpack.i.bf16 %v11788_v12, %v4998_v25  ;;  %v7793_v22 = vpack.i.bf16 %v11788_v12, %v4930_v61  ;;  %v11883_v25 = vld [vmem:[#allocation3 + $0x49] sm:$0xff] }
 0x9b5   : > { %7397 = vmatmul.mubr.msk.f32.gmra.mrb[48].mxu0 %vm1234_vm0, %v8364_v20  ;;  %v7838_v62 = vpack.i.bf16 %v4971_v44, %v11883_v25  ;;  %v7848_v56 = vpack.i.bf16 %v4903_v49, %v11883_v25  ;;  %v8379_v44 = vld [vmem:[%s8564_s21 + $0xb0] sm:$0xff]  ;;  %v11961_v49 = vld [vmem:[#allocation3 + $0x69] sm:$0xff] }
 0x9b6   : > { %7714 = vrot.lane.b32.xlu0 %v7693_v8, %s8420_s22  ;;  %v11797_v8 = vld [vmem:[#allocation3 + $0x37] sm:$0xff]  ;;  %7399 = vmatprep.mubr.msk.f32.mxu0 %vm1234_vm0, %v8365_v60  ;;  %13426 = vst [vmem:[#allocation110_spill] sm:$0xff] %v11961_v49 }
 0x9b7   : > { %7709 = vrot.lane.b32.xlu1 %v7708_v6, %s8429_s25  ;;  %v5000_v53 = vmul.f32 %v13404_v19, %v11797_v8  ;;  %v4932_v4 = vmul.f32 %v13406_v29, %v11797_v8 }
 0x9b9   : > { %7400 = vmatmul.mubr.msk.f32.gmra.mrb[50].mxu0 %vm1234_vm0, %v8366_v24  ;;  %v7813_v33 = vpack.i.bf16 %v11816_v58, %v4932_v4  ;;  %v8376_v24 = vld [vmem:[%s8564_s21 + $0x98] sm:$0xff] }
 0x9ba   : > { %7724 = vrot.lane.b32.xlu0 %v7723_v42, %s8429_s25  ;;  %7402 = vmatprep.mubr.msk.f32.mxu0 %vm1234_vm0, %v8367_v41  ;;  %v11921_v41 = vld [vmem:[#allocation3 + $0x59] sm:$0xff] }
 0x9bb   : > { %7719 = vrot.lane.b32.xlu1 %v7708_v6, %s8427_s26 }
 0x9bd   : > { %7403 = vmatmul.mubr.msk.f32.gmra.mrb[52].mxu0 %vm1234_vm0, %v8368_v34  ;;  %v13419_v34 = vld [vmem:[#allocation122_spill] sm:$0xff] }
 0x9be   : > { %7734 = vrot.lane.b32.xlu0 %v7723_v42, %s8427_s26  ;;  %7405 = vmatprep.mubr.msk.f32.mxu0 %vm1234_vm0, %v8369_v37 }
 0x9bf   : > { %7729 = vrot.lane.b32.xlu1 %v7708_v6, %s8420_s22  ;;  %v7798_v6 = vpack.i.bf16 %v4967_v55, %v11549_v36  ;;  %v7818_v36 = vpack.i.bf16 %v4969_v1, %v11845_v23  ;;  %v11897_v55 = vld [vmem:[#allocation3 + $0x61] sm:$0xff]  ;;  %v11925_v1 = vld [vmem:[#allocation3 + $0x6f] sm:$0xff] }
 0x9c0   : > { %13417 = vst [vmem:[#allocation8_spill] sm:$0xff] %v11925_v1 }
 0x9c1   : > { %7406 = vmatmul.mubr.msk.f32.gmra.mrb[54].mxu0 %vm1234_vm0, %v8370_v13  ;;  %v11937_v13 = vld [vmem:[#allocation3 + $0x71] sm:$0xff] }
 0x9c2   : > { %7744 = vrot.lane.b32.xlu0 %v7723_v42, %s8420_s22  ;;  %v7803_v42 = vpack.i.bf16 %v11816_v58, %v5000_v53  ;;  %7408 = vmatprep.mubr.msk.f32.mxu0 %vm1234_vm0, %v8371_v32  ;;  %v8375_v53 = vld [vmem:[%s8564_s21 + $0x90] sm:$0xff]  ;;  %13422 = vst [vmem:[#allocation22_spill] sm:$0xff] %v11937_v13  ;;  %v11939_v32 = vld [vmem:[#allocation3 + $0x77] sm:$0xff] }
 0x9c3   : > { %7739 = vrot.lane.b32.xlu1 %v7738_v39, %s8429_s25  ;;  %13423 = vst [vmem:[#allocation23_spill] sm:$0xff] %v11939_v32 }
 0x9c5   : > { %7409 = vmatmul.mubr.msk.f32.gmra.mrb[56].mxu0 %vm1234_vm0, %v8372_v27 }
 0x9c6   : > { %7754 = vrot.lane.b32.xlu0 %v7753_v35, %s8429_s25  ;;  %7411 = vmatprep.mubr.msk.f32.mxu0 %vm1234_vm0, %v8373_v0 }
 0x9c7   : > { %7749 = vrot.lane.b32.xlu1 %v7738_v39, %s8427_s26 }
 0x9ca   : > { %7764 = vrot.lane.b32.xlu0 %v7753_v35, %s8427_s26  ;;  %s8430_s26 = smov 80   ;;  %v11849_v35 = vld [vmem:[#allocation3 + $0x4f] sm:$0xff] }
 0x9cb   : > { %7759 = vrot.lane.b32.xlu1 %v7738_v39, %s8420_s22  ;;  %s13403_s22 = smov 32   ;;  %v5002_v39 = vmul.f32 %v13406_v29, %v11826_v21  ;;  %v7833_v26 = vpack.i.bf16 %v11849_v35, %v4934_v17 }
 0x9cd   : > { %v7823_v59 = vpack.i.bf16 %v11849_v35, %v5002_v39 }
 0x9ce   : > { %7774 = vrot.lane.b32.xlu0 %v7773_v57, %s8422_s23  ;;  %v5004_v57 = vmul.f32 %v13408_v18, %v11862_v11 }
 0x9cf   : > { %7769 = vrot.lane.b32.xlu1 %v7768_v47, %s13403_s22 }
 0x9d0   : > { %v11855_v63 = vpop.permute.xlu0 %7544  ;;  %v7843_v51 = vpack.i.bf16 %v11887_v15, %v5004_v57 }
 0x9d2   : > { %7779 = vrot.lane.b32.xlu0 %v7778_v31, %s8430_s26  ;;  %v13412_v31 = vld [vmem:[#allocation113_spill] sm:$0xff] }
 0x9d3   : > { %7784 = vrot.lane.b32.xlu1 %v7783_v38, %s8431_s19  ;;  %v4936_v61 = vmul.f32 %v13412_v31, %v11862_v11 }
 0x9d5   : > { %v7853_v60 = vpack.i.bf16 %v11887_v15, %v4936_v61  ;;  %v5008_v61 = vmul.f32 %v13419_v34, %v11939_v32 }
 0x9d6   : > { %7794 = vrot.lane.b32.xlu0 %v7793_v22, %s8422_s23  ;;  %v11900_v22 = vld [vmem:[#allocation3 + $0x67] sm:$0xff] }
 0x9d7   : > { %7789 = vrot.lane.b32.xlu1 %v7788_v14, %s13403_s22  ;;  %13414 = vst [vmem:[#allocation9_spill] sm:$0xff] %v11900_v22  ;;  %v8374_v14 = vld [vmem:[%s8564_s21 + $0x88] sm:$0xff]  ;;  %v4938_v37 = vmul.f32 %v13419_v34, %v11900_v22 }
 0x9d8   : > { %7412 = vmatmul.mubr.msk.f32.gmra.mrb[58].mxu0 %vm1234_vm0, %v8374_v14  ;;  %v8381_v14 = vld [vmem:[%s8564_s21 + $0xc0] sm:$0xff] }
 0x9d9   : > { %7414 = vmatprep.mubr.msk.f32.mxu0 %vm1234_vm0, %v8375_v53  ;;  %v7873_v57 = vpack.i.bf16 %v11925_v1, %v4938_v37  ;;  %v11965_v53 = vld [vmem:[#allocation3 + $0x7f] sm:$0xff] }
 0x9da   : > { %7799 = vrot.lane.b32.xlu0 %v7798_v6, %s8430_s26  ;;  %v4973_v6 = vmul.f32 %v13413_v28, %v11897_v55  ;;  %13427 = vst [vmem:[#allocation24_spill] sm:$0xff] %v11965_v53 }
 0x9db   : > { %7804 = vrot.lane.b32.xlu1 %v7803_v42, %s8431_s19  ;;  %v5006_v42 = vmul.f32 %v13412_v31, %v11900_v22 }
 0x9dc   : > { %7415 = vmatmul.mubr.msk.f32.gmra.mrb[60].mxu0 %vm1234_vm0, %v8376_v24  ;;  %v7858_v39 = vpack.i.bf16 %v4973_v6, %v11921_v41 }
 0x9dd   : > { %v7863_v17 = vpack.i.bf16 %v11925_v1, %v5006_v42 }
 0x9de   : > { %7814 = vrot.lane.b32.xlu0 %v7813_v33, %s8422_s23  ;;  %v8377_v33 = vld [vmem:[%s8564_s21 + $0xa0] sm:$0xff] }
 0x9df   : > { %7809 = vrot.lane.b32.xlu1 %v7808_v46, %s13403_s22  ;;  %7417 = vmatprep.mubr.msk.f32.mxu0 %vm1234_vm0, %v8377_v33  ;;  %v7883_v33 = vpack.i.bf16 %v11965_v53, %v5008_v61 }
 0x9e2   : > { %7819 = vrot.lane.b32.xlu0 %v7818_v36, %s8430_s26 }
 0x9e3   : > { %7824 = vrot.lane.b32.xlu1 %v7823_v59, %s8431_s19  ;;  %v13421_v59 = vld [vmem:[#allocation134_spill] sm:$0xff] }
 0x9e4   : > { %v4905_v45 = vmul.f32 %v13421_v59, %v11897_v55  ;;  %v4975_v27 = vmul.f32 %v13421_v59, %v11937_v13 }
 0x9e5   : > { %v11872_v5 = vpop.permute.xlu1 %7539 }
 0x9e6   : > { %7834 = vrot.lane.b32.xlu0 %v7833_v26, %s8422_s23  ;;  %v8378_v26 = vld [vmem:[%s8564_s21 + $0xa8] sm:$0xff]  ;;  %v7878_v6 = vpack.i.bf16 %v4975_v27, %v11961_v49 }
 0x9e7   : > { %7829 = vrot.lane.b32.xlu1 %v7828_v52, %s13403_s22  ;;  %v11881_v47 = vpop.permute.xlu0 %7554  ;;  %7418 = vmatmul.mubr.msk.f32.gmra.mrb[62].mxu0 %vm1234_vm0, %v8378_v26  ;;  %v8382_v26 = vld [vmem:[%s8564_s21 + $0xc8] sm:$0xff] }
 0x9e8   : > { %7420 = vmatprep.mubr.msk.f32.mxu0 %vm1234_vm0, %v8379_v44  ;;  %v8383_v44 = vld [vmem:[%s8564_s21 + $0xd0] sm:$0xff] }
 0x9e9   : > { %v11892_v38 = vpop.permute.xlu1 %7549 }
 0x9ea   : > { %7839 = vrot.lane.b32.xlu0 %v7838_v62, %s8430_s26  ;;  %v7868_v62 = vpack.i.bf16 %v4905_v45, %v11921_v41  ;;  %v4782_v45 = vld [vmem:[#allocation3 + $0x87] sm:$0xff] }
 0x9eb   : > { %7844 = vrot.lane.b32.xlu1 %v7843_v51, %s8431_s19  ;;  %v8380_v51 = vld [vmem:[%s8564_s21 + $0xb8] sm:$0xff] }
 0x9ec   : > { %v11907_v20 = vpop.permute.xlu0 %7564  ;;  %7421 = vmatmul.mubr.msk.f32.gmra.mrb[64].mxu0 %vm1234_vm0, %v8380_v51 }
 0x9ed   : > { %13415 = vst [vmem:[#allocation16_spill] sm:$0xff] %v11907_v20  ;;  %v11912_v4 = vpop.permute.xlu1 %7559  ;;  %7423 = vmatprep.mubr.msk.f32.mxu0 %vm1234_vm0, %v8381_v14 }
 0x9ee   : > { %13416 = vst [vmem:[#allocation11_spill] sm:$0xff] %v11912_v4  ;;  %7854 = vrot.lane.b32.xlu0 %v7853_v60, %s8422_s23 }
 0x9ef   : > { %7849 = vrot.lane.b32.xlu1 %v7848_v56, %s13403_s22  ;;  %v13428_v56 = vld [vmem:[#allocation131_spill] sm:$0xff] }
 0x9f0   : > { %v11927_v46 = vpop.permute.xlu0 %7574  ;;  %v4940_v42 = vmul.f32 %v13428_v56, %v11939_v32  ;;  %7424 = vmatmul.mubr.msk.f32.gmra.mrb[66].mxu0 %vm1234_vm0, %v8382_v26  ;;  %v5010_v14 = vmul.f32 %v13428_v56, %v4782_v45  ;;  %v4783_v26 = vld [vmem:[#allocation3 + $0x8f] sm:$0xff]  ;;  %v12040_v56 = vld [vmem:[#allocation3 + $0xa1] sm:$0xff] }
 0x9f1   : > { %13418 = vst [vmem:[#allocation182_spill] sm:$0xff] %v11927_v46  ;;  %v11932_v36 = vpop.permute.xlu1 %7569  ;;  %7426 = vmatprep.mubr.msk.f32.mxu0 %vm1234_vm0, %v8383_v44  ;;  %13440 = vst [vmem:[#allocation28_spill] sm:$0xff] %v12040_v56 }
 0x9f2   : > { %13420 = vst [vmem:[#allocation18_spill] sm:$0xff] %v11932_v36  ;;  %7859 = vrot.lane.b32.xlu0 %v7858_v39, %s8430_s26  ;;  %v13429_v39 = vld [vmem:[#allocation143_spill] sm:$0xff]  ;;  %v7893_v27 = vpack.i.bf16 %v11965_v53, %v4940_v42  ;;  %v8385_v42 = vld [vmem:[%s8564_s21 + $0xe0] sm:$0xff]  ;;  %v7903_v53 = vpack.i.bf16 %v4783_v26, %v5010_v14 }
 0x9f3   : > { %7864 = vrot.lane.b32.xlu1 %v7863_v17, %s8431_s19  ;;  %v4907_v37 = vmul.f32 %v13429_v39, %v11937_v13  ;;  %v11977_v17 = vld [vmem:[#allocation3 + $0x81] sm:$0xff] }
 0x9f4   : > { %v11947_v52 = vpop.permute.xlu0 %7584  ;;  %13430 = vst [vmem:[#allocation15_spill] sm:$0xff] %v11977_v17  ;;  %v4889_v13 = vld [vmem:[#allocation3 + $0xe1] sm:$0xff] }
 0x9f5   : > { %13424 = vst [vmem:[#allocation10_spill] sm:$0xff] %v11947_v52  ;;  %v11952_v0 = vpop.permute.xlu1 %7579  ;;  %v7888_v51 = vpack.i.bf16 %v4907_v37, %v11961_v49  ;;  %v13432_v52 = vld [vmem:[#allocation140_spill] sm:$0xff] }
 0x9f6   : > { %13425 = vst [vmem:[#allocation12_spill] sm:$0xff] %v11952_v0  ;;  %7874 = vrot.lane.b32.xlu0 %v7873_v57, %s8422_s23  ;;  %v4942_v0 = vmul.f32 %v13432_v52, %v4782_v45 }
 0x9f7   : > { %7869 = vrot.lane.b32.xlu1 %v7868_v62, %s13403_s22  ;;  %v4977_v62 = vmul.f32 %v13429_v39, %v11977_v17  ;;  %v4784_v39 = vld [vmem:[#allocation3 + $0x97] sm:$0xff] }
 0x9f8   : > { %v11967_v60 = vpop.permute.xlu0 %7594  ;;  %v7913_v14 = vpack.i.bf16 %v4783_v26, %v4942_v0 }
 0x9f9   : > { %v11972_v24 = vpop.permute.xlu1 %7589 }
 0x9fa   : > { %7879 = vrot.lane.b32.xlu0 %v7878_v6, %s8430_s26  ;;  %v8384_v6 = vld [vmem:[%s8564_s21 + $0xd8] sm:$0xff] }
 0x9fb   : > { %7884 = vrot.lane.b32.xlu1 %v7883_v33, %s8431_s19  ;;  %7427 = vmatmul.mubr.msk.f32.gmra.mrb[68].mxu0 %vm1234_vm0, %v8384_v6  ;;  %v11998_v33 = vld [vmem:[#allocation3 + $0x79] sm:$0xff]  ;;  %v13433_v6 = vld [vmem:[#allocation152_spill] sm:$0xff] }
 0x9fc   : > { %v11985_v57 = vpop.permute.xlu0 %7604  ;;  %13431 = vst [vmem:[#allocation26_spill] sm:$0xff] %v11998_v33  ;;  %7429 = vmatprep.mubr.msk.f32.mxu0 %vm1234_vm0, %v8385_v42  ;;  %v7898_v37 = vpack.i.bf16 %v4977_v62, %v11998_v33  ;;  %v4909_v46 = vmul.f32 %v13433_v6, %v11977_v17  ;;  %v8386_v42 = vld [vmem:[%s8564_s21 + $0xe8] sm:$0xff]  ;;  %v8387_v62 = vld [vmem:[%s8564_s21 + $0xf0] sm:$0xff] }
 0x9fd   : > { %v11990_v61 = vpop.permute.xlu1 %7599 }
 0x9fe   : > { %7894 = vrot.lane.b32.xlu0 %v7893_v27, %s8422_s23  ;;  %v7908_v1 = vpack.i.bf16 %v4909_v46, %v11998_v33 }
 0x9ff   : > { %7889 = vrot.lane.b32.xlu1 %v7888_v51, %s13403_s22  ;;  %v12010_v51 = vld [vmem:[#allocation3 + $0x91] sm:$0xff]  ;;  %7430 = vmatmul.mubr.msk.f32.gmra.mrb[70].mxu0 %vm1234_vm0, %v8386_v42  ;;  %v8388_v42 = vld [vmem:[%s8564_s21 + $0xf8] sm:$0xff] }
 0xa00   : > { %v12002_v44 = vpop.permute.xlu0 %7614  ;;  %13434 = vst [vmem:[#allocation19_spill] sm:$0xff] %v12010_v51  ;;  %7432 = vmatprep.mubr.msk.f32.mxu0 %vm1234_vm0, %v8387_v62  ;;  %v4979_v32 = vmul.f32 %v13433_v6, %v12010_v51  ;;  %v4785_v62 = vld [vmem:[#allocation3 + $0x9f] sm:$0xff] }
 0xa01   : > { %v12006_v27 = vpop.permute.xlu1 %7609  ;;  %v13437_v6 = vld [vmem:[#allocation149_spill] sm:$0xff] }
 0xa02   : > { %7899 = vrot.lane.b32.xlu0 %v7898_v37, %s8430_s26  ;;  %v5012_v37 = vmul.f32 %v13432_v52, %v4784_v39  ;;  %v4944_v59 = vmul.f32 %v13437_v6, %v4784_v39  ;;  %v13439_v52 = vld [vmem:[#allocation161_spill] sm:$0xff] }
 0xa03   : > { %7904 = vrot.lane.b32.xlu1 %v7903_v53, %s8431_s19  ;;  %7433 = vmatmul.mubr.msk.f32.gmra.mrb[72].mxu0 %vm1234_vm0, %v8388_v42  ;;  %v12030_v53 = vld [vmem:[#allocation3 + $0x89] sm:$0xff]  ;;  %vm6030_vm0 = vcmask 654336  }
 0xa04   : > { %v12018_v45 = vpop.permute.xlu0 %7624  ;;  %13435 = vst [vmem:[#allocation13_spill] sm:$0xff] %v12030_v53  ;;  %v7918_v26 = vpack.i.bf16 %v4979_v32, %v12030_v53  ;;  %v7923_v46 = vpack.i.bf16 %v4785_v62, %v5012_v37  ;;  %v4786_v42 = vld [vmem:[#allocation3 + $0xa7] sm:$0xff]  ;;  %v7933_v22 = vpack.i.bf16 %v4785_v62, %v4944_v59  ;;  %v4981_v32 = vmul.f32 %v13439_v52, %v12040_v56 }
 0xa05   : > { %v12022_v36 = vpop.permute.xlu1 %7619  ;;  %v5014_v33 = vmul.f32 %v13437_v6, %v4786_v42  ;;  %v13445_v62 = vld [vmem:[#allocation158_spill] sm:$0xff]  ;;  %v12064_v6 = vld [vmem:[#allocation3 + $0xb1] sm:$0xff] }
 0xa06   : > { %7914 = vrot.lane.b32.xlu0 %v7913_v14, %s8422_s23  ;;  %v4911_v14 = vmul.f32 %v13439_v52, %v12010_v51  ;;  %v12054_v51 = vld [vmem:[#allocation3 + $0x99] sm:$0xff]  ;;  %13448 = vst [vmem:[#allocation34_spill] sm:$0xff] %v12064_v6 }
 0xa07   : > { %7909 = vrot.lane.b32.xlu1 %v7908_v1, %s13403_s22  ;;  %13443 = vst [vmem:[#allocation32_spill] sm:$0xff] %v12054_v51  ;;  %v7938_v59 = vpack.i.bf16 %v4981_v32, %v12054_v51 }
 0xa08   : > { %v12032_v0 = vpop.permute.xlu0 %7634  ;;  %v7928_v37 = vpack.i.bf16 %v4911_v14, %v12030_v53  ;;  %v13447_v14 = vld [vmem:[#allocation169_spill] sm:$0xff] }
 0xa09   : > { %13436 = vst [vmem:[#allocation33_spill] sm:$0xff] %v12032_v0  ;;  %v12036_v17 = vpop.permute.xlu1 %7629  ;;  %v4913_v53 = vmul.f32 %v13447_v14, %v12040_v56  ;;  %v4983_v32 = vmul.f32 %v13447_v14, %v12064_v6  ;;  %v4927_v0 = vld [vmem:[#allocation3 + $0x10f] sm:$0xff] }
 0xa0a   : > { %13438 = vst [vmem:[#allocation189_spill] sm:$0xff] %v12036_v17  ;;  %7919 = vrot.lane.b32.xlu0 %v7918_v26, %s8430_s26  ;;  %v4787_v26 = vld [vmem:[#allocation3 + $0xaf] sm:$0xff] }
 0xa0b   : > { %7924 = vrot.lane.b32.xlu1 %v7923_v46, %s8431_s19 }
 0xa0c   : > { %v12044_v1 = vpop.permute.xlu0 %7644 }
 0xa0d   : > { %13441 = vst [vmem:[#allocation35_spill] sm:$0xff] %v12044_v1  ;;  %v12048_v39 = vpop.permute.xlu1 %7639  ;;  %v4946_v1 = vmul.f32 %v13445_v62, %v4786_v42 }
 0xa0e   : > { %13442 = vst [vmem:[#allocation17_spill] sm:$0xff] %v12048_v39  ;;  %7934 = vrot.lane.b32.xlu0 %v7933_v22, %s8422_s23  ;;  %v7943_v39 = vpack.i.bf16 %v4787_v26, %v5014_v33  ;;  %v4788_v22 = vld [vmem:[#allocation3 + $0xb7] sm:$0xff]  ;;  %v7948_v33 = vpack.i.bf16 %v4913_v53, %v12054_v51  ;;  %v13455_v53 = vld [vmem:[#allocation175_spill] sm:$0xff] }
 0xa0f   : > { %7929 = vrot.lane.b32.xlu1 %v7928_v37, %s13403_s22  ;;  %v4915_v51 = vmul.f32 %v13455_v53, %v12064_v6  ;;  %v12099_v6 = vld [vmem:[#allocation3 + $0xb9] sm:$0xff] }
 0xa10   : > { %v12056_v46 = vpop.permute.xlu0 %7654  ;;  %13458 = vst [vmem:[#allocation29_spill] sm:$0xff] %v12099_v6 }
 0xa11   : > { %13444 = vst [vmem:[#allocation20_spill] sm:$0xff] %v12056_v46  ;;  %v12060_v52 = vpop.permute.xlu1 %7649  ;;  %v7953_v46 = vpack.i.bf16 %v4787_v26, %v4946_v1  ;;  %v13453_v26 = vld [vmem:[#allocation167_spill] sm:$0xff] }
 0xa12   : > { %13446 = vst [vmem:[#allocation119_spill] sm:$0xff] %v12060_v52  ;;  %7939 = vrot.lane.b32.xlu0 %v7938_v59, %s8430_s26  ;;  %v5016_v52 = vmul.f32 %v13445_v62, %v4788_v22  ;;  %v12078_v59 = vld [vmem:[#allocation3 + $0xa9] sm:$0xff]  ;;  %v4885_v62 = vld [vmem:[#allocation3 + $0xc1] sm:$0xff] }
 0xa13   : > { %7944 = vrot.lane.b32.xlu1 %v7943_v39, %s8431_s19  ;;  %13451 = vst [vmem:[#allocation31_spill] sm:$0xff] %v12078_v59  ;;  %v4789_v39 = vld [vmem:[#allocation3 + $0xbf] sm:$0xff]  ;;  %v7958_v1 = vpack.i.bf16 %v4983_v32, %v12078_v59  ;;  %v4985_v15 = vmul.f32 %v13455_v53, %v4885_v62  ;;  %v7968_v20 = vpack.i.bf16 %v4915_v51, %v12078_v59  ;;  %v4792_v59 = vld [vmem:[#allocation3 + $0xd7] sm:$0xff] }
 0xa14   : > { %v12068_v37 = vpop.permute.xlu0 %7664 }
 0xa15   : > { %13449 = vst [vmem:[#allocation27_spill] sm:$0xff] %v12068_v37  ;;  %v12072_v42 = vpop.permute.xlu1 %7659  ;;  %v4948_v37 = vmul.f32 %v13453_v26, %v4788_v22 }
 0xa16   : > { %13450 = vst [vmem:[#allocation36_spill] sm:$0xff] %v12072_v42  ;;  %7954 = vrot.lane.b32.xlu0 %v7953_v46, %s8422_s23  ;;  %v7963_v42 = vpack.i.bf16 %v4789_v39, %v5016_v52  ;;  %v4790_v46 = vld [vmem:[#allocation3 + $0xc7] sm:$0xff] }
 0xa17   : > { %7949 = vrot.lane.b32.xlu1 %v7948_v33, %s13403_s22  ;;  %v5018_v52 = vmul.f32 %v13453_v26, %v4790_v46 }
 0xa18   : > { %v12080_v56 = vpop.permute.xlu0 %7674 }
 0xa19   : > { %13452 = vst [vmem:[#allocation25_spill] sm:$0xff] %v12080_v56  ;;  %v12084_v14 = vpop.permute.xlu1 %7669  ;;  %v7973_v56 = vpack.i.bf16 %v4789_v39, %v4948_v37  ;;  %v13460_v37 = vld [vmem:[#allocation179_spill] sm:$0xff] }
 0xa1a   : > { %13454 = vst [vmem:[#allocation45_spill] sm:$0xff] %v12084_v14  ;;  %7959 = vrot.lane.b32.xlu0 %v7958_v1, %s8430_s26  ;;  %v4917_v39 = vmul.f32 %v13460_v37, %v4885_v62  ;;  %v13462_v14 = vld [vmem:[#allocation173_spill] sm:$0xff] }
 0xa1b   : > { %7964 = vrot.lane.b32.xlu1 %v7963_v42, %s8431_s19  ;;  %v4791_v42 = vld [vmem:[#allocation3 + $0xcf] sm:$0xff]  ;;  %v4950_v51 = vmul.f32 %v13462_v14, %v4790_v46  ;;  %v5020_v26 = vmul.f32 %v13462_v14, %v4792_v59 }
 0xa1c   : > { %v12090_v33 = vpop.permute.xlu0 %7684 }
 0xa1d   : > { %13456 = vst [vmem:[#allocation38_spill] sm:$0xff] %v12090_v33  ;;  %v12093_v32 = vpop.permute.xlu1 %7679  ;;  %v7978_v33 = vpack.i.bf16 %v4985_v15, %v12099_v6  ;;  %v7993_v62 = vpack.i.bf16 %v4791_v42, %v4950_v51 }
 0xa1e   : > { %13457 = vst [vmem:[#allocation47_spill] sm:$0xff] %v12093_v32  ;;  %7974 = vrot.lane.b32.xlu0 %v7973_v56, %s8422_s23  ;;  %v7983_v32 = vpack.i.bf16 %v4791_v42, %v5018_v52  ;;  %v4887_v56 = vld [vmem:[#allocation3 + $0xd1] sm:$0xff]  ;;  %v4820_v52 = vmul.f32 %v13462_v14, %v4788_v22 }
 0xa1f   : > { %7969 = vrot.lane.b32.xlu1 %v7968_v20, %s13403_s22  ;;  %v13468_v42 = vld [vmem:[#allocation180_spill] sm:$0xff] }
 0xa20   : > { %v12101_v1 = vpop.permute.xlu0 %7694  ;;  %v4952_v51 = vmul.f32 %v13468_v42, %v4792_v59 }
 0xa21   : > { %13459 = vst [vmem:[#allocation42_spill] sm:$0xff] %v12101_v1  ;;  %v12105_v53 = vpop.permute.xlu1 %7689  ;;  %v7988_v1 = vpack.i.bf16 %v4917_v39, %v12099_v6 }
 0xa22   : > { %13461 = vst [vmem:[#allocation30_spill] sm:$0xff] %v12105_v53  ;;  %7979 = vrot.lane.b32.xlu0 %v7978_v33, %s8430_s26  ;;  %v4987_v53 = vmul.f32 %v13460_v37, %v4887_v56  ;;  %v4793_v33 = vld [vmem:[#allocation3 + $0xdf] sm:$0xff]  ;;  %v4822_v37 = vmul.f32 %v13468_v42, %v4790_v46 }
 0xa23   : > { %7984 = vrot.lane.b32.xlu1 %v7983_v32, %s8431_s19  ;;  %v8003_v6 = vpack.i.bf16 %v4793_v33, %v5020_v26  ;;  %v8013_v46 = vpack.i.bf16 %v4793_v33, %v4952_v51 }
 0xa24   : > { %v12110_v20 = vpop.permute.xlu0 %7704 }
 0xa25   : > { %13463 = vst [vmem:[#allocation128_spill] sm:$0xff] %v12110_v20  ;;  %v12114_v15 = vpop.permute.xlu1 %7699  ;;  %v12126_v20 = vld [vmem:[#allocation3 + $0xc9] sm:$0xff] }
 0xa26   : > { %13464 = vst [vmem:[#allocation44_spill] sm:$0xff] %v12114_v15  ;;  %v7701_v28 = vunpack.i.l.bf16 %v12114_v15  ;;  %7989 = vrot.lane.b32.xlu0 %v7988_v1, %s13403_s22  ;;  %13467 = vst [vmem:[#allocation43_spill] sm:$0xff] %v12126_v20  ;;  %v7998_v1 = vpack.i.bf16 %v4987_v53, %v12126_v20 }
 0xa27   : > { %7994 = vrot.lane.b32.xlu1 %v7993_v62, %s8422_s23  ;;  %v13470_v62 = vld [vmem:[#allocation184_spill] sm:$0xff] }
 0xa28   : > { %v12122_v32 = vsel %vm3259_vm2, %v4820_v52, %v7701_v28  ;;  %v12124_v39 = vpop.permute.xlu0 %7714  ;;  %v4919_v15 = vmul.f32 %v13470_v62, %v4887_v56  ;;  %v4794_v28 = vld [vmem:[#allocation3 + $0xe7] sm:$0xff] }
 0xa29   : > { %13465 = vst [vmem:[#allocation39_spill] sm:$0xff] %v12122_v32  ;;  %13466 = vst [vmem:[#allocation46_spill] sm:$0xff] %v12124_v39  ;;  %v7716_v14 = vunpack.i.l.bf16 %v12124_v39  ;;  %v12131_v22 = vpop.permute.xlu1 %7709  ;;  %v4989_v39 = vmul.f32 %v13470_v62, %v4889_v13  ;;  %v5022_v56 = vmul.f32 %v13468_v42, %v4794_v28  ;;  %v13477_v62 = vld [vmem:[#allocation187_spill] sm:$0xff] }
 0xa2a   : > { %13469 = vst [vmem:[#allocation37_spill] sm:$0xff] %v12131_v22  ;;  %8004 = vrot.lane.b32.xlu0 %v8003_v6, %s8431_s19  ;;  %v8008_v53 = vpack.i.bf16 %v4919_v15, %v12126_v20  ;;  %v4888_v6 = vld [vmem:[#allocation3 + $0xd9] sm:$0xff]  ;;  %v4824_v15 = vmul.f32 %v13477_v62, %v4792_v59 }
 0xa2b   : > { %v12137_v52 = vsel %vm3259_vm2, %v4822_v37, %v7716_v14  ;;  %7999 = vrot.lane.b32.xlu1 %v7998_v1, %s8430_s26  ;;  %v4795_v14 = vld [vmem:[#allocation3 + $0xef] sm:$0xff]  ;;  %v8018_v1 = vpack.i.bf16 %v4989_v39, %v4888_v6  ;;  %v4796_v22 = vld [vmem:[#allocation3 + $0xf7] sm:$0xff] }
 0xa2c   : > { %13471 = vst [vmem:[#allocation57_spill] sm:$0xff] %v12137_v52  ;;  %v12140_v26 = vpop.permute.xlu0 %7724  ;;  %v13475_v52 = vld [vmem:[#allocation190_spill] sm:$0xff]  ;;  %v8023_v51 = vpack.i.bf16 %v4795_v14, %v5022_v56  ;;  %v5024_v56 = vmul.f32 %v13477_v62, %v4796_v22 }
 0xa2d   : > { %13472 = vst [vmem:[#allocation48_spill] sm:$0xff] %v12140_v26  ;;  %v12143_v32 = vpop.permute.xlu1 %7719  ;;  %v4921_v26 = vmul.f32 %v13475_v52, %v4889_v13 }
 0xa2e   : > { %13473 = vst [vmem:[#allocation59_spill] sm:$0xff] %v12143_v32  ;;  %8014 = vrot.lane.b32.xlu0 %v8013_v46, %s8422_s23  ;;  %v4954_v32 = vmul.f32 %v13477_v62, %v4794_v28  ;;  %v4891_v46 = vld [vmem:[#allocation3 + $0xf1] sm:$0xff]  ;;  %v4890_v62 = vld [vmem:[#allocation3 + $0xe9] sm:$0xff] }
 0xa2f   : > { %8009 = vrot.lane.b32.xlu1 %v8008_v53, %s13403_s22  ;;  %v8028_v13 = vpack.i.bf16 %v4921_v26, %v4888_v6  ;;  %v4766_v26 = vld [vmem:[#allocation3 + $0x7] sm:$0xff] }
 0xa30   : > { %v12149_v37 = vpop.permute.xlu0 %7734 }
 0xa31   : > { %13474 = vst [vmem:[#allocation41_spill] sm:$0xff] %v12149_v37  ;;  %v12152_v33 = vpop.permute.xlu1 %7729  ;;  %v13480_v37 = vld [vmem:[#allocation192_spill] sm:$0xff] }
 0xa32   : > { %13476 = vst [vmem:[#allocation52_spill] sm:$0xff] %v12152_v33  ;;  %v7731_v42 = vunpack.i.l.bf16 %v12152_v33  ;;  %8019 = vrot.lane.b32.xlu0 %v8018_v1, %s8430_s26  ;;  %v4826_v20 = vmul.f32 %v13480_v37, %v4794_v28  ;;  %v8033_v33 = vpack.i.bf16 %v4795_v14, %v4954_v32  ;;  %v4991_v1 = vmul.f32 %v13475_v52, %v4891_v46  ;;  %v4893_v14 = vld [vmem:[#allocation3 + $0x101] sm:$0xff] }
 0xa33   : > { %8024 = vrot.lane.b32.xlu1 %v8023_v51, %s8431_s19 }
 0xa34   : > { %v12160_v53 = vsel %vm3259_vm2, %v4824_v15, %v7731_v42  ;;  %v12162_v39 = vpop.permute.xlu0 %7744  ;;  %v4797_v15 = vld [vmem:[#allocation3 + $0xff] sm:$0xff]  ;;  %v4956_v42 = vmul.f32 %v13480_v37, %v4796_v22  ;;  %v8038_v32 = vpack.i.bf16 %v4991_v1, %v4890_v62 }
 0xa35   : > { %13478 = vst [vmem:[#allocation40_spill] sm:$0xff] %v12160_v53  ;;  %13479 = vst [vmem:[#allocation137_spill] sm:$0xff] %v12162_v39  ;;  %v7746_v34 = vunpack.i.l.bf16 %v12162_v39  ;;  %v12167_v59 = vpop.permute.xlu1 %7739  ;;  %v8043_v28 = vpack.i.bf16 %v4797_v15, %v5024_v56 }
 0xa36   : > { %13481 = vst [vmem:[#allocation54_spill] sm:$0xff] %v12167_v59  ;;  %8029 = vrot.lane.b32.xlu0 %v8028_v13, %s13403_s22  ;;  %v4798_v13 = vmul.f32 %v13401_v7, %v4766_v26  ;;  %v8053_v56 = vpack.i.bf16 %v4797_v15, %v4956_v42  ;;  %v4767_v59 = vld [vmem:[#allocation3 + $0xf] sm:$0xff]  ;;  %v4892_v15 = vld [vmem:[#allocation3 + $0xf9] sm:$0xff]  ;;  %v12199_v42 = vmul.f32 %v13402_v43, %v11792_v9 }
 0xa37   : > { %v12172_v51 = vsel %vm3259_vm2, %v4826_v20, %v7746_v34  ;;  %8034 = vrot.lane.b32.xlu1 %v8033_v33, %s8422_s23  ;;  %v4926_v34 = vld [vmem:[#allocation3 + $0x107] sm:$0xff]  ;;  %v7537_v20 = vunpack.i.h.bf16 %v11831_v40  ;;  %v7536_v33 = vunpack.i.l.bf16 %v11831_v40  ;;  %v13489_v40 = vld [vmem:[#allocation193_spill] sm:$0xff] }
 0xa38   : > { %13482 = vst [vmem:[#allocation51_spill] sm:$0xff] %v12172_v51  ;;  %v12175_v6 = vpop.permute.xlu0 %7754  ;;  %v4962_v26 = vld [vmem:[#allocation3 + $0x109] sm:$0xff]  ;;  %v4925_v11 = vmul.f32 %v13489_v40, %v4893_v14 }
 0xa39   : > { %13483 = vst [vmem:[#allocation56_spill] sm:$0xff] %v12175_v6  ;;  %v12178_v39 = vpop.permute.xlu1 %7749  ;;  %v13486_v6 = vld [vmem:[#allocation191_spill] sm:$0xff] }
 0xa3a   : > { %13484 = vst [vmem:[#allocation55_spill] sm:$0xff] %v12178_v39  ;;  %8044 = vrot.lane.b32.xlu0 %v8043_v28, %s8431_s19  ;;  %v4993_v52 = vmul.f32 %v13486_v6, %v4893_v14  ;;  %v4923_v1 = vmul.f32 %v13486_v6, %v4891_v46  ;;  %v13488_v28 = vld [vmem:[#allocation194_spill] sm:$0xff]  ;;  %v5903_v46 = vsel %vm3259_vm2, %v4767_v59, %v7537_v20  ;;  %v7542_v59 = vunpack.i.h.bf16 %v11872_v5 }
 0xa3b   : > { %8039 = vrot.lane.b32.xlu1 %v8038_v32, %s8430_s26  ;;  %v4828_v53 = vmul.f32 %v13488_v28, %v4796_v22  ;;  %v5026_v32 = vmul.f32 %v13480_v37, %v4926_v34  ;;  %v5902_v22 = vsel %vm3259_vm2, %v4798_v13, %v7536_v33  ;;  %v8068_v9 = vpack.i.bf16 %v4925_v11, %v4892_v15 }
 0xa3c   : > { %v12185_v51 = vpop.permute.xlu0 %7764  ;;  %v8048_v14 = vpack.i.bf16 %v4923_v1, %v4890_v62  ;;  %v4996_v1 = vld [vmem:[#allocation3 + $0x117] sm:$0xff] }
 0xa3d   : > { %13485 = vst [vmem:[#allocation49_spill] sm:$0xff] %v12185_v51  ;;  %v12188_v39 = vpop.permute.xlu1 %7759  ;;  %v8063_v43 = vpack.i.bf16 %v4927_v0, %v5026_v32 }
 0xa3e   : > { %13487 = vst [vmem:[#allocation69_spill] sm:$0xff] %v12188_v39  ;;  %v7761_v7 = vunpack.i.l.bf16 %v12188_v39  ;;  %8054 = vrot.lane.b32.xlu0 %v8053_v56, %s8422_s23  ;;  %v8058_v56 = vpack.i.bf16 %v4993_v52, %v4892_v15  ;;  %v7592_v52 = vunpack.i.h.bf16 %v11972_v24 }
 0xa3f   : > { %5640 = vrot.lane.b32.xlu1 %v4962_v26, %s8430_s26  ;;  %v4958_v26 = vmul.f32 %v13488_v28, %v4926_v34 }
 0xa40   : > { %v12204_v51 = vsel %vm3259_vm2, %v4828_v53, %v7761_v7  ;;  %v7775_v6 = vpop.permute.xlu0 %7774  ;;  %v7591_v53 = vunpack.i.l.bf16 %v11972_v24 }
 0xa41   : > { %v7770_v39 = vpop.permute.xlu1 %7769  ;;  %v7777_v37 = vunpack.i.h.bf16 %v7775_v6  ;;  %v7776_v49 = vunpack.i.l.bf16 %v7775_v6 }
 0xa42   : > { %v7772_v17 = vunpack.i.h.bf16 %v7770_v39  ;;  %v7771_v4 = vunpack.i.l.bf16 %v7770_v39  ;;  %8059 = vrot.lane.b32.xlu0 %v8058_v56, %s8430_s26  ;;  %v4800_v56 = vmul.f32 %v13404_v19, %v11745_v2  ;;  %v7547_v19 = vunpack.i.h.bf16 %v11855_v63 }
 0xa43   : > { %8049 = vrot.lane.b32.xlu1 %v8048_v14, %s13403_s22  ;;  %v8073_v14 = vpack.i.bf16 %v4927_v0, %v4958_v26  ;;  %v7602_v26 = vunpack.i.h.bf16 %v11990_v61 }
 0xa44   : > { %v5935_v6 = vsel %vm3325_vm9, %v5903_v46, %v7772_v17  ;;  %v5934_v62 = vsel %vm3325_vm9, %v5902_v22, %v7771_v4  ;;  %v7780_v39 = vpop.permute.xlu0 %7779  ;;  %v7541_v17 = vunpack.i.l.bf16 %v11872_v5  ;;  %v7596_v4 = vunpack.i.l.bf16 %v11967_v60 }
 0xa45   : > { %v5967_v13 = vsel %vm3391_vm12, %v5935_v6, %v7777_v37  ;;  %v5966_v11 = vsel %vm3391_vm12, %v5934_v62, %v7776_v49  ;;  %v7785_v34 = vpop.permute.xlu1 %7784  ;;  %v7782_v20 = vunpack.i.h.bf16 %v7780_v39  ;;  %v7781_v33 = vunpack.i.l.bf16 %v7780_v39  ;;  %v4963_v49 = vld [vmem:[#allocation3 + $0x111] sm:$0xff] }
 0xa46   : > { %v7787_v7 = vunpack.i.h.bf16 %v7785_v34  ;;  %v7786_v32 = vunpack.i.l.bf16 %v7785_v34  ;;  %v5998_v15 = vsel %vm3457_vm15, %v5966_v11, %v7591_v53  ;;  %8069 = vrot.lane.b32.xlu0 %v8068_v9, %s13403_s22  ;;  %v5999_v24 = vsel %vm3457_vm15, %v5967_v13, %v7592_v52 }
 0xa47   : > { %v6031_v46 = vsel %vm6030_vm0, %v5998_v15, %v7781_v33  ;;  %8064 = vrot.lane.b32.xlu1 %v8063_v43, %s8431_s19  ;;  %v6032_v22 = vsel %vm6030_vm0, %v5999_v24, %v7782_v20  ;;  %v5028_v9 = vmul.f32 %v13488_v28, %v4996_v1  ;;  %v7597_v43 = vunpack.i.h.bf16 %v11967_v60  ;;  %v5030_v1 = vld [vmem:[#allocation3 + $0x118] sm:$0xff] }
 0xa48   : > { %v7795_v37 = vpop.permute.xlu0 %7794  ;;  %v6064_v52 = vsel %vm6063_vm1, %v6031_v46, %v7786_v32  ;;  %v6065_v39 = vsel %vm6063_vm1, %v6032_v22, %v7787_v7  ;;  %v4995_v2 = vmul.f32 %v13489_v40, %v4963_v49  ;;  %v5904_v0 = vsel %vm3259_vm2, %v4800_v56, %v7541_v17  ;;  %v5031_v56 = vld [vmem:[#allocation3 + $0x120] sm:$0xff] }
 0xa49   : > { %v7790_v53 = vpop.permute.xlu1 %7789  ;;  %v7797_v5 = vunpack.i.h.bf16 %v7795_v37  ;;  %v7796_v6 = vunpack.i.l.bf16 %v7795_v37  ;;  %v6097_v62 = vsel %vm6096_vm3, %v6064_v52, %v7596_v4  ;;  %v5905_v28 = vsel %vm3259_vm2, %v11774_v16, %v7542_v59  ;;  %v4997_v52 = vld [vmem:[#allocation3 + $0x11f] sm:$0xff] }
 0xa4a   : > { %v7792_v13 = vunpack.i.h.bf16 %v7790_v53  ;;  %v7791_v11 = vunpack.i.l.bf16 %v7790_v53  ;;  %5768 = vrot.lane.b32.xlu0 %v5028_v9, %s8431_s19  ;;  %6314 = vmatmul.mubr.f32.vlgmr.msra.gmra.mrb[2].mxu1 %v6097_v62  ;;  %v7601_v60 = vunpack.i.l.bf16 %v11990_v61  ;;  %v6098_v7 = vsel %vm6096_vm3, %v6065_v39, %v7597_v43 }
 0xa4b   : > { %8074 = vrot.lane.b32.xlu1 %v8073_v14, %s8422_s23  ;;  %7081 = vmatprep.mubr.msk.f32.mxu1 %vm3259_vm2, %v12199_v42  ;;  %v7546_v46 = vunpack.i.l.bf16 %v11855_v63  ;;  %v7606_v49 = vunpack.i.l.bf16 %v11985_v57  ;;  %v4802_v14 = vmul.f32 %v13406_v29, %v11769_v10  ;;  %v5037_v63 = vmul.f32 %v13405_v50, %v11823_v48 }
 0xa4c   : > { %v5936_v34 = vsel %vm3325_vm9, %v5904_v0, %v7791_v11  ;;  %v5937_v20 = vsel %vm3325_vm9, %v5905_v28, %v7792_v13  ;;  %v7800_v33 = vpop.permute.xlu0 %7799  ;;  %v7607_v43 = vunpack.i.h.bf16 %v11985_v57  ;;  %v5907_v29 = vsel %vm3259_vm2, %v11788_v12, %v7547_v19 }
 0xa4d   : > { %v5969_v32 = vsel %vm3391_vm12, %v5937_v20, %v7797_v5  ;;  %v5968_v16 = vsel %vm3391_vm12, %v5936_v34, %v7796_v6  ;;  %v7805_v59 = vpop.permute.xlu1 %7804  ;;  %v7802_v15 = vunpack.i.h.bf16 %v7800_v33  ;;  %v7801_v24 = vunpack.i.l.bf16 %v7800_v33 }
 0xa4e   : > { %v7807_v17 = vunpack.i.h.bf16 %v7805_v59  ;;  %v7806_v4 = vunpack.i.l.bf16 %v7805_v59  ;;  %5642 = vrot.lane.b32.xlu0 %v4995_v2, %s8430_s26  ;;  %6319 = vmatmul.mubr.f32.gmra.mrb[4].mxu1 %v6098_v7  ;;  %v6000_v61 = vsel %vm3457_vm15, %v5968_v16, %v7601_v60  ;;  %v6001_v42 = vsel %vm3457_vm15, %v5969_v32, %v7602_v26 }
 0xa4f   : > { %5866 = vrot.lane.b32.xlu1 %v5030_v1, %s8429_s25  ;;  %7082 = vmatprep.mubr.msk.f32.mxu1 %vm3259_vm2, %v11845_v23  ;;  %v6033_v22 = vsel %vm6030_vm0, %v6000_v61, %v7801_v24  ;;  %v6034_v37 = vsel %vm6030_vm0, %v6001_v42, %v7802_v15  ;;  %v5906_v10 = vsel %vm3259_vm2, %v4802_v14, %v7546_v46  ;;  %v7552_v50 = vunpack.i.h.bf16 %v11892_v38 }
 0xa50   : > { %v7815_v9 = vpop.permute.xlu0 %7814  ;;  %v6066_v53 = vsel %vm6063_vm1, %v6033_v22, %v7806_v4  ;;  %v6067_v39 = vsel %vm6063_vm1, %v6034_v37, %v7807_v17  ;;  %v7612_v48 = vunpack.i.h.bf16 %v12006_v27  ;;  %v7611_v57 = vunpack.i.l.bf16 %v12006_v27 }
 0xa51   : > { %v7810_v5 = vpop.permute.xlu1 %7809  ;;  %v7817_v6 = vunpack.i.h.bf16 %v7815_v9  ;;  %v7816_v62 = vunpack.i.l.bf16 %v7815_v9  ;;  %v6099_v23 = vsel %vm6096_vm3, %v6066_v53, %v7606_v49  ;;  %v6100_v26 = vsel %vm6096_vm3, %v6067_v39, %v7607_v43 }
 0xa52   : > { %v7812_v13 = vunpack.i.h.bf16 %v7810_v5  ;;  %v7811_v11 = vunpack.i.l.bf16 %v7810_v5  ;;  %6324 = vmatmul.mubr.f32.gmra.mrb[6].mxu1 %v6099_v23  ;;  %5868 = vrot.lane.b32.xlu0 %v5031_v56, %s8429_s25  ;;  %v7551_v32 = vunpack.i.l.bf16 %v11892_v38  ;;  %v7616_v16 = vunpack.i.l.bf16 %v12002_v44 }
 0xa53   : > { %5770 = vrot.lane.b32.xlu1 %v4997_v52, %s8431_s19  ;;  %7083 = vmatprep.mubr.msk.f32.mxu1 %vm3259_vm2, %v5037_v63  ;;  %v4804_v24 = vmul.f32 %v13408_v18, %v11797_v8  ;;  %v5039_v61 = vmul.f32 %v13407_v30, %v11859_v54  ;;  %v7557_v22 = vunpack.i.h.bf16 %v11881_v47  ;;  %v7617_v56 = vunpack.i.h.bf16 %v12002_v44 }
 0xa54   : > { %v5939_v2 = vsel %vm3325_vm9, %v5907_v29, %v7812_v13  ;;  %v5938_v0 = vsel %vm3325_vm9, %v5906_v10, %v7811_v11  ;;  %v7820_v28 = vpop.permute.xlu0 %7819  ;;  %v7556_v8 = vunpack.i.l.bf16 %v11881_v47  ;;  %v5909_v18 = vsel %vm3259_vm2, %v11816_v58, %v7552_v50 }
 0xa55   : > { %v5971_v60 = vsel %vm3391_vm12, %v5939_v2, %v7817_v6  ;;  %v5970_v12 = vsel %vm3391_vm12, %v5938_v0, %v7816_v62  ;;  %v7825_v19 = vpop.permute.xlu1 %7824  ;;  %v7822_v34 = vunpack.i.h.bf16 %v7820_v28  ;;  %v7821_v20 = vunpack.i.l.bf16 %v7820_v28 }
 0xa56   : > { %v7827_v33 = vunpack.i.h.bf16 %v7825_v19  ;;  %v7826_v1 = vunpack.i.l.bf16 %v7825_v19  ;;  %6329 = vmatmul.mubr.f32.gmra.mrb[8].mxu1 %v6100_v26  ;;  %v6002_v7 = vsel %vm3457_vm15, %v5970_v12, %v7611_v57  ;;  %v6003_v27 = vsel %vm3457_vm15, %v5971_v60, %v7612_v48 }
 0xa57   : > { %7084 = vmatprep.mubr.msk.f32.mxu1 %vm3259_vm2, %v11883_v25  ;;  %v6035_v59 = vsel %vm6030_vm0, %v6002_v7, %v7821_v20  ;;  %v6036_v15 = vsel %vm6030_vm0, %v6003_v27, %v7822_v34  ;;  %v5908_v30 = vsel %vm3259_vm2, %v4804_v24, %v7551_v32  ;;  %v7622_v54 = vunpack.i.h.bf16 %v12022_v36  ;;  %v13490_v34 = vld [vmem:[#allocation11_spill] sm:$0xff] }
 0xa58   : > { %v7835_v17 = vpop.permute.xlu0 %7834  ;;  %v6068_v4 = vsel %vm6063_vm1, %v6035_v59, %v7826_v1  ;;  %v6069_v25 = vsel %vm6063_vm1, %v6036_v15, %v7827_v33  ;;  %v7621_v9 = vunpack.i.l.bf16 %v12022_v36  ;;  %v7627_v13 = vunpack.i.h.bf16 %v12018_v45 }
 0xa59   : > { %v7830_v42 = vpop.permute.xlu1 %7829  ;;  %v7837_v38 = vunpack.i.h.bf16 %v7835_v17  ;;  %v7836_v46 = vunpack.i.l.bf16 %v7835_v17  ;;  %v6101_v49 = vsel %vm6096_vm3, %v6068_v4, %v7616_v16  ;;  %v6102_v63 = vsel %vm6096_vm3, %v6069_v25, %v7617_v56  ;;  %v13493_v25 = vld [vmem:[#allocation110_spill] sm:$0xff] }
 0xa5a   : > { %v7832_v37 = vunpack.i.h.bf16 %v7830_v42  ;;  %v7831_v14 = vunpack.i.l.bf16 %v7830_v42  ;;  %6334 = vmatmul.mubr.f32.gmra.mrb[10].mxu1 %v6101_v49  ;;  %v7626_v11 = vunpack.i.l.bf16 %v12018_v45  ;;  %v4806_v50 = vmul.f32 %v13412_v31, %v11826_v21 }
 0xa5b   : > { %7085 = vmatprep.mubr.msk.f32.mxu1 %vm3259_vm2, %v5039_v61  ;;  %v5041_v2 = vmul.f32 %v13409_v3, %v11897_v55  ;;  %v5911_v21 = vsel %vm3259_vm2, %v11849_v35, %v7557_v22  ;;  %v7562_v20 = vunpack.i.h.bf16 %v13490_v34  ;;  %v7561_v3 = vunpack.i.l.bf16 %v13490_v34  ;;  %v13491_v55 = vld [vmem:[#allocation189_spill] sm:$0xff] }
 0xa5c   : > { %v5940_v52 = vsel %vm3325_vm9, %v5908_v30, %v7831_v14  ;;  %v5941_v44 = vsel %vm3325_vm9, %v5909_v18, %v7832_v37  ;;  %v7840_v53 = vpop.permute.xlu0 %7839  ;;  %v5910_v31 = vsel %vm3259_vm2, %v4806_v50, %v7556_v8  ;;  %v7632_v33 = vunpack.i.h.bf16 %v13491_v55  ;;  %v13494_v37 = vld [vmem:[#allocation21_spill] sm:$0xff]  ;;  %v13495_v14 = vld [vmem:[#allocation122_spill] sm:$0xff] }
 0xa5d   : > { %v5973_v47 = vsel %vm3391_vm12, %v5941_v44, %v7837_v38  ;;  %v5972_v5 = vsel %vm3391_vm12, %v5940_v52, %v7836_v46  ;;  %v7845_v58 = vpop.permute.xlu1 %7844  ;;  %v7842_v6 = vunpack.i.h.bf16 %v7840_v53  ;;  %v7841_v62 = vunpack.i.l.bf16 %v7840_v53  ;;  %v13492_v38 = vld [vmem:[#allocation33_spill] sm:$0xff] }
 0xa5e   : > { %v7847_v23 = vunpack.i.h.bf16 %v7845_v58  ;;  %v7846_v39 = vunpack.i.l.bf16 %v7845_v58  ;;  %6339 = vmatmul.mubr.f32.gmra.mrb[12].mxu1 %v6102_v63  ;;  %v6004_v43 = vsel %vm3457_vm15, %v5972_v5, %v7621_v9  ;;  %v6005_v36 = vsel %vm3457_vm15, %v5973_v47, %v7622_v54  ;;  %v13496_v54 = vld [vmem:[#allocation22_spill] sm:$0xff]  ;;  %v13497_v9 = vld [vmem:[#allocation125_spill] sm:$0xff] }
 0xa5f   : > { %7086 = vmatprep.mubr.msk.f32.mxu1 %vm3259_vm2, %v11921_v41  ;;  %v6037_v10 = vsel %vm6030_vm0, %v6004_v43, %v7841_v62  ;;  %v6038_v29 = vsel %vm6030_vm0, %v6005_v36, %v7842_v6  ;;  %v7631_v1 = vunpack.i.l.bf16 %v13491_v55  ;;  %v7637_v46 = vunpack.i.h.bf16 %v13492_v38  ;;  %v13499_v36 = vld [vmem:[#allocation14_spill] sm:$0xff] }
 0xa60   : > { %v7855_v48 = vpop.permute.xlu0 %7854  ;;  %v6070_v57 = vsel %vm6063_vm1, %v6037_v10, %v7846_v39  ;;  %v6071_v0 = vsel %vm6063_vm1, %v6038_v29, %v7847_v23  ;;  %v7636_v49 = vunpack.i.l.bf16 %v13492_v38  ;;  %v4808_v8 = vmul.f32 %v13495_v14, %v13494_v37  ;;  %v13498_v23 = vld [vmem:[#allocation16_spill] sm:$0xff]  ;;  %v13500_v10 = vld [vmem:[#allocation17_spill] sm:$0xff]  ;;  %v13508_v37 = vld [vmem:[#allocation18_spill] sm:$0xff] }
 0xa61   : > { %v7850_v28 = vpop.permute.xlu1 %7849  ;;  %v7857_v45 = vunpack.i.h.bf16 %v7855_v48  ;;  %v7856_v26 = vunpack.i.l.bf16 %v7855_v48  ;;  %v6103_v41 = vsel %vm6096_vm3, %v6070_v57, %v7626_v11  ;;  %v6104_v60 = vsel %vm6096_vm3, %v6071_v0, %v7627_v13 }
 0xa62   : > { %v7852_v12 = vunpack.i.h.bf16 %v7850_v28  ;;  %v7851_v19 = vunpack.i.l.bf16 %v7850_v28  ;;  %6344 = vmatmul.mubr.f32.gmra.mrb[14].mxu1 %v6103_v41  ;;  %v5043_v52 = vmul.f32 %v13497_v9, %v13496_v54  ;;  %v7567_v39 = vunpack.i.h.bf16 %v13498_v23 }
 0xa63   : > { %7087 = vmatprep.mubr.msk.f32.mxu1 %vm3259_vm2, %v5041_v2  ;;  %v7566_v43 = vunpack.i.l.bf16 %v13498_v23  ;;  %v5913_v13 = vsel %vm3259_vm2, %v13499_v36, %v7562_v20  ;;  %v5912_v11 = vsel %vm3259_vm2, %v4808_v8, %v7561_v3  ;;  %v7642_v29 = vunpack.i.h.bf16 %v13500_v10  ;;  %v13502_v3 = vld [vmem:[#allocation26_spill] sm:$0xff] }
 0xa64   : > { %v5943_v7 = vsel %vm3325_vm9, %v5911_v21, %v7852_v12  ;;  %v5942_v27 = vsel %vm3325_vm9, %v5910_v31, %v7851_v19  ;;  %v7860_v32 = vpop.permute.xlu0 %7859  ;;  %v7641_v50 = vunpack.i.l.bf16 %v13500_v10  ;;  %v13501_v31 = vld [vmem:[#allocation35_spill] sm:$0xff]  ;;  %v7572_v14 = vunpack.i.h.bf16 %v13508_v37 }
 0xa65   : > { %v5975_v16 = vsel %vm3391_vm12, %v5943_v7, %v7857_v45  ;;  %v5974_v35 = vsel %vm3391_vm12, %v5942_v27, %v7856_v26  ;;  %v7865_v59 = vpop.permute.xlu1 %7864  ;;  %v7862_v15 = vunpack.i.h.bf16 %v7860_v32  ;;  %v7861_v24 = vunpack.i.l.bf16 %v7860_v32  ;;  %v13504_v7 = vld [vmem:[#allocation131_spill] sm:$0xff] }
 0xa66   : > { %v7867_v17 = vunpack.i.h.bf16 %v7865_v59  ;;  %v7866_v4 = vunpack.i.l.bf16 %v7865_v59  ;;  %6349 = vmatmul.mubr.f32.gmra.mrb[16].mxu1 %v6104_v60  ;;  %v6006_v61 = vsel %vm3457_vm15, %v5974_v35, %v7631_v1  ;;  %v6007_v42 = vsel %vm3457_vm15, %v5975_v16, %v7632_v33  ;;  %v13503_v1 = vld [vmem:[#allocation9_spill] sm:$0xff]  ;;  %v13505_v35 = vld [vmem:[#allocation15_spill] sm:$0xff]  ;;  %v13506_v59 = vld [vmem:[#allocation134_spill] sm:$0xff] }
 0xa67   : > { %7088 = vmatprep.mubr.msk.f32.mxu1 %vm3259_vm2, %v13493_v25  ;;  %v6039_v22 = vsel %vm6030_vm0, %v6006_v61, %v7861_v24  ;;  %v6040_v56 = vsel %vm6030_vm0, %v6007_v42, %v7862_v15  ;;  %v7647_v34 = vunpack.i.h.bf16 %v13501_v31  ;;  %v7646_v20 = vunpack.i.l.bf16 %v13501_v31  ;;  %v13507_v25 = vld [vmem:[#allocation8_spill] sm:$0xff] }
 0xa68   : > { %v7875_v18 = vpop.permute.xlu0 %7874  ;;  %v6072_v30 = vsel %vm6063_vm1, %v6039_v22, %v7866_v4  ;;  %v6073_v44 = vsel %vm6063_vm1, %v6040_v56, %v7867_v17  ;;  %v4810_v27 = vmul.f32 %v13504_v7, %v13503_v1  ;;  %v5045_v15 = vmul.f32 %v13506_v59, %v13505_v35  ;;  %v13517_v1 = vld [vmem:[#allocation24_spill] sm:$0xff] }
 0xa69   : > { %v7870_v53 = vpop.permute.xlu1 %7869  ;;  %v7877_v63 = vunpack.i.h.bf16 %v7875_v18  ;;  %v7876_v47 = vunpack.i.l.bf16 %v7875_v18  ;;  %v6105_v5 = vsel %vm6096_vm3, %v6072_v30, %v7636_v49  ;;  %v6106_v58 = vsel %vm6096_vm3, %v6073_v44, %v7637_v46  ;;  %v13509_v18 = vld [vmem:[#allocation119_spill] sm:$0xff] }
 0xa6a   : > { %v7872_v6 = vunpack.i.h.bf16 %v7870_v53  ;;  %v7871_v62 = vunpack.i.l.bf16 %v7870_v53  ;;  %6354 = vmatmul.mubr.f32.gmra.mrb[18].mxu1 %v6105_v5  ;;  %v5915_v22 = vsel %vm3259_vm2, %v13507_v25, %v7567_v39  ;;  %v5914_v56 = vsel %vm3259_vm2, %v4810_v27, %v7566_v43  ;;  %v13510_v43 = vld [vmem:[#allocation20_spill] sm:$0xff] }
 0xa6b   : > { %7089 = vmatprep.mubr.msk.f32.mxu1 %vm3259_vm2, %v5043_v52  ;;  %v7571_v8 = vunpack.i.l.bf16 %v13508_v37  ;;  %v7652_v30 = vunpack.i.h.bf16 %v13509_v18  ;;  %v7651_v54 = vunpack.i.l.bf16 %v13509_v18  ;;  %v7657_v36 = vunpack.i.h.bf16 %v13510_v43 }
 0xa6c   : > { %v5944_v48 = vsel %vm3325_vm9, %v5912_v11, %v7871_v62  ;;  %v5945_v57 = vsel %vm3325_vm9, %v5913_v13, %v7872_v6  ;;  %v7880_v2 = vpop.permute.xlu0 %7879  ;;  %v7656_v13 = vunpack.i.l.bf16 %v13510_v43  ;;  %v13511_v11 = vld [vmem:[#allocation13_spill] sm:$0xff]  ;;  %v5917_v7 = vsel %vm3259_vm2, %v13517_v1, %v7572_v14 }
 0xa6d   : > { %v5977_v0 = vsel %vm3391_vm12, %v5945_v57, %v7877_v63  ;;  %v5976_v28 = vsel %vm3391_vm12, %v5944_v48, %v7876_v47  ;;  %v7885_v45 = vpop.permute.xlu1 %7884  ;;  %v7882_v26 = vunpack.i.h.bf16 %v7880_v2  ;;  %v7881_v41 = vunpack.i.l.bf16 %v7880_v2  ;;  %v13513_v48 = vld [vmem:[#allocation140_spill] sm:$0xff] }
 0xa6e   : > { %v7887_v60 = vunpack.i.h.bf16 %v7885_v45  ;;  %v7886_v12 = vunpack.i.l.bf16 %v7885_v45  ;;  %6359 = vmatmul.mubr.f32.gmra.mrb[20].mxu1 %v6106_v58  ;;  %v6008_v19 = vsel %vm3457_vm15, %v5976_v28, %v7641_v50  ;;  %v6009_v21 = vsel %vm3457_vm15, %v5977_v0, %v7642_v29  ;;  %v13512_v50 = vld [vmem:[#allocation23_spill] sm:$0xff] }
 0xa6f   : > { %7090 = vmatprep.mubr.msk.f32.mxu1 %vm3259_vm2, %v13502_v3  ;;  %v6041_v55 = vsel %vm6030_vm0, %v6008_v19, %v7881_v41  ;;  %v6042_v33 = vsel %vm6030_vm0, %v6009_v21, %v7882_v26  ;;  %v4812_v57 = vmul.f32 %v13513_v48, %v13512_v50  ;;  %v13514_v28 = vld [vmem:[#allocation19_spill] sm:$0xff]  ;;  %v13516_v3 = vld [vmem:[#allocation182_spill] sm:$0xff]  ;;  %v13524_v50 = vld [vmem:[#allocation12_spill] sm:$0xff] }
 0xa70   : > { %v7895_v32 = vpop.permute.xlu0 %7894  ;;  %v6074_v16 = vsel %vm6063_vm1, %v6041_v55, %v7886_v12  ;;  %v6075_v24 = vsel %vm6063_vm1, %v6042_v33, %v7887_v60  ;;  %v13515_v45 = vld [vmem:[#allocation143_spill] sm:$0xff]  ;;  %v7577_v55 = vunpack.i.h.bf16 %v13516_v3  ;;  %v7576_v33 = vunpack.i.l.bf16 %v13516_v3 }
 0xa71   : > { %v7890_v17 = vpop.permute.xlu1 %7889  ;;  %v7897_v4 = vunpack.i.h.bf16 %v7895_v32  ;;  %v7896_v61 = vunpack.i.l.bf16 %v7895_v32  ;;  %v6107_v42 = vsel %vm6096_vm3, %v6074_v16, %v7646_v20  ;;  %v6108_v38 = vsel %vm6096_vm3, %v6075_v24, %v7647_v34  ;;  %v13518_v32 = vld [vmem:[#allocation36_spill] sm:$0xff] }
 0xa72   : > { %v7892_v46 = vunpack.i.h.bf16 %v7890_v17  ;;  %v7891_v49 = vunpack.i.l.bf16 %v7890_v17  ;;  %6364 = vmatmul.mubr.f32.gmra.mrb[22].mxu1 %v6107_v42  ;;  %v5047_v26 = vmul.f32 %v13515_v45, %v13514_v28  ;;  %v5916_v27 = vsel %vm3259_vm2, %v4812_v57, %v7571_v8  ;;  %v13520_v8 = vld [vmem:[#allocation32_spill] sm:$0xff] }
 0xa73   : > { %7091 = vmatprep.mubr.msk.f32.mxu1 %vm3259_vm2, %v5045_v15  ;;  %v7662_v16 = vunpack.i.h.bf16 %v13518_v32  ;;  %v7661_v35 = vunpack.i.l.bf16 %v13518_v32  ;;  %v7582_v48 = vunpack.i.h.bf16 %v13524_v50  ;;  %v7581_v57 = vunpack.i.l.bf16 %v13524_v50 }
 0xa74   : > { %v5947_v9 = vsel %vm3325_vm9, %v5915_v22, %v7892_v46  ;;  %v5946_v52 = vsel %vm3325_vm9, %v5914_v56, %v7891_v49  ;;  %v7900_v44 = vpop.permute.xlu0 %7899  ;;  %v13519_v56 = vld [vmem:[#allocation27_spill] sm:$0xff] }
 0xa75   : > { %v5979_v53 = vsel %vm3391_vm12, %v5947_v9, %v7897_v4  ;;  %v5978_v63 = vsel %vm3391_vm12, %v5946_v52, %v7896_v61  ;;  %v7905_v47 = vpop.permute.xlu1 %7904  ;;  %v7902_v5 = vunpack.i.h.bf16 %v7900_v44  ;;  %v7901_v58 = vunpack.i.l.bf16 %v7900_v44  ;;  %v13521_v9 = vld [vmem:[#allocation149_spill] sm:$0xff] }
 0xa76   : > { %v7907_v6 = vunpack.i.h.bf16 %v7905_v47  ;;  %v7906_v62 = vunpack.i.l.bf16 %v7905_v47  ;;  %6369 = vmatmul.mubr.f32.gmra.mrb[24].mxu1 %v6108_v38  ;;  %v6010_v23 = vsel %vm3457_vm15, %v5978_v63, %v7651_v54  ;;  %v6011_v39 = vsel %vm3457_vm15, %v5979_v53, %v7652_v30  ;;  %v8389_v54 = vld [vmem:[#allocation3 + $0x87] sm:$0xff]  ;;  %v13522_v63 = vld [vmem:[#allocation28_spill] sm:$0xff] }
 0xa77   : > { %7092 = vmatprep.mubr.msk.f32.mxu1 %vm3259_vm2, %v13511_v11  ;;  %v6043_v10 = vsel %vm6030_vm0, %v6010_v23, %v7901_v58  ;;  %v6044_v29 = vsel %vm6030_vm0, %v6011_v39, %v7902_v5  ;;  %v7667_v37 = vunpack.i.h.bf16 %v13519_v56  ;;  %v7666_v14 = vunpack.i.l.bf16 %v13519_v56  ;;  %v13523_v47 = vld [vmem:[#allocation152_spill] sm:$0xff] }
 0xa78   : > { %v7915_v2 = vpop.permute.xlu0 %7914  ;;  %v6076_v0 = vsel %vm6063_vm1, %v6043_v10, %v7906_v62  ;;  %v6077_v41 = vsel %vm6063_vm1, %v6044_v29, %v7907_v6  ;;  %v4814_v52 = vmul.f32 %v8389_v54, %v13521_v9  ;;  %v5049_v5 = vmul.f32 %v13523_v47, %v13522_v63  ;;  %v8390_v11 = vld [vmem:[#allocation3 + $0x8f] sm:$0xff]  ;;  %v8392_v54 = vld [vmem:[#allocation3 + $0x9f] sm:$0xff] }
 0xa79   : > { %v7910_v60 = vpop.permute.xlu1 %7909  ;;  %v7917_v12 = vunpack.i.h.bf16 %v7915_v2  ;;  %v7916_v19 = vunpack.i.l.bf16 %v7915_v2  ;;  %v6109_v21 = vsel %vm6096_vm3, %v6076_v0, %v7656_v13  ;;  %v6110_v31 = vsel %vm6096_vm3, %v6077_v41, %v7657_v36  ;;  %v13525_v2 = vld [vmem:[#allocation45_spill] sm:$0xff] }
 0xa7a   : > { %v7912_v34 = vunpack.i.h.bf16 %v7910_v60  ;;  %v7911_v20 = vunpack.i.l.bf16 %v7910_v60  ;;  %6374 = vmatmul.mubr.f32.gmra.mrb[26].mxu1 %v6109_v21  ;;  %v5919_v10 = vsel %vm3259_vm2, %v8390_v11, %v7577_v55  ;;  %v5918_v29 = vsel %vm3259_vm2, %v4814_v52, %v7576_v33  ;;  %v13526_v33 = vld [vmem:[#allocation25_spill] sm:$0xff] }
 0xa7b   : > { %7093 = vmatprep.mubr.msk.f32.mxu1 %vm3259_vm2, %v5047_v26  ;;  %v7672_v0 = vunpack.i.h.bf16 %v13525_v2  ;;  %v7671_v28 = vunpack.i.l.bf16 %v13525_v2  ;;  %v7677_v1 = vunpack.i.h.bf16 %v13526_v33  ;;  %v5921_v9 = vsel %vm3259_vm2, %v8392_v54, %v7582_v48 }
 0xa7c   : > { %v5948_v59 = vsel %vm3325_vm9, %v5916_v27, %v7911_v20  ;;  %v5949_v15 = vsel %vm3325_vm9, %v5917_v7, %v7912_v34  ;;  %v7920_v24 = vpop.permute.xlu0 %7919  ;;  %v7676_v7 = vunpack.i.l.bf16 %v13526_v33  ;;  %v13527_v27 = vld [vmem:[#allocation31_spill] sm:$0xff] }
 0xa7d   : > { %v5981_v17 = vsel %vm3391_vm12, %v5949_v15, %v7917_v12  ;;  %v5980_v4 = vsel %vm3391_vm12, %v5948_v59, %v7916_v19  ;;  %v7925_v61 = vpop.permute.xlu1 %7924  ;;  %v7922_v42 = vunpack.i.h.bf16 %v7920_v24  ;;  %v7921_v38 = vunpack.i.l.bf16 %v7920_v24  ;;  %v13528_v59 = vld [vmem:[#allocation158_spill] sm:$0xff] }
 0xa7e   : > { %v7927_v46 = vunpack.i.h.bf16 %v7925_v61  ;;  %v7926_v49 = vunpack.i.l.bf16 %v7925_v61  ;;  %6379 = vmatmul.mubr.f32.gmra.mrb[28].mxu1 %v6110_v31  ;;  %v6012_v25 = vsel %vm3457_vm15, %v5980_v4, %v7661_v35  ;;  %v6013_v22 = vsel %vm3457_vm15, %v5981_v17, %v7662_v16  ;;  %v8391_v35 = vld [vmem:[#allocation3 + $0x97] sm:$0xff]  ;;  %v13529_v4 = vld [vmem:[#allocation34_spill] sm:$0xff] }
 0xa7f   : > { %7094 = vmatprep.mubr.msk.f32.mxu1 %vm3259_vm2, %v13520_v8  ;;  %v6045_v18 = vsel %vm6030_vm0, %v6012_v25, %v7921_v38  ;;  %v6046_v30 = vsel %vm6030_vm0, %v6013_v22, %v7922_v42  ;;  %v4816_v15 = vmul.f32 %v8391_v35, %v13528_v59  ;;  %v13530_v61 = vld [vmem:[#allocation161_spill] sm:$0xff]  ;;  %v13531_v8 = vld [vmem:[#allocation10_spill] sm:$0xff] }
 0xa80   : > { %v7935_v44 = vpop.permute.xlu0 %7934  ;;  %v6078_v53 = vsel %vm6063_vm1, %v6045_v18, %v7926_v49  ;;  %v6079_v58 = vsel %vm6063_vm1, %v6046_v30, %v7927_v46  ;;  %v5051_v42 = vmul.f32 %v13530_v61, %v13529_v4  ;;  %v7587_v18 = vunpack.i.h.bf16 %v13531_v8  ;;  %v13537_v35 = vld [vmem:[#allocation30_spill] sm:$0xff] }
 0xa81   : > { %v7930_v6 = vpop.permute.xlu1 %7929  ;;  %v7937_v62 = vunpack.i.h.bf16 %v7935_v44  ;;  %v7936_v23 = vunpack.i.l.bf16 %v7935_v44  ;;  %v6111_v39 = vsel %vm6096_vm3, %v6078_v53, %v7666_v14  ;;  %v6112_v43 = vsel %vm6096_vm3, %v6079_v58, %v7667_v37  ;;  %v13532_v44 = vld [vmem:[#allocation47_spill] sm:$0xff] }
 0xa82   : > { %v7932_v36 = vunpack.i.h.bf16 %v7930_v6  ;;  %v7931_v13 = vunpack.i.l.bf16 %v7930_v6  ;;  %6384 = vmatmul.mubr.f32.gmra.mrb[30].mxu1 %v6111_v39  ;;  %v7586_v30 = vunpack.i.l.bf16 %v13531_v8  ;;  %v5920_v52 = vsel %vm3259_vm2, %v4816_v15, %v7581_v57  ;;  %v13534_v57 = vld [vmem:[#allocation29_spill] sm:$0xff] }
 0xa83   : > { %7095 = vmatprep.mubr.msk.f32.mxu1 %vm3259_vm2, %v5049_v5  ;;  %v7682_v53 = vunpack.i.h.bf16 %v13532_v44  ;;  %v7681_v63 = vunpack.i.l.bf16 %v13532_v44  ;;  %v7692_v59 = vunpack.i.h.bf16 %v13537_v35  ;;  %v7691_v15 = vunpack.i.l.bf16 %v13537_v35  ;;  %v13546_v35 = vld [vmem:[#allocation37_spill] sm:$0xff] }
 0xa84   : > { %v5951_v45 = vsel %vm3325_vm9, %v5919_v10, %v7932_v36  ;;  %v5950_v26 = vsel %vm3325_vm9, %v5918_v29, %v7931_v13  ;;  %v7940_v41 = vpop.permute.xlu0 %7939  ;;  %v13533_v29 = vld [vmem:[#allocation38_spill] sm:$0xff] }
 0xa85   : > { %v5983_v60 = vsel %vm3391_vm12, %v5951_v45, %v7937_v62  ;;  %v5982_v12 = vsel %vm3391_vm12, %v5950_v26, %v7936_v23  ;;  %v7945_v19 = vpop.permute.xlu1 %7944  ;;  %v7942_v21 = vunpack.i.h.bf16 %v7940_v41  ;;  %v7941_v31 = vunpack.i.l.bf16 %v7940_v41  ;;  %v13535_v45 = vld [vmem:[#allocation167_spill] sm:$0xff] }
 0xa86   : > { %v7947_v34 = vunpack.i.h.bf16 %v7945_v19  ;;  %v7946_v20 = vunpack.i.l.bf16 %v7945_v19  ;;  %6389 = vmatmul.mubr.f32.gmra.mrb[32].mxu1 %v6112_v43  ;;  %v6014_v3 = vsel %vm3457_vm15, %v5982_v12, %v7671_v28  ;;  %v6015_v55 = vsel %vm3457_vm15, %v5983_v60, %v7672_v0  ;;  %v8393_v28 = vld [vmem:[#allocation3 + $0xa7] sm:$0xff]  ;;  %v13536_v19 = vld [vmem:[#allocation169_spill] sm:$0xff] }
 0xa87   : > { %7096 = vmatprep.mubr.msk.f32.mxu1 %vm3259_vm2, %v13527_v27  ;;  %v6047_v32 = vsel %vm6030_vm0, %v6014_v3, %v7941_v31  ;;  %v6048_v16 = vsel %vm6030_vm0, %v6015_v55, %v7942_v21  ;;  %v7687_v50 = vunpack.i.h.bf16 %v13533_v29  ;;  %v7686_v48 = vunpack.i.l.bf16 %v13533_v29  ;;  %v8394_v12 = vld [vmem:[#allocation3 + $0xc1] sm:$0xff]  ;;  %v8395_v27 = vld [vmem:[#allocation3 + $0xaf] sm:$0xff] }
 0xa88   : > { %v7955_v24 = vpop.permute.xlu0 %7954  ;;  %v6080_v17 = vsel %vm6063_vm1, %v6047_v32, %v7946_v20  ;;  %v6081_v38 = vsel %vm6063_vm1, %v6048_v16, %v7947_v34  ;;  %v4818_v26 = vmul.f32 %v8393_v28, %v13535_v45  ;;  %v5053_v21 = vmul.f32 %v8394_v12, %v13536_v19 }
 0xa89   : > { %v7950_v46 = vpop.permute.xlu1 %7949  ;;  %v7957_v49 = vunpack.i.h.bf16 %v7955_v24  ;;  %v7956_v25 = vunpack.i.l.bf16 %v7955_v24  ;;  %v6113_v22 = vsel %vm6096_vm3, %v6080_v17, %v7676_v7  ;;  %v6114_v56 = vsel %vm6096_vm3, %v6081_v38, %v7677_v1  ;;  %v13538_v24 = vld [vmem:[#allocation44_spill] sm:$0xff] }
 0xa8a   : > { %v7952_v37 = vunpack.i.h.bf16 %v7950_v46  ;;  %v7951_v14 = vunpack.i.l.bf16 %v7950_v46  ;;  %6394 = vmatmul.mubr.f32.gmra.mrb[34].mxu1 %v6113_v22  ;;  %v5923_v32 = vsel %vm3259_vm2, %v8395_v27, %v7587_v18  ;;  %v5922_v16 = vsel %vm3259_vm2, %v4818_v26, %v7586_v30  ;;  %v13539_v18 = vld [vmem:[#allocation42_spill] sm:$0xff] }
 0xa8b   : > { %7097 = vmatprep.mubr.msk.f32.mxu1 %vm3259_vm2, %v5051_v42  ;;  %v7702_v17 = vunpack.i.h.bf16 %v13538_v24  ;;  %v7697_v30 = vunpack.i.h.bf16 %v13539_v18  ;;  %v7696_v54 = vunpack.i.l.bf16 %v13539_v18  ;;  %v8399_v27 = vld [vmem:[#allocation3 + $0xe1] sm:$0xff] }
 0xa8c   : > { %v5952_v47 = vsel %vm3325_vm9, %v5920_v52, %v7951_v14  ;;  %v5953_v5 = vsel %vm3325_vm9, %v5921_v9, %v7952_v37  ;;  %v7960_v58 = vpop.permute.xlu0 %7959  ;;  %v13540_v9 = vld [vmem:[#allocation43_spill] sm:$0xff] }
 0xa8d   : > { %v5985_v6 = vsel %vm3391_vm12, %v5953_v5, %v7957_v49  ;;  %v5984_v62 = vsel %vm3391_vm12, %v5952_v47, %v7956_v25  ;;  %v7965_v23 = vpop.permute.xlu1 %7964  ;;  %v7962_v39 = vunpack.i.h.bf16 %v7960_v58  ;;  %v7961_v43 = vunpack.i.l.bf16 %v7960_v58  ;;  %v8396_v47 = vld [vmem:[#allocation3 + $0xd1] sm:$0xff]  ;;  %v13541_v5 = vld [vmem:[#allocation175_spill] sm:$0xff] }
 0xa8e   : > { %v7967_v36 = vunpack.i.h.bf16 %v7965_v23  ;;  %v7966_v13 = vunpack.i.l.bf16 %v7965_v23  ;;  %6399 = vmatmul.mubr.f32.gmra.mrb[36].mxu1 %v6114_v56  ;;  %v6016_v11 = vsel %vm3457_vm15, %v5984_v62, %v7681_v63  ;;  %v6017_v10 = vsel %vm3457_vm15, %v5985_v6, %v7682_v53  ;;  %v13547_v18 = vld [vmem:[#allocation59_spill] sm:$0xff] }
 0xa8f   : > { %7098 = vmatprep.mubr.msk.f32.mxu1 %vm3259_vm2, %v13534_v57  ;;  %v6049_v2 = vsel %vm6030_vm0, %v6016_v11, %v7961_v43  ;;  %v6050_v0 = vsel %vm6030_vm0, %v6017_v10, %v7962_v39  ;;  %v5055_v58 = vmul.f32 %v8396_v47, %v13541_v5 }
 0xa90   : > { %v7975_v41 = vpop.permute.xlu0 %7974  ;;  %v6082_v60 = vsel %vm6063_vm1, %v6049_v2, %v7966_v13  ;;  %v6083_v31 = vsel %vm6063_vm1, %v6050_v0, %v7967_v36  ;;  %v8397_v13 = vld [vmem:[#allocation3 + $0xbf] sm:$0xff]  ;;  %v13543_v0 = vld [vmem:[#allocation39_spill] sm:$0xff] }
 0xa91   : > { %v7970_v34 = vpop.permute.xlu1 %7969  ;;  %v7977_v20 = vunpack.i.h.bf16 %v7975_v41  ;;  %v7976_v3 = vunpack.i.l.bf16 %v7975_v41  ;;  %v6115_v55 = vsel %vm6096_vm3, %v6082_v60, %v7686_v48  ;;  %v6116_v33 = vsel %vm6096_vm3, %v6083_v31, %v7687_v50  ;;  %v13542_v50 = vld [vmem:[#allocation128_spill] sm:$0xff] }
 0xa92   : > { %v7972_v1 = vunpack.i.h.bf16 %v7970_v34  ;;  %v7971_v7 = vunpack.i.l.bf16 %v7970_v34  ;;  %6404 = vmatmul.mubr.f32.gmra.mrb[38].mxu1 %v6115_v55  ;;  %v5925_v11 = vsel %vm3259_vm2, %v8397_v13, %v7702_v17  ;;  %v7707_v48 = vunpack.i.h.bf16 %v13542_v50  ;;  %v12520_v34 = vpop.f32.mrb[42].mxu0 }
 0xa93   : > { %7099 = vmatprep.mubr.msk.f32.mxu1 %vm3259_vm2, %v5053_v21  ;;  %v7706_v57 = vunpack.i.l.bf16 %v13542_v50  ;;  %v12522_v55 = vpop.f32.mrb[43].mxu0 }
 0xa94   : > { %v5955_v4 = vsel %vm3325_vm9, %v5923_v32, %v7972_v1  ;;  %v5954_v61 = vsel %vm3325_vm9, %v5922_v16, %v7971_v7  ;;  %v7980_v42 = vpop.permute.xlu0 %7979  ;;  %v8398_v7 = vld [vmem:[#allocation3 + $0xd9] sm:$0xff]  ;;  %v13545_v32 = vld [vmem:[#allocation179_spill] sm:$0xff] }
 0xa95   : > { %v5987_v38 = vsel %vm3391_vm12, %v5955_v4, %v7977_v20  ;;  %v5986_v46 = vsel %vm3391_vm12, %v5954_v61, %v7976_v3  ;;  %v7985_v49 = vpop.permute.xlu1 %7984  ;;  %v7982_v25 = vunpack.i.h.bf16 %v7980_v42  ;;  %v7981_v22 = vunpack.i.l.bf16 %v7980_v42 }
 0xa96   : > { %v7987_v56 = vunpack.i.h.bf16 %v7985_v49  ;;  %v7986_v37 = vunpack.i.l.bf16 %v7985_v49  ;;  %6409 = vmatmul.mubr.f32.gmra.mrb[40].mxu1 %v6116_v33  ;;  %v6018_v14 = vsel %vm3457_vm15, %v5986_v46, %v7691_v15  ;;  %v6019_v8 = vsel %vm3457_vm15, %v5987_v38, %v7692_v59  ;;  %v13544_v33 = vld [vmem:[#allocation46_spill] sm:$0xff] }
 0xa97   : > { %7100 = vmatprep.mubr.msk.f32.mxu1 %vm3259_vm2, %v13540_v9  ;;  %v6051_v52 = vsel %vm6030_vm0, %v6018_v14, %v7981_v22  ;;  %v6052_v44 = vsel %vm6030_vm0, %v6019_v8, %v7982_v25  ;;  %v7717_v1 = vunpack.i.h.bf16 %v13544_v33  ;;  %v5057_v16 = vmul.f32 %v8399_v27, %v13545_v32  ;;  %v8400_v14 = vld [vmem:[#allocation3 + $0xcf] sm:$0xff]  ;;  %v13552_v32 = vld [vmem:[#allocation41_spill] sm:$0xff] }
 0xa98   : > { %v7990_v53 = vpop.permute.xlu0 %7989  ;;  %v6084_v63 = vsel %vm6063_vm1, %v6051_v52, %v7986_v37  ;;  %v6085_v6 = vsel %vm6063_vm1, %v6052_v44, %v7987_v56  ;;  %v7712_v59 = vunpack.i.h.bf16 %v13546_v35  ;;  %v7711_v15 = vunpack.i.l.bf16 %v13546_v35  ;;  %v13548_v9 = vld [vmem:[#allocation52_spill] sm:$0xff] }
 0xa99   : > { %v7995_v62 = vpop.permute.xlu1 %7994  ;;  %v7992_v23 = vunpack.i.h.bf16 %v7990_v53  ;;  %v7991_v39 = vunpack.i.l.bf16 %v7990_v53  ;;  %v6117_v43 = vsel %vm6096_vm3, %v6084_v63, %v7696_v54  ;;  %v6118_v36 = vsel %vm6096_vm3, %v6085_v6, %v7697_v30  ;;  %v13549_v53 = vld [vmem:[#allocation57_spill] sm:$0xff] }
 0xa9a   : > { %v7997_v10 = vunpack.i.h.bf16 %v7995_v62  ;;  %v7996_v29 = vunpack.i.l.bf16 %v7995_v62  ;;  %6414 = vmatmul.mubr.f32.gmra.mrb[42].mxu1 %v6117_v43  ;;  %v5927_v8 = vsel %vm3259_vm2, %v8400_v14, %v7717_v1  ;;  %v7722_v30 = vunpack.i.h.bf16 %v13547_v18  ;;  %v8403_v1 = vld [vmem:[#allocation3 + $0xf1] sm:$0xff] }
 0xa9b   : > { %v5957_v2 = vsel %vm3325_vm9, %v5925_v11, %v7992_v23  ;;  %v5956_v28 = vsel %vm3325_vm9, %v13543_v0, %v7991_v39  ;;  %7101 = vmatprep.mubr.msk.f32.mxu1 %vm3259_vm2, %v5055_v58  ;;  %v7721_v54 = vunpack.i.l.bf16 %v13547_v18  ;;  %v7732_v52 = vunpack.i.h.bf16 %v13548_v9  ;;  %v12547_v11 = vpop.f32.mrb[44].mxu0  ;;  %v8401_v0 = vld [vmem:[#allocation3 + $0xe9] sm:$0xff] }
 0xa9c   : > { %v5989_v45 = vsel %vm3391_vm12, %v5957_v2, %v7997_v10  ;;  %v5988_v26 = vsel %vm3391_vm12, %v5956_v28, %v7996_v29  ;;  %v8005_v41 = vpop.permute.xlu0 %8004  ;;  %v13550_v10 = vld [vmem:[#allocation48_spill] sm:$0xff]  ;;  %v12553_v2 = vpop.f32.mrb[45].mxu0  ;;  %v7736_v35 = vunpack.i.l.bf16 %v13552_v32 }
 0xa9d   : > { %v8000_v60 = vpop.permute.xlu1 %7999  ;;  %v8007_v12 = vunpack.i.h.bf16 %v8005_v41  ;;  %v8006_v19 = vunpack.i.l.bf16 %v8005_v41  ;;  %v6020_v21 = vsel %vm3457_vm15, %v5988_v26, %v7706_v57  ;;  %v6021_v31 = vsel %vm3457_vm15, %v5989_v45, %v7707_v48 }
 0xa9e   : > { %v8002_v20 = vunpack.i.h.bf16 %v8000_v60  ;;  %v8001_v3 = vunpack.i.l.bf16 %v8000_v60  ;;  %6419 = vmatmul.mubr.f32.gmra.mrb[44].mxu1 %v6118_v36  ;;  %v7727_v29 = vunpack.i.h.bf16 %v13550_v10  ;;  %v7726_v50 = vunpack.i.l.bf16 %v13550_v10  ;;  %v8406_v10 = vld [vmem:[#allocation3 + $0xef] sm:$0xff] }
 0xa9f   : > { %7102 = vmatprep.mubr.msk.f32.mxu1 %vm3259_vm2, %v8398_v7  ;;  %v13551_v7 = vld [vmem:[#allocation184_spill] sm:$0xff] }
 0xaa0   : > { %v8015_v24 = vpop.permute.xlu0 %8014  ;;  %v6053_v17 = vsel %vm6030_vm0, %v6020_v21, %v8001_v3  ;;  %v6054_v4 = vsel %vm6030_vm0, %v6021_v31, %v8002_v20  ;;  %v8402_v31 = vld [vmem:[#allocation3 + $0xdf] sm:$0xff]  ;;  %v5059_v27 = vmul.f32 %v8403_v1, %v13551_v7  ;;  %v8407_v7 = vld [vmem:[#allocation3 + $0x109] sm:$0xff] }
 0xaa1   : > { %v8010_v61 = vpop.permute.xlu1 %8009  ;;  %v8017_v42 = vunpack.i.h.bf16 %v8015_v24  ;;  %v8016_v38 = vunpack.i.l.bf16 %v8015_v24  ;;  %v6086_v46 = vsel %vm6063_vm1, %v6053_v17, %v8006_v19  ;;  %v6087_v49 = vsel %vm6063_vm1, %v6054_v4, %v8007_v12 }
 0xaa2   : > { %v8012_v25 = vunpack.i.h.bf16 %v8010_v61  ;;  %v8011_v22 = vunpack.i.l.bf16 %v8010_v61  ;;  %v6119_v56 = vsel %vm6096_vm3, %v6086_v46, %v7711_v15  ;;  %v6120_v37 = vsel %vm6096_vm3, %v6087_v49, %v7712_v59  ;;  %v13553_v15 = vld [vmem:[#allocation40_spill] sm:$0xff] }
 0xaa3   : > { %6424 = vmatmul.mubr.f32.gmra.mrb[46].mxu1 %v6119_v56  ;;  %v5929_v20 = vsel %vm3259_vm2, %v8402_v31, %v7732_v52  ;;  %v13559_v31 = vld [vmem:[#allocation69_spill] sm:$0xff] }
 0xaa4   : > { %v5959_v44 = vsel %vm3325_vm9, %v5927_v8, %v8012_v25  ;;  %v5958_v63 = vsel %vm3325_vm9, %v13549_v53, %v8011_v22  ;;  %7103 = vmatprep.mubr.msk.f32.mxu1 %vm3259_vm2, %v5057_v16  ;;  %v8020_v47 = vpop.permute.xlu0 %8019  ;;  %v7737_v16 = vunpack.i.h.bf16 %v13552_v32  ;;  %v13554_v8 = vld [vmem:[#allocation54_spill] sm:$0xff] }
 0xaa5   : > { %v5991_v5 = vsel %vm3391_vm12, %v5959_v44, %v8017_v42  ;;  %v5990_v58 = vsel %vm3391_vm12, %v5958_v63, %v8016_v38  ;;  %v8025_v6 = vpop.permute.xlu1 %8024  ;;  %v8022_v62 = vunpack.i.h.bf16 %v8020_v47  ;;  %v8021_v23 = vunpack.i.l.bf16 %v8020_v47 }
 0xaa6   : > { %v8027_v39 = vunpack.i.h.bf16 %v8025_v6  ;;  %v8026_v43 = vunpack.i.l.bf16 %v8025_v6  ;;  %v6022_v36 = vsel %vm3457_vm15, %v5990_v58, %v7721_v54  ;;  %v6023_v13 = vsel %vm3457_vm15, %v5991_v5, %v7722_v30  ;;  %v8404_v54 = vld [vmem:[#allocation3 + $0xf9] sm:$0xff] }
 0xaa7   : > { %6429 = vmatmul.mubr.f32.gmra.mrb[48].mxu1 %v6120_v37  ;;  %v6055_v48 = vsel %vm6030_vm0, %v6022_v36, %v8021_v23  ;;  %v6056_v57 = vsel %vm6030_vm0, %v6023_v13, %v8022_v62  ;;  %v12572_v37 = vpop.f32.mrb[46].mxu0  ;;  %v7742_v18 = vunpack.i.h.bf16 %v13554_v8  ;;  %v7741_v30 = vunpack.i.l.bf16 %v13554_v8  ;;  %v13555_v5 = vld [vmem:[#allocation137_spill] sm:$0xff]  ;;  %v8405_v62 = vld [vmem:[#allocation3 + $0x101] sm:$0xff] }
 0xaa8   : > { %7104 = vmatprep.mubr.msk.f32.mxu1 %vm3259_vm2, %v8401_v0  ;;  %v8030_v28 = vpop.permute.xlu0 %8029  ;;  %v6088_v45 = vsel %vm6063_vm1, %v6055_v48, %v8026_v43  ;;  %v6089_v26 = vsel %vm6063_vm1, %v6056_v57, %v8027_v39  ;;  %v12574_v14 = vpop.f32.mrb[47].mxu0  ;;  %v7747_v58 = vunpack.i.h.bf16 %v13555_v5  ;;  %v13556_v23 = vld [vmem:[#allocation190_spill] sm:$0xff] }
 0xaa9   : > { %v8035_v41 = vpop.permute.xlu1 %8034  ;;  %v8032_v60 = vunpack.i.h.bf16 %v8030_v28  ;;  %v8031_v12 = vunpack.i.l.bf16 %v8030_v28  ;;  %v6121_v19 = vsel %vm6096_vm3, %v6088_v45, %v7726_v50  ;;  %v6122_v21 = vsel %vm6096_vm3, %v6089_v26, %v7727_v29  ;;  %v13557_v50 = vld [vmem:[#allocation56_spill] sm:$0xff]  ;;  %v12592_v28 = vpop.f32.mrb[48].mxu0  ;;  %v13558_v26 = vld [vmem:[#allocation55_spill] sm:$0xff] }
 0xaaa   : > { %v8037_v3 = vunpack.i.h.bf16 %v8035_v41  ;;  %v8036_v33 = vunpack.i.l.bf16 %v8035_v41  ;;  %v5061_v39 = vmul.f32 %v8405_v62, %v13556_v23  ;;  %v5931_v29 = vsel %vm3259_vm2, %v8406_v10, %v7747_v58 }
 0xaab   : > { %v5961_v59 = vsel %vm3325_vm9, %v5929_v20, %v8032_v60  ;;  %v5960_v24 = vsel %vm3325_vm9, %v13553_v15, %v8031_v12  ;;  %6434 = vmatmul.mubr.f32.gmra.mrb[50].mxu1 %v6121_v19  ;;  %v7757_v48 = vunpack.i.h.bf16 %v13557_v50  ;;  %v7756_v45 = vunpack.i.l.bf16 %v13557_v50  ;;  %v12596_v19 = vpop.f32.mrb[49].mxu0  ;;  %v5032_v50 = vld [vmem:[#allocation3 + $0x119] sm:$0xff] }
 0xaac   : > { %v5993_v17 = vsel %vm3391_vm12, %v5961_v59, %v8037_v3  ;;  %v5992_v4 = vsel %vm3391_vm12, %v5960_v24, %v8036_v33  ;;  %7105 = vmatprep.mubr.msk.f32.mxu1 %vm3259_vm2, %v5059_v27  ;;  %v8045_v61 = vpop.permute.xlu0 %8044  ;;  %v7752_v41 = vunpack.i.h.bf16 %v13558_v26  ;;  %v7762_v20 = vunpack.i.h.bf16 %v13559_v31  ;;  %v13560_v33 = vld [vmem:[#allocation51_spill] sm:$0xff]  ;;  %v12616_v58 = vpop.f32.mrb[50].mxu0 }
 0xaad   : > { %v8040_v42 = vpop.permute.xlu1 %8039  ;;  %v8047_v38 = vunpack.i.h.bf16 %v8045_v61  ;;  %v8046_v46 = vunpack.i.l.bf16 %v8045_v61  ;;  %v6024_v49 = vsel %vm3457_vm15, %v5992_v4, %v7736_v35  ;;  %v6025_v25 = vsel %vm3457_vm15, %v5993_v17, %v7737_v16 }
 0xaae   : > { %v8042_v22 = vunpack.i.h.bf16 %v8040_v42  ;;  %v8041_v56 = vunpack.i.l.bf16 %v8040_v42 }
 0xaaf   : > { %6439 = vmatmul.mubr.f32.gmra.mrb[52].mxu1 %v6122_v21  ;;  %v7751_v21 = vunpack.i.l.bf16 %v13558_v26 }
 0xab0   : > { %7106 = vmatprep.mubr.msk.f32.mxu1 %vm3259_vm2, %v8404_v54  ;;  %v8055_v9 = vpop.permute.xlu0 %8054  ;;  %v6057_v52 = vsel %vm6030_vm0, %v6024_v49, %v8041_v56  ;;  %v6058_v44 = vsel %vm6030_vm0, %v6025_v25, %v8042_v22  ;;  %v13561_v54 = vld [vmem:[#allocation191_spill] sm:$0xff] }
 0xab1   : > { %v12581_v53 = vpop.permute.xlu1 %5640  ;;  %v6090_v63 = vsel %vm6063_vm1, %v6057_v52, %v8046_v46  ;;  %v6091_v47 = vsel %vm6063_vm1, %v6058_v44, %v8047_v38  ;;  %v8057_v60 = vunpack.i.h.bf16 %v8055_v9  ;;  %v8056_v12 = vunpack.i.l.bf16 %v8055_v9  ;;  %v8409_v44 = vld [vmem:[#allocation3 + $0xff] sm:$0xff] }
 0xab2   : > { %v6123_v6 = vsel %vm6096_vm3, %v6090_v63, %v7741_v30  ;;  %v6124_v43 = vsel %vm6096_vm3, %v6091_v47, %v7742_v18  ;;  %v8408_v30 = vld [vmem:[#allocation3 + $0x111] sm:$0xff]  ;;  %v5933_v63 = vsel %vm3259_vm2, %v8409_v44, %v7762_v20 }
 0xab3   : > { %6444 = vmatmul.mubr.f32.gmra.mrb[54].mxu1 %v6123_v6  ;;  %v5063_v9 = vmul.f32 %v8408_v30, %v13561_v54  ;;  %v13562_v6 = vld [vmem:[#allocation49_spill] sm:$0xff] }
 0xab4   : > { %7107 = vmatprep.mubr.msk.f32.mxu1 %vm3259_vm2, %v5061_v39  ;;  %v8060_v36 = vpop.permute.xlu0 %8059  ;;  %v7767_v62 = vunpack.i.h.bf16 %v13562_v6  ;;  %v7766_v23 = vunpack.i.l.bf16 %v13562_v6 }
 0xab5   : > { %v8050_v13 = vpop.permute.xlu1 %8049  ;;  %v8062_v35 = vunpack.i.h.bf16 %v8060_v36  ;;  %v8061_v59 = vunpack.i.l.bf16 %v8060_v36  ;;  %v12624_v36 = vpop.f32.mrb[51].mxu0 }
 0xab6   : > { %v8052_v57 = vunpack.i.h.bf16 %v8050_v13  ;;  %v8051_v0 = vunpack.i.l.bf16 %v8050_v13 }
 0xab7   : > { %6449 = vmatmul.mubr.f32.gmra.mrb[56].mxu1 %v6124_v43 }
 0xab8   : > { %v5963_v3 = vsel %vm3325_vm9, %v5931_v29, %v8052_v57  ;;  %v5962_v1 = vsel %vm3325_vm9, %v13560_v33, %v8051_v0  ;;  %7108 = vmatprep.mubr.msk.f32.mxu1 %vm3259_vm2, %v8407_v7  ;;  %v8070_v27 = vpop.permute.xlu0 %8069 }
 0xab9   : > { %v5994_v32 = vsel %vm3391_vm12, %v5962_v1, %v8056_v12  ;;  %v5995_v16 = vsel %vm3391_vm12, %v5963_v3, %v8057_v60  ;;  %v8065_v15 = vpop.permute.xlu1 %8064  ;;  %v8072_v42 = vunpack.i.h.bf16 %v8070_v27  ;;  %v8071_v38 = vunpack.i.l.bf16 %v8070_v27  ;;  %v12638_v3 = vpop.f32.mrb[52].mxu0 }
 0xaba   : > { %v8067_v24 = vunpack.i.h.bf16 %v8065_v15  ;;  %v8066_v17 = vunpack.i.l.bf16 %v8065_v15  ;;  %v6026_v4 = vsel %vm3457_vm15, %v5994_v32, %v7751_v21  ;;  %v6027_v61 = vsel %vm3457_vm15, %v5995_v16, %v7752_v41 }
 0xabb   : > { %v6059_v46 = vsel %vm6030_vm0, %v6026_v4, %v8061_v59  ;;  %v6060_v49 = vsel %vm6030_vm0, %v6027_v61, %v8062_v35  ;;  %v5965_v39 = vsel %vm3325_vm9, %v5933_v63, %v8072_v42  ;;  %v5964_v43 = vsel %vm3325_vm9, %v12204_v51, %v8071_v38 }
 0xabc   : > { %v5769_v25 = vpop.permute.xlu0 %5768  ;;  %v6092_v22 = vsel %vm6063_vm1, %v6059_v46, %v8066_v17  ;;  %v6093_v56 = vsel %vm6063_vm1, %v6060_v49, %v8067_v24 }
 0xabd   : > { %v8075_v8 = vpop.permute.xlu1 %8074  ;;  %v6125_v18 = vsel %vm6096_vm3, %v6092_v22, %v7756_v45  ;;  %v6126_v52 = vsel %vm6096_vm3, %v6093_v56, %v7757_v48  ;;  %v5033_v48 = vld [vmem:[#allocation3 + $0x121] sm:$0xff]  ;;  %v12683_v22 = vld [vmem:[%s12879_s15] ss:$0 sm:$0xff] }
 0xabe   : > { %v8077_v47 = vunpack.i.h.bf16 %v8075_v8  ;;  %v8076_v5 = vunpack.i.l.bf16 %v8075_v8  ;;  %6454 = vmatmul.mubr.f32.gmra.mrb[58].mxu1 %v6125_v18  ;;  %v5065_v41 = vmul.f32 %v13489_v40, %v5033_v48  ;;  %v12690_v8 = vld [vmem:[%s12877_s13] ss:$0 sm:$0xff]  ;;  %v6645_v30 = vadd.f32 %v12683_v22, %v12522_v55 }
 0xabf   : > { %7109 = vmatprep.mubr.msk.f32.mxu1 %vm3259_vm2, %v5063_v9  ;;  %v6650_v44 = vadd.f32 %v12520_v34, %v12683_v22  ;;  %v6660_v34 = vadd.f32 %v12547_v11, %v12683_v22  ;;  %v6670_v11 = vadd.f32 %v12572_v37, %v12683_v22  ;;  %v6680_v37 = vadd.f32 %v12592_v28, %v12683_v22 }
 0xac0   : > { %v5996_v13 = vsel %vm3391_vm12, %v5964_v43, %v8076_v5  ;;  %v5643_v10 = vpop.permute.xlu0 %5642  ;;  %v5997_v29 = vsel %vm3391_vm12, %v5965_v39, %v8077_v47  ;;  %v6690_v28 = vadd.f32 %v12616_v58, %v12683_v22  ;;  %v6700_v58 = vadd.f32 %v12638_v3, %v12683_v22 }
 0xac1   : > { %v6028_v57 = vsel %vm3457_vm15, %v5996_v13, %v7766_v23  ;;  %v5867_v0 = vpop.permute.xlu1 %5866  ;;  %v6029_v45 = vsel %vm3457_vm15, %v5997_v29, %v7767_v62  ;;  %v6655_v62 = vadd.f32 %v12683_v22, %v12553_v2  ;;  %v6665_v2 = vadd.f32 %v12683_v22, %v12574_v14 }
 0xac2   : > { %v6061_v26 = vsel %vm6030_vm0, %v6028_v57, %v12581_v53  ;;  %6459 = vmatmul.mubr.f32.gmra.mrb[60].mxu1 %v6126_v52  ;;  %v6062_v12 = vsel %vm6030_vm0, %v6029_v45, %v5643_v10  ;;  %v12641_v53 = vpop.f32.mrb[53].mxu0  ;;  %v6675_v14 = vadd.f32 %v12683_v22, %v12596_v19  ;;  %v6685_v19 = vadd.f32 %v12683_v22, %v12624_v36 }
 0xac3   : > { %v6094_v51 = vsel %vm6063_vm1, %v6061_v26, %v5769_v25  ;;  %7110 = vmatprep.mubr.msk.f32.mxu1 %vm3259_vm2, %v5032_v50  ;;  %v12644_v1 = vpop.f32.mrb[54].mxu0  ;;  %v6695_v36 = vadd.f32 %v12683_v22, %v12641_v53 }
 0xac4   : > { %v6127_v60 = vsel %vm6096_vm3, %v6094_v51, %v5867_v0  ;;  %v5869_v20 = vpop.permute.xlu0 %5868  ;;  %v12646_v40 = vpop.f32.mrb[55].mxu0  ;;  %v6710_v3 = vadd.f32 %v12644_v1, %v12683_v22 }
 0xac5   : > { %v5771_v21 = vpop.permute.xlu1 %5770  ;;  %v12648_v7 = vpop.f32.mrb[56].mxu0  ;;  %v6705_v53 = vadd.f32 %v12683_v22, %v12646_v40 }
 0xac6   : > { %v6095_v31 = vsel %vm6063_vm1, %v6062_v12, %v5771_v21  ;;  %6464 = vmatmul.mubr.f32.gmra.mrb[62].mxu1 %v6127_v60  ;;  %v12650_v27 = vpop.f32.mrb[57].mxu0  ;;  %v6720_v1 = vadd.f32 %v12648_v7, %v12683_v22 }
 0xac7   : > { %7111 = vmatprep.mubr.msk.f32.mxu1 %vm3259_vm2, %v5065_v41  ;;  %v6128_v33 = vsel %vm6096_vm3, %v6095_v31, %v5869_v20  ;;  %v12652_v32 = vpop.f32.mrb[58].mxu0  ;;  %v6715_v40 = vadd.f32 %v12683_v22, %v12650_v27 }
 0xac8   : > { %v12654_v16 = vpop.f32.mrb[59].mxu0  ;;  %v6730_v7 = vadd.f32 %v12652_v32, %v12683_v22 }
 0xac9   : > { %v12656_v35 = vpop.f32.mrb[60].mxu0  ;;  %v6725_v27 = vadd.f32 %v12683_v22, %v12654_v16 }
 0xaca   : > { %6469 = vmatmul.mubr.f32.gmra.mrb[64].mxu1 %v6128_v33  ;;  %v12658_v59 = vpop.f32.mrb[61].mxu0  ;;  %v6740_v32 = vadd.f32 %v12656_v35, %v12683_v22 }
 0xacb   : > { %v12660_v15 = vpop.f32.mrb[62].mxu0  ;;  %v6735_v16 = vadd.f32 %v12683_v22, %v12658_v59 }
 0xacc   : > { %v12662_v24 = vpop.f32.mrb[63].mxu0  ;;  %v6750_v35 = vadd.f32 %v12660_v15, %v12683_v22 }
 0xacd   : > { %v12664_v17 = vpop.f32.mrb[64].mxu0  ;;  %v6745_v59 = vadd.f32 %v12683_v22, %v12662_v24 }
 0xace   : > { %v12666_v4 = vpop.f32.mrb[65].mxu0  ;;  %v6760_v15 = vadd.f32 %v12664_v17, %v12683_v22 }
 0xacf   : > { %v12668_v61 = vpop.f32.mrb[66].mxu0  ;;  %v6755_v24 = vadd.f32 %v12683_v22, %v12666_v4 }
 0xad0   : > { %v12670_v42 = vpop.f32.mrb[67].mxu0  ;;  %v6770_v17 = vadd.f32 %v12668_v61, %v12683_v22 }
 0xad1   : > { %v12672_v38 = vpop.f32.mrb[68].mxu0  ;;  %v6765_v4 = vadd.f32 %v12683_v22, %v12670_v42 }
 0xad2   : > { %v12674_v46 = vpop.f32.mrb[69].mxu0  ;;  %v6780_v61 = vadd.f32 %v12672_v38, %v12683_v22 }
 0xad3   : > { %v12676_v49 = vpop.f32.mrb[70].mxu0  ;;  %v6775_v42 = vadd.f32 %v12683_v22, %v12674_v46 }
 0xad4   : > { %v12678_v25 = vpop.f32.mrb[71].mxu0  ;;  %v6790_v38 = vadd.f32 %v12676_v49, %v12683_v22 }
 0xad5   : > { %v6785_v46 = vadd.f32 %v12683_v22, %v12678_v25 }
 0xad6   : > { %v12685_v56 = vpop.f32.mrb[72].mxu0 }
 0xad7   : > { %v12692_v18 = vpop.f32.mrb[73].mxu0  ;;  %v6800_v49 = vadd.f32 %v12685_v56, %v12683_v22 }
 0xad8   : > { %v6795_v25 = vadd.f32 %v12683_v22, %v12692_v18 }
 0xb1d   : > { %v6315_v54 = vpop.f32.mrb[2].mxu1 }
 0xb1e   : > { %v6316_v9 = vadd.f32 %v12690_v8, %v6315_v54  ;;  %v6317_v52 = vpop.f32.mrb[3].mxu1 }
 0xb20   : > { %v6803_v63 = vadd.f32 %v6645_v30, %v6316_v9 }
 0xb21   : > { %v6320_v47 = vpop.f32.mrb[4].mxu1 }
 0xb22   : > { %6835 = vst.msk [vmem:[%s12702_s20] sm:$0xff] %vm3259_vm2, %v6803_v63  ;;  %v6321_v55 = vadd.f32 %v12690_v8, %v6320_v47  ;;  %v6322_v5 = vpop.f32.mrb[5].mxu1 }
 0xb24   : > { %v6804_v6 = vadd.f32 %v6650_v44, %v6321_v55 }
 0xb25   : > { %v6325_v23 = vpop.f32.mrb[6].mxu1 }
 0xb26   : > { %6836 = vst.msk [vmem:[%s12702_s20 + $0x8] sm:$0xff] %vm3259_vm2, %v6804_v6  ;;  %v6326_v39 = vadd.f32 %v12690_v8, %v6325_v23  ;;  %v6327_v43 = vpop.f32.mrb[7].mxu1 }
 0xb28   : > { %v6805_v13 = vadd.f32 %v6655_v62, %v6326_v39 }
 0xb29   : > { %v6330_v10 = vpop.f32.mrb[8].mxu1 }
 0xb2a   : > { %6837 = vst.msk [vmem:[%s12702_s20 + $0x10] sm:$0xff] %vm3259_vm2, %v6805_v13  ;;  %v6331_v29 = vadd.f32 %v12690_v8, %v6330_v10  ;;  %v6332_v50 = vpop.f32.mrb[9].mxu1 }
 0xb2c   : > { %v6806_v48 = vadd.f32 %v6660_v34, %v6331_v29 }
 0xb2d   : > { %v6335_v57 = vpop.f32.mrb[10].mxu1 }
 0xb2e   : > { %6838 = vst.msk [vmem:[%s12702_s20 + $0x18] sm:$0xff] %vm3259_vm2, %v6806_v48  ;;  %v6336_v0 = vadd.f32 %v12690_v8, %v6335_v57  ;;  %v6337_v45 = vpop.f32.mrb[11].mxu1 }
 0xb30   : > { %v6807_v26 = vadd.f32 %v6665_v2, %v6336_v0 }
 0xb31   : > { %v6340_v51 = vpop.f32.mrb[12].mxu1 }
 0xb32   : > { %6839 = vst.msk [vmem:[%s12702_s20 + $0x20] sm:$0xff] %vm3259_vm2, %v6807_v26  ;;  %v6341_v41 = vadd.f32 %v12690_v8, %v6340_v51  ;;  %v6342_v60 = vpop.f32.mrb[13].mxu1 }
 0xb34   : > { %v6808_v12 = vadd.f32 %v6670_v11, %v6341_v41 }
 0xb35   : > { %v6345_v21 = vpop.f32.mrb[14].mxu1 }
 0xb36   : > { %6840 = vst.msk [vmem:[%s12702_s20 + $0x28] sm:$0xff] %vm3259_vm2, %v6808_v12  ;;  %v6346_v31 = vadd.f32 %v12690_v8, %v6345_v21  ;;  %v6347_v20 = vpop.f32.mrb[15].mxu1 }
 0xb38   : > { %v6809_v33 = vadd.f32 %v6675_v14, %v6346_v31 }
 0xb39   : > { %v6350_v30 = vpop.f32.mrb[16].mxu1 }
 0xb3a   : > { %6841 = vst.msk [vmem:[%s12702_s20 + $0x30] sm:$0xff] %vm3259_vm2, %v6809_v33  ;;  %v6351_v54 = vadd.f32 %v12690_v8, %v6350_v30  ;;  %v6352_v9 = vpop.f32.mrb[17].mxu1 }
 0xb3c   : > { %v6810_v52 = vadd.f32 %v6680_v37, %v6351_v54 }
 0xb3d   : > { %v6355_v44 = vpop.f32.mrb[18].mxu1 }
 0xb3e   : > { %6842 = vst.msk [vmem:[%s12702_s20 + $0x38] sm:$0xff] %vm3259_vm2, %v6810_v52  ;;  %v6356_v63 = vadd.f32 %v12690_v8, %v6355_v44  ;;  %v6357_v47 = vpop.f32.mrb[19].mxu1 }
 0xb40   : > { %v6811_v55 = vadd.f32 %v6685_v19, %v6356_v63 }
 0xb41   : > { %v6360_v5 = vpop.f32.mrb[20].mxu1 }
 0xb42   : > { %6843 = vst.msk [vmem:[%s12702_s20 + $0x40] sm:$0xff] %vm3259_vm2, %v6811_v55  ;;  %v6361_v6 = vadd.f32 %v12690_v8, %v6360_v5  ;;  %v6362_v62 = vpop.f32.mrb[21].mxu1 }
 0xb44   : > { %v6812_v23 = vadd.f32 %v6690_v28, %v6361_v6 }
 0xb45   : > { %v6365_v39 = vpop.f32.mrb[22].mxu1 }
 0xb46   : > { %6844 = vst.msk [vmem:[%s12702_s20 + $0x48] sm:$0xff] %vm3259_vm2, %v6812_v23  ;;  %v6366_v43 = vadd.f32 %v12690_v8, %v6365_v39  ;;  %v6367_v34 = vpop.f32.mrb[23].mxu1 }
 0xb48   : > { %v6813_v13 = vadd.f32 %v6695_v36, %v6366_v43 }
 0xb49   : > { %v6370_v10 = vpop.f32.mrb[24].mxu1 }
 0xb4a   : > { %6845 = vst.msk [vmem:[%s12702_s20 + $0x50] sm:$0xff] %vm3259_vm2, %v6813_v13  ;;  %v6371_v29 = vadd.f32 %v12690_v8, %v6370_v10  ;;  %v6372_v50 = vpop.f32.mrb[25].mxu1 }
 0xb4c   : > { %v6814_v48 = vadd.f32 %v6700_v58, %v6371_v29 }
 0xb4d   : > { %v6375_v2 = vpop.f32.mrb[26].mxu1 }
 0xb4e   : > { %6846 = vst.msk [vmem:[%s12702_s20 + $0x58] sm:$0xff] %vm3259_vm2, %v6814_v48  ;;  %v6376_v57 = vadd.f32 %v12690_v8, %v6375_v2  ;;  %v6377_v0 = vpop.f32.mrb[27].mxu1 }
 0xb50   : > { %v6815_v45 = vadd.f32 %v6705_v53, %v6376_v57 }
 0xb51   : > { %v6380_v11 = vpop.f32.mrb[28].mxu1 }
 0xb52   : > { %6847 = vst.msk [vmem:[%s12702_s20 + $0x60] sm:$0xff] %vm3259_vm2, %v6815_v45  ;;  %v6381_v26 = vadd.f32 %v12690_v8, %v6380_v11  ;;  %v6382_v51 = vpop.f32.mrb[29].mxu1 }
 0xb54   : > { %v6816_v41 = vadd.f32 %v6710_v3, %v6381_v26 }
 0xb55   : > { %v6385_v60 = vpop.f32.mrb[30].mxu1 }
 0xb56   : > { %6848 = vst.msk [vmem:[%s12702_s20 + $0x68] sm:$0xff] %vm3259_vm2, %v6816_v41  ;;  %v6386_v12 = vadd.f32 %v12690_v8, %v6385_v60  ;;  %v6387_v14 = vpop.f32.mrb[31].mxu1 }
 0xb58   : > { %v6817_v21 = vadd.f32 %v6715_v40, %v6386_v12 }
 0xb59   : > { %v6390_v31 = vpop.f32.mrb[32].mxu1 }
 0xb5a   : > { %6849 = vst.msk [vmem:[%s12702_s20 + $0x70] sm:$0xff] %vm3259_vm2, %v6817_v21  ;;  %v6391_v20 = vadd.f32 %v12690_v8, %v6390_v31  ;;  %v6392_v37 = vpop.f32.mrb[33].mxu1 }
 0xb5c   : > { %v6818_v33 = vadd.f32 %v6720_v1, %v6391_v20 }
 0xb5d   : > { %v6395_v30 = vpop.f32.mrb[34].mxu1 }
 0xb5e   : > { %6850 = vst.msk [vmem:[%s12702_s20 + $0x78] sm:$0xff] %vm3259_vm2, %v6818_v33  ;;  %v6396_v54 = vadd.f32 %v12690_v8, %v6395_v30  ;;  %v6397_v9 = vpop.f32.mrb[35].mxu1 }
 0xb60   : > { %v6819_v52 = vadd.f32 %v6725_v27, %v6396_v54 }
 0xb61   : > { %v6400_v19 = vpop.f32.mrb[36].mxu1 }
 0xb62   : > { %6851 = vst.msk [vmem:[%s12702_s20 + $0x80] sm:$0xff] %vm3259_vm2, %v6819_v52  ;;  %v6401_v44 = vadd.f32 %v12690_v8, %v6400_v19  ;;  %v6402_v63 = vpop.f32.mrb[37].mxu1 }
 0xb64   : > { %v6820_v47 = vadd.f32 %v6730_v7, %v6401_v44 }
 0xb65   : > { %v6405_v28 = vpop.f32.mrb[38].mxu1 }
 0xb66   : > { %6852 = vst.msk [vmem:[%s12702_s20 + $0x88] sm:$0xff] %vm3259_vm2, %v6820_v47  ;;  %v6406_v55 = vadd.f32 %v12690_v8, %v6405_v28  ;;  %v6407_v5 = vpop.f32.mrb[39].mxu1 }
 0xb68   : > { %v6821_v6 = vadd.f32 %v6735_v16, %v6406_v55 }
 0xb69   : > { %v6410_v62 = vpop.f32.mrb[40].mxu1 }
 0xb6a   : > { %6853 = vst.msk [vmem:[%s12702_s20 + $0x90] sm:$0xff] %vm3259_vm2, %v6821_v6  ;;  %v6411_v23 = vadd.f32 %v12690_v8, %v6410_v62  ;;  %v6412_v36 = vpop.f32.mrb[41].mxu1 }
 0xb6c   : > { %v6822_v39 = vadd.f32 %v6740_v32, %v6411_v23 }
 0xb6d   : > { %v6415_v43 = vpop.f32.mrb[42].mxu1 }
 0xb6e   : > { %6854 = vst.msk [vmem:[%s12702_s20 + $0x98] sm:$0xff] %vm3259_vm2, %v6822_v39  ;;  %v6416_v34 = vadd.f32 %v12690_v8, %v6415_v43  ;;  %v6417_v58 = vpop.f32.mrb[43].mxu1 }
 0xb70   : > { %v6823_v13 = vadd.f32 %v6745_v59, %v6416_v34 }
 0xb71   : > { %v6420_v10 = vpop.f32.mrb[44].mxu1 }
 0xb72   : > { %6855 = vst.msk [vmem:[%s12702_s20 + $0xa0] sm:$0xff] %vm3259_vm2, %v6823_v13  ;;  %v6421_v29 = vadd.f32 %v12690_v8, %v6420_v10  ;;  %v6422_v50 = vpop.f32.mrb[45].mxu1 }
 0xb74   : > { %v6824_v48 = vadd.f32 %v6750_v35, %v6421_v29 }
 0xb76   : > { %6856 = vst.msk [vmem:[%s12702_s20 + $0xa8] sm:$0xff] %vm3259_vm2, %v6824_v48  ;;  %v6425_v53 = vpop.f32.mrb[46].mxu1 }
 0xb77   : > { %v6426_v2 = vadd.f32 %v12690_v8, %v6425_v53  ;;  %v6427_v57 = vpop.f32.mrb[47].mxu1 }
 0xb79   : > { %v6825_v0 = vadd.f32 %v6755_v24, %v6426_v2 }
 0xb7a   : > { %v6430_v3 = vpop.f32.mrb[48].mxu1 }
 0xb7b   : > { %6857 = vst.msk [vmem:[%s12702_s20 + $0xb0] sm:$0xff] %vm3259_vm2, %v6825_v0  ;;  %v6431_v45 = vadd.f32 %v12690_v8, %v6430_v3  ;;  %v6432_v11 = vpop.f32.mrb[49].mxu1 }
 0xb7d   : > { %v6826_v26 = vadd.f32 %v6760_v15, %v6431_v45 }
 0xb7e   : > { %v6435_v51 = vpop.f32.mrb[50].mxu1 }
 0xb7f   : > { %6858 = vst.msk [vmem:[%s12702_s20 + $0xb8] sm:$0xff] %vm3259_vm2, %v6826_v26  ;;  %v6436_v41 = vadd.f32 %v12690_v8, %v6435_v51  ;;  %v6437_v40 = vpop.f32.mrb[51].mxu1 }
 0xb81   : > { %v6827_v60 = vadd.f32 %v6765_v4, %v6436_v41 }
 0xb82   : > { %v6440_v12 = vpop.f32.mrb[52].mxu1 }
 0xb83   : > { %6859 = vst.msk [vmem:[%s12702_s20 + $0xc0] sm:$0xff] %vm3259_vm2, %v6827_v60  ;;  %v6441_v14 = vadd.f32 %v12690_v8, %v6440_v12  ;;  %v6442_v1 = vpop.f32.mrb[53].mxu1 }
 0xb85   : > { %v6828_v21 = vadd.f32 %v6770_v17, %v6441_v14 }
 0xb86   : > { %v6445_v31 = vpop.f32.mrb[54].mxu1 }
 0xb87   : > { %6860 = vst.msk [vmem:[%s12702_s20 + $0xc8] sm:$0xff] %vm3259_vm2, %v6828_v21  ;;  %v6446_v20 = vadd.f32 %v12690_v8, %v6445_v31  ;;  %v6447_v37 = vpop.f32.mrb[55].mxu1 }
 0xb89   : > { %v6829_v33 = vadd.f32 %v6775_v42, %v6446_v20 }
 0xb8a   : > { %v6450_v27 = vpop.f32.mrb[56].mxu1 }
 0xb8b   : > { %6861 = vst.msk [vmem:[%s12702_s20 + $0xd0] sm:$0xff] %vm3259_vm2, %v6829_v33  ;;  %v6451_v30 = vadd.f32 %v12690_v8, %v6450_v27  ;;  %v6452_v54 = vpop.f32.mrb[57].mxu1 }
 0xb8d   : > { %v6830_v9 = vadd.f32 %v6780_v61, %v6451_v30 }
 0xb8f   : > { %6862 = vst.msk [vmem:[%s12702_s20 + $0xd8] sm:$0xff] %vm3259_vm2, %v6830_v9 }
 0xb91   : > { %v6455_v7 = vpop.f32.mrb[58].mxu1 }
 0xb92   : > { %v6456_v52 = vadd.f32 %v12690_v8, %v6455_v7  ;;  %v6457_v19 = vpop.f32.mrb[59].mxu1 }
 0xb94   : > { %v6831_v44 = vadd.f32 %v6785_v46, %v6456_v52 }
 0xb95   : > { %v6460_v63 = vpop.f32.mrb[60].mxu1 }
 0xb96   : > { %6863 = vst.msk [vmem:[%s12702_s20 + $0xe0] sm:$0xff] %vm3259_vm2, %v6831_v44  ;;  %v6461_v47 = vadd.f32 %v12690_v8, %v6460_v63  ;;  %v6462_v16 = vpop.f32.mrb[61].mxu1 }
 0xb98   : > { %v6832_v28 = vadd.f32 %v6790_v38, %v6461_v47 }
 0xb99   : > { %v6465_v55 = vpop.f32.mrb[62].mxu1 }
 0xb9a   : > { %6864 = vst.msk [vmem:[%s12702_s20 + $0xe8] sm:$0xff] %vm3259_vm2, %v6832_v28  ;;  %v6466_v5 = vadd.f32 %v12690_v8, %v6465_v55  ;;  %v6467_v32 = vpop.f32.mrb[63].mxu1 }
 0xb9c   : > { %v6833_v6 = vadd.f32 %v6795_v25, %v6466_v5 }
 0xb9d   : > { %v6470_v62 = vpop.f32.mrb[64].mxu1 }
 0xb9e   : > { %6865 = vst.msk [vmem:[%s12702_s20 + $0xf0] sm:$0xff] %vm3259_vm2, %v6833_v6  ;;  %v6471_v23 = vadd.f32 %v12690_v8, %v6470_v62  ;;  %v6472_v36 = vpop.f32.mrb[65].mxu1 }
 0xba0   : > { %v6834_v39 = vadd.f32 %v6800_v49, %v6471_v23 }
 0xba2   : > { %6866 = vst.msk [vmem:[%s12702_s20 + $0xf8] sm:$0xff] %vm3259_vm2, %v6834_v39 }
 0xba3 PF: > { %s28_s27 = sadd.s32 1, %s8416_s27  }
 0xba4   : > { %p25_p4 = scmp.ge.s32.totalorder %s28_s27, 4  }
 0xba6   :  { %27 = sbr.rel (!%p25_p4) target bundleno = 4 (0x4), region = 125 }

</bundles_post_ra>
